<compile_context>
chip_gen: v7x
topology: tpu7x:2x2x1
jax: 0.10.0
libtpu: 0.0.40
codegen_flags: <defaults>
</compile_context>

<pallas_src>
import functools

import jax
import jax.numpy as jnp
from jax.experimental import pallas as pl
from jax.experimental.pallas import tpu as pltpu

# Architecture constants (84x84 input is forced by fc4 = 7*7*64).
H_IN = W_IN = 84
OH1 = OW1 = 20          # conv1: k=8, s=4
OH2 = OW2 = 9           # conv2: k=4, s=2
OH3 = OW3 = 7           # conv3: k=3, s=1
C1, C2, C3 = 32, 64, 64
K1 = 4 * 8 * 8          # conv1 im2col contraction (C_in * 8 * 8)
FC4 = 512
HEAD_PAD = 128          # head output padded to a full lane register (sliced in wrapper)

# "Wide" row counts: conv2/conv3 are evaluated over a slightly larger row space so
# that every (ki,kj) tap is ONE contiguous row-read of the previous layer's scratch.
# Valid output (y,x) sits at wide row 20*y + x; extra rows are harmless junk.
W2ROWS = 20 * (OH2 - 1) + OW2     # 169
W3ROWS = 20 * (OH3 - 1) + OW3     # 127
HALF1 = OH1 * OW1 // 2            # 200: start of odd-x conv1 rows (even/odd reorder)


def _choose_conv_block(batch):
    """Images per conv grid step: >=2 steps whenever B>=2, VMEM ~4 MB at G=16."""
    if batch >= 32:
        return 16
    if batch >= 2:
        return max(1, batch // 2)
    return 1


def _choose_fc_tile(batch):
    """fc M-tile: multiple of 8, <=128, >=2 grid steps once B >= 16 (megacore)."""
    if batch < 16:
        return batch
    return min(128, ((batch // 2 + 7) // 8) * 8)


# ----------------------------------------------------------------------------
# Kernel 1: fused conv1 -> conv2 -> conv3 (G images per grid step)
# ----------------------------------------------------------------------------
def _conv_stack_kernel(p1_ref, w1_ref, b1_ref, w2_ref, b2_ref, w3_ref, b3_ref,
                       out_ref, h1_scr, h2_scr):
    g_per_step = h1_scr.shape[0]

    def per_image(g, carry):
        # conv1: im2col GEMM, K=256.  Patches are int8 (shifted by -128); the /255
        # scale and +128 correction are folded into w1/b1.  Result rows are in
        # even/odd-x order (rows [0,200): x even at 10*y+x/2; [200,400): x odd).
        patches = p1_ref[g].astype(jnp.bfloat16)                       # (400, 256)
        h1 = jnp.dot(patches, w1_ref[...], preferred_element_type=jnp.float32)
        h1 = jnp.maximum(h1 + b1_ref[...], 0.0)
        h1_scr[g] = h1.astype(jnp.bfloat16)

        # conv2 (4x4, stride 2): thanks to the even/odd row order every tap is one
        # CONTIGUOUS 169-row read (original read would be stride-2 over sublanes).
        acc2 = jnp.zeros((W2ROWS, C2), jnp.float32)
        for ki in range(4):
            for kj in range(4):
                o = ki * OW1 + kj
                base = o // 2 + (0 if o % 2 == 0 else HALF1)
                lhs = h1_scr[g, pl.ds(base, W2ROWS), :]                # (169, 32) bf16
                wblk = w2_ref[(ki * 4 + kj) * C1:(ki * 4 + kj + 1) * C1, :]
                acc2 = acc2 + jnp.dot(lhs, wblk,
                                      preferred_element_type=jnp.float32)
        h2 = jnp.maximum(acc2 + b2_ref[...], 0.0)      # valid h2[y,x] at row 20*y+x
        h2_scr[g] = h2.astype(jnp.bfloat16)

        # conv3 (3x3, stride 1): each tap is one contiguous 127-row read of wide h2.
        acc3 = jnp.zeros((W3ROWS, C3), jnp.float32)
        for ki in range(3):
            for kj in range(3):
                lhs = h2_scr[g, pl.ds(ki * 20 + kj, W3ROWS), :]        # (127, 64) bf16
                wblk = w3_ref[(ki * 3 + kj) * C2:(ki * 3 + kj + 1) * C2, :]
                acc3 = acc3 + jnp.dot(lhs, wblk,
                                      preferred_element_type=jnp.float32)
        h3 = jnp.maximum(acc3 + b3_ref[...], 0.0)

        # Compact valid rows: wide row 20*y+x -> output row 7*y+x (order (y, x, c)).
        for y3 in range(OH3):
            out_ref[g, pl.ds(y3 * OW3, OW3), :] = (
                h3[20 * y3:20 * y3 + OW3, :].astype(jnp.bfloat16))
        return carry

    jax.lax.fori_loop(0, g_per_step, per_image, 0)


def conv_stack(patches1, w1m, b1m, w2m, b2m, w3m, b3m):
    B = patches1.shape[0]
    G = _choose_conv_block(B)
    grid_spec = pltpu.PrefetchScalarGridSpec(
        num_scalar_prefetch=0,
        grid=(pl.cdiv(B, G),),
        in_specs=[
            pl.BlockSpec((G, OH1 * OW1, K1), lambda i: (i, 0, 0)),
            pl.BlockSpec((K1, C1), lambda i: (0, 0)),
            pl.BlockSpec((1, C1), lambda i: (0, 0)),
            pl.BlockSpec((16 * C1, C2), lambda i: (0, 0)),
            pl.BlockSpec((1, C2), lambda i: (0, 0)),
            pl.BlockSpec((9 * C2, C3), lambda i: (0, 0)),
            pl.BlockSpec((1, C3), lambda i: (0, 0)),
        ],
        out_specs=pl.BlockSpec((G, OH3 * OW3, C3), lambda i: (i, 0, 0)),
        scratch_shapes=[
            pltpu.VMEM((G, OH1 * OW1, C1), jnp.bfloat16),   # h1, even/odd row order
            pltpu.VMEM((G, W2ROWS, C2), jnp.bfloat16),      # wide h2
        ],
    )
    return pl.pallas_call(
        _conv_stack_kernel,
        grid_spec=grid_spec,
        out_shape=jax.ShapeDtypeStruct((B, OH3 * OW3, C3), jnp.bfloat16),
        compiler_params=pltpu.CompilerParams(dimension_semantics=("parallel",)),
    )(patches1, w1m, b1m, w2m, b2m, w3m, b3m)


# ----------------------------------------------------------------------------
# Kernel 2: fused fc4 (+ReLU) + head, lane-padded output
# ----------------------------------------------------------------------------
def _fc_head_kernel(x_ref, w4_ref, b4_ref, wh_ref, bh_ref, out_ref):
    h4 = jnp.dot(x_ref[...], w4_ref[...], preferred_element_type=jnp.float32)
    h4 = jnp.maximum(h4 + b4_ref[...], 0.0)                               # (TM, 512)
    out = jnp.dot(h4.astype(jnp.bfloat16), wh_ref[...],
                  preferred_element_type=jnp.float32)                     # (TM, 128)
    out_ref[...] = out + bh_ref[...]


def fc_head(flat, w4m, b4m, whm, bhm):
    B, K = flat.shape
    TM = _choose_fc_tile(B)
    grid_spec = pltpu.PrefetchScalarGridSpec(
        num_scalar_prefetch=0,
        grid=(pl.cdiv(B, TM),),
        in_specs=[
            pl.BlockSpec((TM, K), lambda i: (i, 0)),
            pl.BlockSpec((K, FC4), lambda i: (0, 0)),
            pl.BlockSpec((1, FC4), lambda i: (0, 0)),
            pl.BlockSpec((FC4, HEAD_PAD), lambda i: (0, 0)),
            pl.BlockSpec((1, HEAD_PAD), lambda i: (0, 0)),
        ],
        out_specs=pl.BlockSpec((TM, HEAD_PAD), lambda i: (i, 0)),
    )
    return pl.pallas_call(
        _fc_head_kernel,
        grid_spec=grid_spec,
        out_shape=jax.ShapeDtypeStruct((B, HEAD_PAD), jnp.float32),
        compiler_params=pltpu.CompilerParams(dimension_semantics=("parallel",)),
    )(flat, w4m, b4m, whm, bhm)


# ----------------------------------------------------------------------------
# Wrapper glue: conv1 im2col on the uint8 input (the only layout op left in XLA)
# ----------------------------------------------------------------------------
def _im2col_conv1(x_nchw_u8):
    """(B, C, 84, 84) uint8 -> (B, 400, C*64) int8 patches, values shifted by -128.

    Rows [0,200) hold output positions (y, x) with x EVEN at index 10*y + x//2;
    rows [200,400) hold x ODD at 200 + 10*y + (x-1)//2.  With this order every
    conv2 kernel tap in the Pallas kernel is one contiguous 169-row read of the
    conv1 scratch.  Feature order within a row is (C, KH, KW).  The -128 shift
    keeps the 7x-expanded patch tensor at 1 byte/element (int8 -> bf16 in-kernel);
    it is corrected by a bias fold in prepare_params.
    """
    B, C, H, W = x_nchw_u8.shape
    kh = kw = 8
    stride = 4
    oh = (H - kh) // stride + 1
    ow = (W - kw) // stride + 1
    xi = (x_nchw_u8.astype(jnp.int16) - 128).astype(jnp.int8)
    cols = [xi[:, :, i:i + stride * oh:stride, j:j + stride * ow:stride]
            for i in range(kh) for j in range(kw)]
    p = jnp.stack(cols, axis=0).reshape(kh, kw, B, C, oh, ow)
    p = p.transpose(2, 4, 5, 3, 0, 1).reshape(B, oh, ow, C * kh * kw)
    p_even = p[:, :, 0::2, :].reshape(B, oh * (ow // 2), C * kh * kw)
    p_odd = p[:, :, 1::2, :].reshape(B, oh * (ow // 2), C * kh * kw)
    return jnp.concatenate([p_even, p_odd], axis=1)       # (B, 400, 256) int8


# ----------------------------------------------------------------------------
# Parameters: torch-like init, one-time kernel-ready preparation
# ----------------------------------------------------------------------------
def init_params(key, in_channels=4, n_actions=14):
    ks = jax.random.split(key, 10)

    def dense(k, shape, fan_in):
        return jax.random.normal(k, shape, jnp.float32) / jnp.sqrt(jnp.float32(fan_in))

    return {
        "w1": dense(ks[0], (32, in_channels, 8, 8), in_channels * 64),
        "b1": dense(ks[1], (32,), in_channels * 64),
        "w2": dense(ks[2], (64, 32, 4, 4), 32 * 16),
        "b2": dense(ks[3], (64,), 32 * 16),
        "w3": dense(ks[4], (64, 64, 3, 3), 64 * 9),
        "b3": dense(ks[5], (64,), 64 * 9),
        "w4": dense(ks[6], (512, 7 * 7 * 64), 7 * 7 * 64),   # torch Linear (out, in)
        "b4": dense(ks[7], (512,), 7 * 7 * 64),
        "wh": dense(ks[8], (n_actions, 512), 512),
        "bh": dense(ks[9], (n_actions,), 512),
    }


def prepare_params(params):
    """One-time (outside jit) reorder / scale / bf16-cast of weights for the kernels."""
    c_in = params["w1"].shape[1]
    # conv weights -> (K, N) GEMM matrices; row orders match the kernels' contractions.
    w1m = (params["w1"].transpose(1, 2, 3, 0).reshape(c_in * 64, C1)
           * jnp.float32(1.0 / 255.0)).astype(jnp.bfloat16)          # /255 folded in
    # Patches are shifted by -128, so fold +128 * sum_k(w1m[k, :]) into the bias
    # (computed from the bf16 weights so it exactly matches the kernel arithmetic).
    b1m = (params["b1"].reshape(1, C1)
           + 128.0 * jnp.sum(w1m.astype(jnp.float32), axis=0, keepdims=True))
    w2m = params["w2"].transpose(2, 3, 1, 0).reshape(16 * C1, C2).astype(jnp.bfloat16)
    w3m = params["w3"].transpose(2, 3, 1, 0).reshape(9 * C2, C3).astype(jnp.bfloat16)
    # fc4: permute rows from torch's (c, y, x) flatten order to the kernel's (y, x, c).
    w4m = (params["w4"].reshape(FC4, C3, OH3, OW3).transpose(2, 3, 1, 0)
           .reshape(OH3 * OW3 * C3, FC4).astype(jnp.bfloat16))
    # head: pad N to 128 lanes for a dense store; the wrapper slices back to n_actions.
    n_actions = params["wh"].shape[0]
    whm = (jnp.zeros((FC4, HEAD_PAD), jnp.float32)
           .at[:, :n_actions].set(params["wh"].T).astype(jnp.bfloat16))
    bhm = jnp.zeros((1, HEAD_PAD), jnp.float32).at[0, :n_actions].set(params["bh"])
    return {
        "w1m": w1m, "b1m": b1m,
        "w2m": w2m, "b2m": params["b2"].reshape(1, C2),
        "w3m": w3m, "b3m": params["b3"].reshape(1, C3),
        "w4m": w4m, "b4m": params["b4"].reshape(1, FC4),
        "whm": whm, "bhm": bhm,
    }


def dqn_forward(prep, x_nchw_uint8, *, n_actions=14):
    """Matches PyTorch: x.float()/255 -> 3x(conv+relu) -> fc4+relu -> head."""
    B = x_nchw_uint8.shape[0]
    patches1 = _im2col_conv1(x_nchw_uint8)                     # (B, 400, 256) int8
    h3 = conv_stack(patches1, prep["w1m"], prep["b1m"], prep["w2m"], prep["b2m"],
                    prep["w3m"], prep["b3m"])                  # (B, 49, 64) bf16
    flat = h3.reshape(B, OH3 * OW3 * C3)                       # order matches w4m rows
    out = fc_head(flat, prep["w4m"], prep["b4m"], prep["whm"], prep["bhm"])
    return out[:, :n_actions]


if __name__ == "__main__":
    key = jax.random.PRNGKey(0)
    k_x, k_p = jax.random.split(key)

    B, C, H, W = 2, 4, 84, 84                 # 84x84 forced by fc4 = 7*7*64
    x = jax.random.randint(k_x, (B, C, H, W), 0, 256, dtype=jnp.int32).astype(jnp.uint8)

    params = init_params(k_p, in_channels=C, n_actions=14)
    prep = prepare_params(params)             # one-time weight prep (outside jit)

    fwd = jax.jit(functools.partial(dqn_forward, n_actions=14))
    out = jax.block_until_ready(fwd(prep, x))

    assert out.shape == (B, 14), out.shape
    assert out.dtype == jnp.float32, out.dtype
    assert bool(jnp.all(jnp.isfinite(out)))
    print("KERNEL_OK")
</pallas_src>

<mosaic_0001>
module attributes {stable_mosaic.version = 11 : i64} {
  func.func @_conv_stack_kernel(%arg0: i32, %arg1: memref<1x400x256xi8, #tpu.memory_space<vmem>>, %arg2: memref<256x32xbf16, #tpu.memory_space<vmem>>, %arg3: memref<1x32xf32, #tpu.memory_space<vmem>>, %arg4: memref<512x64xbf16, #tpu.memory_space<vmem>>, %arg5: memref<1x64xf32, #tpu.memory_space<vmem>>, %arg6: memref<576x64xbf16, #tpu.memory_space<vmem>>, %arg7: memref<1x64xf32, #tpu.memory_space<vmem>>, %arg8: memref<1x49x64xbf16, #tpu.memory_space<vmem>>, %arg9: memref<1x400x32xbf16, #tpu.memory_space<vmem>>, %arg10: memref<1x169x64xbf16, #tpu.memory_space<vmem>>) attributes {dimension_semantics = [#tpu.dimension_semantics<parallel>], iteration_bounds = array<i64: 2>, scalar_prefetch = 0 : i64, scratch_operands = 2 : i64, tpu.core_type = #tpu.core_type<tc>, window_params = [{transform_indices = @transform_0, window_bounds = array<i64: 1, 400, 256>}, {pipeline_mode = #tpu.pipeline_mode<synchronous>, transform_indices = @transform_1, window_bounds = array<i64: 256, 32>}, {pipeline_mode = #tpu.pipeline_mode<synchronous>, transform_indices = @transform_2, window_bounds = array<i64: 1, 32>}, {pipeline_mode = #tpu.pipeline_mode<synchronous>, transform_indices = @transform_3, window_bounds = array<i64: 512, 64>}, {pipeline_mode = #tpu.pipeline_mode<synchronous>, transform_indices = @transform_4, window_bounds = array<i64: 1, 64>}, {pipeline_mode = #tpu.pipeline_mode<synchronous>, transform_indices = @transform_5, window_bounds = array<i64: 576, 64>}, {pipeline_mode = #tpu.pipeline_mode<synchronous>, transform_indices = @transform_6, window_bounds = array<i64: 1, 64>}, {transform_indices = @transform_7, window_bounds = array<i64: 1, 49, 64>}]} {
    %c0_i32 = arith.constant 0 : i32
    %0 = arith.index_cast %c0_i32 : i32 to index
    %c0 = arith.constant 0 : index
    %c0_0 = arith.constant 0 : index
    %1 = vector.load %arg1[%0, %c0, %c0_0] : memref<1x400x256xi8, #tpu.memory_space<vmem>>, vector<1x400x256xi8>
    %2 = vector.shape_cast %1 : vector<1x400x256xi8> to vector<400x256xi8>
    %3 = arith.sitofp %2 : vector<400x256xi8> to vector<400x256xbf16>
    %c0_1 = arith.constant 0 : index
    %c0_2 = arith.constant 0 : index
    %4 = vector.load %arg2[%c0_1, %c0_2] : memref<256x32xbf16, #tpu.memory_space<vmem>>, vector<256x32xbf16>
    %cst = arith.constant dense<0.000000e+00> : vector<400x32xf32>
    %5 = tpu.matmul %3, %4, %cst {dimension_numbers = #tpu.dot_dimension_numbers<[1], [0], [0], [1], [0, 0, 1, 1], [], []>} : vector<400x256xbf16>, vector<256x32xbf16>, vector<400x32xf32> -> vector<400x32xf32>
    %c0_3 = arith.constant 0 : index
    %c0_4 = arith.constant 0 : index
    %6 = vector.load %arg3[%c0_3, %c0_4] : memref<1x32xf32, #tpu.memory_space<vmem>>, vector<1x32xf32>
    %7 = vector.broadcast %6 : vector<1x32xf32> to vector<400x32xf32>
    %8 = arith.addf %5, %7 : vector<400x32xf32>
    %cst_5 = arith.constant 0.000000e+00 : f32
    %9 = vector.broadcast %cst_5 : f32 to vector<400x32xf32>
    %10 = arith.maximumf %8, %9 : vector<400x32xf32>
    %11 = arith.truncf %10 : vector<400x32xf32> to vector<400x32xbf16>
    %12 = arith.index_cast %c0_i32 : i32 to index
    %c0_6 = arith.constant 0 : index
    %c0_7 = arith.constant 0 : index
    %13 = vector.load %arg9[%12, %c0_6, %c0_7] : memref<1x400x32xbf16, #tpu.memory_space<vmem>>, vector<1x400x32xbf16>
    %14 = vector.shape_cast %13 : vector<1x400x32xbf16> to vector<400x32xbf16>
    %15 = vector.shape_cast %11 : vector<400x32xbf16> to vector<1x400x32xbf16>
    tpu.vector_store %arg9[%12, %c0_6, %c0_7], %15 {strides = array<i32>} : memref<1x400x32xbf16, #tpu.memory_space<vmem>>, vector<1x400x32xbf16>,
    %cst_8 = arith.constant 0.000000e+00 : f32
    %16 = vector.broadcast %cst_8 : f32 to vector<169x64xf32>
    %17 = arith.index_cast %c0_i32 : i32 to index
    %c0_9 = arith.constant 0 : index
    %c0_10 = arith.constant 0 : index
    %18 = vector.load %arg9[%17, %c0_9, %c0_10] : memref<1x400x32xbf16, #tpu.memory_space<vmem>>, vector<1x169x32xbf16>
    %19 = vector.shape_cast %18 : vector<1x169x32xbf16> to vector<169x32xbf16>
    %c0_11 = arith.constant 0 : index
    %c0_12 = arith.constant 0 : index
    %20 = vector.load %arg4[%c0_11, %c0_12] : memref<512x64xbf16, #tpu.memory_space<vmem>>, vector<32x64xbf16>
    %cst_13 = arith.constant dense<0.000000e+00> : vector<169x64xf32>
    %21 = tpu.matmul %19, %20, %cst_13 {dimension_numbers = #tpu.dot_dimension_numbers<[1], [0], [0], [1], [0, 0, 1, 1], [], []>} : vector<169x32xbf16>, vector<32x64xbf16>, vector<169x64xf32> -> vector<169x64xf32>
    %22 = arith.addf %16, %21 : vector<169x64xf32>
    %23 = arith.index_cast %c0_i32 : i32 to index
    %c200 = arith.constant 200 : index
    %c0_14 = arith.constant 0 : index
    %24 = vector.load %arg9[%23, %c200, %c0_14] : memref<1x400x32xbf16, #tpu.memory_space<vmem>>, vector<1x169x32xbf16>
    %25 = vector.shape_cast %24 : vector<1x169x32xbf16> to vector<169x32xbf16>
    %c32 = arith.constant 32 : index
    %c0_15 = arith.constant 0 : index
    %26 = vector.load %arg4[%c32, %c0_15] : memref<512x64xbf16, #tpu.memory_space<vmem>>, vector<32x64xbf16>
    %cst_16 = arith.constant dense<0.000000e+00> : vector<169x64xf32>
    %27 = tpu.matmul %25, %26, %cst_16 {dimension_numbers = #tpu.dot_dimension_numbers<[1], [0], [0], [1], [0, 0, 1, 1], [], []>} : vector<169x32xbf16>, vector<32x64xbf16>, vector<169x64xf32> -> vector<169x64xf32>
    %28 = arith.addf %22, %27 : vector<169x64xf32>
    %29 = arith.index_cast %c0_i32 : i32 to index
    %c1 = arith.constant 1 : index
    %c0_17 = arith.constant 0 : index
    %30 = vector.load %arg9[%29, %c1, %c0_17] : memref<1x400x32xbf16, #tpu.memory_space<vmem>>, vector<1x169x32xbf16>
    %31 = vector.shape_cast %30 : vector<1x169x32xbf16> to vector<169x32xbf16>
    %c64 = arith.constant 64 : index
    %c0_18 = arith.constant 0 : index
    %32 = vector.load %arg4[%c64, %c0_18] : memref<512x64xbf16, #tpu.memory_space<vmem>>, vector<32x64xbf16>
    %cst_19 = arith.constant dense<0.000000e+00> : vector<169x64xf32>
    %33 = tpu.matmul %31, %32, %cst_19 {dimension_numbers = #tpu.dot_dimension_numbers<[1], [0], [0], [1], [0, 0, 1, 1], [], []>} : vector<169x32xbf16>, vector<32x64xbf16>, vector<169x64xf32> -> vector<169x64xf32>
    %34 = arith.addf %28, %33 : vector<169x64xf32>
    %35 = arith.index_cast %c0_i32 : i32 to index
    %c201 = arith.constant 201 : index
    %c0_20 = arith.constant 0 : index
    %36 = vector.load %arg9[%35, %c201, %c0_20] : memref<1x400x32xbf16, #tpu.memory_space<vmem>>, vector<1x169x32xbf16>
    %37 = vector.shape_cast %36 : vector<1x169x32xbf16> to vector<169x32xbf16>
    %c96 = arith.constant 96 : index
    %c0_21 = arith.constant 0 : index
    %38 = vector.load %arg4[%c96, %c0_21] : memref<512x64xbf16, #tpu.memory_space<vmem>>, vector<32x64xbf16>
    %cst_22 = arith.constant dense<0.000000e+00> : vector<169x64xf32>
    %39 = tpu.matmul %37, %38, %cst_22 {dimension_numbers = #tpu.dot_dimension_numbers<[1], [0], [0], [1], [0, 0, 1, 1], [], []>} : vector<169x32xbf16>, vector<32x64xbf16>, vector<169x64xf32> -> vector<169x64xf32>
    %40 = arith.addf %34, %39 : vector<169x64xf32>
    %41 = arith.index_cast %c0_i32 : i32 to index
    %c10 = arith.constant 10 : index
    %c0_23 = arith.constant 0 : index
    %42 = vector.load %arg9[%41, %c10, %c0_23] : memref<1x400x32xbf16, #tpu.memory_space<vmem>>, vector<1x169x32xbf16>
    %43 = vector.shape_cast %42 : vector<1x169x32xbf16> to vector<169x32xbf16>
    %c128 = arith.constant 128 : index
    %c0_24 = arith.constant 0 : index
    %44 = vector.load %arg4[%c128, %c0_24] : memref<512x64xbf16, #tpu.memory_space<vmem>>, vector<32x64xbf16>
    %cst_25 = arith.constant dense<0.000000e+00> : vector<169x64xf32>
    %45 = tpu.matmul %43, %44, %cst_25 {dimension_numbers = #tpu.dot_dimension_numbers<[1], [0], [0], [1], [0, 0, 1, 1], [], []>} : vector<169x32xbf16>, vector<32x64xbf16>, vector<169x64xf32> -> vector<169x64xf32>
    %46 = arith.addf %40, %45 : vector<169x64xf32>
    %47 = arith.index_cast %c0_i32 : i32 to index
    %c210 = arith.constant 210 : index
    %c0_26 = arith.constant 0 : index
    %48 = vector.load %arg9[%47, %c210, %c0_26] : memref<1x400x32xbf16, #tpu.memory_space<vmem>>, vector<1x169x32xbf16>
    %49 = vector.shape_cast %48 : vector<1x169x32xbf16> to vector<169x32xbf16>
    %c160 = arith.constant 160 : index
    %c0_27 = arith.constant 0 : index
    %50 = vector.load %arg4[%c160, %c0_27] : memref<512x64xbf16, #tpu.memory_space<vmem>>, vector<32x64xbf16>
    %cst_28 = arith.constant dense<0.000000e+00> : vector<169x64xf32>
    %51 = tpu.matmul %49, %50, %cst_28 {dimension_numbers = #tpu.dot_dimension_numbers<[1], [0], [0], [1], [0, 0, 1, 1], [], []>} : vector<169x32xbf16>, vector<32x64xbf16>, vector<169x64xf32> -> vector<169x64xf32>
    %52 = arith.addf %46, %51 : vector<169x64xf32>
    %53 = arith.index_cast %c0_i32 : i32 to index
    %c11 = arith.constant 11 : index
    %c0_29 = arith.constant 0 : index
    %54 = vector.load %arg9[%53, %c11, %c0_29] : memref<1x400x32xbf16, #tpu.memory_space<vmem>>, vector<1x169x32xbf16>
    %55 = vector.shape_cast %54 : vector<1x169x32xbf16> to vector<169x32xbf16>
    %c192 = arith.constant 192 : index
    %c0_30 = arith.constant 0 : index
    %56 = vector.load %arg4[%c192, %c0_30] : memref<512x64xbf16, #tpu.memory_space<vmem>>, vector<32x64xbf16>
    %cst_31 = arith.constant dense<0.000000e+00> : vector<169x64xf32>
    %57 = tpu.matmul %55, %56, %cst_31 {dimension_numbers = #tpu.dot_dimension_numbers<[1], [0], [0], [1], [0, 0, 1, 1], [], []>} : vector<169x32xbf16>, vector<32x64xbf16>, vector<169x64xf32> -> vector<169x64xf32>
    %58 = arith.addf %52, %57 : vector<169x64xf32>
    %59 = arith.index_cast %c0_i32 : i32 to index
    %c211 = arith.constant 211 : index
    %c0_32 = arith.constant 0 : index
    %60 = vector.load %arg9[%59, %c211, %c0_32] : memref<1x400x32xbf16, #tpu.memory_space<vmem>>, vector<1x169x32xbf16>
    %61 = vector.shape_cast %60 : vector<1x169x32xbf16> to vector<169x32xbf16>
    %c224 = arith.constant 224 : index
    %c0_33 = arith.constant 0 : index
    %62 = vector.load %arg4[%c224, %c0_33] : memref<512x64xbf16, #tpu.memory_space<vmem>>, vector<32x64xbf16>
    %cst_34 = arith.constant dense<0.000000e+00> : vector<169x64xf32>
    %63 = tpu.matmul %61, %62, %cst_34 {dimension_numbers = #tpu.dot_dimension_numbers<[1], [0], [0], [1], [0, 0, 1, 1], [], []>} : vector<169x32xbf16>, vector<32x64xbf16>, vector<169x64xf32> -> vector<169x64xf32>
    %64 = arith.addf %58, %63 : vector<169x64xf32>
    %65 = arith.index_cast %c0_i32 : i32 to index
    %c20 = arith.constant 20 : index
    %c0_35 = arith.constant 0 : index
    %66 = vector.load %arg9[%65, %c20, %c0_35] : memref<1x400x32xbf16, #tpu.memory_space<vmem>>, vector<1x169x32xbf16>
    %67 = vector.shape_cast %66 : vector<1x169x32xbf16> to vector<169x32xbf16>
    %c256 = arith.constant 256 : index
    %c0_36 = arith.constant 0 : index
    %68 = vector.load %arg4[%c256, %c0_36] : memref<512x64xbf16, #tpu.memory_space<vmem>>, vector<32x64xbf16>
    %cst_37 = arith.constant dense<0.000000e+00> : vector<169x64xf32>
    %69 = tpu.matmul %67, %68, %cst_37 {dimension_numbers = #tpu.dot_dimension_numbers<[1], [0], [0], [1], [0, 0, 1, 1], [], []>} : vector<169x32xbf16>, vector<32x64xbf16>, vector<169x64xf32> -> vector<169x64xf32>
    %70 = arith.addf %64, %69 : vector<169x64xf32>
    %71 = arith.index_cast %c0_i32 : i32 to index
    %c220 = arith.constant 220 : index
    %c0_38 = arith.constant 0 : index
    %72 = vector.load %arg9[%71, %c220, %c0_38] : memref<1x400x32xbf16, #tpu.memory_space<vmem>>, vector<1x169x32xbf16>
    %73 = vector.shape_cast %72 : vector<1x169x32xbf16> to vector<169x32xbf16>
    %c288 = arith.constant 288 : index
    %c0_39 = arith.constant 0 : index
    %74 = vector.load %arg4[%c288, %c0_39] : memref<512x64xbf16, #tpu.memory_space<vmem>>, vector<32x64xbf16>
    %cst_40 = arith.constant dense<0.000000e+00> : vector<169x64xf32>
    %75 = tpu.matmul %73, %74, %cst_40 {dimension_numbers = #tpu.dot_dimension_numbers<[1], [0], [0], [1], [0, 0, 1, 1], [], []>} : vector<169x32xbf16>, vector<32x64xbf16>, vector<169x64xf32> -> vector<169x64xf32>
    %76 = arith.addf %70, %75 : vector<169x64xf32>
    %77 = arith.index_cast %c0_i32 : i32 to index
    %c21 = arith.constant 21 : index
    %c0_41 = arith.constant 0 : index
    %78 = vector.load %arg9[%77, %c21, %c0_41] : memref<1x400x32xbf16, #tpu.memory_space<vmem>>, vector<1x169x32xbf16>
    %79 = vector.shape_cast %78 : vector<1x169x32xbf16> to vector<169x32xbf16>
    %c320 = arith.constant 320 : index
    %c0_42 = arith.constant 0 : index
    %80 = vector.load %arg4[%c320, %c0_42] : memref<512x64xbf16, #tpu.memory_space<vmem>>, vector<32x64xbf16>
    %cst_43 = arith.constant dense<0.000000e+00> : vector<169x64xf32>
    %81 = tpu.matmul %79, %80, %cst_43 {dimension_numbers = #tpu.dot_dimension_numbers<[1], [0], [0], [1], [0, 0, 1, 1], [], []>} : vector<169x32xbf16>, vector<32x64xbf16>, vector<169x64xf32> -> vector<169x64xf32>
    %82 = arith.addf %76, %81 : vector<169x64xf32>
    %83 = arith.index_cast %c0_i32 : i32 to index
    %c221 = arith.constant 221 : index
    %c0_44 = arith.constant 0 : index
    %84 = vector.load %arg9[%83, %c221, %c0_44] : memref<1x400x32xbf16, #tpu.memory_space<vmem>>, vector<1x169x32xbf16>
    %85 = vector.shape_cast %84 : vector<1x169x32xbf16> to vector<169x32xbf16>
    %c352 = arith.constant 352 : index
    %c0_45 = arith.constant 0 : index
    %86 = vector.load %arg4[%c352, %c0_45] : memref<512x64xbf16, #tpu.memory_space<vmem>>, vector<32x64xbf16>
    %cst_46 = arith.constant dense<0.000000e+00> : vector<169x64xf32>
    %87 = tpu.matmul %85, %86, %cst_46 {dimension_numbers = #tpu.dot_dimension_numbers<[1], [0], [0], [1], [0, 0, 1, 1], [], []>} : vector<169x32xbf16>, vector<32x64xbf16>, vector<169x64xf32> -> vector<169x64xf32>
    %88 = arith.addf %82, %87 : vector<169x64xf32>
    %89 = arith.index_cast %c0_i32 : i32 to index
    %c30 = arith.constant 30 : index
    %c0_47 = arith.constant 0 : index
    %90 = vector.load %arg9[%89, %c30, %c0_47] : memref<1x400x32xbf16, #tpu.memory_space<vmem>>, vector<1x169x32xbf16>
    %91 = vector.shape_cast %90 : vector<1x169x32xbf16> to vector<169x32xbf16>
    %c384 = arith.constant 384 : index
    %c0_48 = arith.constant 0 : index
    %92 = vector.load %arg4[%c384, %c0_48] : memref<512x64xbf16, #tpu.memory_space<vmem>>, vector<32x64xbf16>
    %cst_49 = arith.constant dense<0.000000e+00> : vector<169x64xf32>
    %93 = tpu.matmul %91, %92, %cst_49 {dimension_numbers = #tpu.dot_dimension_numbers<[1], [0], [0], [1], [0, 0, 1, 1], [], []>} : vector<169x32xbf16>, vector<32x64xbf16>, vector<169x64xf32> -> vector<169x64xf32>
    %94 = arith.addf %88, %93 : vector<169x64xf32>
    %95 = arith.index_cast %c0_i32 : i32 to index
    %c230 = arith.constant 230 : index
    %c0_50 = arith.constant 0 : index
    %96 = vector.load %arg9[%95, %c230, %c0_50] : memref<1x400x32xbf16, #tpu.memory_space<vmem>>, vector<1x169x32xbf16>
    %97 = vector.shape_cast %96 : vector<1x169x32xbf16> to vector<169x32xbf16>
    %c416 = arith.constant 416 : index
    %c0_51 = arith.constant 0 : index
    %98 = vector.load %arg4[%c416, %c0_51] : memref<512x64xbf16, #tpu.memory_space<vmem>>, vector<32x64xbf16>
    %cst_52 = arith.constant dense<0.000000e+00> : vector<169x64xf32>
    %99 = tpu.matmul %97, %98, %cst_52 {dimension_numbers = #tpu.dot_dimension_numbers<[1], [0], [0], [1], [0, 0, 1, 1], [], []>} : vector<169x32xbf16>, vector<32x64xbf16>, vector<169x64xf32> -> vector<169x64xf32>
    %100 = arith.addf %94, %99 : vector<169x64xf32>
    %101 = arith.index_cast %c0_i32 : i32 to index
    %c31 = arith.constant 31 : index
    %c0_53 = arith.constant 0 : index
    %102 = vector.load %arg9[%101, %c31, %c0_53] : memref<1x400x32xbf16, #tpu.memory_space<vmem>>, vector<1x169x32xbf16>
    %103 = vector.shape_cast %102 : vector<1x169x32xbf16> to vector<169x32xbf16>
    %c448 = arith.constant 448 : index
    %c0_54 = arith.constant 0 : index
    %104 = vector.load %arg4[%c448, %c0_54] : memref<512x64xbf16, #tpu.memory_space<vmem>>, vector<32x64xbf16>
    %cst_55 = arith.constant dense<0.000000e+00> : vector<169x64xf32>
    %105 = tpu.matmul %103, %104, %cst_55 {dimension_numbers = #tpu.dot_dimension_numbers<[1], [0], [0], [1], [0, 0, 1, 1], [], []>} : vector<169x32xbf16>, vector<32x64xbf16>, vector<169x64xf32> -> vector<169x64xf32>
    %106 = arith.addf %100, %105 : vector<169x64xf32>
    %107 = arith.index_cast %c0_i32 : i32 to index
    %c231 = arith.constant 231 : index
    %c0_56 = arith.constant 0 : index
    %108 = vector.load %arg9[%107, %c231, %c0_56] : memref<1x400x32xbf16, #tpu.memory_space<vmem>>, vector<1x169x32xbf16>
    %109 = vector.shape_cast %108 : vector<1x169x32xbf16> to vector<169x32xbf16>
    %c480 = arith.constant 480 : index
    %c0_57 = arith.constant 0 : index
    %110 = vector.load %arg4[%c480, %c0_57] : memref<512x64xbf16, #tpu.memory_space<vmem>>, vector<32x64xbf16>
    %cst_58 = arith.constant dense<0.000000e+00> : vector<169x64xf32>
    %111 = tpu.matmul %109, %110, %cst_58 {dimension_numbers = #tpu.dot_dimension_numbers<[1], [0], [0], [1], [0, 0, 1, 1], [], []>} : vector<169x32xbf16>, vector<32x64xbf16>, vector<169x64xf32> -> vector<169x64xf32>
    %112 = arith.addf %106, %111 : vector<169x64xf32>
    %c0_59 = arith.constant 0 : index
    %c0_60 = arith.constant 0 : index
    %113 = vector.load %arg5[%c0_59, %c0_60] : memref<1x64xf32, #tpu.memory_space<vmem>>, vector<1x64xf32>
    %114 = vector.broadcast %113 : vector<1x64xf32> to vector<169x64xf32>
    %115 = arith.addf %112, %114 : vector<169x64xf32>
    %cst_61 = arith.constant 0.000000e+00 : f32
    %116 = vector.broadcast %cst_61 : f32 to vector<169x64xf32>
    %117 = arith.maximumf %115, %116 : vector<169x64xf32>
    %118 = arith.truncf %117 : vector<169x64xf32> to vector<169x64xbf16>
    %119 = arith.index_cast %c0_i32 : i32 to index
    %c0_62 = arith.constant 0 : index
    %c0_63 = arith.constant 0 : index
    %120 = vector.load %arg10[%119, %c0_62, %c0_63] : memref<1x169x64xbf16, #tpu.memory_space<vmem>>, vector<1x169x64xbf16>
    %121 = vector.shape_cast %120 : vector<1x169x64xbf16> to vector<169x64xbf16>
    %122 = vector.shape_cast %118 : vector<169x64xbf16> to vector<1x169x64xbf16>
    tpu.vector_store %arg10[%119, %c0_62, %c0_63], %122 {strides = array<i32>} : memref<1x169x64xbf16, #tpu.memory_space<vmem>>, vector<1x169x64xbf16>,
    %cst_64 = arith.constant 0.000000e+00 : f32
    %123 = vector.broadcast %cst_64 : f32 to vector<127x64xf32>
    %124 = arith.index_cast %c0_i32 : i32 to index
    %c0_65 = arith.constant 0 : index
    %c0_66 = arith.constant 0 : index
    %125 = vector.load %arg10[%124, %c0_65, %c0_66] : memref<1x169x64xbf16, #tpu.memory_space<vmem>>, vector<1x127x64xbf16>
    %126 = vector.shape_cast %125 : vector<1x127x64xbf16> to vector<127x64xbf16>
    %c0_67 = arith.constant 0 : index
    %c0_68 = arith.constant 0 : index
    %127 = vector.load %arg6[%c0_67, %c0_68] : memref<576x64xbf16, #tpu.memory_space<vmem>>, vector<64x64xbf16>
    %cst_69 = arith.constant dense<0.000000e+00> : vector<127x64xf32>
    %128 = tpu.matmul %126, %127, %cst_69 {dimension_numbers = #tpu.dot_dimension_numbers<[1], [0], [0], [1], [0, 0, 1, 1], [], []>} : vector<127x64xbf16>, vector<64x64xbf16>, vector<127x64xf32> -> vector<127x64xf32>
    %129 = arith.addf %123, %128 : vector<127x64xf32>
    %130 = arith.index_cast %c0_i32 : i32 to index
    %c1_70 = arith.constant 1 : index
    %c0_71 = arith.constant 0 : index
    %131 = vector.load %arg10[%130, %c1_70, %c0_71] : memref<1x169x64xbf16, #tpu.memory_space<vmem>>, vector<1x127x64xbf16>
    %132 = vector.shape_cast %131 : vector<1x127x64xbf16> to vector<127x64xbf16>
    %c64_72 = arith.constant 64 : index
    %c0_73 = arith.constant 0 : index
    %133 = vector.load %arg6[%c64_72, %c0_73] : memref<576x64xbf16, #tpu.memory_space<vmem>>, vector<64x64xbf16>
    %cst_74 = arith.constant dense<0.000000e+00> : vector<127x64xf32>
    %134 = tpu.matmul %132, %133, %cst_74 {dimension_numbers = #tpu.dot_dimension_numbers<[1], [0], [0], [1], [0, 0, 1, 1], [], []>} : vector<127x64xbf16>, vector<64x64xbf16>, vector<127x64xf32> -> vector<127x64xf32>
    %135 = arith.addf %129, %134 : vector<127x64xf32>
    %136 = arith.index_cast %c0_i32 : i32 to index
    %c2 = arith.constant 2 : index
    %c0_75 = arith.constant 0 : index
    %137 = vector.load %arg10[%136, %c2, %c0_75] : memref<1x169x64xbf16, #tpu.memory_space<vmem>>, vector<1x127x64xbf16>
    %138 = vector.shape_cast %137 : vector<1x127x64xbf16> to vector<127x64xbf16>
    %c128_76 = arith.constant 128 : index
    %c0_77 = arith.constant 0 : index
    %139 = vector.load %arg6[%c128_76, %c0_77] : memref<576x64xbf16, #tpu.memory_space<vmem>>, vector<64x64xbf16>
    %cst_78 = arith.constant dense<0.000000e+00> : vector<127x64xf32>
    %140 = tpu.matmul %138, %139, %cst_78 {dimension_numbers = #tpu.dot_dimension_numbers<[1], [0], [0], [1], [0, 0, 1, 1], [], []>} : vector<127x64xbf16>, vector<64x64xbf16>, vector<127x64xf32> -> vector<127x64xf32>
    %141 = arith.addf %135, %140 : vector<127x64xf32>
    %142 = arith.index_cast %c0_i32 : i32 to index
    %c20_79 = arith.constant 20 : index
    %c0_80 = arith.constant 0 : index
    %143 = vector.load %arg10[%142, %c20_79, %c0_80] : memref<1x169x64xbf16, #tpu.memory_space<vmem>>, vector<1x127x64xbf16>
    %144 = vector.shape_cast %143 : vector<1x127x64xbf16> to vector<127x64xbf16>
    %c192_81 = arith.constant 192 : index
    %c0_82 = arith.constant 0 : index
    %145 = vector.load %arg6[%c192_81, %c0_82] : memref<576x64xbf16, #tpu.memory_space<vmem>>, vector<64x64xbf16>
    %cst_83 = arith.constant dense<0.000000e+00> : vector<127x64xf32>
    %146 = tpu.matmul %144, %145, %cst_83 {dimension_numbers = #tpu.dot_dimension_numbers<[1], [0], [0], [1], [0, 0, 1, 1], [], []>} : vector<127x64xbf16>, vector<64x64xbf16>, vector<127x64xf32> -> vector<127x64xf32>
    %147 = arith.addf %141, %146 : vector<127x64xf32>
    %148 = arith.index_cast %c0_i32 : i32 to index
    %c21_84 = arith.constant 21 : index
    %c0_85 = arith.constant 0 : index
    %149 = vector.load %arg10[%148, %c21_84, %c0_85] : memref<1x169x64xbf16, #tpu.memory_space<vmem>>, vector<1x127x64xbf16>
    %150 = vector.shape_cast %149 : vector<1x127x64xbf16> to vector<127x64xbf16>
    %c256_86 = arith.constant 256 : index
    %c0_87 = arith.constant 0 : index
    %151 = vector.load %arg6[%c256_86, %c0_87] : memref<576x64xbf16, #tpu.memory_space<vmem>>, vector<64x64xbf16>
    %cst_88 = arith.constant dense<0.000000e+00> : vector<127x64xf32>
    %152 = tpu.matmul %150, %151, %cst_88 {dimension_numbers = #tpu.dot_dimension_numbers<[1], [0], [0], [1], [0, 0, 1, 1], [], []>} : vector<127x64xbf16>, vector<64x64xbf16>, vector<127x64xf32> -> vector<127x64xf32>
    %153 = arith.addf %147, %152 : vector<127x64xf32>
    %154 = arith.index_cast %c0_i32 : i32 to index
    %c22 = arith.constant 22 : index
    %c0_89 = arith.constant 0 : index
    %155 = vector.load %arg10[%154, %c22, %c0_89] : memref<1x169x64xbf16, #tpu.memory_space<vmem>>, vector<1x127x64xbf16>
    %156 = vector.shape_cast %155 : vector<1x127x64xbf16> to vector<127x64xbf16>
    %c320_90 = arith.constant 320 : index
    %c0_91 = arith.constant 0 : index
    %157 = vector.load %arg6[%c320_90, %c0_91] : memref<576x64xbf16, #tpu.memory_space<vmem>>, vector<64x64xbf16>
    %cst_92 = arith.constant dense<0.000000e+00> : vector<127x64xf32>
    %158 = tpu.matmul %156, %157, %cst_92 {dimension_numbers = #tpu.dot_dimension_numbers<[1], [0], [0], [1], [0, 0, 1, 1], [], []>} : vector<127x64xbf16>, vector<64x64xbf16>, vector<127x64xf32> -> vector<127x64xf32>
    %159 = arith.addf %153, %158 : vector<127x64xf32>
    %160 = arith.index_cast %c0_i32 : i32 to index
    %c40 = arith.constant 40 : index
    %c0_93 = arith.constant 0 : index
    %161 = vector.load %arg10[%160, %c40, %c0_93] : memref<1x169x64xbf16, #tpu.memory_space<vmem>>, vector<1x127x64xbf16>
    %162 = vector.shape_cast %161 : vector<1x127x64xbf16> to vector<127x64xbf16>
    %c384_94 = arith.constant 384 : index
    %c0_95 = arith.constant 0 : index
    %163 = vector.load %arg6[%c384_94, %c0_95] : memref<576x64xbf16, #tpu.memory_space<vmem>>, vector<64x64xbf16>
    %cst_96 = arith.constant dense<0.000000e+00> : vector<127x64xf32>
    %164 = tpu.matmul %162, %163, %cst_96 {dimension_numbers = #tpu.dot_dimension_numbers<[1], [0], [0], [1], [0, 0, 1, 1], [], []>} : vector<127x64xbf16>, vector<64x64xbf16>, vector<127x64xf32> -> vector<127x64xf32>
    %165 = arith.addf %159, %164 : vector<127x64xf32>
    %166 = arith.index_cast %c0_i32 : i32 to index
    %c41 = arith.constant 41 : index
    %c0_97 = arith.constant 0 : index
    %167 = vector.load %arg10[%166, %c41, %c0_97] : memref<1x169x64xbf16, #tpu.memory_space<vmem>>, vector<1x127x64xbf16>
    %168 = vector.shape_cast %167 : vector<1x127x64xbf16> to vector<127x64xbf16>
    %c448_98 = arith.constant 448 : index
    %c0_99 = arith.constant 0 : index
    %169 = vector.load %arg6[%c448_98, %c0_99] : memref<576x64xbf16, #tpu.memory_space<vmem>>, vector<64x64xbf16>
    %cst_100 = arith.constant dense<0.000000e+00> : vector<127x64xf32>
    %170 = tpu.matmul %168, %169, %cst_100 {dimension_numbers = #tpu.dot_dimension_numbers<[1], [0], [0], [1], [0, 0, 1, 1], [], []>} : vector<127x64xbf16>, vector<64x64xbf16>, vector<127x64xf32> -> vector<127x64xf32>
    %171 = arith.addf %165, %170 : vector<127x64xf32>
    %172 = arith.index_cast %c0_i32 : i32 to index
    %c42 = arith.constant 42 : index
    %c0_101 = arith.constant 0 : index
    %173 = vector.load %arg10[%172, %c42, %c0_101] : memref<1x169x64xbf16, #tpu.memory_space<vmem>>, vector<1x127x64xbf16>
    %174 = vector.shape_cast %173 : vector<1x127x64xbf16> to vector<127x64xbf16>
    %c512 = arith.constant 512 : index
    %c0_102 = arith.constant 0 : index
    %175 = vector.load %arg6[%c512, %c0_102] : memref<576x64xbf16, #tpu.memory_space<vmem>>, vector<64x64xbf16>
    %cst_103 = arith.constant dense<0.000000e+00> : vector<127x64xf32>
    %176 = tpu.matmul %174, %175, %cst_103 {dimension_numbers = #tpu.dot_dimension_numbers<[1], [0], [0], [1], [0, 0, 1, 1], [], []>} : vector<127x64xbf16>, vector<64x64xbf16>, vector<127x64xf32> -> vector<127x64xf32>
    %177 = arith.addf %171, %176 : vector<127x64xf32>
    %c0_104 = arith.constant 0 : index
    %c0_105 = arith.constant 0 : index
    %178 = vector.load %arg7[%c0_104, %c0_105] : memref<1x64xf32, #tpu.memory_space<vmem>>, vector<1x64xf32>
    %179 = vector.broadcast %178 : vector<1x64xf32> to vector<127x64xf32>
    %180 = arith.addf %177, %179 : vector<127x64xf32>
    %cst_106 = arith.constant 0.000000e+00 : f32
    %181 = vector.broadcast %cst_106 : f32 to vector<127x64xf32>
    %182 = arith.maximumf %180, %181 : vector<127x64xf32>
    %183 = vector.extract_strided_slice %182 {offsets = [0, 0], sizes = [7, 64], strides = [1, 1]} : vector<127x64xf32> to vector<7x64xf32>
    %184 = arith.truncf %183 : vector<7x64xf32> to vector<7x64xbf16>
    %185 = arith.index_cast %c0_i32 : i32 to index
    %c0_107 = arith.constant 0 : index
    %c0_108 = arith.constant 0 : index
    %186 = vector.load %arg8[%185, %c0_107, %c0_108] : memref<1x49x64xbf16, #tpu.memory_space<vmem>>, vector<1x7x64xbf16>
    %187 = vector.shape_cast %186 : vector<1x7x64xbf16> to vector<7x64xbf16>
    %188 = vector.shape_cast %184 : vector<7x64xbf16> to vector<1x7x64xbf16>
    tpu.vector_store %arg8[%185, %c0_107, %c0_108], %188 {strides = array<i32>} : memref<1x49x64xbf16, #tpu.memory_space<vmem>>, vector<1x7x64xbf16>,
    %189 = vector.extract_strided_slice %182 {offsets = [20, 0], sizes = [7, 64], strides = [1, 1]} : vector<127x64xf32> to vector<7x64xf32>
    %190 = arith.truncf %189 : vector<7x64xf32> to vector<7x64xbf16>
    %191 = arith.index_cast %c0_i32 : i32 to index
    %c7 = arith.constant 7 : index
    %c0_109 = arith.constant 0 : index
    %192 = vector.load %arg8[%191, %c7, %c0_109] : memref<1x49x64xbf16, #tpu.memory_space<vmem>>, vector<1x7x64xbf16>
    %193 = vector.shape_cast %192 : vector<1x7x64xbf16> to vector<7x64xbf16>
    %194 = vector.shape_cast %190 : vector<7x64xbf16> to vector<1x7x64xbf16>
    tpu.vector_store %arg8[%191, %c7, %c0_109], %194 {strides = array<i32>} : memref<1x49x64xbf16, #tpu.memory_space<vmem>>, vector<1x7x64xbf16>,
    %195 = vector.extract_strided_slice %182 {offsets = [40, 0], sizes = [7, 64], strides = [1, 1]} : vector<127x64xf32> to vector<7x64xf32>
    %196 = arith.truncf %195 : vector<7x64xf32> to vector<7x64xbf16>
    %197 = arith.index_cast %c0_i32 : i32 to index
    %c14 = arith.constant 14 : index
    %c0_110 = arith.constant 0 : index
    %198 = vector.load %arg8[%197, %c14, %c0_110] : memref<1x49x64xbf16, #tpu.memory_space<vmem>>, vector<1x7x64xbf16>
    %199 = vector.shape_cast %198 : vector<1x7x64xbf16> to vector<7x64xbf16>
    %200 = vector.shape_cast %196 : vector<7x64xbf16> to vector<1x7x64xbf16>
    tpu.vector_store %arg8[%197, %c14, %c0_110], %200 {strides = array<i32>} : memref<1x49x64xbf16, #tpu.memory_space<vmem>>, vector<1x7x64xbf16>,
    %201 = vector.extract_strided_slice %182 {offsets = [60, 0], sizes = [7, 64], strides = [1, 1]} : vector<127x64xf32> to vector<7x64xf32>
    %202 = arith.truncf %201 : vector<7x64xf32> to vector<7x64xbf16>
    %203 = arith.index_cast %c0_i32 : i32 to index
    %c21_111 = arith.constant 21 : index
    %c0_112 = arith.constant 0 : index
    %204 = vector.load %arg8[%203, %c21_111, %c0_112] : memref<1x49x64xbf16, #tpu.memory_space<vmem>>, vector<1x7x64xbf16>
    %205 = vector.shape_cast %204 : vector<1x7x64xbf16> to vector<7x64xbf16>
    %206 = vector.shape_cast %202 : vector<7x64xbf16> to vector<1x7x64xbf16>
    tpu.vector_store %arg8[%203, %c21_111, %c0_112], %206 {strides = array<i32>} : memref<1x49x64xbf16, #tpu.memory_space<vmem>>, vector<1x7x64xbf16>,
    %207 = vector.extract_strided_slice %182 {offsets = [80, 0], sizes = [7, 64], strides = [1, 1]} : vector<127x64xf32> to vector<7x64xf32>
    %208 = arith.truncf %207 : vector<7x64xf32> to vector<7x64xbf16>
    %209 = arith.index_cast %c0_i32 : i32 to index
    %c28 = arith.constant 28 : index
    %c0_113 = arith.constant 0 : index
    %210 = vector.load %arg8[%209, %c28, %c0_113] : memref<1x49x64xbf16, #tpu.memory_space<vmem>>, vector<1x7x64xbf16>
    %211 = vector.shape_cast %210 : vector<1x7x64xbf16> to vector<7x64xbf16>
    %212 = vector.shape_cast %208 : vector<7x64xbf16> to vector<1x7x64xbf16>
    tpu.vector_store %arg8[%209, %c28, %c0_113], %212 {strides = array<i32>} : memref<1x49x64xbf16, #tpu.memory_space<vmem>>, vector<1x7x64xbf16>,
    %213 = vector.extract_strided_slice %182 {offsets = [100, 0], sizes = [7, 64], strides = [1, 1]} : vector<127x64xf32> to vector<7x64xf32>
    %214 = arith.truncf %213 : vector<7x64xf32> to vector<7x64xbf16>
    %215 = arith.index_cast %c0_i32 : i32 to index
    %c35 = arith.constant 35 : index
    %c0_114 = arith.constant 0 : index
    %216 = vector.load %arg8[%215, %c35, %c0_114] : memref<1x49x64xbf16, #tpu.memory_space<vmem>>, vector<1x7x64xbf16>
    %217 = vector.shape_cast %216 : vector<1x7x64xbf16> to vector<7x64xbf16>
    %218 = vector.shape_cast %214 : vector<7x64xbf16> to vector<1x7x64xbf16>
    tpu.vector_store %arg8[%215, %c35, %c0_114], %218 {strides = array<i32>} : memref<1x49x64xbf16, #tpu.memory_space<vmem>>, vector<1x7x64xbf16>,
    %219 = vector.extract_strided_slice %182 {offsets = [120, 0], sizes = [7, 64], strides = [1, 1]} : vector<127x64xf32> to vector<7x64xf32>
    %220 = arith.truncf %219 : vector<7x64xf32> to vector<7x64xbf16>
    %221 = arith.index_cast %c0_i32 : i32 to index
    %c42_115 = arith.constant 42 : index
    %c0_116 = arith.constant 0 : index
    %222 = vector.load %arg8[%221, %c42_115, %c0_116] : memref<1x49x64xbf16, #tpu.memory_space<vmem>>, vector<1x7x64xbf16>
    %223 = vector.shape_cast %222 : vector<1x7x64xbf16> to vector<7x64xbf16>
    %224 = vector.shape_cast %220 : vector<7x64xbf16> to vector<1x7x64xbf16>
    tpu.vector_store %arg8[%221, %c42_115, %c0_116], %224 {strides = array<i32>} : memref<1x49x64xbf16, #tpu.memory_space<vmem>>, vector<1x7x64xbf16>,
    %c1_i32 = arith.constant 1 : i32
    return
  }
  func.func @transform_0(%arg0: i32) -> (i32, i32, i32) {
    %c0_i32 = arith.constant 0 : i32
    %c0_i32_0 = arith.constant 0 : i32
    %c0_i32_1 = arith.constant 0 : i32
    return %arg0, %c0_i32, %c0_i32_0 : i32, i32, i32
  }
  func.func @transform_1(%arg0: i32) -> (i32, i32) {
    %c0_i32 = arith.constant 0 : i32
    %c0_i32_0 = arith.constant 0 : i32
    %c0_i32_1 = arith.constant 0 : i32
    return %c0_i32, %c0_i32_0 : i32, i32
  }
  func.func @transform_2(%arg0: i32) -> (i32, i32) {
    %c0_i32 = arith.constant 0 : i32
    %c0_i32_0 = arith.constant 0 : i32
    %c0_i32_1 = arith.constant 0 : i32
    return %c0_i32, %c0_i32_0 : i32, i32
  }
  func.func @transform_3(%arg0: i32) -> (i32, i32) {
    %c0_i32 = arith.constant 0 : i32
    %c0_i32_0 = arith.constant 0 : i32
    %c0_i32_1 = arith.constant 0 : i32
    return %c0_i32, %c0_i32_0 : i32, i32
  }
  func.func @transform_4(%arg0: i32) -> (i32, i32) {
    %c0_i32 = arith.constant 0 : i32
    %c0_i32_0 = arith.constant 0 : i32
    %c0_i32_1 = arith.constant 0 : i32
    return %c0_i32, %c0_i32_0 : i32, i32
  }
  func.func @transform_5(%arg0: i32) -> (i32, i32) {
    %c0_i32 = arith.constant 0 : i32
    %c0_i32_0 = arith.constant 0 : i32
    %c0_i32_1 = arith.constant 0 : i32
    return %c0_i32, %c0_i32_0 : i32, i32
  }
  func.func @transform_6(%arg0: i32) -> (i32, i32) {
    %c0_i32 = arith.constant 0 : i32
    %c0_i32_0 = arith.constant 0 : i32
    %c0_i32_1 = arith.constant 0 : i32
    return %c0_i32, %c0_i32_0 : i32, i32
  }
  func.func @transform_7(%arg0: i32) -> (i32, i32, i32) {
    %c0_i32 = arith.constant 0 : i32
    %c0_i32_0 = arith.constant 0 : i32
    %c0_i32_1 = arith.constant 0 : i32
    return %arg0, %c0_i32, %c0_i32_0 : i32, i32, i32
  }
}

module attributes {stable_mosaic.version = 11 : i64} {
  func.func @_fc_head_kernel(%arg0: i32, %arg1: memref<2x3136xbf16, #tpu.memory_space<vmem>>, %arg2: memref<3136x512xbf16, #tpu.memory_space<vmem>>, %arg3: memref<1x512xf32, #tpu.memory_space<vmem>>, %arg4: memref<512x128xbf16, #tpu.memory_space<vmem>>, %arg5: memref<1x128xf32, #tpu.memory_space<vmem>>, %arg6: memref<2x128xf32, #tpu.memory_space<vmem>>) attributes {dimension_semantics = [#tpu.dimension_semantics<parallel>], iteration_bounds = array<i64: 1>, scalar_prefetch = 0 : i64, scratch_operands = 0 : i64, tpu.core_type = #tpu.core_type<tc>, window_params = [{transform_indices = @transform_0, window_bounds = array<i64: 2, 3136>}, {pipeline_mode = #tpu.pipeline_mode<synchronous>, transform_indices = @transform_1, window_bounds = array<i64: 3136, 512>}, {pipeline_mode = #tpu.pipeline_mode<synchronous>, transform_indices = @transform_2, window_bounds = array<i64: 1, 512>}, {pipeline_mode = #tpu.pipeline_mode<synchronous>, transform_indices = @transform_3, window_bounds = array<i64: 512, 128>}, {pipeline_mode = #tpu.pipeline_mode<synchronous>, transform_indices = @transform_4, window_bounds = array<i64: 1, 128>}, {transform_indices = @transform_5, window_bounds = array<i64: 2, 128>}]} {
    %c0 = arith.constant 0 : index
    %c0_0 = arith.constant 0 : index
    %0 = vector.load %arg1[%c0, %c0_0] : memref<2x3136xbf16, #tpu.memory_space<vmem>>, vector<2x3136xbf16>
    %c0_1 = arith.constant 0 : index
    %c0_2 = arith.constant 0 : index
    %1 = vector.load %arg2[%c0_1, %c0_2] : memref<3136x512xbf16, #tpu.memory_space<vmem>>, vector<3136x512xbf16>
    %cst = arith.constant dense<0.000000e+00> : vector<2x512xf32>
    %2 = tpu.matmul %0, %1, %cst {dimension_numbers = #tpu.dot_dimension_numbers<[1], [0], [0], [1], [0, 0, 1, 1], [], []>} : vector<2x3136xbf16>, vector<3136x512xbf16>, vector<2x512xf32> -> vector<2x512xf32>
    %c0_3 = arith.constant 0 : index
    %c0_4 = arith.constant 0 : index
    %3 = vector.load %arg3[%c0_3, %c0_4] : memref<1x512xf32, #tpu.memory_space<vmem>>, vector<1x512xf32>
    %4 = vector.broadcast %3 : vector<1x512xf32> to vector<2x512xf32>
    %5 = arith.addf %2, %4 : vector<2x512xf32>
    %cst_5 = arith.constant 0.000000e+00 : f32
    %6 = vector.broadcast %cst_5 : f32 to vector<2x512xf32>
    %7 = arith.maximumf %5, %6 : vector<2x512xf32>
    %8 = arith.truncf %7 : vector<2x512xf32> to vector<2x512xbf16>
    %c0_6 = arith.constant 0 : index
    %c0_7 = arith.constant 0 : index
    %9 = vector.load %arg4[%c0_6, %c0_7] : memref<512x128xbf16, #tpu.memory_space<vmem>>, vector<512x128xbf16>
    %cst_8 = arith.constant dense<0.000000e+00> : vector<2x128xf32>
    %10 = tpu.matmul %8, %9, %cst_8 {dimension_numbers = #tpu.dot_dimension_numbers<[1], [0], [0], [1], [0, 0, 1, 1], [], []>} : vector<2x512xbf16>, vector<512x128xbf16>, vector<2x128xf32> -> vector<2x128xf32>
    %c0_9 = arith.constant 0 : index
    %c0_10 = arith.constant 0 : index
    %11 = vector.load %arg5[%c0_9, %c0_10] : memref<1x128xf32, #tpu.memory_space<vmem>>, vector<1x128xf32>
    %12 = vector.broadcast %11 : vector<1x128xf32> to vector<2x128xf32>
    %13 = arith.addf %10, %12 : vector<2x128xf32>
    %c0_11 = arith.constant 0 : index
    %c0_12 = arith.constant 0 : index
    %14 = vector.load %arg6[%c0_11, %c0_12] : memref<2x128xf32, #tpu.memory_space<vmem>>, vector<2x128xf32>
    tpu.vector_store %arg6[%c0_11, %c0_12], %13 {strides = array<i32>} : memref<2x128xf32, #tpu.memory_space<vmem>>, vector<2x128xf32>,
    return
  }
  func.func @transform_0(%arg0: i32) -> (i32, i32) {
    %c0_i32 = arith.constant 0 : i32
    %c0_i32_0 = arith.constant 0 : i32
    return %arg0, %c0_i32 : i32, i32
  }
  func.func @transform_1(%arg0: i32) -> (i32, i32) {
    %c0_i32 = arith.constant 0 : i32
    %c0_i32_0 = arith.constant 0 : i32
    %c0_i32_1 = arith.constant 0 : i32
    return %c0_i32, %c0_i32_0 : i32, i32
  }
  func.func @transform_2(%arg0: i32) -> (i32, i32) {
    %c0_i32 = arith.constant 0 : i32
    %c0_i32_0 = arith.constant 0 : i32
    %c0_i32_1 = arith.constant 0 : i32
    return %c0_i32, %c0_i32_0 : i32, i32
  }
  func.func @transform_3(%arg0: i32) -> (i32, i32) {
    %c0_i32 = arith.constant 0 : i32
    %c0_i32_0 = arith.constant 0 : i32
    %c0_i32_1 = arith.constant 0 : i32
    return %c0_i32, %c0_i32_0 : i32, i32
  }
  func.func @transform_4(%arg0: i32) -> (i32, i32) {
    %c0_i32 = arith.constant 0 : i32
    %c0_i32_0 = arith.constant 0 : i32
    %c0_i32_1 = arith.constant 0 : i32
    return %c0_i32, %c0_i32_0 : i32, i32
  }
  func.func @transform_5(%arg0: i32) -> (i32, i32) {
    %c0_i32 = arith.constant 0 : i32
    %c0_i32_0 = arith.constant 0 : i32
    return %arg0, %c0_i32 : i32, i32
  }
}

</mosaic_0001>

<bundles_post_ra>
// kernel: dqn_forward.2
= control target key start
LH: loop header
LB: loop body
LE: loop exit
PB: predicated region body
PF: predicated region fallthrough
CT: control target
= control target key end

     0   :  { %s9461_s24 = smov 0   ;;  %s12721_s0 = inlined_call_operand.vmem [shape: s8[2,400,256], index: 0, kind: input, shape index: {}]   ;;  %s12722_s1 = inlined_call_operand.vmem [shape: bf16[256,32], index: 1, kind: input, shape index: {}]   ;;  %s12723_s2 = inlined_call_operand.vmem [shape: f32[1,32], index: 2, kind: input, shape index: {}]   ;;  %s12724_s3 = inlined_call_operand.vmem [shape: bf16[512,64], index: 3, kind: input, shape index: {}]   ;;  %s12725_s4 = inlined_call_operand.vmem [shape: f32[1,64], index: 4, kind: input, shape index: {}]   ;;  %s12726_s5 = inlined_call_operand.vmem [shape: bf16[576,64], index: 5, kind: input, shape index: {}]   ;;  %s12727_s6 = inlined_call_operand.vmem [shape: f32[1,64], index: 6, kind: input, shape index: {}]   ;;  %s12728_s7 = inlined_call_operand.vmem [shape: bf16[2,49,64], index: 7, kind: output, shape index: {}]  }
   0x1 LB: > { %s7420_s25 = sadd.s32 4294967295, %s9416_s24   ;;  %p7424_p0 = scmp.ge.s32.totalorder %s9416_s24, 1  ;;  %s9416_s24 = sphi %s9461_s24, %s17_s24  }
   0x2   : > { %p237_p1 = scmp.lt.s32.totalorder %s9416_s24, 3 }
   0x4   : > { %p238_p2 = pnand %p7424_p0, %p237_p1 }
   0x6   : > { %241 = sbr.rel (%p238_p2) target bundleno = 1805 (0x70d), region = 48 }
   0xd   : > { %v9238_v0 = vld [vmem:[%s12722_s1] sm:$0xff]   ;;  %v9418_v1 = vmov 0   ;;  %p269_p3 = scmp.lt.s32.totalorder %s7420_s25, 1  ;;  %v9239_v2 = vld [vmem:[%s12722_s1 + $0x8] sm:$0xff]   ;;  %v9240_v3 = vld [vmem:[%s12722_s1 + $0x10] sm:$0xff]   ;;  %vm9420_vm0 = vmmov 0  }
   0xe   : > { %765 = vmatprep.subr.bf16.mxu0 %v9418_v1  ;;  %v9241_v4 = vld [vmem:[%s12722_s1 + $0x18] sm:$0xff]   ;;  %v9242_v5 = vld [vmem:[%s12722_s1 + $0x20] sm:$0xff]   ;;  %v9243_v9 = vld [vmem:[%s12722_s1 + $0x28] sm:$0xff]   ;;  %vm1073_vm1 = vcmask 261120   ;;  %vm3533_vm2 = vsmask.f32 5376 }
   0xf   : > { %766 = vmatpush1.bf16.msra.mxu0 %v9238_v0  ;;  %s13049_s25 = smov (!%p269_p3, %s7420_s25), 1  ;;  %v9244_v11 = vld [vmem:[%s12722_s1 + $0x30] sm:$0xff]   ;;  %v9245_v12 = vld [vmem:[%s12722_s1 + $0x38] sm:$0xff]   ;;  %v9246_v13 = vld [vmem:[%s12722_s1 + $0x40] sm:$0xff]   ;;  %vm4537_vm3 = vsmask.f32 256 }
  0x10   : > { %767 = vmatprep.subr.bf16.mxu0 %v9418_v1  ;;  %s9225_s9 = smul.u32 200, %s13049_s25  ;;  %v9247_v14 = vld [vmem:[%s12722_s1 + $0x48] sm:$0xff]   ;;  %v9248_v15 = vld [vmem:[%s12722_s1 + $0x50] sm:$0xff]   ;;  %v9249_v16 = vld [vmem:[%s12722_s1 + $0x58] sm:$0xff]   ;;  %vm2529_vm4 = vsmask.f32 2304 }
  0x11   : > { %v9250_v17 = vld [vmem:[%s12722_s1 + $0x60] sm:$0xff]   ;;  %v9251_v18 = vld [vmem:[%s12722_s1 + $0x68] sm:$0xff]   ;;  %v9252_v19 = vld [vmem:[%s12722_s1 + $0x70] sm:$0xff]   ;;  %vm1142_vm5 = vcmask 1043456   ;;  %vm1771_vm6 = vsmask.f32 3328 }
  0x12   : > { %s9487_s14 = scalar_lea.vmem %s12721_s0, %s9225_s9  ;;  %v9253_v21 = vld [vmem:[%s12722_s1 + $0x78] sm:$0xff]   ;;  %vm2829_vm7 = vsmask.f32 6400  ;;  %vm3779_vm8 = vsmask.f32 1280  ;;  %vm2315_vm9 = vcmask 1046528  }
  0x13   : > { %768 = vmatpush1.bf16.msra.mxu0 %v9239_v2  ;;  %v280_v6 = vld [vmem:[%s9487_s14] sm:$0xff]   ;;  %v282_v20 = vld [vmem:[%s9487_s14 + $0x8] sm:$0xff]   ;;  %v284_v25 = vld [vmem:[%s9487_s14 + $0x10] sm:$0xff]   ;;  %vm4323_vm10 = vcmask 1044480   ;;  %vm4822_vm11 = vsmask.f32 4352 }
  0x14   : > { %769 = vmatprep.subr.bf16.mxu0 %v9418_v1  ;;  %v330_v7 = vunpack.c.l.s8.bf16 %v280_v6  ;;  %v331_v8 = vunpack.c.h.s8.bf16 %v280_v6  ;;  %v332_v22 = vunpack.c.l.s8.bf16 %v282_v20  ;;  %v333_v23 = vunpack.c.h.s8.bf16 %v282_v20  ;;  %v286_v31 = vld [vmem:[%s9487_s14 + $0x18] sm:$0xff]   ;;  %v288_v36 = vld [vmem:[%s9487_s14 + $0x20] sm:$0xff]   ;;  %v290_v41 = vld [vmem:[%s9487_s14 + $0x28] sm:$0xff]   ;;  %s9226_s16 = smul.u32 28, %s13049_s25 }
  0x15   : > { %v334_v27 = vunpack.c.l.s8.bf16 %v284_v25  ;;  %v335_v28 = vunpack.c.h.s8.bf16 %v284_v25  ;;  %v336_v32 = vunpack.c.l.s8.bf16 %v286_v31  ;;  %v337_v33 = vunpack.c.h.s8.bf16 %v286_v31  ;;  %v292_v46 = vld [vmem:[%s9487_s14 + $0x30] sm:$0xff]   ;;  %v294_v51 = vld [vmem:[%s9487_s14 + $0x38] sm:$0xff]   ;;  %v296_v56 = vld [vmem:[%s9487_s14 + $0x40] sm:$0xff]  }
  0x16   : > { %v7429_v10 = vcombine.high %v330_v7, %v331_v8  ;;  %v7428_v24 = vcombine.low %v330_v7, %v331_v8  ;;  %v7431_v26 = vcombine.high %v332_v22, %v333_v23  ;;  %v7430_v29 = vcombine.low %v332_v22, %v333_v23  ;;  %v298_v61 = vld [vmem:[%s9487_s14 + $0x48] sm:$0xff]   ;;  %v300_v2 = vld [vmem:[%s9487_s14 + $0x50] sm:$0xff]   ;;  %v302_v7 = vld [vmem:[%s9487_s14 + $0x58] sm:$0xff]   ;;  %s12654_s19 = scalar_lea.vmem %s12728_s7, %s9226_s16 }
  0x17   : > { %770 = vmatpush1.bf16.msra.mxu0 %v9240_v3  ;;  %v7433_v30 = vcombine.high %v334_v27, %v335_v28  ;;  %v7432_v34 = vcombine.low %v334_v27, %v335_v28  ;;  %v7435_v35 = vcombine.high %v336_v32, %v337_v33  ;;  %v338_v37 = vunpack.c.l.s8.bf16 %v288_v36  ;;  %v308_v22 = vld [vmem:[%s9487_s14 + $0x70] sm:$0xff]   ;;  %v310_v27 = vld [vmem:[%s9487_s14 + $0x78] sm:$0xff]  }
  0x18   : > { %771 = vmatprep.subr.bf16.mxu0 %v9418_v1  ;;  %797 = vmatprep.mubr.bf16.mxu0 %v7429_v10  ;;  %v339_v38 = vunpack.c.h.s8.bf16 %v288_v36  ;;  %v7434_v39 = vcombine.low %v336_v32, %v337_v33  ;;  %v340_v42 = vunpack.c.l.s8.bf16 %v290_v41  ;;  %v341_v43 = vunpack.c.h.s8.bf16 %v290_v41  ;;  %v312_v32 = vld [vmem:[%s9487_s14 + $0x80] sm:$0xff]  }
  0x19   : > { %v342_v47 = vunpack.c.l.s8.bf16 %v292_v46  ;;  %v343_v48 = vunpack.c.h.s8.bf16 %v292_v46  ;;  %v344_v52 = vunpack.c.l.s8.bf16 %v294_v51  ;;  %v345_v53 = vunpack.c.h.s8.bf16 %v294_v51 }
  0x1a   : > { %v7437_v40 = vcombine.high %v338_v37, %v339_v38  ;;  %v7436_v44 = vcombine.low %v338_v37, %v339_v38  ;;  %v7439_v45 = vcombine.high %v340_v42, %v341_v43  ;;  %v7438_v49 = vcombine.low %v340_v42, %v341_v43  ;;  %v314_v37 = vld [vmem:[%s9487_s14 + $0x88] sm:$0xff]   ;;  %v316_v42 = vld [vmem:[%s9487_s14 + $0x90] sm:$0xff]  }
  0x1b   : > { %772 = vmatpush1.bf16.msra.mxu0 %v9241_v4  ;;  %v7441_v50 = vcombine.high %v342_v47, %v343_v48  ;;  %v7440_v54 = vcombine.low %v342_v47, %v343_v48  ;;  %v7443_v55 = vcombine.high %v344_v52, %v345_v53  ;;  %v346_v57 = vunpack.c.l.s8.bf16 %v296_v56  ;;  %v318_v47 = vld [vmem:[%s9487_s14 + $0x98] sm:$0xff]  }
  0x1c   : > { %773 = vmatprep.subr.bf16.mxu0 %v9418_v1  ;;  %v347_v58 = vunpack.c.h.s8.bf16 %v296_v56  ;;  %v7442_v59 = vcombine.low %v344_v52, %v345_v53  ;;  %v348_v62 = vunpack.c.l.s8.bf16 %v298_v61  ;;  %v349_v63 = vunpack.c.h.s8.bf16 %v298_v61  ;;  %v320_v52 = vld [vmem:[%s9487_s14 + $0xa0] sm:$0xff]  }
  0x1d   : > { %v350_v3 = vunpack.c.l.s8.bf16 %v300_v2  ;;  %v351_v4 = vunpack.c.h.s8.bf16 %v300_v2  ;;  %v352_v8 = vunpack.c.l.s8.bf16 %v302_v7  ;;  %v358_v23 = vunpack.c.l.s8.bf16 %v308_v22 }
  0x1e   : > { %v7445_v60 = vcombine.high %v346_v57, %v347_v58  ;;  %v7444_v0 = vcombine.low %v346_v57, %v347_v58  ;;  %v360_v28 = vunpack.c.l.s8.bf16 %v310_v27  ;;  %v362_v33 = vunpack.c.l.s8.bf16 %v312_v32  ;;  %v322_v57 = vld [vmem:[%s9487_s14 + $0xa8] sm:$0xff]  }
  0x1f   : > { %774 = vmatpush1.bf16.msra.mxu0 %v9242_v5  ;;  %v7446_v5 = vcombine.low %v348_v62, %v349_v63  ;;  %v7449_v6 = vcombine.high %v350_v3, %v351_v4  ;;  %v7448_v10 = vcombine.low %v350_v3, %v351_v4  ;;  %v364_v38 = vunpack.c.l.s8.bf16 %v314_v37  ;;  %v326_v3 = vld [vmem:[%s9487_s14 + $0xb8] sm:$0xff]  }
  0x20   : > { %775 = vmatprep.subr.bf16.mxu0 %v9418_v1  ;;  %v366_v43 = vunpack.c.l.s8.bf16 %v316_v42  ;;  %v368_v48 = vunpack.c.l.s8.bf16 %v318_v47  ;;  %v370_v53 = vunpack.c.l.s8.bf16 %v320_v52  ;;  %v372_v58 = vunpack.c.l.s8.bf16 %v322_v57 }
  0x21   : > { %v376_v4 = vunpack.c.l.s8.bf16 %v326_v3  ;;  %vm1502_vm12 = vsmask.f32 7424  ;;  %vm2095_vm13 = vcmask 1042432   ;;  %vm3317_vm14 = vcmask 1041408  }
  0x22   : > { %vm3079_vm15 = vcmask 1045504  }
  0x23   : > { %776 = vmatpush1.bf16.msra.mxu0 %v9243_v9  ;;  %v353_v9 = vunpack.c.h.s8.bf16 %v302_v7 }
  0x24   : > { %777 = vmatprep.subr.bf16.mxu0 %v9418_v1 }
  0x27   : > { %778 = vmatpush1.bf16.msra.mxu0 %v9244_v11  ;;  %v7451_v11 = vcombine.high %v352_v8, %v353_v9 }
  0x28   : > { %779 = vmatprep.subr.bf16.mxu0 %v9418_v1 }
  0x2b   : > { %780 = vmatpush1.bf16.msra.mxu0 %v9245_v12  ;;  %v304_v12 = vld [vmem:[%s9487_s14 + $0x60] sm:$0xff]  }
  0x2c   : > { %781 = vmatprep.subr.bf16.mxu0 %v9418_v1 }
  0x2f   : > { %782 = vmatpush1.bf16.msra.mxu0 %v9246_v13  ;;  %v354_v13 = vunpack.c.l.s8.bf16 %v304_v12 }
  0x30   : > { %783 = vmatprep.subr.bf16.mxu0 %v9418_v1 }
  0x33   : > { %784 = vmatpush1.bf16.msra.mxu0 %v9247_v14  ;;  %v355_v14 = vunpack.c.h.s8.bf16 %v304_v12  ;;  %v9254_v12 = vld [vmem:[%s12724_s3 + $0x10] sm:$0xff]  }
  0x34   : > { %785 = vmatprep.subr.bf16.mxu0 %v9418_v1 }
  0x35   : > { %v7452_v20 = vcombine.low %v354_v13, %v355_v14 }
  0x37   : > { %786 = vmatpush1.bf16.msra.mxu0 %v9248_v15  ;;  %v7450_v15 = vcombine.low %v352_v8, %v353_v9  ;;  %v328_v8 = vld [vmem:[%s9487_s14 + $0xc0] sm:$0xff]  }
  0x38   : > { %787 = vmatprep.subr.bf16.mxu0 %v9418_v1  ;;  %v378_v9 = vunpack.c.l.s8.bf16 %v328_v8 }
  0x3b   : > { %788 = vmatpush1.bf16.msra.mxu0 %v9249_v16  ;;  %v7453_v16 = vcombine.high %v354_v13, %v355_v14  ;;  %v12746_v14 = vmov 0.0  }
  0x3c   : > { %789 = vmatprep.subr.bf16.mxu0 %v9418_v1  ;;  %9221 = vmatprep.subr.bf16.mxu1 %v12746_v14 }
  0x3d   : > { %9223 = vmatpush3.bf16.msra.mxu1 %v9254_v12  ;;  %8245 = vmatprep.mubr.msk.bf16.mxu1 %vm9420_vm0, %v12746_v14 }
  0x3e   : > { %9222 = vmatprep.subr.bf16.mxu1 %v12746_v14 }
  0x3f   : > { %790 = vmatpush1.bf16.msra.mxu0 %v9250_v17  ;;  %v306_v17 = vld [vmem:[%s9487_s14 + $0x68] sm:$0xff]  }
  0x40   : > { %791 = vmatprep.subr.bf16.mxu0 %v9418_v1 }
  0x43   : > { %792 = vmatpush1.bf16.msra.mxu0 %v9251_v18  ;;  %v356_v18 = vunpack.c.l.s8.bf16 %v306_v17 }
  0x44   : > { %793 = vmatprep.subr.bf16.mxu0 %v9418_v1 }
  0x47   : > { %794 = vmatpush1.bf16.msra.mxu0 %v9252_v19  ;;  %v357_v19 = vunpack.c.h.s8.bf16 %v306_v17  ;;  %v9569_v17 = vld [vmem:[%s12723_s2] ss:$0 sm:$0xff] }
  0x48   : > { %795 = vmatprep.subr.bf16.mxu0 %v9418_v1  ;;  %v7447_v1 = vcombine.high %v348_v62, %v349_v63  ;;  %v324_v62 = vld [vmem:[%s9487_s14 + $0xb0] sm:$0xff]  }
  0x49   : > { %v7454_v25 = vcombine.low %v356_v18, %v357_v19  ;;  %v374_v63 = vunpack.c.l.s8.bf16 %v324_v62 }
  0x4b   : > { %796 = vmatpush1.bf16.msra.mxu0 %v9253_v21  ;;  %v7455_v21 = vcombine.high %v356_v18, %v357_v19 }
  0x4c   : > { %8237 = vmatprep.subr.bf16.mxu0 %v12746_v14 }
  0x4e   : > { %798 = vmatmul.mubr.bf16.vlgmr.msra.gmra.mrb[0].mxu0 %v7428_v24  ;;  %v359_v24 = vunpack.c.h.s8.bf16 %v308_v22 }
  0x4f   : > { %805 = vmatprep.mubr.bf16.mxu0 %v7431_v26  ;;  %8238 = vmatpush3.bf16.msra.mxu0 %v9254_v12 }
  0x50   : > { %v7457_v26 = vcombine.high %v358_v23, %v359_v24  ;;  %8239 = vmatprep.subr.bf16.mxu0 %v12746_v14 }
  0x56   : > { %806 = vmatmul.mubr.bf16.gmra.mrb[4].mxu0 %v7430_v29  ;;  %v361_v29 = vunpack.c.h.s8.bf16 %v310_v27 }
  0x57   : > { %813 = vmatprep.mubr.bf16.mxu0 %v7433_v30  ;;  %v7456_v30 = vcombine.low %v358_v23, %v359_v24 }
  0x58   : > { %v7459_v31 = vcombine.high %v360_v28, %v361_v29 }
  0x5e   : > { %814 = vmatmul.mubr.bf16.gmra.mrb[8].mxu0 %v7432_v34  ;;  %v363_v34 = vunpack.c.h.s8.bf16 %v312_v32 }
  0x5f   : > { %821 = vmatprep.mubr.bf16.mxu0 %v7435_v35  ;;  %v7458_v35 = vcombine.low %v360_v28, %v361_v29 }
  0x60   : > { %v7461_v36 = vcombine.high %v362_v33, %v363_v34 }
  0x66   : > { %822 = vmatmul.mubr.bf16.gmra.mrb[12].mxu0 %v7434_v39  ;;  %v365_v39 = vunpack.c.h.s8.bf16 %v314_v37 }
  0x67   : > { %829 = vmatprep.mubr.bf16.mxu0 %v7437_v40  ;;  %v7460_v40 = vcombine.low %v362_v33, %v363_v34 }
  0x68   : > { %v7463_v41 = vcombine.high %v364_v38, %v365_v39 }
  0x6e   : > { %830 = vmatmul.mubr.bf16.gmra.mrb[16].mxu0 %v7436_v44  ;;  %v367_v44 = vunpack.c.h.s8.bf16 %v316_v42 }
  0x6f   : > { %837 = vmatprep.mubr.bf16.mxu0 %v7439_v45  ;;  %v7462_v45 = vcombine.low %v364_v38, %v365_v39 }
  0x70   : > { %v7465_v46 = vcombine.high %v366_v43, %v367_v44 }
  0x76   : > { %838 = vmatmul.mubr.bf16.gmra.mrb[20].mxu0 %v7438_v49  ;;  %v369_v49 = vunpack.c.h.s8.bf16 %v318_v47 }
  0x77   : > { %845 = vmatprep.mubr.bf16.mxu0 %v7441_v50  ;;  %v7464_v50 = vcombine.low %v366_v43, %v367_v44 }
  0x78   : > { %v7467_v51 = vcombine.high %v368_v48, %v369_v49 }
  0x7e   : > { %846 = vmatmul.mubr.bf16.gmra.mrb[24].mxu0 %v7440_v54  ;;  %v371_v54 = vunpack.c.h.s8.bf16 %v320_v52 }
  0x7f   : > { %853 = vmatprep.mubr.bf16.mxu0 %v7443_v55  ;;  %v7466_v55 = vcombine.low %v368_v48, %v369_v49 }
  0x80   : > { %v7469_v56 = vcombine.high %v370_v53, %v371_v54 }
  0x86   : > { %854 = vmatmul.mubr.bf16.gmra.mrb[28].mxu0 %v7442_v59  ;;  %v373_v59 = vunpack.c.h.s8.bf16 %v322_v57 }
  0x87   : > { %861 = vmatprep.mubr.bf16.mxu0 %v7445_v60  ;;  %v7468_v60 = vcombine.low %v370_v53, %v371_v54 }
  0x88   : > { %v7471_v61 = vcombine.high %v372_v58, %v373_v59 }
  0x8e   : > { %862 = vmatmul.mubr.bf16.gmra.mrb[32].mxu0 %v7444_v0  ;;  %v375_v0 = vunpack.c.h.s8.bf16 %v324_v62 }
  0x8f   : > { %869 = vmatprep.mubr.bf16.mxu0 %v7447_v1  ;;  %v7470_v1 = vcombine.low %v372_v58, %v373_v59 }
  0x90   : > { %v7473_v2 = vcombine.high %v374_v63, %v375_v0 }
  0x96   : > { %870 = vmatmul.mubr.bf16.gmra.mrb[36].mxu0 %v7446_v5  ;;  %v377_v5 = vunpack.c.h.s8.bf16 %v326_v3 }
  0x97   : > { %877 = vmatprep.mubr.bf16.mxu0 %v7449_v6  ;;  %v7472_v6 = vcombine.low %v374_v63, %v375_v0 }
  0x98   : > { %v7475_v7 = vcombine.high %v376_v4, %v377_v5 }
  0x9e   : > { %878 = vmatmul.mubr.bf16.gmra.mrb[40].mxu0 %v7448_v10  ;;  %v379_v10 = vunpack.c.h.s8.bf16 %v328_v8 }
  0x9f   : > { %885 = vmatprep.mubr.bf16.mxu0 %v7451_v11  ;;  %v7474_v11 = vcombine.low %v376_v4, %v377_v5 }
  0xa0   : > { %v7477_v13 = vcombine.high %v378_v9, %v379_v10 }
  0xa6   : > { %886 = vmatmul.mubr.bf16.gmra.mrb[44].mxu0 %v7450_v15  ;;  %v7476_v15 = vcombine.low %v378_v9, %v379_v10 }
  0xa7   : > { %893 = vmatprep.mubr.bf16.mxu0 %v7453_v16  ;;  %v9255_v16 = vld [vmem:[%s12724_s3 + $0x18] sm:$0xff]  }
  0xa8   : > { %8240 = vmatpush3.bf16.msra.mxu0 %v9255_v16  ;;  %9224 = vmatpush3.bf16.msra.mxu1 %v9255_v16 }
  0xa9   : > { %8381 = vmatprep.subr.bf16.mxu0 %v12746_v14  ;;  %8285 = vmatprep.subr.bf16.mxu1 %v12746_v14 }
  0xae   : > { %894 = vmatmul.mubr.bf16.gmra.mrb[48].mxu0 %v7452_v20 }
  0xaf   : > { %901 = vmatprep.mubr.bf16.mxu0 %v7455_v21 }
  0xb6   : > { %902 = vmatmul.mubr.bf16.gmra.mrb[52].mxu0 %v7454_v25 }
  0xb7   : > { %909 = vmatprep.mubr.bf16.mxu0 %v7457_v26 }
  0xbe   : > { %910 = vmatmul.mubr.bf16.gmra.mrb[56].mxu0 %v7456_v30 }
  0xbf   : > { %917 = vmatprep.mubr.bf16.mxu0 %v7459_v31 }
  0xc6   : > { %918 = vmatmul.mubr.bf16.gmra.mrb[60].mxu0 %v7458_v35 }
  0xc7   : > { %925 = vmatprep.mubr.bf16.mxu0 %v7461_v36 }
  0xce   : > { %926 = vmatmul.mubr.bf16.gmra.mrb[64].mxu0 %v7460_v40 }
  0xcf   : > { %933 = vmatprep.mubr.bf16.mxu0 %v7463_v41 }
  0xd6   : > { %934 = vmatmul.mubr.bf16.gmra.mrb[68].mxu0 %v7462_v45 }
  0xd7   : > { %941 = vmatprep.mubr.bf16.mxu0 %v7465_v46 }
  0xde   : > { %942 = vmatmul.mubr.bf16.gmra.mrb[72].mxu0 %v7464_v50 }
  0xdf   : > { %949 = vmatprep.mubr.bf16.mxu0 %v7467_v51 }
  0xe6   : > { %950 = vmatmul.mubr.bf16.gmra.mrb[76].mxu0 %v7466_v55 }
  0xe7   : > { %957 = vmatprep.mubr.bf16.mxu0 %v7469_v56 }
  0xee   : > { %958 = vmatmul.mubr.bf16.gmra.mrb[80].mxu0 %v7468_v60 }
  0xef   : > { %965 = vmatprep.mubr.bf16.mxu0 %v7471_v61 }
  0xf6   : > { %966 = vmatmul.mubr.bf16.gmra.mrb[84].mxu0 %v7470_v1 }
  0xf7   : > { %973 = vmatprep.mubr.bf16.mxu0 %v7473_v2 }
  0xfe   : > { %974 = vmatmul.mubr.bf16.gmra.mrb[88].mxu0 %v7472_v6 }
  0xff   : > { %981 = vmatprep.mubr.bf16.mxu0 %v7475_v7 }
 0x106   : > { %982 = vmatmul.mubr.bf16.gmra.mrb[92].mxu0 %v7474_v11 }
 0x107   : > { %989 = vmatprep.mubr.bf16.mxu0 %v7477_v13 }
 0x10e   : > { %990 = vmatmul.mubr.bf16.gmra.mrb[96].mxu0 %v7476_v15 }
 0x10f   : > { %8241 = vmatprep.mubr.msk.bf16.mxu0 %vm9420_vm0, %v12746_v14 }
 0x121   : > { %v799_v18 = vpop.f32.mrb[0].mxu0 }
 0x122   : > { %v800_v19 = vadd.f32 %v9569_v17, %v799_v18  ;;  %v801_v20 = vpop.f32.mrb[1].mxu0 }
 0x123   : > { %v802_v21 = vpop.f32.mrb[2].mxu0 }
 0x124   : > { %v803_v22 = vadd.f32 %v9569_v17, %v802_v21  ;;  %v804_v23 = vpop.f32.mrb[3].mxu0  ;;  %v998_v24 = vmax.f32 %v800_v19, 0.0 }
 0x126   : > { %v999_v25 = vmax.f32 %v803_v22, 0.0 }
 0x128   : > { %v1048_v26 = vpack.c.bf16 %v999_v25, %v998_v24 }
 0x129   : > { %v807_v27 = vpop.f32.mrb[4].mxu0 }
 0x12a   : > { %1074 = vst.msk [vmem:[#allocation2] sm:$0xff] %vm1073_vm1, %v1048_v26  ;;  %v808_v28 = vadd.f32 %v9569_v17, %v807_v27  ;;  %v809_v29 = vpop.f32.mrb[5].mxu0 }
 0x12b   : > { %v810_v30 = vpop.f32.mrb[6].mxu0 }
 0x12c   : > { %v811_v31 = vadd.f32 %v9569_v17, %v810_v30  ;;  %v812_v32 = vpop.f32.mrb[7].mxu0  ;;  %v1000_v33 = vmax.f32 %v808_v28, 0.0 }
 0x12e   : > { %v1001_v34 = vmax.f32 %v811_v31, 0.0 }
 0x130   : > { %v1049_v35 = vpack.c.bf16 %v1001_v34, %v1000_v33 }
 0x131   : > { %v815_v36 = vpop.f32.mrb[8].mxu0 }
 0x132   : > { %1075 = vst.msk [vmem:[#allocation2 + $0x8] sm:$0xff] %vm1073_vm1, %v1049_v35  ;;  %v816_v37 = vadd.f32 %v9569_v17, %v815_v36  ;;  %v817_v38 = vpop.f32.mrb[9].mxu0 }
 0x133   : > { %v818_v39 = vpop.f32.mrb[10].mxu0 }
 0x134   : > { %v819_v40 = vadd.f32 %v9569_v17, %v818_v39  ;;  %v820_v41 = vpop.f32.mrb[11].mxu0  ;;  %v1002_v42 = vmax.f32 %v816_v37, 0.0 }
 0x136   : > { %v1003_v43 = vmax.f32 %v819_v40, 0.0 }
 0x138   : > { %v1050_v44 = vpack.c.bf16 %v1003_v43, %v1002_v42 }
 0x139   : > { %v823_v45 = vpop.f32.mrb[12].mxu0  ;;  %v3071_v51 = vld [vmem:[#allocation2 + $0x8] sm:$0xfc] }
 0x13a   : > { %1076 = vst.msk [vmem:[#allocation2 + $0x10] sm:$0xff] %vm1073_vm1, %v1050_v44  ;;  %v824_v46 = vadd.f32 %v9569_v17, %v823_v45  ;;  %v825_v47 = vpop.f32.mrb[13].mxu0  ;;  %v3535_v54 = vshrl.u32 %v3071_v51, 16  ;;  %v3538_v55 = vshll.u32 %v3071_v51, 16  ;;  %v4075_v13 = vld [vmem:[#allocation2 + $0x8] sm:$0x80] }
 0x13b   : > { %v826_v48 = vpop.f32.mrb[14].mxu0  ;;  %v4539_v24 = vshrl.u32 %v4075_v13, 16 }
 0x13c   : > { %v827_v49 = vadd.f32 %v9569_v17, %v826_v48  ;;  %v828_v50 = vpop.f32.mrb[15].mxu0  ;;  %v1004_v52 = vmax.f32 %v824_v46, 0.0  ;;  %v3537_v0 = vrot.slane %v3535_v54, 2  ;;  %v3540_v1 = vrot.slane %v3538_v55, 3 }
 0x13d   : > { %v4541_v34 = vrot.slane %v4539_v24, 7 }
 0x13e   : > { %v1005_v53 = vmax.f32 %v827_v49, 0.0  ;;  %v3541_v10 = vor.u32 %v3540_v1, %v3537_v0 }
 0x140   : > { %v1051_v56 = vpack.c.bf16 %v1005_v53, %v1004_v52 }
 0x141   : > { %v831_v57 = vpop.f32.mrb[16].mxu0  ;;  %v9582_v58 = vld [vmem:[#allocation2 + $0x10] sm:$0xff] }
 0x142   : > { %1077 = vst.msk [vmem:[#allocation2 + $0x18] sm:$0xff] %vm1073_vm1, %v1051_v56  ;;  %v832_v59 = vadd.f32 %v9569_v17, %v831_v57  ;;  %v833_v60 = vpop.f32.mrb[17].mxu0  ;;  %v12744_v62 = vshrl.u32 %v9582_v58, 16  ;;  %v12743_v63 = vshll.u32 %v9582_v58, 16  ;;  %v4076_v4 = vld [vmem:[#allocation2 + $0x10] sm:$0xff] }
 0x143   : > { %v834_v61 = vpop.f32.mrb[18].mxu0  ;;  %v4543_v11 = vshrl.u32 %v4076_v4, 16  ;;  %v4546_v30 = vshll.u32 %v4076_v4, 16 }
 0x144   : > { %v835_v2 = vadd.f32 %v9569_v17, %v834_v61  ;;  %v836_v3 = vpop.f32.mrb[19].mxu0  ;;  %v3542_v5 = vrot.slane %v12744_v62, 2  ;;  %v3543_v6 = vrot.slane %v12743_v63, 3  ;;  %v1006_v7 = vmax.f32 %v832_v59, 0.0 }
 0x145   : > { %v4545_v25 = vrot.slane %v4543_v11, 7 }
 0x146   : > { %v1007_v8 = vmax.f32 %v835_v2, 0.0  ;;  %v3544_v9 = vor.u32 %v3543_v6, %v3542_v5 }
 0x147   : > { %v4548_v35 = vor.u32 %v4546_v30, %v4545_v25 }
 0x148   : > { %v1052_v12 = vpack.c.bf16 %v1007_v8, %v1006_v7  ;;  %v9596_v18 = vsel %vm3533_vm2, %v3541_v10, %v3544_v9 }
 0x149   : > { %v839_v15 = vpop.f32.mrb[20].mxu0  ;;  %v9593_v16 = vld [vmem:[#allocation2 + $0x18] sm:$0xff]  ;;  %12764 = vst [vmem:[#allocation4_spill] sm:$0xff] %v9596_v18  ;;  %v9613_v41 = vsel %vm4537_vm3, %v4541_v34, %v4548_v35 }
 0x14a   : > { %1078 = vst.msk [vmem:[#allocation2 + $0x20] sm:$0xff] %vm1073_vm1, %v1052_v12  ;;  %v840_v19 = vadd.f32 %v9569_v17, %v839_v15  ;;  %v841_v20 = vpop.f32.mrb[21].mxu0  ;;  %v12742_v22 = vshrl.u32 %v9593_v16, 16  ;;  %v12741_v23 = vshll.u32 %v9593_v16, 16  ;;  %v4077_v37 = vld [vmem:[#allocation2 + $0x18] sm:$0xff]  ;;  %12766 = vst [vmem:[#allocation6_spill] sm:$0xff] %v9613_v41 }
 0x14b   : > { %v842_v21 = vpop.f32.mrb[22].mxu0  ;;  %v4551_v47 = vshrl.u32 %v4077_v37, 16  ;;  %v4554_v61 = vshll.u32 %v4077_v37, 16 }
 0x14c   : > { %v843_v26 = vadd.f32 %v9569_v17, %v842_v21  ;;  %v844_v27 = vpop.f32.mrb[23].mxu0  ;;  %v3546_v28 = vrot.slane %v12742_v22, 2  ;;  %v3547_v29 = vrot.slane %v12741_v23, 3  ;;  %v1008_v31 = vmax.f32 %v840_v19, 0.0 }
 0x14d   : > { %v4553_v55 = vrot.slane %v4551_v47, 7 }
 0x14e   : > { %v1009_v32 = vmax.f32 %v843_v26, 0.0  ;;  %v3548_v33 = vor.u32 %v3547_v29, %v3546_v28 }
 0x14f   : > { %v4556_v5 = vor.u32 %v4554_v61, %v4553_v55 }
 0x150   : > { %v1053_v36 = vpack.c.bf16 %v1009_v32, %v1008_v31  ;;  %v9610_v40 = vsel %vm3533_vm2, %v3544_v9, %v3548_v33 }
 0x151   : > { %v847_v38 = vpop.f32.mrb[24].mxu0  ;;  %v9607_v39 = vld [vmem:[#allocation2 + $0x20] sm:$0xff]  ;;  %12765 = vst [vmem:[#allocation5_spill] sm:$0xff] %v9610_v40  ;;  %v9639_v15 = vsel %vm4537_vm3, %v4545_v25, %v4556_v5 }
 0x152   : > { %1079 = vst.msk [vmem:[#allocation2 + $0x28] sm:$0xff] %vm1073_vm1, %v1053_v36  ;;  %v848_v42 = vadd.f32 %v9569_v17, %v847_v38  ;;  %v849_v43 = vpop.f32.mrb[25].mxu0  ;;  %v12740_v45 = vshrl.u32 %v9607_v39, 16  ;;  %v12739_v46 = vshll.u32 %v9607_v39, 16  ;;  %v4078_v8 = vld [vmem:[#allocation2 + $0x20] sm:$0xff]  ;;  %12768 = vst [vmem:[#allocation8_spill] sm:$0xff] %v9639_v15 }
 0x153   : > { %v850_v44 = vpop.f32.mrb[26].mxu0  ;;  %v4559_v19 = vshrl.u32 %v4078_v8, 16  ;;  %v4562_v37 = vshll.u32 %v4078_v8, 16 }
 0x154   : > { %v851_v48 = vadd.f32 %v9569_v17, %v850_v44  ;;  %v852_v49 = vpop.f32.mrb[27].mxu0  ;;  %v3550_v50 = vrot.slane %v12740_v45, 2  ;;  %v3551_v51 = vrot.slane %v12739_v46, 3  ;;  %v1010_v52 = vmax.f32 %v848_v42, 0.0  ;;  %v9261_v46 = vld [vmem:[%s12724_s3 + $0x50] sm:$0xff]  }
 0x155   : > { %v4561_v25 = vrot.slane %v4559_v19, 7 }
 0x156   : > { %v1011_v53 = vmax.f32 %v851_v48, 0.0  ;;  %v3552_v54 = vor.u32 %v3551_v51, %v3550_v50 }
 0x157   : > { %v4564_v44 = vor.u32 %v4562_v37, %v4561_v25 }
 0x158   : > { %v1054_v56 = vpack.c.bf16 %v1011_v53, %v1010_v52  ;;  %v9627_v60 = vsel %vm3533_vm2, %v3548_v33, %v3552_v54 }
 0x159   : > { %v855_v57 = vpop.f32.mrb[28].mxu0  ;;  %v9624_v59 = vld [vmem:[#allocation2 + $0x28] sm:$0xff]  ;;  %12767 = vst [vmem:[#allocation7_spill] sm:$0xff] %v9627_v60  ;;  %v9661_v52 = vsel %vm4537_vm3, %v4553_v55, %v4564_v44 }
 0x15a   : > { %1080 = vst.msk [vmem:[#allocation2 + $0x30] sm:$0xff] %vm1073_vm1, %v1054_v56  ;;  %v856_v0 = vadd.f32 %v9569_v17, %v855_v57  ;;  %v857_v1 = vpop.f32.mrb[29].mxu0  ;;  %v12738_v3 = vshrl.u32 %v9624_v59, 16  ;;  %v12737_v4 = vshll.u32 %v9624_v59, 16  ;;  %v4079_v34 = vld [vmem:[#allocation2 + $0x28] sm:$0xff]  ;;  %12771 = vst [vmem:[#allocation11_spill] sm:$0xff] %v9661_v52 }
 0x15b   : > { %v858_v2 = vpop.f32.mrb[30].mxu0  ;;  %v4567_v47 = vshrl.u32 %v4079_v34, 16 }
 0x15c   : > { %v859_v6 = vadd.f32 %v9569_v17, %v858_v2  ;;  %v860_v7 = vpop.f32.mrb[31].mxu0  ;;  %v3554_v9 = vrot.slane %v12738_v3, 2  ;;  %v3555_v10 = vrot.slane %v12737_v4, 3  ;;  %v1012_v11 = vmax.f32 %v856_v0, 0.0 }
 0x15d   : > { %v4569_v0 = vrot.slane %v4567_v47, 7  ;;  %v4570_v7 = vshll.u32 %v4079_v34, 16 }
 0x15e   : > { %v1013_v12 = vmax.f32 %v859_v6, 0.0  ;;  %v3556_v13 = vor.u32 %v3555_v10, %v3554_v9 }
 0x160   : > { %v1055_v20 = vpack.c.bf16 %v1013_v12, %v1012_v11  ;;  %v9644_v26 = vsel %vm3533_vm2, %v3552_v54, %v3556_v13  ;;  %v4572_v11 = vor.u32 %v4570_v7, %v4569_v0 }
 0x161   : > { %v863_v21 = vpop.f32.mrb[32].mxu0  ;;  %v9641_v24 = vld [vmem:[#allocation2 + $0x30] sm:$0xff]  ;;  %12769 = vst [vmem:[#allocation9_spill] sm:$0xff] %v9644_v26 }
 0x162   : > { %1081 = vst.msk [vmem:[#allocation2 + $0x38] sm:$0xff] %vm1073_vm1, %v1055_v20  ;;  %v864_v27 = vadd.f32 %v9569_v17, %v863_v21  ;;  %v865_v28 = vpop.f32.mrb[33].mxu0  ;;  %v12736_v30 = vshrl.u32 %v9641_v24, 16  ;;  %v12735_v31 = vshll.u32 %v9641_v24, 16  ;;  %v4080_v5 = vld [vmem:[#allocation2 + $0x30] sm:$0xff] }
 0x163   : > { %v866_v29 = vpop.f32.mrb[34].mxu0  ;;  %v4575_v12 = vshrl.u32 %v4080_v5, 16 }
 0x164   : > { %v867_v32 = vadd.f32 %v9569_v17, %v866_v29  ;;  %v868_v33 = vpop.f32.mrb[35].mxu0  ;;  %v3558_v35 = vrot.slane %v12736_v30, 2  ;;  %v3559_v36 = vrot.slane %v12735_v31, 3  ;;  %v1014_v38 = vmax.f32 %v864_v27, 0.0 }
 0x165   : > { %v9678_v27 = vsel %vm4537_vm3, %v4561_v25, %v4572_v11 }
 0x166   : > { %v1015_v42 = vmax.f32 %v867_v32, 0.0  ;;  %v3560_v43 = vor.u32 %v3559_v36, %v3558_v35  ;;  %12774 = vst [vmem:[#allocation14_spill] sm:$0xff] %v9678_v27  ;;  %v4577_v35 = vrot.slane %v4575_v12, 7 }
 0x168   : > { %v1056_v48 = vpack.c.bf16 %v1015_v42, %v1014_v38  ;;  %v9658_v51 = vsel %vm3533_vm2, %v3556_v13, %v3560_v43 }
 0x169   : > { %v871_v49 = vpop.f32.mrb[36].mxu0  ;;  %v9655_v50 = vld [vmem:[#allocation2 + $0x38] sm:$0xff]  ;;  %12770 = vst [vmem:[#allocation10_spill] sm:$0xff] %v9658_v51 }
 0x16a   : > { %1082 = vst.msk [vmem:[#allocation2 + $0x40] sm:$0xff] %vm1073_vm1, %v1056_v48  ;;  %v872_v53 = vadd.f32 %v9569_v17, %v871_v49  ;;  %v873_v54 = vpop.f32.mrb[37].mxu0  ;;  %v12734_v57 = vshrl.u32 %v9655_v50, 16  ;;  %v12733_v61 = vshll.u32 %v9655_v50, 16  ;;  %v4081_v38 = vld [vmem:[#allocation2 + $0x38] sm:$0xff] }
 0x16b   : > { %v874_v56 = vpop.f32.mrb[38].mxu0 }
 0x16c   : > { %v875_v1 = vadd.f32 %v9569_v17, %v874_v56  ;;  %v876_v2 = vpop.f32.mrb[39].mxu0  ;;  %v3562_v6 = vrot.slane %v12734_v57, 2  ;;  %v3563_v55 = vrot.slane %v12733_v61, 3  ;;  %v1016_v8 = vmax.f32 %v872_v53, 0.0 }
 0x16d   : > { %v4583_v53 = vshrl.u32 %v4081_v38, 16 }
 0x16e   : > { %v1017_v9 = vmax.f32 %v875_v1, 0.0  ;;  %v3564_v10 = vor.u32 %v3563_v55, %v3562_v6 }
 0x16f   : > { %v4585_v11 = vrot.slane %v4583_v53, 7 }
 0x170   : > { %v1057_v13 = vpack.c.bf16 %v1017_v9, %v1016_v8  ;;  %v9675_v21 = vsel %vm3533_vm2, %v3560_v43, %v3564_v10  ;;  %v4578_v43 = vshll.u32 %v4080_v5, 16 }
 0x171   : > { %v879_v19 = vpop.f32.mrb[40].mxu0  ;;  %v9672_v20 = vld [vmem:[#allocation2 + $0x40] sm:$0xff]  ;;  %12773 = vst [vmem:[#allocation13_spill] sm:$0xff] %v9675_v21 }
 0x172   : > { %12772 = vst [vmem:[#allocation12_spill] sm:$0xff] %v9672_v20  ;;  %1083 = vst.msk [vmem:[#allocation2 + $0x48] sm:$0xff] %vm1073_vm1, %v1057_v13  ;;  %v880_v28 = vadd.f32 %v9569_v17, %v879_v19  ;;  %v881_v29 = vpop.f32.mrb[41].mxu0  ;;  %v12732_v33 = vshrl.u32 %v9672_v20, 16  ;;  %v12731_v34 = vshll.u32 %v9672_v20, 16  ;;  %v4580_v49 = vor.u32 %v4578_v43, %v4577_v35  ;;  %v4082_v19 = vld [vmem:[#allocation2 + $0x40] sm:$0xff] }
 0x173   : > { %v882_v32 = vpop.f32.mrb[42].mxu0 }
 0x174   : > { %v883_v36 = vadd.f32 %v9569_v17, %v882_v32  ;;  %v884_v37 = vpop.f32.mrb[43].mxu0  ;;  %v3566_v42 = vrot.slane %v12732_v33, 2  ;;  %v3567_v25 = vrot.slane %v12731_v34, 3  ;;  %v1018_v44 = vmax.f32 %v880_v28, 0.0 }
 0x175   : > { %v9695_v6 = vsel %vm4537_vm3, %v4569_v0, %v4580_v49  ;;  %v4586_v28 = vshll.u32 %v4081_v38, 16 }
 0x176   : > { %v1019_v47 = vmax.f32 %v883_v36, 0.0  ;;  %v3568_v48 = vor.u32 %v3567_v25, %v3566_v42  ;;  %12777 = vst [vmem:[#allocation17_spill] sm:$0xff] %v9695_v6  ;;  %v4591_v42 = vshrl.u32 %v4082_v19, 16 }
 0x177   : > { %v4588_v37 = vor.u32 %v4586_v28, %v4585_v11 }
 0x178   : > { %v1058_v54 = vpack.c.bf16 %v1019_v47, %v1018_v44  ;;  %v9692_v2 = vsel %vm3533_vm2, %v3564_v10, %v3568_v48 }
 0x179   : > { %v887_v56 = vpop.f32.mrb[44].mxu0  ;;  %v9689_v1 = vld [vmem:[#allocation2 + $0x48] sm:$0xff]  ;;  %12776 = vst [vmem:[#allocation16_spill] sm:$0xff] %v9692_v2  ;;  %v9710_v49 = vsel %vm4537_vm3, %v4577_v35, %v4588_v37 }
 0x17a   : > { %12775 = vst [vmem:[#allocation15_spill] sm:$0xff] %v9689_v1  ;;  %1084 = vst.msk [vmem:[#allocation2 + $0x50] sm:$0xff] %vm1073_vm1, %v1058_v54  ;;  %v888_v55 = vadd.f32 %v9569_v17, %v887_v56  ;;  %v889_v5 = vpop.f32.mrb[45].mxu0  ;;  %v12730_v8 = vshrl.u32 %v9689_v1, 16  ;;  %v12729_v9 = vshll.u32 %v9689_v1, 16  ;;  %v4083_v38 = vld [vmem:[#allocation2 + $0x48] sm:$0xff] }
 0x17b   : > { %v890_v7 = vpop.f32.mrb[46].mxu0  ;;  %12779 = vst [vmem:[#allocation19_spill] sm:$0xff] %v9710_v49  ;;  %v4599_v28 = vshrl.u32 %v4083_v38, 16  ;;  %v12791_v49 = vmov 0.0  }
 0x17c   : > { %v891_v12 = vadd.f32 %v9569_v17, %v890_v7  ;;  %v892_v13 = vpop.f32.mrb[47].mxu0  ;;  %v3570_v10 = vrot.slane %v12730_v8, 2  ;;  %v3571_v0 = vrot.slane %v12729_v9, 3  ;;  %v1020_v29 = vmax.f32 %v888_v55, 0.0 }
 0x17d   : > { %v4593_v7 = vrot.slane %v4591_v42, 7 }
 0x17e   : > { %v1021_v32 = vmax.f32 %v891_v12, 0.0  ;;  %v3572_v36 = vor.u32 %v3571_v0, %v3570_v10 }
 0x180   : > { %v1059_v25 = vpack.c.bf16 %v1021_v32, %v1020_v29  ;;  %v9707_v47 = vsel %vm3533_vm2, %v3568_v48, %v3572_v36  ;;  %v4594_v48 = vshll.u32 %v4082_v19, 16 }
 0x181   : > { %v895_v43 = vpop.f32.mrb[48].mxu0  ;;  %v2077_v44 = vld [vmem:[#allocation2 + $0x50] sm:$0xff]  ;;  %12778 = vst [vmem:[#allocation18_spill] sm:$0xff] %v9707_v47 }
 0x182   : > { %1085 = vst.msk [vmem:[#allocation2 + $0x58] sm:$0xff] %vm1073_vm1, %v1059_v25  ;;  %v896_v53 = vadd.f32 %v9569_v17, %v895_v43  ;;  %v897_v54 = vpop.f32.mrb[49].mxu0  ;;  %v2620_v55 = vshrl.u32 %v2077_v44, 16  ;;  %v2623_v5 = vshll.u32 %v2077_v44, 16  ;;  %v4084_v37 = vld [vmem:[#allocation2 + $0x50] sm:$0xff]  ;;  %v4596_v25 = vor.u32 %v4594_v48, %v4593_v7 }
 0x183   : > { %v898_v56 = vpop.f32.mrb[50].mxu0  ;;  %v4601_v44 = vrot.slane %v4599_v28, 7  ;;  %v4610_v31 = vshll.u32 %v4084_v37, 16 }
 0x184   : > { %v899_v12 = vadd.f32 %v9569_v17, %v898_v56  ;;  %v900_v13 = vpop.f32.mrb[51].mxu0  ;;  %v3574_v10 = vrot.slane %v2620_v55, 2  ;;  %v3575_v0 = vrot.slane %v2623_v5, 3  ;;  %v1022_v29 = vmax.f32 %v896_v53, 0.0 }
 0x185   : > { %v9719_v42 = vsel %vm4537_vm3, %v4585_v11, %v4596_v25  ;;  %v4607_v13 = vshrl.u32 %v4084_v37, 16  ;;  %v2625_v48 = vrot.slane %v2623_v5, 6  ;;  %v4602_v25 = vshll.u32 %v4083_v38, 16 }
 0x186   : > { %v1023_v35 = vmax.f32 %v899_v12, 0.0  ;;  %v3576_v32 = vor.u32 %v3575_v0, %v3574_v10  ;;  %12781 = vst [vmem:[#allocation21_spill] sm:$0xff] %v9719_v42  ;;  %v2622_v0 = vrot.slane %v2620_v55, 5 }
 0x187   : > { %v4604_v30 = vor.u32 %v4602_v25, %v4601_v44 }
 0x188   : > { %v1060_v9 = vpack.c.bf16 %v1023_v35, %v1022_v29  ;;  %v9716_v34 = vsel %vm3533_vm2, %v3572_v36, %v3576_v32  ;;  %v9724_v4 = vor.u32 %v2625_v48, %v2622_v0 }
 0x189   : > { %v903_v43 = vpop.f32.mrb[52].mxu0  ;;  %v2078_v54 = vld [vmem:[#allocation2 + $0x58] sm:$0x3]  ;;  %12780 = vst [vmem:[#allocation20_spill] sm:$0xff] %v9716_v34 }
 0x18a   : > { %v3072_v8 = vld [vmem:[#allocation2 + $0x58] sm:$0x7f]  ;;  %1086 = vst.msk [vmem:[#allocation2 + $0x60] sm:$0xff] %vm1073_vm1, %v1060_v9  ;;  %v904_v19 = vadd.f32 %v9569_v17, %v903_v43  ;;  %v905_v53 = vpop.f32.mrb[53].mxu0  ;;  %v2629_v56 = vshrl.u32 %v2078_v54, 16  ;;  %v2632_v12 = vshll.u32 %v2078_v54, 16 }
 0x18b   : > { %v906_v10 = vpop.f32.mrb[54].mxu0  ;;  %v3579_v29 = vshrl.u32 %v3072_v8, 16  ;;  %v3582_v35 = vshll.u32 %v3072_v8, 16  ;;  %v4085_v11 = vld [vmem:[#allocation2 + $0x58] sm:$0xff]  ;;  %v4609_v54 = vrot.slane %v4607_v13, 7  ;;  %12782 = vst [vmem:[#allocation22_spill] sm:$0xff] %v9724_v4 }
 0x18c   : > { %v907_v36 = vadd.f32 %v9569_v17, %v906_v10  ;;  %v908_v33 = vpop.f32.mrb[55].mxu0  ;;  %v2631_v61 = vrot.slane %v2629_v56, 5  ;;  %v2634_v28 = vrot.slane %v2632_v12, 6  ;;  %v1024_v43 = vmax.f32 %v904_v19, 0.0 }
 0x18d   : > { %v3581_v57 = vrot.slane %v3579_v29, 2  ;;  %v3584_v9 = vrot.slane %v3582_v35, 3  ;;  %v4615_v8 = vshrl.u32 %v4085_v11, 16  ;;  %v9729_v33 = vsel %vm4537_vm3, %v4593_v7, %v4604_v30 }
 0x18e   : > { %v1025_v53 = vmax.f32 %v907_v36, 0.0  ;;  %v2635_v55 = vor.u32 %v2634_v28, %v2631_v61  ;;  %12784 = vst [vmem:[#allocation24_spill] sm:$0xff] %v9729_v33  ;;  %v4612_v38 = vor.u32 %v4610_v31, %v4609_v54 }
 0x18f   : > { %v9726_v5 = vor.u32 %v3584_v9, %v3581_v57  ;;  %v4617_v61 = vrot.slane %v4615_v8, 7  ;;  %v4618_v57 = vshll.u32 %v4085_v11, 16 }
 0x190   : > { %v1061_v3 = vpack.c.bf16 %v1025_v53, %v1024_v43  ;;  %v9733_v37 = vsel %vm2529_vm4, %v9724_v4, %v2635_v55  ;;  %v9742_v31 = vsel %vm4537_vm3, %v4601_v44, %v4612_v38 }
 0x191   : > { %12783 = vst [vmem:[#allocation23_spill] sm:$0xff] %v9726_v5  ;;  %v911_v56 = vpop.f32.mrb[56].mxu0  ;;  %12785 = vst [vmem:[#allocation25_spill] sm:$0xff] %v9733_v37  ;;  %v9737_v19 = vsel %vm3533_vm2, %v3576_v32, %v9726_v5  ;;  %v4086_v12 = vld [vmem:[#allocation2 + $0x60] sm:$0xf]  ;;  %v4620_v7 = vor.u32 %v4618_v57, %v4617_v61  ;;  %v9256_v57 = vld [vmem:[%s12724_s3 + $0x30] sm:$0xff]  }
 0x192   : > { %12786 = vst [vmem:[#allocation26_spill] sm:$0xff] %v9737_v19  ;;  %1087 = vst.msk [vmem:[#allocation2 + $0x68] sm:$0xff] %vm1073_vm1, %v1061_v3  ;;  %v912_v13 = vadd.f32 %v9569_v17, %v911_v56  ;;  %v913_v10 = vpop.f32.mrb[57].mxu0  ;;  %v4623_v0 = vshrl.u32 %v4086_v12, 16  ;;  %v4626_v36 = vshll.u32 %v4086_v12, 16 }
 0x193   : > { %v914_v30 = vpop.f32.mrb[58].mxu0  ;;  %12787 = vst [vmem:[#allocation27_spill] sm:$0xff] %v9742_v31  ;;  %v9746_v32 = vsel %vm4537_vm3, %v4609_v54, %v4620_v7  ;;  %v1114_v3 = vld [vmem:[#allocation2 + $0x60] sm:$0xf0] }
 0x194   : > { %v915_v48 = vadd.f32 %v9569_v17, %v914_v30  ;;  %v916_v29 = vpop.f32.mrb[59].mxu0  ;;  %12788 = vst [vmem:[#allocation28_spill] sm:$0xff] %v9746_v32  ;;  %v4625_v35 = vrot.slane %v4623_v0, 7  ;;  %v1026_v11 = vmax.f32 %v912_v13, 0.0  ;;  %v1143_v44 = vrot.slane %v1114_v3, 4 }
 0x195   : > { %v1773_v55 = vshrl.u32 %v1114_v3, 16  ;;  %v1776_v8 = vshll.u32 %v1114_v3, 16 }
 0x196   : > { %v1027_v25 = vmax.f32 %v915_v48, 0.0  ;;  %v4628_v28 = vor.u32 %v4626_v36, %v4625_v35 }
 0x197   : > { %v1775_v35 = vrot.slane %v1773_v55, 4  ;;  %v1778_v36 = vrot.slane %v1776_v8, 5 }
 0x198   : > { %v1062_v9 = vpack.c.bf16 %v1027_v25, %v1026_v11  ;;  %v9749_v38 = vsel %vm4537_vm3, %v4617_v61, %v4628_v28  ;;  %v9257_v28 = vld [vmem:[%s12724_s3 + $0x38] sm:$0xff]  }
 0x199   : > { %v919_v43 = vpop.f32.mrb[60].mxu0  ;;  %v1115_v53 = vld [vmem:[#allocation2 + $0x68] sm:$0xff]  ;;  %12789 = vst [vmem:[#allocation29_spill] sm:$0xff] %v9749_v38 }
 0x19a   : > { %1088 = vst.msk [vmem:[#allocation2 + $0x70] sm:$0xff] %vm1073_vm1, %v1062_v9  ;;  %v920_v54 = vadd.f32 %v9569_v17, %v919_v43  ;;  %v921_v56 = vpop.f32.mrb[61].mxu0  ;;  %v1144_v12 = vrot.slane %v1115_v53, 4  ;;  %v1781_v13 = vshrl.u32 %v1115_v53, 16  ;;  %v1784_v10 = vshll.u32 %v1115_v53, 16 }
 0x19b   : > { %v922_v30 = vpop.f32.mrb[62].mxu0  ;;  %v9758_v29 = vld [vmem:[#allocation2 + $0x68] sm:$0xfe]  ;;  %v1779_v56 = vor.u32 %v1778_v36, %v1775_v35 }
 0x19c   : > { %v923_v7 = vadd.f32 %v9569_v17, %v922_v30  ;;  %v924_v0 = vpop.f32.mrb[63].mxu0  ;;  %v1145_v48 = vsel %vm1142_vm5, %v1143_v44, %v1144_v12  ;;  %v1783_v61 = vrot.slane %v1781_v13, 4  ;;  %v1786_v11 = vrot.slane %v1784_v10, 5  ;;  %v3289_v55 = vld [vmem:[#allocation2 + $0x68] sm:$0xc0] }
 0x19d   : > { %8242 = vmatmul.mubr.msk.bf16.vlgmr.msra.gmra.mrb[100].mxu0 %vm1073_vm1, %v1145_v48  ;;  %v1028_v25 = vmax.f32 %v920_v54, 0.0  ;;  %v2831_v9 = vshrl.u32 %v9758_v29, 16  ;;  %v2834_v43 = vshll.u32 %v9758_v29, 16 }
 0x19e   : > { %v1029_v3 = vmax.f32 %v923_v7, 0.0  ;;  %8382 = vmatpush3.bf16.msra.mxu0 %v9256_v57  ;;  %8385 = vmatprep.mubr.msk.bf16.mxu0 %vm9420_vm0, %v12746_v14  ;;  %v9769_v44 = vor.u32 %v1786_v11, %v1783_v61  ;;  %v9258_v7 = vld [vmem:[%s12724_s3] sm:$0xff]   ;;  %v3781_v11 = vshrl.u32 %v3289_v55, 16 }
 0x19f   : > { %8383 = vmatprep.subr.bf16.mxu0 %v12746_v14  ;;  %v2833_v35 = vrot.slane %v2831_v9, 1  ;;  %v2836_v36 = vrot.slane %v2834_v43, 2 }
 0x1a0   : > { %v1063_v53 = vpack.c.bf16 %v1029_v3, %v1028_v25 }
 0x1a1   : > { %v927_v8 = vpop.f32.mrb[64].mxu0  ;;  %v9771_v54 = vld [vmem:[#allocation2 + $0x70] sm:$0xff] }
 0x1a2   : > { %v3290_v57 = vld [vmem:[#allocation2 + $0x70] sm:$0xff]  ;;  %1089 = vst.msk [vmem:[#allocation2 + $0x78] sm:$0xff] %vm1073_vm1, %v1063_v53  ;;  %v928_v13 = vadd.f32 %v9569_v17, %v927_v8  ;;  %v929_v10 = vpop.f32.mrb[65].mxu0  ;;  %8384 = vmatpush3.bf16.msra.mxu0 %v9257_v28  ;;  %v1146_v30 = vrot.slane %v9771_v54, 4  ;;  %v1790_v0 = vshrl.u32 %v9771_v54, 16  ;;  %v1793_v48 = vshll.u32 %v9771_v54, 16 }
 0x1a3   : > { %v930_v61 = vpop.f32.mrb[66].mxu0  ;;  %8477 = vmatprep.subr.bf16.mxu0 %v12746_v14  ;;  %v3789_v25 = vshrl.u32 %v3290_v57, 16  ;;  %v1788_v8 = vsel %vm1771_vm6, %v1779_v56, %v9769_v44  ;;  %v3792_v56 = vshll.u32 %v3290_v57, 16 }
 0x1a4   : > { %v931_v3 = vadd.f32 %v9569_v17, %v930_v61  ;;  %v932_v28 = vpop.f32.mrb[67].mxu0  ;;  %v1147_v53 = vsel %vm1142_vm5, %v1144_v12, %v1146_v30  ;;  %v1792_v10 = vrot.slane %v1790_v0, 4  ;;  %v1795_v9 = vrot.slane %v1793_v48, 5  ;;  %v9259_v12 = vld [vmem:[%s12724_s3 + $0x8] sm:$0xff]  }
 0x1a5   : > { %8246 = vmatmul.mubr.msk.bf16.vlgmr.msra.gmra.mrb[0].mxu1 %vm1073_vm1, %v1147_v53  ;;  %8386 = vmatmul.mubr.msk.bf16.vlgmr.msra.gmra.mrb[104].mxu0 %vm1073_vm1, %v1788_v8  ;;  %v2838_v43 = vrot.slane %v1790_v0, 1  ;;  %v2839_v61 = vrot.slane %v1793_v48, 2  ;;  %v3784_v28 = vshll.u32 %v3289_v55, 16  ;;  %v1030_v45 = vmax.f32 %v928_v13, 0.0  ;;  %v9262_v48 = vld [vmem:[%s12724_s3 + $0x58] sm:$0xff]  }
 0x1a6   : > { %v1031_v23 = vmax.f32 %v931_v3, 0.0  ;;  %8286 = vmatpush3.bf16.msra.mxu1 %v9258_v7  ;;  %8249 = vmatprep.mubr.msk.bf16.mxu1 %vm9420_vm0, %v12746_v14  ;;  %v9800_v53 = vor.u32 %v1795_v9, %v1792_v10  ;;  %v2837_v55 = vor.u32 %v2836_v36, %v2833_v35  ;;  %v3791_v0 = vrot.slane %v3789_v25, 6 }
 0x1a7   : > { %8389 = vmatprep.mubr.msk.bf16.mxu0 %vm9420_vm0, %v12746_v14  ;;  %8287 = vmatprep.subr.bf16.mxu1 %v12746_v14  ;;  %v2840_v13 = vor.u32 %v2839_v61, %v2838_v43  ;;  %v3794_v3 = vrot.slane %v3792_v56, 7  ;;  %v3783_v35 = vrot.slane %v3781_v11, 6  ;;  %v3786_v36 = vrot.slane %v3784_v28, 7 }
 0x1a8   : > { %v1064_v7 = vpack.c.bf16 %v1031_v23, %v1030_v45  ;;  %8478 = vmatpush3.bf16.msra.mxu0 %v9261_v46  ;;  %v1797_v11 = vsel %vm1771_vm6, %v9769_v44, %v9800_v53  ;;  %v12745_v28 = vrot.slane %v9771_v54, 1 }
 0x1a9   : > { %v935_v8 = vpop.f32.mrb[68].mxu0  ;;  %v9806_v57 = vld [vmem:[#allocation2 + $0x78] sm:$0xff]  ;;  %8479 = vmatprep.subr.bf16.mxu0 %v12746_v14  ;;  %v9810_v10 = vsel %vm2829_vm7, %v2837_v55, %v2840_v13  ;;  %v9825_v55 = vor.u32 %v3794_v3, %v3791_v0  ;;  %v3787_v63 = vor.u32 %v3786_v36, %v3783_v35 }
 0x1aa   : > { %v9812_v25 = vld [vmem:[#allocation2 + $0x78] sm:$0xff]  ;;  %1090 = vst.msk [vmem:[#allocation2 + $0x80] sm:$0xff] %vm1073_vm1, %v1064_v7  ;;  %v936_v23 = vadd.f32 %v9569_v17, %v935_v8  ;;  %v937_v45 = vpop.f32.mrb[69].mxu0  ;;  %v1148_v46 = vrot.slane %v9806_v57, 4  ;;  %v1799_v9 = vshrl.u32 %v9806_v57, 16  ;;  %v1802_v43 = vshll.u32 %v9806_v57, 16  ;;  %8288 = vmatpush3.bf16.msra.mxu1 %v9259_v12 }
 0x1ab   : > { %12790 = vst [vmem:[#allocation30_spill] sm:$0xff] %v9812_v25  ;;  %v938_v61 = vpop.f32.mrb[70].mxu0  ;;  %8333 = vmatprep.subr.bf16.mxu1 %v12746_v14  ;;  %v2319_v56 = vrot.slane %v9806_v57, 1  ;;  %v3798_v22 = vshrl.u32 %v9812_v25, 16 }
 0x1ac   : > { %v939_v7 = vadd.f32 %v9569_v17, %v938_v61  ;;  %v940_v8 = vpop.f32.mrb[71].mxu0  ;;  %v1149_v12 = vsel %vm1142_vm5, %v1146_v30, %v1148_v46  ;;  %v1801_v45 = vrot.slane %v1799_v9, 4  ;;  %8480 = vmatpush3.bf16.msra.mxu0 %v9262_v48  ;;  %v1804_v44 = vrot.slane %v1802_v43, 5  ;;  %v4315_v48 = vld [vmem:[#allocation2 + $0x70] sm:$0xf8] }
 0x1ad   : > { %8250 = vmatmul.mubr.msk.bf16.gmra.mrb[4].mxu1 %vm1073_vm1, %v1149_v12  ;;  %8390 = vmatmul.mubr.msk.bf16.gmra.mrb[108].mxu0 %vm1073_vm1, %v1797_v11  ;;  %v9837_v0 = vsel %vm2315_vm9, %v12745_v28, %v2319_v56  ;;  %v2842_v3 = vrot.slane %v1799_v9, 1  ;;  %v2843_v57 = vrot.slane %v1802_v43, 2  ;;  %v1032_v61 = vmax.f32 %v936_v23, 0.0 }
 0x1ae   : > { %v1033_v8 = vmax.f32 %v939_v7, 0.0  ;;  %8253 = vmatprep.mubr.msk.bf16.mxu1 %vm9420_vm0, %v12746_v14  ;;  %8393 = vmatprep.mubr.msk.bf16.mxu0 %vm9420_vm0, %v12746_v14  ;;  %v3801_v30 = vshll.u32 %v9812_v25, 16  ;;  %v9844_v11 = vor.u32 %v1804_v44, %v1801_v45  ;;  %v4831_v9 = vrot.slane %v3798_v22, 3 }
 0x1af   : > { %8573 = vmatprep.subr.bf16.mxu0 %v12746_v14  ;;  %v2844_v12 = vor.u32 %v2843_v57, %v2842_v3  ;;  %v4824_v38 = vshrl.u32 %v4315_v48, 16  ;;  %v4827_v32 = vshll.u32 %v4315_v48, 16  ;;  %v9856_v45 = vsel %vm3779_vm8, %v3787_v63, %v9825_v55 }
 0x1b0   : > { %v1065_v62 = vpack.c.bf16 %v1033_v8, %v1032_v61  ;;  %v4832_v43 = vrot.slane %v3801_v30, 4  ;;  %v1806_v61 = vsel %vm1771_vm6, %v9800_v53, %v9844_v11  ;;  %v3800_v63 = vrot.slane %v3798_v22, 6 }
 0x1b1   : > { %v943_v23 = vpop.f32.mrb[72].mxu0  ;;  %v9847_v7 = vld [vmem:[#allocation2 + $0x80] sm:$0xff]  ;;  %v9850_v28 = vsel %vm2829_vm7, %v2840_v13, %v2844_v12 }
 0x1b2   : > { %v9852_v31 = vld [vmem:[#allocation2 + $0x80] sm:$0xff]  ;;  %1091 = vst.msk [vmem:[#allocation2 + $0x88] sm:$0xff] %vm1073_vm1, %v1065_v62  ;;  %v944_v35 = vadd.f32 %v9569_v17, %v943_v23  ;;  %v945_v36 = vpop.f32.mrb[73].mxu0  ;;  %v1150_v44 = vrot.slane %v9847_v7, 4  ;;  %v1808_v3 = vshrl.u32 %v9847_v7, 16  ;;  %v1811_v13 = vshll.u32 %v9847_v7, 16 }
 0x1b3   : > { %v946_v57 = vpop.f32.mrb[74].mxu0  ;;  %v2321_v8 = vrot.slane %v9847_v7, 1  ;;  %v9867_v48 = vor.u32 %v4832_v43, %v4831_v9  ;;  %v3807_v33 = vshrl.u32 %v9852_v31, 16 }
 0x1b4   : > { %v947_v62 = vadd.f32 %v9569_v17, %v946_v57  ;;  %v948_v23 = vpop.f32.mrb[75].mxu0  ;;  %v1151_v36 = vsel %vm1142_vm5, %v1148_v46, %v1150_v44  ;;  %v1810_v14 = vrot.slane %v1808_v3, 4  ;;  %v1813_v42 = vrot.slane %v1811_v13, 5 }
 0x1b5   : > { %8254 = vmatmul.mubr.msk.bf16.gmra.mrb[8].mxu1 %vm1073_vm1, %v1151_v36  ;;  %8394 = vmatmul.mubr.msk.bf16.gmra.mrb[112].mxu0 %vm1073_vm1, %v1806_v61  ;;  %v9875_v53 = vsel %vm2315_vm9, %v2319_v56, %v2321_v8  ;;  %v2846_v7 = vrot.slane %v1808_v3, 1  ;;  %v2847_v22 = vrot.slane %v1811_v13, 2  ;;  %v1034_v9 = vmax.f32 %v944_v35, 0.0 }
 0x1b6   : > { %v1035_v43 = vmax.f32 %v947_v62, 0.0  ;;  %8257 = vmatprep.mubr.msk.bf16.mxu1 %vm9420_vm0, %v12791_v49  ;;  %8397 = vmatprep.mubr.msk.bf16.mxu0 %vm9420_vm0, %v12791_v49  ;;  %v3810_v57 = vshll.u32 %v9852_v31, 16  ;;  %v9883_v23 = vor.u32 %v1813_v42, %v1810_v14  ;;  %v3803_v36 = vrot.slane %v3801_v30, 7 }
 0x1b7   : > { %v2848_v61 = vor.u32 %v2847_v22, %v2846_v7  ;;  %v4327_v56 = vrot.slane %v9852_v31, 3  ;;  %v9886_v35 = vrot.slane %v4824_v38, 3  ;;  %v9888_v13 = vrot.slane %v4827_v32, 4 }
 0x1b8   : > { %v1066_v3 = vpack.c.bf16 %v1035_v43, %v1034_v9  ;;  %v3809_v46 = vrot.slane %v3807_v33, 6  ;;  %v3812_v52 = vrot.slane %v3810_v57, 7  ;;  %v12792_v42 = vrot.slane %v9812_v25, 3 }
 0x1b9   : > { %v951_v62 = vpop.f32.mrb[76].mxu0  ;;  %v9890_v6 = vld [vmem:[#allocation2 + $0x88] sm:$0xff]  ;;  %v9893_v27 = vsel %vm2829_vm7, %v2844_v12, %v2848_v61  ;;  %v1815_v9 = vsel %vm1771_vm6, %v9844_v11, %v9883_v23  ;;  %v9912_v15 = vor.u32 %v3803_v36, %v3800_v63 }
 0x1ba   : > { %v9895_v14 = vld [vmem:[#allocation2 + $0x88] sm:$0xff]  ;;  %v9900_v31 = vsel %vm4323_vm10, %v12792_v42, %v4327_v56  ;;  %1092 = vst.msk [vmem:[#allocation2 + $0x90] sm:$0xff] %vm1073_vm1, %v1066_v3  ;;  %v952_v32 = vadd.f32 %v9569_v17, %v951_v62  ;;  %v953_v38 = vpop.f32.mrb[77].mxu0  ;;  %v1152_v30 = vrot.slane %v9890_v6, 4  ;;  %v1817_v7 = vshrl.u32 %v9890_v6, 16 }
 0x1bb   : > { %12793 = vst [vmem:[#allocation31_spill] sm:$0xff] %v9900_v31  ;;  %v1820_v12 = vshll.u32 %v9890_v6, 16  ;;  %v954_v22 = vpop.f32.mrb[78].mxu0  ;;  %v2323_v43 = vrot.slane %v9890_v6, 1  ;;  %v3819_v5 = vshll.u32 %v9895_v14, 16 }
 0x1bc   : > { %v955_v3 = vadd.f32 %v9569_v17, %v954_v22  ;;  %v956_v62 = vpop.f32.mrb[79].mxu0  ;;  %v1153_v38 = vsel %vm1142_vm5, %v1150_v44, %v1152_v30  ;;  %v1819_v41 = vrot.slane %v1817_v7, 4  ;;  %v2850_v6 = vrot.slane %v1817_v7, 1 }
 0x1bd   : > { %8258 = vmatmul.mubr.msk.bf16.gmra.mrb[12].mxu1 %vm1073_vm1, %v1153_v38  ;;  %8398 = vmatmul.mubr.msk.bf16.gmra.mrb[116].mxu0 %vm1073_vm1, %v1815_v9  ;;  %v1822_v19 = vrot.slane %v1820_v12, 5  ;;  %v9920_v11 = vsel %vm2315_vm9, %v2321_v8, %v2323_v43  ;;  %v2851_v42 = vrot.slane %v1820_v12, 2  ;;  %v1036_v63 = vmax.f32 %v952_v32, 0.0 }
 0x1be   : > { %v1037_v36 = vmax.f32 %v955_v3, 0.0  ;;  %8261 = vmatprep.mubr.msk.bf16.mxu1 %vm9420_vm0, %v12791_v49  ;;  %8401 = vmatprep.mubr.msk.bf16.mxu0 %vm9420_vm0, %v12791_v49  ;;  %v9926_v17 = vrot.slane %v3807_v33, 3  ;;  %v9930_v9 = vrot.slane %v3810_v57, 4  ;;  %v4329_v8 = vrot.slane %v9895_v14, 3 }
 0x1bf   : > { %v9928_v44 = vor.u32 %v1822_v19, %v1819_v41  ;;  %v2852_v22 = vor.u32 %v2851_v42, %v2850_v6  ;;  %v12794_v7 = vshrl.u32 %v9895_v14, 16  ;;  %v3821_v12 = vrot.slane %v3819_v5, 7 }
 0x1c0   : > { %v1067_v62 = vpack.c.bf16 %v1037_v36, %v1036_v63  ;;  %v9938_v3 = vsel %vm3779_vm8, %v9825_v55, %v9912_v15  ;;  %v3813_v57 = vor.u32 %v3812_v52, %v3809_v46  ;;  %v9948_v42 = vsel %vm4323_vm10, %v4327_v56, %v4329_v8  ;;  %v9956_v55 = vld [vmem:[%s12723_s2] ss:$0 sm:$0xff] }
 0x1c1   : > { %v3818_v32 = vrot.slane %v12794_v7, 6  ;;  %v959_v38 = vpop.f32.mrb[80].mxu0  ;;  %v9940_v33 = vld [vmem:[#allocation2 + $0x90] sm:$0xff]  ;;  %v9943_v41 = vsel %vm2829_vm7, %v2848_v61, %v2852_v22  ;;  %12795 = vst [vmem:[#allocation32_spill] sm:$0xff] %v9948_v42  ;;  %v1824_v7 = vsel %vm1771_vm6, %v9883_v23, %v9928_v44 }
 0x1c2   : > { %v9945_v19 = vld [vmem:[#allocation2 + $0x90] sm:$0xff]  ;;  %1093 = vst.msk [vmem:[#allocation2 + $0x98] sm:$0xff] %vm1073_vm1, %v1067_v62  ;;  %v960_v63 = vadd.f32 %v9956_v55, %v959_v38  ;;  %v961_v61 = vpop.f32.mrb[81].mxu0  ;;  %v1154_v36 = vrot.slane %v9940_v33, 4  ;;  %v1826_v52 = vshrl.u32 %v9940_v33, 16  ;;  %v1829_v46 = vshll.u32 %v9940_v33, 16 }
 0x1c3   : > { %v962_v56 = vpop.f32.mrb[82].mxu0  ;;  %v2325_v62 = vrot.slane %v9940_v33, 1  ;;  %v3825_v6 = vshrl.u32 %v9945_v19, 16  ;;  %v3828_v34 = vshll.u32 %v9945_v19, 16  ;;  %v3822_v21 = vor.u32 %v3821_v12, %v3818_v32 }
 0x1c4   : > { %v963_v38 = vadd.f32 %v9956_v55, %v962_v56  ;;  %v964_v61 = vpop.f32.mrb[83].mxu0  ;;  %v1155_v47 = vsel %vm1142_vm5, %v1152_v30, %v1154_v36  ;;  %v1828_v2 = vrot.slane %v1826_v52, 4  ;;  %v1831_v51 = vrot.slane %v1829_v46, 5 }
 0x1c5   : > { %8262 = vmatmul.mubr.msk.bf16.gmra.mrb[16].mxu1 %vm1073_vm1, %v1155_v47  ;;  %8402 = vmatmul.mubr.msk.bf16.gmra.mrb[120].mxu0 %vm1073_vm1, %v1824_v7  ;;  %v9973_v23 = vsel %vm2315_vm9, %v2323_v43, %v2325_v62  ;;  %v2854_v33 = vrot.slane %v1826_v52, 1  ;;  %v2855_v26 = vrot.slane %v1829_v46, 2  ;;  %v1038_v60 = vmax.f32 %v960_v63, 0.0 }
 0x1c6   : > { %v1039_v40 = vmax.f32 %v963_v38, 0.0  ;;  %8265 = vmatprep.mubr.msk.bf16.mxu1 %vm9420_vm0, %v12791_v49  ;;  %8405 = vmatprep.mubr.msk.bf16.mxu0 %vm9420_vm0, %v12791_v49  ;;  %v3827_v30 = vrot.slane %v3825_v6, 6  ;;  %v3830_v32 = vrot.slane %v3828_v34, 7  ;;  %v12796_v47 = vshrl.u32 %v9895_v14, 16 }
 0x1c7   : > { %v2856_v12 = vor.u32 %v2855_v26, %v2854_v33  ;;  %v4840_v7 = vrot.slane %v3819_v5, 4  ;;  %v4331_v43 = vrot.slane %v9945_v19, 3  ;;  %v9982_v52 = vor.u32 %v1831_v51, %v1828_v2 }
 0x1c8   : > { %v4839_v56 = vrot.slane %v12796_v47, 3  ;;  %v1068_v61 = vpack.c.bf16 %v1039_v40, %v1038_v60  ;;  %v9986_v63 = vsel %vm3779_vm8, %v9912_v15, %v3813_v57  ;;  %v9989_v46 = vsel %vm3779_vm8, %v3813_v57, %v3822_v21 }
 0x1c9   : > { %v967_v38 = vpop.f32.mrb[84].mxu0  ;;  %v9991_v18 = vld [vmem:[#allocation2 + $0x98] sm:$0xff]  ;;  %v9994_v26 = vsel %vm2829_vm7, %v2852_v22, %v2856_v12  ;;  %v4843_v5 = vrot.slane %v3825_v6, 3  ;;  %v9998_v19 = vor.u32 %v3830_v32, %v3827_v30  ;;  %v10001_v40 = vsel %vm4323_vm10, %v4329_v8, %v4331_v43 }
 0x1ca   : > { %v9996_v14 = vld [vmem:[#allocation2 + $0x98] sm:$0xff]  ;;  %12797 = vst [vmem:[#allocation33_spill] sm:$0xff] %v10001_v40  ;;  %1094 = vst.msk [vmem:[#allocation2 + $0xa0] sm:$0xff] %vm1073_vm1, %v1068_v61  ;;  %v968_v60 = vadd.f32 %v9956_v55, %v967_v38  ;;  %v969_v15 = vpop.f32.mrb[85].mxu0  ;;  %v1156_v51 = vrot.slane %v9991_v18, 4  ;;  %v1835_v2 = vshrl.u32 %v9991_v18, 16  ;;  %v1833_v38 = vsel %vm1771_vm6, %v9928_v44, %v9982_v52 }
 0x1cb   : > { %v1838_v22 = vshll.u32 %v9991_v18, 16  ;;  %v970_v57 = vpop.f32.mrb[86].mxu0  ;;  %v2327_v33 = vrot.slane %v9991_v18, 1  ;;  %v4844_v6 = vrot.slane %v3828_v34, 4  ;;  %v10011_v30 = vsel %vm3779_vm8, %v3822_v21, %v9998_v19 }
 0x1cc   : > { %v971_v32 = vadd.f32 %v9956_v55, %v970_v57  ;;  %v972_v47 = vpop.f32.mrb[87].mxu0  ;;  %v1157_v61 = vsel %vm1142_vm5, %v1154_v36, %v1156_v51  ;;  %v1837_v15 = vrot.slane %v1835_v2, 4  ;;  %v2858_v34 = vrot.slane %v1835_v2, 1 }
 0x1cd   : > { %8266 = vmatmul.mubr.msk.bf16.gmra.mrb[20].mxu1 %vm1073_vm1, %v1157_v61  ;;  %8406 = vmatmul.mubr.msk.bf16.gmra.mrb[124].mxu0 %vm1073_vm1, %v1833_v38  ;;  %v1840_v18 = vrot.slane %v1838_v22, 5  ;;  %v10022_v21 = vsel %vm2315_vm9, %v2325_v62, %v2327_v33  ;;  %v2859_v8 = vrot.slane %v1838_v22, 2  ;;  %v1040_v40 = vmax.f32 %v968_v60, 0.0 }
 0x1ce   : > { %v1041_v57 = vmax.f32 %v971_v32, 0.0  ;;  %8269 = vmatprep.mubr.msk.bf16.mxu1 %vm9420_vm0, %v12791_v49  ;;  %8409 = vmatprep.mubr.msk.bf16.mxu0 %vm9420_vm0, %v12791_v49  ;;  %v12798_v44 = vshrl.u32 %v9996_v14, 16  ;;  %v12749_v47 = vshll.u32 %v9996_v14, 16  ;;  %v4333_v62 = vrot.slane %v9996_v14, 3 }
 0x1cf   : > { %v10031_v61 = vor.u32 %v1840_v18, %v1837_v15  ;;  %v2860_v38 = vor.u32 %v2859_v8, %v2858_v34  ;;  %v12799_v60 = vor.u32 %v9888_v13, %v9886_v35  ;;  %v4841_v42 = vor.u32 %v4840_v7, %v4839_v56 }
 0x1d0   : > { %v3836_v36 = vrot.slane %v12798_v44, 6  ;;  %v1069_v22 = vpack.c.bf16 %v1041_v57, %v1040_v40  ;;  %v3839_v32 = vrot.slane %v12749_v47, 7  ;;  %v4837_v44 = vor.u32 %v9930_v9, %v9926_v17 }
 0x1d1   : > { %v10039_v2 = vsel %vm4822_vm11, %v12799_v60, %v9867_v48  ;;  %v975_v15 = vpop.f32.mrb[88].mxu0  ;;  %v10045_v18 = vld [vmem:[#allocation2 + $0xa0] sm:$0xff]  ;;  %v10048_v8 = vsel %vm2829_vm7, %v2856_v12, %v2860_v38  ;;  %v10053_v35 = vsel %vm4323_vm10, %v4331_v43, %v4333_v62  ;;  %v10055_v13 = vor.u32 %v4844_v6, %v4843_v5 }
 0x1d2   : > { %12800 = vst [vmem:[#allocation34_spill] sm:$0xff] %v10039_v2  ;;  %v10050_v34 = vld [vmem:[#allocation2 + $0xa0] sm:$0xff]  ;;  %12801 = vst [vmem:[#allocation35_spill] sm:$0xff] %v10053_v35  ;;  %v976_v40 = vadd.f32 %v9956_v55, %v975_v15  ;;  %v977_v57 = vpop.f32.mrb[89].mxu0  ;;  %v1158_v17 = vrot.slane %v10045_v18, 4  ;;  %v1844_v9 = vshrl.u32 %v10045_v18, 16  ;;  %v3840_v60 = vor.u32 %v3839_v32, %v3836_v36 }
 0x1d3   : > { %1095 = vst.msk [vmem:[#allocation2 + $0xa8] sm:$0xff] %vm1073_vm1, %v1069_v22  ;;  %v1847_v56 = vshll.u32 %v10045_v18, 16  ;;  %v978_v12 = vpop.f32.mrb[90].mxu0  ;;  %v2329_v7 = vrot.slane %v10045_v18, 1  ;;  %v1842_v15 = vsel %vm1771_vm6, %v9982_v52, %v10031_v61 }
 0x1d4   : > { %v979_v5 = vadd.f32 %v9956_v55, %v978_v12  ;;  %v980_v6 = vpop.f32.mrb[91].mxu0  ;;  %v1159_v22 = vsel %vm1142_vm5, %v1156_v51, %v1158_v17  ;;  %v1846_v57 = vrot.slane %v1844_v9, 4  ;;  %v2862_v36 = vrot.slane %v1844_v9, 1 }
 0x1d5   : > { %8270 = vmatmul.mubr.msk.bf16.gmra.mrb[24].mxu1 %vm1073_vm1, %v1159_v22  ;;  %8410 = vmatmul.mubr.msk.bf16.gmra.mrb[128].mxu0 %vm1073_vm1, %v1842_v15  ;;  %v1849_v47 = vrot.slane %v1847_v56, 5  ;;  %v10072_v18 = vsel %vm2315_vm9, %v2327_v33, %v2329_v7  ;;  %v2863_v32 = vrot.slane %v1847_v56, 2  ;;  %v1042_v43 = vmax.f32 %v976_v40, 0.0 }
 0x1d6   : > { %v1043_v12 = vmax.f32 %v979_v5, 0.0  ;;  %8273 = vmatprep.mubr.msk.bf16.mxu1 %vm9420_vm0, %v12791_v49  ;;  %8413 = vmatprep.mubr.msk.bf16.mxu0 %vm9420_vm0, %v12791_v49  ;;  %v10080_v52 = vsel %vm3779_vm8, %v9998_v19, %v3840_v60  ;;  %v12803_v51 = vshrl.u32 %v10050_v34, 16  ;;  %v12750_v9 = vshll.u32 %v10050_v34, 16 }
 0x1d7   : > { %12802 = vst [vmem:[#allocation36_spill] sm:$0xff] %v10080_v52  ;;  %v1850_v22 = vor.u32 %v1849_v47, %v1846_v57  ;;  %v2864_v33 = vor.u32 %v2863_v32, %v2862_v36  ;;  %v4335_v40 = vrot.slane %v10050_v34, 3  ;;  %v10088_v5 = vsel %vm4822_vm11, %v9867_v48, %v4837_v44 }
 0x1d8   : > { %v3845_v6 = vrot.slane %v12803_v51, 6  ;;  %v1070_v56 = vpack.c.bf16 %v1043_v12, %v1042_v43  ;;  %12804 = vst [vmem:[#allocation37_spill] sm:$0xff] %v10088_v5  ;;  %v10091_v15 = vsel %vm4822_vm11, %v4837_v44, %v4841_v42  ;;  %v10095_v19 = vsel %vm4822_vm11, %v4841_v42, %v10055_v13 }
 0x1d9   : > { %12805 = vst [vmem:[#allocation38_spill] sm:$0xff] %v10091_v15  ;;  %12806 = vst [vmem:[#allocation39_spill] sm:$0xff] %v10095_v19  ;;  %v983_v2 = vpop.f32.mrb[92].mxu0  ;;  %v10100_v47 = vsel %vm2829_vm7, %v2860_v38, %v2864_v33  ;;  %v3848_v43 = vrot.slane %v12750_v9, 7  ;;  %v10107_v48 = vsel %vm4323_vm10, %v4333_v62, %v4335_v40 }
 0x1da   : > { %v10097_v51 = vld [vmem:[#allocation2 + $0xa8] sm:$0xff]  ;;  %12807 = vst [vmem:[#allocation40_spill] sm:$0xff] %v10107_v48  ;;  %1096 = vst.msk [vmem:[#allocation2 + $0xb0] sm:$0xff] %vm1073_vm1, %v1070_v56  ;;  %v984_v44 = vadd.f32 %v9956_v55, %v983_v2  ;;  %v985_v42 = vpop.f32.mrb[93].mxu0  ;;  %v1851_v2 = vsel %vm1771_vm6, %v10031_v61, %v1850_v22 }
 0x1db   : > { %v10102_v57 = vld [vmem:[#allocation2 + $0xa8] sm:$0xff]  ;;  %v1160_v36 = vrot.slane %v10097_v51, 4  ;;  %v1853_v32 = vshrl.u32 %v10097_v51, 16  ;;  %v1856_v38 = vshll.u32 %v10097_v51, 16  ;;  %v986_v12 = vpop.f32.mrb[94].mxu0  ;;  %v2331_v19 = vrot.slane %v10097_v51, 1 }
 0x1dc   : > { %v3849_v15 = vor.u32 %v3848_v43, %v3845_v6  ;;  %v987_v62 = vadd.f32 %v9956_v55, %v986_v12  ;;  %v988_v5 = vpop.f32.mrb[95].mxu0  ;;  %v1044_v43 = vmax.f32 %v984_v44, 0.0  ;;  %v4337_v44 = vrot.slane %v10102_v57, 3 }
 0x1dd   : > { %v1161_v56 = vsel %vm1142_vm5, %v1158_v17, %v1160_v36  ;;  %v1855_v42 = vrot.slane %v1853_v32, 4  ;;  %8414 = vmatmul.mubr.msk.bf16.gmra.mrb[132].mxu0 %vm1073_vm1, %v1851_v2  ;;  %v1858_v48 = vrot.slane %v1856_v38, 5  ;;  %v10123_v35 = vsel %vm2315_vm9, %v2329_v7, %v2331_v19 }
 0x1de   : > { %8274 = vmatmul.mubr.msk.bf16.gmra.mrb[28].mxu1 %vm1073_vm1, %v1161_v56  ;;  %v2866_v6 = vrot.slane %v1853_v32, 1  ;;  %v2867_v51 = vrot.slane %v1856_v38, 2  ;;  %v1045_v9 = vmax.f32 %v987_v62, 0.0  ;;  %8417 = vmatprep.mubr.msk.bf16.mxu0 %vm9420_vm0, %v12791_v49  ;;  %v10130_v61 = vsel %vm3779_vm8, %v3840_v60, %v3849_v15 }
 0x1df   : > { %8277 = vmatprep.mubr.msk.bf16.mxu1 %vm9420_vm0, %v12791_v49  ;;  %12808 = vst [vmem:[#allocation41_spill] sm:$0xff] %v10130_v61  ;;  %v12809_v17 = vshrl.u32 %v10102_v57, 16  ;;  %v10134_v12 = vor.u32 %v1858_v48, %v1855_v42  ;;  %v12752_v32 = vshll.u32 %v10102_v57, 16  ;;  %v12810_v62 = vshrl.u32 %v9996_v14, 16 }
 0x1e0   : > { %v2868_v7 = vor.u32 %v2867_v51, %v2866_v6  ;;  %v1071_v38 = vpack.c.bf16 %v1045_v9, %v1044_v43  ;;  %v10150_v42 = vsel %vm4323_vm10, %v4335_v40, %v4337_v44  ;;  %v12812_v6 = vshll.u32 %v9996_v14, 16 }
 0x1e1   : > { %v3854_v5 = vrot.slane %v12809_v17, 6  ;;  %v4847_v56 = vrot.slane %v12810_v62, 3  ;;  %v991_v2 = vpop.f32.mrb[96].mxu0  ;;  %v10140_v31 = vld [vmem:[#allocation2 + $0xb0] sm:$0xff]  ;;  %v3857_v48 = vrot.slane %v12752_v32, 7  ;;  %12811 = vst [vmem:[#allocation42_spill] sm:$0xff] %v10150_v42  ;;  %v1860_v32 = vsel %vm1771_vm6, %v1850_v22, %v10134_v12 }
 0x1e2   : > { %v10143_v60 = vsel %vm2829_vm7, %v2864_v33, %v2868_v7  ;;  %v10145_v25 = vld [vmem:[#allocation2 + $0xb0] sm:$0xff]  ;;  %v4848_v9 = vrot.slane %v12812_v6, 4  ;;  %1097 = vst.msk [vmem:[#allocation2 + $0xb8] sm:$0xff] %vm1073_vm1, %v1071_v38  ;;  %v992_v51 = vadd.f32 %v9956_v55, %v991_v2  ;;  %v993_v43 = vpop.f32.mrb[97].mxu0  ;;  %v1162_v17 = vrot.slane %v10140_v31, 4 }
 0x1e3   : > { %v1862_v33 = vshrl.u32 %v10140_v31, 16  ;;  %v1865_v62 = vshll.u32 %v10140_v31, 16  ;;  %v994_v37 = vpop.f32.mrb[98].mxu0  ;;  %v12754_v40 = vrot.slane %v10140_v31, 1  ;;  %v3858_v42 = vor.u32 %v3857_v48, %v3854_v5 }
 0x1e4   : > { %v1046_v6 = vmax.f32 %v992_v51, 0.0  ;;  %v995_v38 = vadd.f32 %v9956_v55, %v994_v37  ;;  %v1163_v2 = vsel %vm1142_vm5, %v1160_v36, %v1162_v17  ;;  %v996_v4 = vpop.f32.mrb[99].mxu0  ;;  %v12814_v55 = vshrl.u32 %v10145_v25, 16 }
 0x1e5   : > { %v1864_v43 = vrot.slane %v1862_v33, 4  ;;  %8418 = vmatmul.mubr.msk.bf16.gmra.mrb[136].mxu0 %vm1073_vm1, %v1860_v32  ;;  %v1867_v61 = vrot.slane %v1865_v62, 5  ;;  %v10170_v22 = vsel %vm2315_vm9, %v2331_v19, %v12754_v40  ;;  %v2870_v5 = vrot.slane %v1862_v33, 1 }
 0x1e6   : > { %8278 = vmatmul.mubr.msk.bf16.gmra.mrb[32].mxu1 %vm1073_vm1, %v1163_v2  ;;  %v2871_v48 = vrot.slane %v1865_v62, 2  ;;  %v1047_v14 = vmax.f32 %v995_v38, 0.0  ;;  %8421 = vmatprep.mubr.msk.bf16.mxu0 %vm9420_vm0, %v12791_v49  ;;  %v10177_v4 = vsel %vm3779_vm8, %v3849_v15, %v3858_v42  ;;  %v3863_v36 = vrot.slane %v12814_v55, 6 }
 0x1e7   : > { %8281 = vmatprep.mubr.msk.bf16.mxu1 %vm9420_vm0, %v12791_v49  ;;  %12813 = vst [vmem:[#allocation43_spill] sm:$0xff] %v10177_v4  ;;  %v3864_v32 = vshll.u32 %v10145_v25, 16  ;;  %v4339_v19 = vrot.slane %v10145_v25, 3  ;;  %v1868_v33 = vor.u32 %v1867_v61, %v1864_v43  ;;  %v4849_v62 = vor.u32 %v4848_v9, %v4847_v56 }
 0x1e8   : > { %v2872_v37 = vor.u32 %v2871_v48, %v2870_v5  ;;  %v1072_v51 = vpack.c.bf16 %v1047_v14, %v1046_v6  ;;  %v12816_v4 = vshrl.u32 %v10050_v34, 16  ;;  %v12818_v6 = vshll.u32 %v10050_v34, 16 }
 0x1e9   : > { %v1125_v38 = vld [vmem:[#allocation2 + $0xb8] sm:$0x1]  ;;  %v3866_v1 = vrot.slane %v3864_v32, 7  ;;  %v10189_v15 = vsel %vm4323_vm10, %v4337_v44, %v4339_v19 }
 0x1ea   : > { %v10183_v2 = vld [vmem:[#allocation2 + $0xb8] sm:$0x3f]  ;;  %v10186_v40 = vsel %vm2829_vm7, %v2868_v7, %v2872_v37  ;;  %12815 = vst [vmem:[#allocation44_spill] sm:$0xff] %v10189_v15  ;;  %1098 = vst.msk [vmem:[#allocation2 + $0xc0] sm:$0xff] %vm1073_vm1, %v1072_v51  ;;  %v1164_v5 = vrot.slane %v1125_v38, 4  ;;  %v1871_v48 = vshrl.u32 %v1125_v38, 16  ;;  %v1869_v51 = vsel %vm1771_vm6, %v10134_v12, %v1868_v33 }
 0x1eb   : > { %v1874_v55 = vshll.u32 %v1125_v38, 16  ;;  %v4851_v14 = vrot.slane %v12816_v4, 3  ;;  %v2875_v61 = vshrl.u32 %v10183_v2, 16  ;;  %v2878_v56 = vshll.u32 %v10183_v2, 16  ;;  %v10196_v9 = vld [vmem:[#allocation2 + $0xb8] sm:$0xff] }
 0x1ec   : > { %12817 = vst [vmem:[#allocation45_spill] sm:$0xff] %v10196_v9  ;;  %v3867_v7 = vor.u32 %v3866_v1, %v3863_v36  ;;  %v4852_v43 = vrot.slane %v12818_v6, 4  ;;  %v1165_v44 = vsel %vm1142_vm5, %v1162_v17, %v1164_v5  ;;  %v1873_v15 = vrot.slane %v1871_v48, 4 }
 0x1ed   : > { %v1876_v38 = vrot.slane %v1874_v55, 5  ;;  %8422 = vmatmul.mubr.msk.bf16.gmra.mrb[140].mxu0 %vm1073_vm1, %v1869_v51  ;;  %v2877_v4 = vrot.slane %v2875_v61, 1  ;;  %v2880_v52 = vrot.slane %v2878_v56, 2  ;;  %v12820_v1 = vshrl.u32 %v10102_v57, 16 }
 0x1ee   : > { %8282 = vmatmul.mubr.msk.bf16.gmra.mrb[36].mxu1 %vm1073_vm1, %v1165_v44  ;;  %v10206_v20 = vsel %vm3779_vm8, %v3858_v42, %v3867_v7  ;;  %8425 = vmatprep.mubr.msk.bf16.mxu0 %vm9420_vm0, %v12791_v49  ;;  %v3870_v12 = vshrl.u32 %v10196_v9, 16  ;;  %v3873_v17 = vshll.u32 %v10196_v9, 16  ;;  %v12759_v36 = vrot.slane %v10196_v9, 3 }
 0x1ef   : > { %12819 = vst [vmem:[#allocation46_spill] sm:$0xff] %v10206_v20  ;;  %v4855_v34 = vrot.slane %v12820_v1, 3  ;;  %8289 = vmatprep.mubr.msk.bf16.mxu1 %vm9420_vm0, %v12791_v49  ;;  %v10217_v5 = vor.u32 %v2880_v52, %v2877_v4  ;;  %v10221_v42 = vsel %vm4822_vm11, %v10055_v13, %v4849_v62  ;;  %v4853_v48 = vor.u32 %v4852_v43, %v4851_v14  ;;  %v9260_v43 = vld [vmem:[%s12724_s3 + $0x20] sm:$0xff]  }
 0x1f0   : > { %12821 = vst [vmem:[#allocation47_spill] sm:$0xff] %v10221_v42  ;;  %v12822_v55 = vshll.u32 %v10102_v57, 16  ;;  %v1877_v56 = vor.u32 %v1876_v38, %v1873_v15  ;;  %v3872_v6 = vrot.slane %v3870_v12, 6  ;;  %v3875_v44 = vrot.slane %v3873_v17, 7 }
 0x1f1   : > { %v10228_v51 = vsel %vm4323_vm10, %v4339_v19, %v12759_v36  ;;  %v10232_v52 = vsel %vm2829_vm7, %v2872_v37, %v10217_v5  ;;  %v10234_v4 = vld [vmem:[#allocation2 + $0xc0] sm:$0x7]  ;;  %v10237_v13 = vsel %vm4822_vm11, %v4849_v62, %v4853_v48  ;;  %v12825_v57 = vshrl.u32 %v10145_v25, 16 }
 0x1f2   : > { %v4856_v61 = vrot.slane %v12822_v55, 4  ;;  %12823 = vst [vmem:[#allocation48_spill] sm:$0xff] %v10228_v51  ;;  %12824 = vst [vmem:[#allocation49_spill] sm:$0xff] %v10237_v13  ;;  %v3876_v38 = vor.u32 %v3875_v44, %v3872_v6  ;;  %v3879_v19 = vshrl.u32 %v10234_v4, 16  ;;  %v3882_v1 = vshll.u32 %v10234_v4, 16  ;;  %v4316_v37 = vld [vmem:[#allocation2 + $0xc0] sm:$0xff] }
 0x1f3   : > { %v4859_v15 = vrot.slane %v12825_v57, 3  ;;  %v4860_v36 = vrot.slane %v3864_v32, 4  ;;  %v4863_v62 = vrot.slane %v3870_v12, 3  ;;  %v10249_v13 = vld [vmem:[#allocation2] sm:$0xff]  ;;  %v4864_v44 = vrot.slane %v3873_v17, 4  ;;  %v9263_v32 = vld [vmem:[%s12724_s3 + $0x28] sm:$0xff]  }
 0x1f4   : > { %v4857_v14 = vor.u32 %v4856_v61, %v4855_v34  ;;  %v1878_v34 = vsel %vm1771_vm6, %v1868_v33, %v1877_v56  ;;  %v10253_v61 = vsel %vm3779_vm8, %v3867_v7, %v3876_v38  ;;  %v3881_v57 = vrot.slane %v3879_v19, 6 }
 0x1f5   : > { %12827 = vst [vmem:[#allocation51_spill] sm:$0xff] %v10253_v61  ;;  %v3884_v42 = vrot.slane %v3882_v1, 7  ;;  %8426 = vmatmul.mubr.msk.bf16.gmra.mrb[144].mxu0 %vm1073_vm1, %v1878_v34  ;;  %v4861_v6 = vor.u32 %v4860_v36, %v4859_v15  ;;  %v4871_v7 = vshll.u32 %v4316_v37, 16  ;;  %v4865_v17 = vor.u32 %v4864_v44, %v4863_v62  ;;  %v10282_v1 = vld [vmem:[#allocation2 + $0x8] sm:$0xff]  ;;  %v10313_v34 = vld [vmem:[#allocation2 + $0x18] sm:$0xff] }
 0x1f6   : > { %v10247_v55 = vsel %vm4822_vm11, %v4853_v48, %v4857_v14  ;;  %8290 = vmatmul.mubr.msk.bf16.vlgmr.msra.gmra.mrb[40].mxu1 %vm1073_vm1, %v10249_v13  ;;  %v4868_v48 = vshrl.u32 %v4316_v37, 16  ;;  %8481 = vmatprep.mubr.msk.bf16.mxu0 %vm9420_vm0, %v12791_v49  ;;  %v10386_v44 = vld [vmem:[#allocation2 + $0x50] sm:$0x1f]  ;;  %vm4103_vm5 = vcmask 1040384   ;;  %vm5225_vm7 = vcmask 516096  }
 0x1f7   : > { %12826 = vst [vmem:[#allocation50_spill] sm:$0xff] %v10247_v55  ;;  %8334 = vmatpush3.bf16.msra.mxu1 %v9260_v43  ;;  %8293 = vmatprep.mubr.msk.bf16.mxu1 %vm9420_vm0, %v12791_v49  ;;  %v3885_v33 = vor.u32 %v3884_v42, %v3881_v57  ;;  %v10267_v12 = vsel %vm4822_vm11, %v4857_v14, %v4861_v6  ;;  %v4873_v15 = vrot.slane %v4871_v7, 4  ;;  %v2316_v42 = vrot.slane %v9758_v29, 1  ;;  %v9265_v14 = vld [vmem:[%s12724_s3 + $0x70] sm:$0xff]   ;;  %v9266_v29 = vld [vmem:[%s12724_s3 + $0x78] sm:$0xff]   ;;  %v9264_v7 = vld [vmem:[%s12724_s3 + $0x40] sm:$0xff]  }
 0x1f8   : > { %8335 = vmatprep.subr.bf16.mxu1 %v12791_v49  ;;  %12828 = vst [vmem:[#allocation52_spill] sm:$0xff] %v10267_v12  ;;  %v4870_v36 = vrot.slane %v4868_v48, 3  ;;  %v10273_v43 = vsel %vm4822_vm11, %v4861_v6, %v4865_v17  ;;  %v1505_v57 = vshll.u32 %v10249_v13, 16  ;;  %v12760_v6 = vshll.u32 %v10282_v1, 16 }
 0x1f9   : > { %v10270_v56 = vsel %vm3779_vm8, %v3876_v38, %v3885_v33  ;;  %12830 = vst [vmem:[#allocation54_spill] sm:$0xff] %v10273_v43  ;;  %v12832_v38 = vrot.slane %v9771_v54, 1  ;;  %v10303_v54 = vld [vmem:[#allocation2 + $0x10] sm:$0xff]  ;;  %v12834_v48 = vrot.slane %v10140_v31, 1 }
 0x1fa   : > { %12829 = vst [vmem:[#allocation53_spill] sm:$0xff] %v10270_v56  ;;  %v10276_v19 = vor.u32 %v4873_v15, %v4870_v36  ;;  %v1511_v33 = vrot.slane %v12760_v6, 1  ;;  %v12761_v15 = vshrl.u32 %v10282_v1, 16 }
 0x1fb   : > { %8336 = vmatpush3.bf16.msra.mxu1 %v9263_v32  ;;  %v2318_v37 = vsel %vm2315_vm9, %v2316_v42, %v12832_v38  ;;  %v9269_v38 = vld [vmem:[%s12724_s3 + $0x90] sm:$0xff]  }
 0x1fc   : > { %12831 = vst [vmem:[#allocation55_spill] sm:$0xff] %v10276_v19  ;;  %8429 = vmatprep.subr.bf16.mxu1 %v12791_v49  ;;  %v10289_v62 = vsel %vm4822_vm11, %v4865_v17, %v10276_v19  ;;  %v1516_v17 = vshll.u32 %v10303_v54, 16  ;;  %vm12310_vm11 = vmand %vm5225_vm7, %vm4537_vm3 }
 0x1fd   : > { %12833 = vst [vmem:[#allocation56_spill] sm:$0xff] %v10289_v62  ;;  %8482 = vmatmul.mubr.msk.bf16.vlgmr.msra.gmra.mrb[148].mxu0 %vm1073_vm1, %v2318_v37  ;;  %v1523_v37 = vshll.u32 %v10313_v34, 16  ;;  %v9268_v62 = vld [vmem:[%s12724_s3 + $0x60] sm:$0xff]  }
 0x1fe   : > { %8294 = vmatmul.mubr.msk.bf16.gmra.mrb[44].mxu1 %vm1073_vm1, %v10282_v1  ;;  %8485 = vmatprep.mubr.msk.bf16.mxu0 %vm9420_vm0, %v12791_v49  ;;  %v1518_v42 = vrot.slane %v1516_v17, 1 }
 0x1ff   : > { %8297 = vmatprep.mubr.msk.bf16.mxu1 %vm9420_vm0, %v12791_v49  ;;  %8574 = vmatpush3.bf16.msra.mxu0 %v9265_v14  ;;  %v1515_v14 = vor.u32 %v12761_v15, %v1511_v33 }
 0x200   : > { %8575 = vmatprep.subr.bf16.mxu0 %v12791_v49 }
 0x203   : > { %8576 = vmatpush3.bf16.msra.mxu0 %v9266_v29  ;;  %v1519_v29 = vsel %vm1502_vm12, %v1515_v14, %v1518_v42 }
 0x204   : > { %8669 = vmatprep.subr.bf16.mxu0 %v12791_v49 }
 0x205   : > { %8486 = vmatmul.mubr.msk.bf16.gmra.mrb[152].mxu0 %vm1073_vm1, %v9837_v0  ;;  %v10323_v0 = vld [vmem:[#allocation2 + $0x20] sm:$0xff] }
 0x206   : > { %8298 = vmatmul.mubr.msk.bf16.gmra.mrb[48].mxu1 %vm1073_vm1, %v10303_v54  ;;  %8489 = vmatprep.mubr.msk.bf16.mxu0 %vm9420_vm0, %v12791_v49 }
 0x207   : > { %8301 = vmatprep.mubr.msk.bf16.mxu1 %vm9420_vm0, %v12791_v49 }
 0x20d   : > { %8490 = vmatmul.mubr.msk.bf16.gmra.mrb[156].mxu0 %vm1073_vm1, %v9875_v53  ;;  %v10333_v53 = vld [vmem:[#allocation2 + $0x28] sm:$0xff] }
 0x20e   : > { %8302 = vmatmul.mubr.msk.bf16.gmra.mrb[52].mxu1 %vm1073_vm1, %v10313_v34  ;;  %8493 = vmatprep.mubr.msk.bf16.mxu0 %vm9420_vm0, %v12791_v49 }
 0x20f   : > { %8305 = vmatprep.mubr.msk.bf16.mxu1 %vm9420_vm0, %v12791_v49 }
 0x215   : > { %8494 = vmatmul.mubr.msk.bf16.gmra.mrb[160].mxu0 %vm1073_vm1, %v9920_v11  ;;  %v10343_v11 = vld [vmem:[#allocation2 + $0x30] sm:$0xff] }
 0x216   : > { %8306 = vmatmul.mubr.msk.bf16.gmra.mrb[56].mxu1 %vm1073_vm1, %v10323_v0  ;;  %8497 = vmatprep.mubr.msk.bf16.mxu0 %vm9420_vm0, %v12791_v49 }
 0x217   : > { %8309 = vmatprep.mubr.msk.bf16.mxu1 %vm9420_vm0, %v12791_v49 }
 0x21d   : > { %8498 = vmatmul.mubr.msk.bf16.gmra.mrb[164].mxu0 %vm1073_vm1, %v9973_v23  ;;  %v10353_v23 = vld [vmem:[#allocation2 + $0x38] sm:$0xff] }
 0x21e   : > { %8310 = vmatmul.mubr.msk.bf16.gmra.mrb[60].mxu1 %vm1073_vm1, %v10333_v53  ;;  %8501 = vmatprep.mubr.msk.bf16.mxu0 %vm9420_vm0, %v12791_v49 }
 0x21f   : > { %8313 = vmatprep.mubr.msk.bf16.mxu1 %vm9420_vm0, %v12791_v49 }
 0x225   : > { %8502 = vmatmul.mubr.msk.bf16.gmra.mrb[168].mxu0 %vm1073_vm1, %v10022_v21  ;;  %v10363_v21 = vld [vmem:[#allocation2 + $0x40] sm:$0xff] }
 0x226   : > { %8314 = vmatmul.mubr.msk.bf16.gmra.mrb[64].mxu1 %vm1073_vm1, %v10343_v11  ;;  %8505 = vmatprep.mubr.msk.bf16.mxu0 %vm9420_vm0, %v12791_v49 }
 0x227   : > { %8317 = vmatprep.mubr.msk.bf16.mxu1 %vm9420_vm0, %v12791_v49 }
 0x22d   : > { %8506 = vmatmul.mubr.msk.bf16.gmra.mrb[172].mxu0 %vm1073_vm1, %v10072_v18  ;;  %v10373_v18 = vld [vmem:[#allocation2 + $0x48] sm:$0xff] }
 0x22e   : > { %8318 = vmatmul.mubr.msk.bf16.gmra.mrb[68].mxu1 %vm1073_vm1, %v10353_v23  ;;  %8509 = vmatprep.mubr.msk.bf16.mxu0 %vm9420_vm0, %v12791_v49 }
 0x22f   : > { %8321 = vmatprep.mubr.msk.bf16.mxu1 %vm9420_vm0, %v12791_v49 }
 0x235   : > { %8510 = vmatmul.mubr.msk.bf16.gmra.mrb[176].mxu0 %vm1073_vm1, %v10123_v35  ;;  %v2335_v35 = vrot.slane %v10183_v2, 1  ;;  %v1503_v2 = vshrl.u32 %v10249_v13, 16  ;;  %v9267_v13 = vld [vmem:[%s12724_s3 + $0x48] sm:$0xff]  }
 0x236   : > { %8322 = vmatmul.mubr.msk.bf16.gmra.mrb[72].mxu1 %vm1073_vm1, %v10363_v21  ;;  %8513 = vmatprep.mubr.msk.bf16.mxu0 %vm9420_vm0, %v12791_v49 }
 0x237   : > { %8325 = vmatprep.mubr.msk.bf16.mxu1 %vm9420_vm0, %v12791_v49  ;;  %v2336_v32 = vsel %vm2315_vm9, %v12834_v48, %v2335_v35  ;;  %v1525_v48 = vrot.slane %v1523_v37, 1 }
 0x23d   : > { %8514 = vmatmul.mubr.msk.bf16.gmra.mrb[180].mxu0 %vm1073_vm1, %v10170_v22  ;;  %v1507_v22 = vrot.slane %v1505_v57, 1  ;;  %v1520_v57 = vshrl.u32 %v10303_v54, 16 }
 0x23e   : > { %8326 = vmatmul.mubr.msk.bf16.gmra.mrb[76].mxu1 %vm1073_vm1, %v10373_v18  ;;  %8517 = vmatprep.mubr.msk.bf16.mxu0 %vm9420_vm0, %v12791_v49 }
 0x23f   : > { %8329 = vmatprep.mubr.msk.bf16.mxu1 %vm9420_vm0, %v12791_v49  ;;  %v1508_v31 = vor.u32 %v1507_v22, %v1503_v2  ;;  %v1527_v2 = vshrl.u32 %v10313_v34, 16 }
 0x241   : > { %v1512_v36 = vsel %vm1502_vm12, %v1508_v31, %v1511_v33  ;;  %v1529_v31 = vor.u32 %v1527_v2, %v1525_v48 }
 0x245   : > { %8518 = vmatmul.mubr.msk.bf16.gmra.mrb[184].mxu0 %vm1073_vm1, %v2336_v32  ;;  %v1522_v32 = vor.u32 %v1520_v57, %v1518_v42  ;;  %v1544_v42 = vshll.u32 %v10343_v11, 16 }
 0x246   : > { %8330 = vmatmul.mubr.msk.bf16.gmra.mrb[80].mxu1 %vm1073_vm1, %v10386_v44  ;;  %8521 = vmatprep.mubr.msk.bf16.mxu0 %vm9420_vm0, %v12791_v49 }
 0x247   : > { %8337 = vmatprep.mubr.msk.bf16.mxu1 %vm9420_vm0, %v12791_v49  ;;  %v1526_v22 = vsel %vm1502_vm12, %v1522_v32, %v1525_v48  ;;  %v1551_v32 = vshll.u32 %v10353_v23, 16 }
 0x24d   : > { %8522 = vmatmul.mubr.msk.bf16.gmra.mrb[188].mxu0 %vm1073_vm1, %v2335_v35  ;;  %v9270_v35 = vld [vmem:[%s12724_s3 + $0x98] sm:$0xff]  }
 0x24e   : > { %8338 = vmatmul.mubr.msk.bf16.vlgmr.msra.gmra.mrb[84].mxu1 %vm1073_vm1, %v1512_v36  ;;  %8577 = vmatprep.mubr.msk.bf16.mxu0 %vm9420_vm0, %v12791_v49 }
 0x24f   : > { %8430 = vmatpush3.bf16.msra.mxu1 %v9264_v7  ;;  %8341 = vmatprep.mubr.msk.bf16.mxu1 %vm9420_vm0, %v12791_v49  ;;  %v1537_v7 = vshll.u32 %v10333_v53, 16 }
 0x250   : > { %8431 = vmatprep.subr.bf16.mxu1 %v12791_v49 }
 0x251   : > { %v1539_v36 = vrot.slane %v1537_v7, 1 }
 0x253   : > { %8432 = vmatpush3.bf16.msra.mxu1 %v9267_v13 }
 0x254   : > { %8525 = vmatprep.subr.bf16.mxu1 %v12791_v49 }
 0x255   : > { %8578 = vmatmul.mubr.msk.bf16.vlgmr.msra.gmra.mrb[192].mxu0 %vm1073_vm1, %v9810_v10  ;;  %v1530_v10 = vshll.u32 %v10323_v0, 16 }
 0x256   : > { %8342 = vmatmul.mubr.msk.bf16.gmra.mrb[88].mxu1 %vm1073_vm1, %v1519_v29  ;;  %8581 = vmatprep.mubr.msk.bf16.mxu0 %vm9420_vm0, %v12791_v49 }
 0x257   : > { %8345 = vmatprep.mubr.msk.bf16.mxu1 %vm9420_vm0, %v12791_v49  ;;  %8670 = vmatpush3.bf16.msra.mxu0 %v9269_v38  ;;  %v1532_v33 = vrot.slane %v1530_v10, 1  ;;  %v1546_v38 = vrot.slane %v1544_v42, 1  ;;  %v1548_v10 = vshrl.u32 %v10343_v11, 16  ;;  %v1558_v42 = vshll.u32 %v10363_v21, 16 }
 0x258   : > { %8671 = vmatprep.subr.bf16.mxu0 %v12791_v49 }
 0x259   : > { %v1533_v17 = vsel %vm1502_vm12, %v1529_v31, %v1532_v33 }
 0x25b   : > { %8672 = vmatpush3.bf16.msra.mxu0 %v9270_v35 }
 0x25c   : > { %8765 = vmatprep.subr.bf16.mxu0 %v12791_v49 }
 0x25d   : > { %8582 = vmatmul.mubr.msk.bf16.gmra.mrb[196].mxu0 %vm1073_vm1, %v9850_v28  ;;  %v1534_v28 = vshrl.u32 %v10323_v0, 16 }
 0x25e   : > { %8346 = vmatmul.mubr.msk.bf16.gmra.mrb[92].mxu1 %vm1073_vm1, %v1526_v22  ;;  %8585 = vmatprep.mubr.msk.bf16.mxu0 %vm9420_vm0, %v12791_v49  ;;  %v1553_v22 = vrot.slane %v1551_v32, 1 }
 0x25f   : > { %8349 = vmatprep.mubr.msk.bf16.mxu1 %vm9420_vm0, %v12791_v49  ;;  %v1536_v13 = vor.u32 %v1534_v28, %v1532_v33 }
 0x261   : > { %v1540_v14 = vsel %vm1502_vm12, %v1536_v13, %v1539_v36 }
 0x265   : > { %8586 = vmatmul.mubr.msk.bf16.gmra.mrb[200].mxu0 %vm1073_vm1, %v9893_v27  ;;  %v1541_v27 = vshrl.u32 %v10333_v53, 16 }
 0x266   : > { %8350 = vmatmul.mubr.msk.bf16.gmra.mrb[96].mxu1 %vm1073_vm1, %v1533_v17  ;;  %8589 = vmatprep.mubr.msk.bf16.mxu0 %vm9420_vm0, %v12791_v49  ;;  %v1550_v17 = vor.u32 %v1548_v10, %v1546_v38 }
 0x267   : > { %8353 = vmatprep.mubr.msk.bf16.mxu1 %vm9420_vm0, %v12791_v49  ;;  %v1543_v35 = vor.u32 %v1541_v27, %v1539_v36  ;;  %v1555_v27 = vshrl.u32 %v10353_v23, 16 }
 0x26d   : > { %8590 = vmatmul.mubr.msk.bf16.gmra.mrb[204].mxu0 %vm1073_vm1, %v9943_v41  ;;  %v1547_v41 = vsel %vm1502_vm12, %v1543_v35, %v1546_v38  ;;  %v1560_v38 = vrot.slane %v1558_v42, 1 }
 0x26e   : > { %8354 = vmatmul.mubr.msk.bf16.gmra.mrb[100].mxu1 %vm1073_vm1, %v1540_v14  ;;  %8593 = vmatprep.mubr.msk.bf16.mxu0 %vm9420_vm0, %v12791_v49  ;;  %v1554_v14 = vsel %vm1502_vm12, %v1550_v17, %v1553_v22  ;;  %v1565_v17 = vshll.u32 %v10373_v18, 16 }
 0x26f   : > { %8357 = vmatprep.mubr.msk.bf16.mxu1 %vm9420_vm0, %v12791_v49 }
 0x270   : > { %v10468_v37 = vpop.f32.mrb[100].mxu0 }
 0x271   : > { %v8243_v29 = vpop.f32.mrb[101].mxu0 }
 0x272   : > { %v10470_v57 = vpop.f32.mrb[102].mxu0 }
 0x273   : > { %v8244_v48 = vpop.f32.mrb[103].mxu0 }
 0x275   : > { %8594 = vmatmul.mubr.msk.bf16.gmra.mrb[208].mxu0 %vm1073_vm1, %v9994_v26 }
 0x276   : > { %8358 = vmatmul.mubr.msk.bf16.gmra.mrb[104].mxu1 %vm1073_vm1, %v1547_v41  ;;  %8597 = vmatprep.mubr.msk.bf16.mxu0 %vm9420_vm0, %v12791_v49  ;;  %v1557_v41 = vor.u32 %v1555_v27, %v1553_v22  ;;  %v1562_v22 = vshrl.u32 %v10363_v21, 16 }
 0x277   : > { %8361 = vmatprep.mubr.msk.bf16.mxu1 %vm9420_vm0, %v12791_v49 }
 0x278   : > { %v10482_v2 = vpop.f32.mrb[0].mxu1  ;;  %v10484_v33 = vpop.f32.mrb[104].mxu0 }
 0x279   : > { %v8247_v31 = vpop.f32.mrb[1].mxu1  ;;  %v8387_v7 = vpop.f32.mrb[105].mxu0 }
 0x27a   : > { %v10486_v28 = vpop.f32.mrb[2].mxu1  ;;  %v10488_v36 = vpop.f32.mrb[106].mxu0 }
 0x27b   : > { %v8248_v26 = vpop.f32.mrb[3].mxu1  ;;  %v8388_v13 = vpop.f32.mrb[107].mxu0 }
 0x27c   : > { %v1561_v26 = vsel %vm1502_vm12, %v1557_v41, %v1560_v38  ;;  %v1567_v13 = vrot.slane %v1565_v17, 1 }
 0x27d   : > { %8598 = vmatmul.mubr.msk.bf16.gmra.mrb[212].mxu0 %vm1073_vm1, %v10048_v8 }
 0x27e   : > { %8362 = vmatmul.mubr.msk.bf16.gmra.mrb[108].mxu1 %vm1073_vm1, %v1554_v14  ;;  %8601 = vmatprep.mubr.msk.bf16.mxu0 %vm9420_vm0, %v12791_v49 }
 0x27f   : > { %8365 = vmatprep.mubr.msk.bf16.mxu1 %vm9420_vm0, %v12791_v49 }
 0x280   : > { %v10500_v29 = vpop.f32.mrb[4].mxu1  ;;  %v10502_v35 = vpop.f32.mrb[108].mxu0 }
 0x281   : > { %v8251_v48 = vpop.f32.mrb[5].mxu1  ;;  %v8391_v32 = vpop.f32.mrb[109].mxu0 }
 0x282   : > { %v10504_v10 = vpop.f32.mrb[6].mxu1  ;;  %v10506_v31 = vpop.f32.mrb[110].mxu0  ;;  %v1564_v32 = vor.u32 %v1562_v22, %v1560_v38  ;;  %v1569_v38 = vshrl.u32 %v10373_v18, 16 }
 0x283   : > { %v8252_v8 = vpop.f32.mrb[7].mxu1  ;;  %v8392_v7 = vpop.f32.mrb[111].mxu0 }
 0x284   : > { %v1568_v6 = vsel %vm1502_vm12, %v1564_v32, %v1567_v13 }
 0x285   : > { %8602 = vmatmul.mubr.msk.bf16.gmra.mrb[216].mxu0 %vm1073_vm1, %v10100_v47 }
 0x286   : > { %8366 = vmatmul.mubr.msk.bf16.gmra.mrb[112].mxu1 %vm1073_vm1, %v1561_v26  ;;  %8605 = vmatprep.mubr.msk.bf16.mxu0 %vm9420_vm0, %v12791_v49  ;;  %v1572_v26 = vshll.u32 %v10386_v44, 16 }
 0x287   : > { %8369 = vmatprep.mubr.msk.bf16.mxu1 %vm9420_vm0, %v12791_v49 }
 0x288   : > { %v10518_v42 = vpop.f32.mrb[8].mxu1  ;;  %v10520_v14 = vpop.f32.mrb[112].mxu0  ;;  %v1574_v17 = vrot.slane %v1572_v26, 1 }
 0x289   : > { %v8255_v27 = vpop.f32.mrb[9].mxu1  ;;  %v8395_v48 = vpop.f32.mrb[113].mxu0 }
 0x28a   : > { %v10522_v41 = vpop.f32.mrb[10].mxu1  ;;  %v10524_v8 = vpop.f32.mrb[114].mxu0 }
 0x28b   : > { %12835 = vst [vmem:[#allocation57_spill] sm:$0xff] %v10524_v8  ;;  %v8256_v47 = vpop.f32.mrb[11].mxu1  ;;  %v8396_v7 = vpop.f32.mrb[115].mxu0 }
 0x28c   : > { %v1571_v47 = vor.u32 %v1569_v38, %v1567_v13  ;;  %v1576_v38 = vshrl.u32 %v10386_v44, 16  ;;  %v10568_v44 = vld [vmem:[#allocation2] sm:$0xe0] }
 0x28d   : > { %8606 = vmatmul.mubr.msk.bf16.gmra.mrb[220].mxu0 %vm1073_vm1, %v10143_v60 }
 0x28e   : > { %8370 = vmatmul.mubr.msk.bf16.gmra.mrb[116].mxu1 %vm1073_vm1, %v1568_v6  ;;  %8609 = vmatprep.mubr.msk.bf16.mxu0 %vm9420_vm0, %v12791_v49  ;;  %v1575_v19 = vsel %vm1502_vm12, %v1571_v47, %v1574_v17 }
 0x28f   : > { %8373 = vmatprep.mubr.msk.bf16.mxu1 %vm9420_vm0, %v12791_v49 }
 0x290   : > { %v10536_v22 = vpop.f32.mrb[12].mxu1  ;;  %v10538_v27 = vpop.f32.mrb[116].mxu0 }
 0x291   : > { %12836 = vst [vmem:[#allocation58_spill] sm:$0xff] %v10538_v27  ;;  %v8259_v48 = vpop.f32.mrb[13].mxu1  ;;  %v8399_v32 = vpop.f32.mrb[117].mxu0 }
 0x292   : > { %v10540_v6 = vpop.f32.mrb[14].mxu1  ;;  %v10542_v7 = vpop.f32.mrb[118].mxu0 }
 0x293   : > { %12837 = vst [vmem:[#allocation59_spill] sm:$0xff] %v10542_v7  ;;  %v8260_v60 = vpop.f32.mrb[15].mxu1  ;;  %v8400_v15 = vpop.f32.mrb[119].mxu0 }
 0x294   : > { %v1578_v60 = vor.u32 %v1576_v38, %v1574_v17 }
 0x295   : > { %8610 = vmatmul.mubr.msk.bf16.gmra.mrb[224].mxu0 %vm1073_vm1, %v10186_v40 }
 0x296   : > { %8374 = vmatmul.mubr.msk.bf16.gmra.mrb[120].mxu1 %vm1073_vm1, %v1575_v19  ;;  %8613 = vmatprep.mubr.msk.bf16.mxu0 %vm9420_vm0, %v12791_v49 }
 0x297   : > { %8377 = vmatprep.mubr.msk.bf16.mxu1 %vm9420_vm0, %v12791_v49 }
 0x298   : > { %v10552_v13 = vpop.f32.mrb[16].mxu1  ;;  %v10554_v26 = vpop.f32.mrb[120].mxu0 }
 0x299   : > { %12838 = vst [vmem:[#allocation60_spill] sm:$0xff] %v10554_v26  ;;  %v8263_v15 = vpop.f32.mrb[17].mxu1  ;;  %v8403_v48 = vpop.f32.mrb[121].mxu0 }
 0x29a   : > { %v10557_v32 = vpop.f32.mrb[18].mxu1  ;;  %v10559_v19 = vpop.f32.mrb[122].mxu0 }
 0x29b   : > { %12839 = vst [vmem:[#allocation61_spill] sm:$0xff] %v10559_v19  ;;  %v8264_v47 = vpop.f32.mrb[19].mxu1  ;;  %v8404_v40 = vpop.f32.mrb[123].mxu0 }
 0x29c   : > { %v2097_v47 = vrot.slane %v10282_v1, 5 }
 0x29d   : > { %8614 = vmatmul.mubr.msk.bf16.gmra.mrb[228].mxu0 %vm1073_vm1, %v10232_v52 }
 0x29e   : > { %8378 = vmatmul.mubr.msk.bf16.gmra.mrb[124].mxu1 %vm1073_vm1, %v1578_v60  ;;  %8617 = vmatprep.mubr.msk.bf16.mxu0 %vm9420_vm0, %v12791_v49  ;;  %v2096_v60 = vrot.slane %v10568_v44, 5 }
 0x29f   : > { %8433 = vmatprep.mubr.msk.bf16.mxu1 %vm9420_vm0, %v12791_v49 }
 0x2a0   : > { %v10570_v15 = vpop.f32.mrb[20].mxu1  ;;  %v10572_v48 = vpop.f32.mrb[124].mxu0  ;;  %v2098_v55 = vsel %vm2095_vm13, %v2096_v60, %v2097_v47 }
 0x2a1   : > { %12840 = vst [vmem:[#allocation62_spill] sm:$0xff] %v10572_v48  ;;  %v8267_v17 = vpop.f32.mrb[21].mxu1  ;;  %v8407_v38 = vpop.f32.mrb[125].mxu0 }
 0x2a2   : > { %v10575_v40 = vpop.f32.mrb[22].mxu1  ;;  %v10577_v52 = vpop.f32.mrb[126].mxu0  ;;  %v9271_v17 = vld [vmem:[%s12724_s3 + $0x68] sm:$0xff]  }
 0x2a3   : > { %12841 = vst [vmem:[#allocation63_spill] sm:$0xff] %v10577_v52  ;;  %v8268_v43 = vpop.f32.mrb[23].mxu1  ;;  %v8408_v12 = vpop.f32.mrb[127].mxu0  ;;  %v9376_v52 = vld [vmem:[#allocation2 + $0x68] sm:$0xc0] }
 0x2a4   : > { %v3318_v61 = vrot.slane %v9376_v52, 6  ;;  %v9377_v52 = vld [vmem:[#allocation2 + $0x78] sm:$0xff] }
 0x2a5   : > { %8618 = vmatmul.mubr.msk.bf16.gmra.mrb[232].mxu0 %vm1073_vm1, %v10217_v5  ;;  %v9375_v5 = vld [vmem:[#allocation2 + $0x70] sm:$0xff] }
 0x2a6   : > { %8434 = vmatmul.mubr.msk.bf16.vlgmr.msra.gmra.mrb[128].mxu1 %vm1073_vm1, %v2098_v55  ;;  %8673 = vmatprep.mubr.msk.bf16.mxu0 %vm9420_vm0, %v12791_v49  ;;  %v2099_v55 = vrot.slane %v10303_v54, 5  ;;  %v9273_v54 = vld [vmem:[%s12724_s3 + $0xb0] sm:$0xff]  }
 0x2a7   : > { %8526 = vmatpush3.bf16.msra.mxu1 %v9268_v62  ;;  %8437 = vmatprep.mubr.msk.bf16.mxu1 %vm9420_vm0, %v12791_v49  ;;  %v3319_v62 = vrot.slane %v9375_v5, 6 }
 0x2a8   : > { %8527 = vmatprep.subr.bf16.mxu1 %v12791_v49  ;;  %v10595_v12 = vpop.f32.mrb[24].mxu1  ;;  %v10597_v43 = vpop.f32.mrb[128].mxu0  ;;  %v2100_v5 = vsel %vm2095_vm13, %v2097_v47, %v2099_v55 }
 0x2a9   : > { %12842 = vst [vmem:[#allocation64_spill] sm:$0xff] %v10597_v43  ;;  %v8271_v38 = vpop.f32.mrb[25].mxu1  ;;  %v8411_v60 = vpop.f32.mrb[129].mxu0 }
 0x2aa   : > { %v10600_v51 = vpop.f32.mrb[26].mxu1  ;;  %v10602_v56 = vpop.f32.mrb[130].mxu0  ;;  %v3320_v38 = vsel %vm3317_vm14, %v3318_v61, %v3319_v62  ;;  %v2101_v61 = vrot.slane %v10313_v34, 5 }
 0x2ab   : > { %12843 = vst [vmem:[#allocation65_spill] sm:$0xff] %v10602_v56  ;;  %8528 = vmatpush3.bf16.msra.mxu1 %v9271_v17  ;;  %v8272_v48 = vpop.f32.mrb[27].mxu1  ;;  %v8412_v19 = vpop.f32.mrb[131].mxu0  ;;  %v3321_v17 = vrot.slane %v9377_v52, 6 }
 0x2ac   : > { %8621 = vmatprep.subr.bf16.mxu1 %v12791_v49  ;;  %v9274_v19 = vld [vmem:[%s12724_s3 + $0xb8] sm:$0xff]   ;;  %v2102_v20 = vsel %vm2095_vm13, %v2099_v55, %v2101_v61  ;;  %v2103_v55 = vrot.slane %v10323_v0, 5 }
 0x2ad   : > { %8674 = vmatmul.mubr.msk.bf16.vlgmr.msra.gmra.mrb[236].mxu0 %vm1073_vm1, %v3320_v38  ;;  %v3322_v26 = vsel %vm3317_vm14, %v3319_v62, %v3321_v17 }
 0x2ae   : > { %8438 = vmatmul.mubr.msk.bf16.gmra.mrb[132].mxu1 %vm1073_vm1, %v2100_v5  ;;  %8677 = vmatprep.mubr.msk.bf16.mxu0 %vm9420_vm0, %v12791_v49 }
 0x2af   : > { %8441 = vmatprep.mubr.msk.bf16.mxu1 %vm9420_vm0, %v12791_v49  ;;  %8766 = vmatpush3.bf16.msra.mxu0 %v9273_v54 }
 0x2b0   : > { %v10621_v47 = vpop.f32.mrb[132].mxu0  ;;  %8767 = vmatprep.subr.bf16.mxu0 %v12791_v49 }
 0x2b1   : > { %v10619_v48 = vpop.f32.mrb[28].mxu1  ;;  %12844 = vst [vmem:[#allocation66_spill] sm:$0xff] %v10621_v47  ;;  %v8415_v5 = vpop.f32.mrb[133].mxu0 }
 0x2b2   : > { %v8275_v60 = vpop.f32.mrb[29].mxu1  ;;  %v10627_v56 = vpop.f32.mrb[134].mxu0 }
 0x2b3   : > { %v10625_v38 = vpop.f32.mrb[30].mxu1  ;;  %12845 = vst [vmem:[#allocation67_spill] sm:$0xff] %v10627_v56  ;;  %v8416_v43 = vpop.f32.mrb[135].mxu0  ;;  %8768 = vmatpush3.bf16.msra.mxu0 %v9274_v19  ;;  %v9378_v19 = vld [vmem:[#allocation2 + $0x80] sm:$0xff]  ;;  %v2104_v56 = vsel %vm2095_vm13, %v2101_v61, %v2103_v55 }
 0x2b4   : > { %v8276_v54 = vpop.f32.mrb[31].mxu1  ;;  %8861 = vmatprep.subr.bf16.mxu0 %v12791_v49  ;;  %v3323_v62 = vrot.slane %v9378_v19, 6 }
 0x2b5   : > { %8678 = vmatmul.mubr.msk.bf16.gmra.mrb[240].mxu0 %vm1073_vm1, %v3322_v26 }
 0x2b6   : > { %8442 = vmatmul.mubr.msk.bf16.gmra.mrb[136].mxu1 %vm1073_vm1, %v2102_v20  ;;  %8681 = vmatprep.mubr.msk.bf16.mxu0 %vm9420_vm0, %v12791_v49  ;;  %v3324_v47 = vsel %vm3317_vm14, %v3321_v17, %v3323_v62 }
 0x2b7   : > { %8445 = vmatprep.mubr.msk.bf16.mxu1 %vm9420_vm0, %v12791_v49 }
 0x2b8   : > { %v10640_v43 = vpop.f32.mrb[136].mxu0 }
 0x2b9   : > { %v10638_v34 = vpop.f32.mrb[32].mxu1  ;;  %12846 = vst [vmem:[#allocation68_spill] sm:$0xff] %v10640_v43  ;;  %v8419_v60 = vpop.f32.mrb[137].mxu0 }
 0x2ba   : > { %v8279_v52 = vpop.f32.mrb[33].mxu1  ;;  %v10645_v20 = vpop.f32.mrb[138].mxu0  ;;  %v9379_v60 = vld [vmem:[#allocation2 + $0x88] sm:$0xff] }
 0x2bb   : > { %v10643_v5 = vpop.f32.mrb[34].mxu1  ;;  %12847 = vst [vmem:[#allocation69_spill] sm:$0xff] %v10645_v20  ;;  %v8420_v54 = vpop.f32.mrb[139].mxu0  ;;  %v2105_v52 = vrot.slane %v10333_v53, 5  ;;  %v3325_v61 = vrot.slane %v9379_v60, 6 }
 0x2bc   : > { %v8280_v26 = vpop.f32.mrb[35].mxu1 }
 0x2bd   : > { %8682 = vmatmul.mubr.msk.bf16.gmra.mrb[244].mxu0 %vm1073_vm1, %v3324_v47  ;;  %v2106_v43 = vsel %vm2095_vm13, %v2103_v55, %v2105_v52  ;;  %v3326_v7 = vsel %vm3317_vm14, %v3323_v62, %v3325_v61 }
 0x2be   : > { %8446 = vmatmul.mubr.msk.bf16.gmra.mrb[140].mxu1 %vm1073_vm1, %v2104_v56  ;;  %8685 = vmatprep.mubr.msk.bf16.mxu0 %vm9420_vm0, %v12791_v49 }
 0x2bf   : > { %8449 = vmatprep.mubr.msk.bf16.mxu1 %vm9420_vm0, %v12791_v49 }
 0x2c0   : > { %v10657_v19 = vpop.f32.mrb[140].mxu0 }
 0x2c1   : > { %v10655_v0 = vpop.f32.mrb[36].mxu1  ;;  %12848 = vst [vmem:[#allocation70_spill] sm:$0xff] %v10657_v19  ;;  %v8423_v17 = vpop.f32.mrb[141].mxu0 }
 0x2c2   : > { %v8283_v26 = vpop.f32.mrb[37].mxu1  ;;  %v10662_v56 = vpop.f32.mrb[142].mxu0 }
 0x2c3   : > { %v10660_v54 = vpop.f32.mrb[38].mxu1  ;;  %12849 = vst [vmem:[#allocation71_spill] sm:$0xff] %v10662_v56  ;;  %v8424_v20 = vpop.f32.mrb[143].mxu0  ;;  %v2107_v26 = vrot.slane %v10343_v11, 5  ;;  %v9381_v11 = vld [vmem:[#allocation2 + $0x98] sm:$0xff] }
 0x2c4   : > { %v8284_v47 = vpop.f32.mrb[39].mxu1  ;;  %v9380_v20 = vld [vmem:[#allocation2 + $0x90] sm:$0xff] }
 0x2c5   : > { %8686 = vmatmul.mubr.msk.bf16.gmra.mrb[248].mxu0 %vm1073_vm1, %v3326_v7  ;;  %v3327_v17 = vrot.slane %v9380_v20, 6  ;;  %v2108_v8 = vsel %vm2095_vm13, %v2105_v52, %v2107_v26 }
 0x2c6   : > { %8450 = vmatmul.mubr.msk.bf16.gmra.mrb[144].mxu1 %vm1073_vm1, %v2106_v43  ;;  %8689 = vmatprep.mubr.msk.bf16.mxu0 %vm9420_vm0, %v12791_v49 }
 0x2c7   : > { %8453 = vmatprep.mubr.msk.bf16.mxu1 %vm9420_vm0, %v12791_v49 }
 0x2c8   : > { %v10672_v60 = vpop.f32.mrb[144].mxu0 }
 0x2c9   : > { %v1411_v53 = vpop.f32.mrb[40].mxu1  ;;  %12850 = vst [vmem:[#allocation72_spill] sm:$0xff] %v10672_v60  ;;  %v8427_v43 = vpop.f32.mrb[145].mxu0  ;;  %v3328_v60 = vsel %vm3317_vm14, %v3325_v61, %v3327_v17 }
 0x2ca   : > { %v10676_v55 = vadd.f32 %v1411_v53, %v10468_v37  ;;  %v8291_v62 = vpop.f32.mrb[41].mxu1  ;;  %v10678_v7 = vpop.f32.mrb[146].mxu0  ;;  %v3329_v37 = vrot.slane %v9381_v11, 6 }
 0x2cb   : > { %v1414_v47 = vpop.f32.mrb[42].mxu1  ;;  %v8428_v27 = vpop.f32.mrb[147].mxu0 }
 0x2cc   : > { %v10681_v56 = vadd.f32 %v1414_v47, %v10470_v57  ;;  %v8292_v19 = vpop.f32.mrb[43].mxu1  ;;  %v2109_v27 = vrot.slane %v10353_v23, 5  ;;  %v3330_v47 = vsel %vm3317_vm14, %v3327_v17, %v3329_v37 }
 0x2cd   : > { %8690 = vmatmul.mubr.msk.bf16.gmra.mrb[252].mxu0 %vm1073_vm1, %v3328_v60 }
 0x2ce   : > { %8454 = vmatmul.mubr.msk.bf16.gmra.mrb[148].mxu1 %vm1073_vm1, %v2108_v8  ;;  %8693 = vmatprep.mubr.msk.bf16.mxu0 %vm9420_vm0, %v12791_v49  ;;  %v2110_v11 = vsel %vm2095_vm13, %v2107_v26, %v2109_v27 }
 0x2cf   : > { %8457 = vmatprep.mubr.msk.bf16.mxu1 %vm9420_vm0, %v12791_v49 }
 0x2d0   : > { %v10691_v53 = vpop.f32.mrb[148].mxu0 }
 0x2d1   : > { %v1419_v57 = vpop.f32.mrb[44].mxu1  ;;  %v8483_v8 = vpop.f32.mrb[149].mxu0 }
 0x2d2   : > { %v10695_v19 = vadd.f32 %v1419_v57, %v10482_v2  ;;  %v8295_v52 = vpop.f32.mrb[45].mxu1  ;;  %v10697_v60 = vpop.f32.mrb[150].mxu0  ;;  %v9382_v57 = vld [vmem:[#allocation2 + $0xa0] sm:$0xff] }
 0x2d3   : > { %v1422_v61 = vpop.f32.mrb[46].mxu1  ;;  %12851 = vst [vmem:[#allocation73_spill] sm:$0xff] %v10697_v60  ;;  %v8484_v43 = vpop.f32.mrb[151].mxu0  ;;  %v3331_v52 = vrot.slane %v9382_v57, 6 }
 0x2d4   : > { %v10700_v20 = vadd.f32 %v1422_v61, %v10486_v28  ;;  %v8296_v62 = vpop.f32.mrb[47].mxu1  ;;  %v2111_v28 = vrot.slane %v10363_v21, 5 }
 0x2d5   : > { %8694 = vmatmul.mubr.msk.bf16.gmra.mrb[0].mxu0 %vm1073_vm1, %v3330_v47 }
 0x2d6   : > { %8458 = vmatmul.mubr.msk.bf16.gmra.mrb[152].mxu1 %vm1073_vm1, %v2110_v11  ;;  %8697 = vmatprep.mubr.msk.bf16.mxu0 %vm9420_vm0, %v12791_v49  ;;  %v2112_v60 = vsel %vm2095_vm13, %v2109_v27, %v2111_v28 }
 0x2d7   : > { %8461 = vmatprep.mubr.msk.bf16.mxu1 %vm9420_vm0, %v12791_v49 }
 0x2d8   : > { %v10710_v2 = vpop.f32.mrb[152].mxu0 }
 0x2d9   : > { %v1427_v23 = vpop.f32.mrb[48].mxu1  ;;  %12852 = vst [vmem:[#allocation74_spill] sm:$0xff] %v10710_v2  ;;  %v8487_v8 = vpop.f32.mrb[153].mxu0  ;;  %v3332_v2 = vsel %vm3317_vm14, %v3329_v37, %v3331_v52 }
 0x2da   : > { %v10714_v17 = vadd.f32 %v1427_v23, %v10500_v29  ;;  %v8299_v26 = vpop.f32.mrb[49].mxu1  ;;  %v10716_v62 = vpop.f32.mrb[154].mxu0  ;;  %v9383_v23 = vld [vmem:[#allocation2 + $0xa8] sm:$0xff] }
 0x2db   : > { %v1430_v61 = vpop.f32.mrb[50].mxu1  ;;  %v8488_v11 = vpop.f32.mrb[155].mxu0  ;;  %v3333_v57 = vrot.slane %v9383_v23, 6 }
 0x2dc   : > { %v10719_v43 = vadd.f32 %v1430_v61, %v10504_v10  ;;  %v8300_v47 = vpop.f32.mrb[51].mxu1  ;;  %v2113_v10 = vrot.slane %v10373_v18, 5 }
 0x2dd   : > { %8698 = vmatmul.mubr.msk.bf16.gmra.mrb[4].mxu0 %vm1073_vm1, %v3332_v2 }
 0x2de   : > { %8462 = vmatmul.mubr.msk.bf16.gmra.mrb[156].mxu1 %vm1073_vm1, %v2112_v60  ;;  %8701 = vmatprep.mubr.msk.bf16.mxu0 %vm9420_vm0, %v12791_v49  ;;  %v2114_v11 = vsel %vm2095_vm13, %v2111_v28, %v2113_v10  ;;  %v3335_v28 = vrot.slane %v10145_v25, 6 }
 0x2df   : > { %8465 = vmatprep.mubr.msk.bf16.mxu1 %vm9420_vm0, %v12791_v49 }
 0x2e0   : > { %v10729_v29 = vpop.f32.mrb[156].mxu0 }
 0x2e1   : > { %v1435_v21 = vpop.f32.mrb[52].mxu1  ;;  %12853 = vst [vmem:[#allocation75_spill] sm:$0xff] %v10729_v29  ;;  %v8491_v60 = vpop.f32.mrb[157].mxu0  ;;  %v3334_v29 = vsel %vm3317_vm14, %v3331_v52, %v3333_v57 }
 0x2e2   : > { %v10733_v27 = vadd.f32 %v1435_v21, %v10518_v42  ;;  %v8303_v37 = vpop.f32.mrb[53].mxu1  ;;  %v10735_v2 = vpop.f32.mrb[158].mxu0 }
 0x2e3   : > { %v1438_v26 = vpop.f32.mrb[54].mxu1  ;;  %v8492_v47 = vpop.f32.mrb[159].mxu0 }
 0x2e4   : > { %v10738_v8 = vadd.f32 %v1438_v26, %v10522_v41  ;;  %v8304_v61 = vpop.f32.mrb[55].mxu1  ;;  %v10750_v41 = vld [vmem:[#allocation2 + $0x50] sm:$0xff] }
 0x2e5   : > { %8702 = vmatmul.mubr.msk.bf16.gmra.mrb[8].mxu0 %vm1073_vm1, %v3334_v29  ;;  %v2115_v21 = vrot.slane %v10750_v41, 5 }
 0x2e6   : > { %8466 = vmatmul.mubr.msk.bf16.gmra.mrb[160].mxu1 %vm1073_vm1, %v2114_v11  ;;  %8705 = vmatprep.mubr.msk.bf16.mxu0 %vm9420_vm0, %v12791_v49 }
 0x2e7   : > { %8469 = vmatprep.mubr.msk.bf16.mxu1 %vm9420_vm0, %v12791_v49  ;;  %v2116_v11 = vsel %vm2095_vm13, %v2113_v10, %v2115_v21 }
 0x2e8   : > { %v10748_v42 = vpop.f32.mrb[160].mxu0 }
 0x2e9   : > { %v1443_v18 = vpop.f32.mrb[56].mxu1  ;;  %12854 = vst [vmem:[#allocation76_spill] sm:$0xff] %v10748_v42  ;;  %v8495_v29 = vpop.f32.mrb[161].mxu0  ;;  %v3336_v42 = vsel %vm3317_vm14, %v3333_v57, %v3335_v28 }
 0x2ea   : > { %v10755_v52 = vadd.f32 %v1443_v18, %v10536_v22  ;;  %v8307_v23 = vpop.f32.mrb[57].mxu1  ;;  %v10757_v60 = vpop.f32.mrb[162].mxu0 }
 0x2eb   : > { %v1446_v37 = vpop.f32.mrb[58].mxu1  ;;  %12855 = vst [vmem:[#allocation77_spill] sm:$0xff] %v10757_v60  ;;  %v8496_v47 = vpop.f32.mrb[163].mxu0  ;;  %v3337_v23 = vrot.slane %v10196_v9, 6 }
 0x2ec   : > { %v10760_v26 = vadd.f32 %v1446_v37, %v10540_v6  ;;  %v8308_v61 = vpop.f32.mrb[59].mxu1  ;;  %v9385_v6 = vld [vmem:[#allocation2 + $0x58] sm:$0x3]  ;;  %v2534_v47 = vshll.u32 %v10568_v44, 16 }
 0x2ed   : > { %8706 = vmatmul.mubr.msk.bf16.gmra.mrb[12].mxu0 %vm1073_vm1, %v3336_v42  ;;  %v2117_v18 = vrot.slane %v9385_v6, 5  ;;  %v2531_v61 = vshrl.u32 %v10568_v44, 16  ;;  %v3338_v9 = vsel %vm3317_vm14, %v3335_v28, %v3337_v23 }
 0x2ee   : > { %8470 = vmatmul.mubr.msk.bf16.gmra.mrb[164].mxu1 %vm1073_vm1, %v2116_v11  ;;  %8709 = vmatprep.mubr.msk.bf16.mxu0 %vm9420_vm0, %v12791_v49  ;;  %v2536_v44 = vrot.slane %v2534_v47, 6 }
 0x2ef   : > { %8473 = vmatprep.mubr.msk.bf16.mxu1 %vm9420_vm0, %v12791_v49  ;;  %v2118_v6 = vsel %vm2095_vm13, %v2115_v21, %v2117_v18 }
 0x2f0   : > { %v10770_v22 = vpop.f32.mrb[164].mxu0 }
 0x2f1   : > { %v1451_v25 = vpop.f32.mrb[60].mxu1  ;;  %12856 = vst [vmem:[#allocation78_spill] sm:$0xff] %v10770_v22  ;;  %v8499_v29 = vpop.f32.mrb[165].mxu0 }
 0x2f2   : > { %v10774_v10 = vadd.f32 %v1451_v25, %v10552_v13  ;;  %v8311_v57 = vpop.f32.mrb[61].mxu1  ;;  %v10776_v42 = vpop.f32.mrb[166].mxu0  ;;  %v12857_v13 = vshrl.u32 %v10282_v1, 16 }
 0x2f3   : > { %v1454_v37 = vpop.f32.mrb[62].mxu1  ;;  %v8500_v60 = vpop.f32.mrb[167].mxu0  ;;  %v12858_v57 = vshll.u32 %v10282_v1, 16 }
 0x2f4   : > { %v10781_v11 = vadd.f32 %v1454_v37, %v10557_v32  ;;  %v8312_v22 = vpop.f32.mrb[63].mxu1  ;;  %v2541_v25 = vrot.slane %v12857_v13, 5  ;;  %v2533_v32 = vrot.slane %v2531_v61, 5  ;;  %v9272_v61 = vld [vmem:[%s12724_s3 + $0x80] sm:$0xff]  }
 0x2f5   : > { %v2544_v29 = vrot.slane %v12858_v57, 6  ;;  %8710 = vmatmul.mubr.msk.bf16.gmra.mrb[16].mxu0 %vm1073_vm1, %v3338_v9  ;;  %v3339_v22 = vrot.slane %v10234_v4, 6 }
 0x2f6   : > { %8474 = vmatmul.mubr.msk.bf16.gmra.mrb[168].mxu1 %vm1073_vm1, %v2118_v6  ;;  %8713 = vmatprep.mubr.msk.bf16.mxu0 %vm9420_vm0, %v12791_v49  ;;  %v2537_v13 = vor.u32 %v2536_v44, %v2533_v32 }
 0x2f7   : > { %8529 = vmatprep.mubr.msk.bf16.mxu1 %vm9420_vm0, %v12791_v49  ;;  %v2545_v60 = vor.u32 %v2544_v29, %v2541_v25  ;;  %v12859_v29 = vshrl.u32 %v9582_v58, 16 }
 0x2f8   : > { %v10795_v28 = vpop.f32.mrb[168].mxu0 }
 0x2f9   : > { %v1459_v21 = vpop.f32.mrb[64].mxu1  ;;  %v8503_v37 = vpop.f32.mrb[169].mxu0  ;;  %v2546_v4 = vsel %vm2529_vm4, %v2537_v13, %v2545_v60 }
 0x2fa   : > { %v10799_v1 = vadd.f32 %v1459_v21, %v10570_v15  ;;  %v8315_v18 = vpop.f32.mrb[65].mxu1  ;;  %v10801_v6 = vpop.f32.mrb[170].mxu0  ;;  %v3340_v15 = vsel %vm3317_vm14, %v3337_v23, %v3339_v22  ;;  %v2550_v21 = vrot.slane %v12859_v29, 5  ;;  %v12861_v29 = vshrl.u32 %v9593_v16, 16 }
 0x2fb   : > { %v1462_v9 = vpop.f32.mrb[66].mxu1  ;;  %v8504_v25 = vpop.f32.mrb[171].mxu0  ;;  %v12860_v18 = vshll.u32 %v9582_v58, 16  ;;  %vm7249_vm14 = vcmask 518144  }
 0x2fc   : > { %v10807_v47 = vadd.f32 %v1462_v9, %v10575_v40  ;;  %v8316_v57 = vpop.f32.mrb[67].mxu1  ;;  %v9275_v40 = vld [vmem:[%s12724_s3 + $0x88] sm:$0xff]  }
 0x2fd   : > { %v2553_v37 = vrot.slane %v12860_v18, 6  ;;  %8714 = vmatmul.mubr.msk.bf16.gmra.mrb[20].mxu0 %vm1073_vm1, %v3340_v15  ;;  %v9277_v15 = vld [vmem:[%s12724_s3 + $0xd0] sm:$0xff]   ;;  %v12862_v18 = vshll.u32 %v9593_v16, 16 }
 0x2fe   : > { %8530 = vmatmul.mubr.msk.bf16.vlgmr.msra.gmra.mrb[172].mxu1 %vm1073_vm1, %v2546_v4  ;;  %8769 = vmatprep.mubr.msk.bf16.mxu0 %vm9420_vm0, %v12791_v49 }
 0x2ff   : > { %8622 = vmatpush3.bf16.msra.mxu1 %v9272_v61  ;;  %8533 = vmatprep.mubr.msk.bf16.mxu1 %vm9420_vm0, %v12791_v49  ;;  %v2554_v32 = vor.u32 %v2553_v37, %v2550_v21  ;;  %v2559_v21 = vrot.slane %v12861_v29, 5  ;;  %v2562_v37 = vrot.slane %v12862_v18, 6  ;;  %v12863_v29 = vshrl.u32 %v9607_v39, 16 }
 0x300   : > { %8623 = vmatprep.subr.bf16.mxu1 %v12791_v49  ;;  %v10825_v58 = vpop.f32.mrb[172].mxu0  ;;  %v12864_v18 = vshll.u32 %v9607_v39, 16 }
 0x301   : > { %v1467_v23 = vpop.f32.mrb[68].mxu1  ;;  %v8507_v9 = vpop.f32.mrb[173].mxu0  ;;  %v2563_v16 = vor.u32 %v2562_v37, %v2559_v21  ;;  %v2568_v21 = vrot.slane %v12863_v29, 5 }
 0x302   : > { %v10828_v44 = vadd.f32 %v1467_v23, %v10595_v12  ;;  %v8319_v22 = vpop.f32.mrb[69].mxu1  ;;  %v10830_v61 = vpop.f32.mrb[174].mxu0  ;;  %v2555_v12 = vsel %vm2529_vm4, %v2545_v60, %v2554_v32 }
 0x303   : > { %v1470_v13 = vpop.f32.mrb[70].mxu1  ;;  %8624 = vmatpush3.bf16.msra.mxu1 %v9275_v40  ;;  %v8508_v4 = vpop.f32.mrb[175].mxu0 }
 0x304   : > { %v10833_v57 = vadd.f32 %v1470_v13, %v10600_v51  ;;  %v8320_v25 = vpop.f32.mrb[71].mxu1  ;;  %8717 = vmatprep.subr.bf16.mxu1 %v12791_v49  ;;  %v9278_v51 = vld [vmem:[%s12724_s3 + $0xd8] sm:$0xff]  }
 0x305   : > { %8770 = vmatmul.mubr.msk.bf16.vlgmr.msra.gmra.mrb[24].mxu0 %vm1073_vm1, %v9856_v45 }
 0x306   : > { %8534 = vmatmul.mubr.msk.bf16.gmra.mrb[176].mxu1 %vm1073_vm1, %v2555_v12  ;;  %8773 = vmatprep.mubr.msk.bf16.mxu0 %vm9420_vm0, %v12791_v49  ;;  %v2564_v12 = vsel %vm2529_vm4, %v2554_v32, %v2563_v16 }
 0x307   : > { %8537 = vmatprep.mubr.msk.bf16.mxu1 %vm9420_vm0, %v12791_v49  ;;  %8862 = vmatpush3.bf16.msra.mxu0 %v9277_v15 }
 0x308   : > { %v10854_v40 = vpop.f32.mrb[176].mxu0  ;;  %8863 = vmatprep.subr.bf16.mxu0 %v12791_v49 }
 0x309   : > { %v1475_v60 = vpop.f32.mrb[72].mxu1  ;;  %v8511_v22 = vpop.f32.mrb[177].mxu0 }
 0x30a   : > { %v10858_v23 = vadd.f32 %v1475_v60, %v10619_v48  ;;  %v8323_v45 = vpop.f32.mrb[73].mxu1  ;;  %v10860_v13 = vpop.f32.mrb[178].mxu0  ;;  %v2571_v48 = vrot.slane %v12864_v18, 6 }
 0x30b   : > { %v1478_v9 = vpop.f32.mrb[74].mxu1  ;;  %v8512_v15 = vpop.f32.mrb[179].mxu0  ;;  %8864 = vmatpush3.bf16.msra.mxu0 %v9278_v51 }
 0x30c   : > { %v10863_v25 = vadd.f32 %v1478_v9, %v10625_v38  ;;  %v8324_v4 = vpop.f32.mrb[75].mxu1  ;;  %8957 = vmatprep.subr.bf16.mxu0 %v12791_v49  ;;  %v2572_v37 = vor.u32 %v2571_v48, %v2568_v21  ;;  %v12866_v21 = vshll.u32 %v9624_v59, 16 }
 0x30d   : > { %8774 = vmatmul.mubr.msk.bf16.gmra.mrb[28].mxu0 %vm1073_vm1, %v9938_v3 }
 0x30e   : > { %8538 = vmatmul.mubr.msk.bf16.gmra.mrb[180].mxu1 %vm1073_vm1, %v2564_v12  ;;  %8777 = vmatprep.mubr.msk.bf16.mxu0 %vm9420_vm0, %v12791_v49  ;;  %v2573_v15 = vsel %vm2529_vm4, %v2563_v16, %v2572_v37  ;;  %v12865_v12 = vshrl.u32 %v9624_v59, 16  ;;  %v2580_v18 = vrot.slane %v12866_v21, 6 }
 0x30f   : > { %8541 = vmatprep.mubr.msk.bf16.mxu1 %vm9420_vm0, %v12791_v49 }
 0x310   : > { %v10878_v32 = vpop.f32.mrb[180].mxu0  ;;  %v2577_v29 = vrot.slane %v12865_v12, 5 }
 0x311   : > { %v1483_v38 = vpop.f32.mrb[76].mxu1  ;;  %v8515_v60 = vpop.f32.mrb[181].mxu0 }
 0x312   : > { %v10881_v39 = vadd.f32 %v1483_v38, %v10638_v34  ;;  %v8327_v51 = vpop.f32.mrb[77].mxu1  ;;  %v10883_v22 = vpop.f32.mrb[182].mxu0  ;;  %v2581_v16 = vor.u32 %v2580_v18, %v2577_v29  ;;  %v12868_v29 = vshll.u32 %v9641_v24, 16 }
 0x313   : > { %v1486_v45 = vpop.f32.mrb[78].mxu1  ;;  %v8516_v4 = vpop.f32.mrb[183].mxu0 }
 0x314   : > { %v10886_v3 = vadd.f32 %v1486_v45, %v10643_v5  ;;  %v8328_v9 = vpop.f32.mrb[79].mxu1  ;;  %v2582_v4 = vsel %vm2529_vm4, %v2572_v37, %v2581_v16  ;;  %v2589_v21 = vrot.slane %v12868_v29, 6 }
 0x315   : > { %8778 = vmatmul.mubr.msk.bf16.gmra.mrb[32].mxu0 %vm1073_vm1, %v9986_v63 }
 0x316   : > { %8542 = vmatmul.mubr.msk.bf16.gmra.mrb[184].mxu1 %vm1073_vm1, %v2573_v15  ;;  %8781 = vmatprep.mubr.msk.bf16.mxu0 %vm9420_vm0, %v12791_v49  ;;  %v12867_v15 = vshrl.u32 %v9641_v24, 16 }
 0x317   : > { %8545 = vmatprep.mubr.msk.bf16.mxu1 %vm9420_vm0, %v12791_v49 }
 0x318   : > { %v10900_v5 = vpop.f32.mrb[184].mxu0  ;;  %v2586_v12 = vrot.slane %v12867_v15, 5  ;;  %v12869_v15 = vshrl.u32 %v9655_v50, 16 }
 0x319   : > { %v1491_v34 = vpop.f32.mrb[80].mxu1  ;;  %v8519_v38 = vpop.f32.mrb[185].mxu0 }
 0x31a   : > { %v10903_v48 = vadd.f32 %v1491_v34, %v10655_v0  ;;  %v8331_v59 = vpop.f32.mrb[81].mxu1  ;;  %v10905_v60 = vpop.f32.mrb[186].mxu0  ;;  %v2590_v37 = vor.u32 %v2589_v21, %v2586_v12  ;;  %v2595_v29 = vrot.slane %v12869_v15, 5  ;;  %v12870_v12 = vshll.u32 %v9655_v50, 16 }
 0x31b   : > { %v1494_v51 = vpop.f32.mrb[82].mxu1  ;;  %v8520_v9 = vpop.f32.mrb[187].mxu0 }
 0x31c   : > { %v10908_v63 = vadd.f32 %v1494_v51, %v10660_v54  ;;  %v8332_v45 = vpop.f32.mrb[83].mxu1 }
 0x31d   : > { %8782 = vmatmul.mubr.msk.bf16.gmra.mrb[36].mxu0 %vm1073_vm1, %v9989_v46 }
 0x31e   : > { %8546 = vmatmul.mubr.msk.bf16.gmra.mrb[188].mxu1 %vm1073_vm1, %v2582_v4  ;;  %8785 = vmatprep.mubr.msk.bf16.mxu0 %vm9420_vm0, %v12791_v49  ;;  %v2591_v4 = vsel %vm2529_vm4, %v2581_v16, %v2590_v37 }
 0x31f   : > { %8549 = vmatprep.mubr.msk.bf16.mxu1 %vm9420_vm0, %v12791_v49 }
 0x320   : > { %v10922_v54 = vpop.f32.mrb[188].mxu0 }
 0x321   : > { %v1658_v0 = vpop.f32.mrb[84].mxu1  ;;  %v8523_v24 = vpop.f32.mrb[189].mxu0 }
 0x322   : > { %v1745_v18 = vadd.f32 %v1658_v0, %v10676_v55  ;;  %v8339_v34 = vpop.f32.mrb[85].mxu1  ;;  %v10925_v38 = vpop.f32.mrb[190].mxu0  ;;  %v2598_v55 = vrot.slane %v12870_v12, 6  ;;  %v12874_v12 = vld [vmem:[#allocation36_spill] sm:$0xff] }
 0x323   : > { %v1661_v59 = vpop.f32.mrb[86].mxu1  ;;  %v8524_v45 = vpop.f32.mrb[191].mxu0 }
 0x324   : > { %v1746_v51 = vadd.f32 %v1661_v59, %v10681_v56  ;;  %v8340_v46 = vpop.f32.mrb[87].mxu1  ;;  %v10929_v9 = vadd.f32 %v10484_v33, %v1745_v18  ;;  %v2599_v21 = vor.u32 %v2598_v55, %v2595_v29  ;;  %v12871_v45 = vld [vmem:[#allocation12_spill] sm:$0xff] }
 0x325   : > { %8786 = vmatmul.mubr.msk.bf16.gmra.mrb[40].mxu0 %vm1073_vm1, %v10011_v30  ;;  %v12873_v29 = vshll.u32 %v12871_v45, 16 }
 0x326   : > { %8550 = vmatmul.mubr.msk.bf16.gmra.mrb[192].mxu1 %vm1073_vm1, %v2591_v4  ;;  %v10940_v56 = vadd.f32 %v10488_v36, %v1746_v51  ;;  %8789 = vmatprep.mubr.msk.bf16.mxu0 %vm9420_vm0, %v12791_v49  ;;  %v2600_v46 = vsel %vm2529_vm4, %v2590_v37, %v2599_v21  ;;  %v12872_v4 = vshrl.u32 %v12871_v45, 16  ;;  %v12875_v45 = vld [vmem:[#allocation15_spill] sm:$0xff] }
 0x327   : > { %8553 = vmatprep.mubr.msk.bf16.mxu1 %vm9420_vm0, %v12791_v49 }
 0x328   : > { %v10946_v16 = vpop.f32.mrb[192].mxu0  ;;  %v2604_v15 = vrot.slane %v12872_v4, 5  ;;  %v12876_v4 = vshrl.u32 %v12875_v45, 16 }
 0x329   : > { %v1666_v33 = vpop.f32.mrb[88].mxu1  ;;  %v8579_v18 = vpop.f32.mrb[193].mxu0 }
 0x32a   : > { %v1747_v50 = vadd.f32 %v1666_v33, %v10695_v19  ;;  %v8343_v0 = vpop.f32.mrb[89].mxu1  ;;  %v10949_v24 = vpop.f32.mrb[194].mxu0  ;;  %v2607_v19 = vrot.slane %v12873_v29, 6  ;;  %v2613_v29 = vrot.slane %v12876_v4, 5 }
 0x32b   : > { %v1669_v34 = vpop.f32.mrb[90].mxu1  ;;  %v8580_v59 = vpop.f32.mrb[195].mxu0 }
 0x32c   : > { %v1748_v30 = vadd.f32 %v1669_v34, %v10700_v20  ;;  %v8344_v36 = vpop.f32.mrb[91].mxu1  ;;  %v10953_v51 = vadd.f32 %v10502_v35, %v1747_v50  ;;  %v2608_v55 = vor.u32 %v2607_v19, %v2604_v15  ;;  %v12877_v15 = vshll.u32 %v12875_v45, 16  ;;  %v12878_v19 = vld [vmem:[#allocation41_spill] sm:$0xff]  ;;  %v12880_v45 = vld [vmem:[#allocation58_spill] sm:$0xff] }
 0x32d   : > { %8790 = vmatmul.mubr.msk.bf16.gmra.mrb[44].mxu0 %vm1073_vm1, %v12874_v12  ;;  %v12879_v12 = vld [vmem:[#allocation57_spill] sm:$0xff] }
 0x32e   : > { %8554 = vmatmul.mubr.msk.bf16.gmra.mrb[196].mxu1 %vm1073_vm1, %v2600_v46  ;;  %v10964_v20 = vadd.f32 %v10506_v31, %v1748_v30  ;;  %8793 = vmatprep.mubr.msk.bf16.mxu0 %vm9420_vm0, %v12791_v49  ;;  %v2609_v46 = vsel %vm2529_vm4, %v2599_v21, %v2608_v55 }
 0x32f   : > { %8557 = vmatprep.mubr.msk.bf16.mxu1 %vm9420_vm0, %v12791_v49 }
 0x330   : > { %v10970_v37 = vpop.f32.mrb[196].mxu0 }
 0x331   : > { %v1674_v35 = vpop.f32.mrb[92].mxu1  ;;  %v8583_v0 = vpop.f32.mrb[197].mxu0 }
 0x332   : > { %v1749_v33 = vadd.f32 %v1674_v35, %v10714_v17  ;;  %v8347_v50 = vpop.f32.mrb[93].mxu1  ;;  %v10973_v34 = vpop.f32.mrb[198].mxu0  ;;  %v2616_v17 = vrot.slane %v12877_v15, 6 }
 0x333   : > { %v1677_v18 = vpop.f32.mrb[94].mxu1  ;;  %v8584_v36 = vpop.f32.mrb[199].mxu0 }
 0x334   : > { %v1750_v31 = vadd.f32 %v1677_v18, %v10719_v43  ;;  %v8348_v30 = vpop.f32.mrb[95].mxu1  ;;  %v10977_v59 = vadd.f32 %v10520_v14, %v1749_v33  ;;  %v2617_v35 = vor.u32 %v2616_v17, %v2613_v29 }
 0x335   : > { %8794 = vmatmul.mubr.msk.bf16.gmra.mrb[48].mxu0 %vm1073_vm1, %v12878_v19  ;;  %v12881_v19 = vld [vmem:[#allocation43_spill] sm:$0xff] }
 0x336   : > { %8558 = vmatmul.mubr.msk.bf16.gmra.mrb[200].mxu1 %vm1073_vm1, %v2609_v46  ;;  %v10988_v43 = vadd.f32 %v12879_v12, %v1750_v31  ;;  %8797 = vmatprep.mubr.msk.bf16.mxu0 %vm9420_vm0, %v12791_v49  ;;  %v2618_v15 = vsel %vm2529_vm4, %v2608_v55, %v2617_v35 }
 0x337   : > { %8561 = vmatprep.mubr.msk.bf16.mxu1 %vm9420_vm0, %v12791_v49 }
 0x338   : > { %v10994_v21 = vpop.f32.mrb[200].mxu0 }
 0x339   : > { %v1682_v14 = vpop.f32.mrb[96].mxu1  ;;  %v8587_v0 = vpop.f32.mrb[201].mxu0 }
 0x33a   : > { %v1751_v33 = vadd.f32 %v1682_v14, %v10733_v27  ;;  %v8351_v50 = vpop.f32.mrb[97].mxu1  ;;  %v10997_v30 = vpop.f32.mrb[202].mxu0  ;;  %v12882_v27 = vld [vmem:[#allocation59_spill] sm:$0xff] }
 0x33b   : > { %v1685_v18 = vpop.f32.mrb[98].mxu1  ;;  %v8588_v46 = vpop.f32.mrb[203].mxu0 }
 0x33c   : > { %v1752_v31 = vadd.f32 %v1685_v18, %v10738_v8  ;;  %v8352_v36 = vpop.f32.mrb[99].mxu1  ;;  %v11001_v4 = vadd.f32 %v12880_v45, %v1751_v33  ;;  %v12885_v45 = vld [vmem:[#allocation22_spill] sm:$0xff] }
 0x33d   : > { %8798 = vmatmul.mubr.msk.bf16.gmra.mrb[52].mxu0 %vm1073_vm1, %v12881_v19  ;;  %v12884_v36 = vld [vmem:[#allocation60_spill] sm:$0xff]  ;;  %v12886_v19 = vld [vmem:[#allocation46_spill] sm:$0xff] }
 0x33e   : > { %8562 = vmatmul.mubr.msk.bf16.gmra.mrb[204].mxu1 %vm1073_vm1, %v2618_v15  ;;  %v11008_v29 = vadd.f32 %v12882_v27, %v1752_v31  ;;  %8801 = vmatprep.mubr.msk.bf16.mxu0 %vm9420_vm0, %v12791_v49  ;;  %v2627_v15 = vsel %vm2529_vm4, %v2617_v35, %v12885_v45 }
 0x33f   : > { %8565 = vmatprep.mubr.msk.bf16.mxu1 %vm9420_vm0, %v12791_v49 }
 0x340   : > { %v11014_v17 = vpop.f32.mrb[204].mxu0 }
 0x341   : > { %v1690_v8 = vpop.f32.mrb[100].mxu1  ;;  %v8591_v14 = vpop.f32.mrb[205].mxu0 }
 0x342   : > { %v1753_v12 = vadd.f32 %v1690_v8, %v10755_v52  ;;  %v8355_v55 = vpop.f32.mrb[101].mxu1  ;;  %v11017_v50 = vpop.f32.mrb[206].mxu0  ;;  %v12887_v52 = vld [vmem:[#allocation61_spill] sm:$0xff] }
 0x343   : > { %v1693_v33 = vpop.f32.mrb[102].mxu1  ;;  %12883 = vst [vmem:[#allocation12_spill] sm:$0xff] %v11017_v50  ;;  %v8592_v31 = vpop.f32.mrb[207].mxu0 }
 0x344   : > { %v1754_v0 = vadd.f32 %v1693_v33, %v10760_v26  ;;  %v8356_v18 = vpop.f32.mrb[103].mxu1  ;;  %v11021_v46 = vadd.f32 %v12884_v36, %v1753_v12  ;;  %v12890_v36 = vld [vmem:[#allocation62_spill] sm:$0xff] }
 0x345   : > { %8802 = vmatmul.mubr.msk.bf16.gmra.mrb[56].mxu0 %vm1073_vm1, %v12886_v19  ;;  %v12892_v19 = vld [vmem:[#allocation51_spill] sm:$0xff] }
 0x346   : > { %8566 = vmatmul.mubr.msk.bf16.gmra.mrb[208].mxu1 %vm1073_vm1, %v2627_v15  ;;  %v11029_v27 = vadd.f32 %v12887_v52, %v1754_v0  ;;  %8805 = vmatprep.mubr.msk.bf16.mxu0 %vm9420_vm0, %v12791_v49  ;;  %v12891_v15 = vld [vmem:[#allocation25_spill] sm:$0xff]  ;;  %v12893_v52 = vld [vmem:[#allocation63_spill] sm:$0xff] }
 0x347   : > { %8569 = vmatprep.mubr.msk.bf16.mxu1 %vm9420_vm0, %v12791_v49 }
 0x348   : > { %v11035_v8 = vpop.f32.mrb[208].mxu0 }
 0x349   : > { %v1698_v26 = vpop.f32.mrb[104].mxu1  ;;  %12888 = vst [vmem:[#allocation36_spill] sm:$0xff] %v11035_v8  ;;  %v8595_v55 = vpop.f32.mrb[209].mxu0  ;;  %v12896_v8 = vld [vmem:[#allocation64_spill] sm:$0xff] }
 0x34a   : > { %v1755_v12 = vadd.f32 %v1698_v26, %v10774_v10  ;;  %v8359_v35 = vpop.f32.mrb[105].mxu1  ;;  %v11038_v33 = vpop.f32.mrb[210].mxu0 }
 0x34b   : > { %v1701_v14 = vpop.f32.mrb[106].mxu1  ;;  %12889 = vst [vmem:[#allocation15_spill] sm:$0xff] %v11038_v33  ;;  %v8596_v31 = vpop.f32.mrb[211].mxu0 }
 0x34c   : > { %v1756_v18 = vadd.f32 %v1701_v14, %v10781_v11  ;;  %v8360_v0 = vpop.f32.mrb[107].mxu1  ;;  %v11042_v45 = vadd.f32 %v12890_v36, %v1755_v12  ;;  %v9386_v12 = vld [vmem:[#allocation2 + $0x10] sm:$0xff] }
 0x34d   : > { %8806 = vmatmul.mubr.msk.bf16.gmra.mrb[60].mxu0 %vm1073_vm1, %v12892_v19  ;;  %v3081_v35 = vrot.slane %v9386_v12, 2  ;;  %v9276_v19 = vld [vmem:[%s12724_s3 + $0xa0] sm:$0xff]  }
 0x34e   : > { %8570 = vmatmul.mubr.msk.bf16.gmra.mrb[212].mxu1 %vm1073_vm1, %v12891_v15  ;;  %v11049_v10 = vadd.f32 %v12893_v52, %v1756_v18  ;;  %8809 = vmatprep.mubr.msk.bf16.mxu0 %vm9420_vm0, %v12791_v49  ;;  %v9387_v18 = vld [vmem:[#allocation2 + $0x8] sm:$0xfc] }
 0x34f   : > { %8625 = vmatprep.mubr.msk.bf16.mxu1 %vm9420_vm0, %v12791_v49  ;;  %v3080_v15 = vrot.slane %v9387_v18, 2 }
 0x350   : > { %v11055_v26 = vpop.f32.mrb[212].mxu0 }
 0x351   : > { %v1706_v11 = vpop.f32.mrb[108].mxu1  ;;  %12894 = vst [vmem:[#allocation41_spill] sm:$0xff] %v11055_v26  ;;  %v8599_v0 = vpop.f32.mrb[213].mxu0 }
 0x352   : > { %v1757_v55 = vadd.f32 %v1706_v11, %v10799_v1  ;;  %v8363_v14 = vpop.f32.mrb[109].mxu1  ;;  %v11058_v36 = vpop.f32.mrb[214].mxu0  ;;  %v3082_v1 = vsel %vm3079_vm15, %v3080_v15, %v3081_v35  ;;  %v12897_v11 = vld [vmem:[#allocation53_spill] sm:$0xff] }
 0x353   : > { %v1709_v31 = vpop.f32.mrb[110].mxu1  ;;  %12895 = vst [vmem:[#allocation57_spill] sm:$0xff] %v11058_v36  ;;  %v8600_v26 = vpop.f32.mrb[215].mxu0  ;;  %v12898_v14 = vld [vmem:[#allocation65_spill] sm:$0xff] }
 0x354   : > { %v1758_v52 = vadd.f32 %v1709_v31, %v10807_v47  ;;  %v8364_v33 = vpop.f32.mrb[111].mxu1  ;;  %v11065_v12 = vadd.f32 %v12896_v8, %v1757_v55  ;;  %v9279_v47 = vld [vmem:[%s12724_s3 + $0xa8] sm:$0xff]   ;;  %v9388_v26 = vld [vmem:[#allocation2 + $0x18] sm:$0xff] }
 0x355   : > { %8810 = vmatmul.mubr.msk.bf16.gmra.mrb[64].mxu0 %vm1073_vm1, %v12897_v11  ;;  %v3083_v55 = vrot.slane %v9388_v26, 2  ;;  %v9281_v26 = vld [vmem:[%s12724_s3 + $0xf0] sm:$0xff]  }
 0x356   : > { %8626 = vmatmul.mubr.msk.bf16.vlgmr.msra.gmra.mrb[216].mxu1 %vm1073_vm1, %v3082_v1  ;;  %v11072_v0 = vadd.f32 %v12898_v14, %v1758_v52  ;;  %8865 = vmatprep.mubr.msk.bf16.mxu0 %vm9420_vm0, %v12791_v49 }
 0x357   : > { %8718 = vmatpush3.bf16.msra.mxu1 %v9276_v19  ;;  %8629 = vmatprep.mubr.msk.bf16.mxu1 %vm9420_vm0, %v12791_v49  ;;  %v9389_v19 = vld [vmem:[#allocation2 + $0x70] sm:$0xf8] }
 0x358   : > { %8719 = vmatprep.subr.bf16.mxu1 %v12791_v49  ;;  %v11082_v33 = vpop.f32.mrb[216].mxu0  ;;  %v4324_v52 = vrot.slane %v9389_v19, 3  ;;  %v3084_v19 = vsel %vm3079_vm15, %v3081_v35, %v3083_v55 }
 0x359   : > { %v1714_v8 = vpop.f32.mrb[112].mxu1  ;;  %12899 = vst [vmem:[#allocation58_spill] sm:$0xff] %v11082_v33  ;;  %v8603_v15 = vpop.f32.mrb[217].mxu0  ;;  %v12901_v33 = vld [vmem:[#allocation66_spill] sm:$0xff] }
 0x35a   : > { %v1759_v31 = vadd.f32 %v1714_v8, %v10828_v44  ;;  %v8367_v18 = vpop.f32.mrb[113].mxu1  ;;  %v11085_v11 = vpop.f32.mrb[218].mxu0  ;;  %v12902_v8 = vld [vmem:[#allocation30_spill] sm:$0xff] }
 0x35b   : > { %v1717_v1 = vpop.f32.mrb[114].mxu1  ;;  %12900 = vst [vmem:[#allocation43_spill] sm:$0xff] %v11085_v11  ;;  %8720 = vmatpush3.bf16.msra.mxu1 %v9279_v47  ;;  %v8604_v50 = vpop.f32.mrb[219].mxu0  ;;  %v12903_v18 = vrot.slane %v12902_v8, 3 }
 0x35c   : > { %v1760_v14 = vadd.f32 %v1717_v1, %v10833_v57  ;;  %v8368_v36 = vpop.f32.mrb[115].mxu1  ;;  %8813 = vmatprep.subr.bf16.mxu1 %v12791_v49  ;;  %v11093_v44 = vadd.f32 %v12901_v33, %v1759_v31  ;;  %v12904_v57 = vld [vmem:[#allocation67_spill] sm:$0xff]  ;;  %v9390_v33 = vld [vmem:[#allocation2 + $0x20] sm:$0xff] }
 0x35d   : > { %v4326_v15 = vsel %vm4323_vm10, %v4324_v52, %v12903_v18  ;;  %v9282_v36 = vld [vmem:[%s12724_s3 + $0xf8] sm:$0xff]   ;;  %v3085_v31 = vrot.slane %v9390_v33, 2 }
 0x35e   : > { %8630 = vmatmul.mubr.msk.bf16.gmra.mrb[220].mxu1 %vm1073_vm1, %v3084_v19  ;;  %8866 = vmatmul.mubr.msk.bf16.vlgmr.msra.gmra.mrb[68].mxu0 %vm1073_vm1, %v4326_v15  ;;  %v11102_v50 = vadd.f32 %v12904_v57, %v1760_v14  ;;  %v12907_v57 = vld [vmem:[#allocation68_spill] sm:$0xff]  ;;  %v12908_v33 = vld [vmem:[#allocation31_spill] sm:$0xff] }
 0x35f   : > { %8633 = vmatprep.mubr.msk.bf16.mxu1 %vm9420_vm0, %v12791_v49  ;;  %8869 = vmatprep.mubr.msk.bf16.mxu0 %vm9420_vm0, %v12791_v49 }
 0x360   : > { %8958 = vmatpush3.bf16.msra.mxu0 %v9281_v26  ;;  %v11111_v35 = vpop.f32.mrb[220].mxu0 }
 0x361   : > { %v1722_v47 = vpop.f32.mrb[116].mxu1  ;;  %12905 = vst [vmem:[#allocation59_spill] sm:$0xff] %v11111_v35  ;;  %8959 = vmatprep.subr.bf16.mxu0 %v12791_v49  ;;  %v8607_v14 = vpop.f32.mrb[221].mxu0  ;;  %v3086_v35 = vsel %vm3079_vm15, %v3083_v55, %v3085_v31 }
 0x362   : > { %v1761_v52 = vadd.f32 %v1722_v47, %v10858_v23  ;;  %v8371_v1 = vpop.f32.mrb[117].mxu1  ;;  %v11115_v18 = vpop.f32.mrb[222].mxu0  ;;  %v12909_v23 = vld [vmem:[#allocation69_spill] sm:$0xff] }
 0x363   : > { %v1725_v8 = vpop.f32.mrb[118].mxu1  ;;  %12906 = vst [vmem:[#allocation60_spill] sm:$0xff] %v11115_v18  ;;  %v8608_v19 = vpop.f32.mrb[223].mxu0 }
 0x364   : > { %v1762_v26 = vadd.f32 %v1725_v8, %v10863_v25  ;;  %v8372_v15 = vpop.f32.mrb[119].mxu1  ;;  %8960 = vmatpush3.bf16.msra.mxu0 %v9282_v36  ;;  %v11119_v11 = vadd.f32 %v12907_v57, %v1761_v52  ;;  %v9391_v52 = vld [vmem:[#allocation2 + $0x28] sm:$0xff] }
 0x365   : > { %v3087_v1 = vrot.slane %v9391_v52, 2 }
 0x366   : > { %8634 = vmatmul.mubr.msk.bf16.gmra.mrb[224].mxu1 %vm1073_vm1, %v3086_v35  ;;  %8870 = vmatmul.mubr.msk.bf16.gmra.mrb[72].mxu0 %vm1073_vm1, %v12908_v33  ;;  %v11126_v47 = vadd.f32 %v12909_v23, %v1762_v26  ;;  %v12912_v33 = vld [vmem:[#allocation70_spill] sm:$0xff] }
 0x367   : > { %8637 = vmatprep.mubr.msk.bf16.mxu1 %vm9420_vm0, %v12791_v49  ;;  %8873 = vmatprep.mubr.msk.bf16.mxu0 %vm9420_vm0, %v12791_v49  ;;  %v3088_v18 = vsel %vm3079_vm15, %v3085_v31, %v3087_v1 }
 0x368   : > { %v11132_v36 = vpop.f32.mrb[224].mxu0 }
 0x369   : > { %v1730_v25 = vpop.f32.mrb[120].mxu1  ;;  %12910 = vst [vmem:[#allocation22_spill] sm:$0xff] %v11132_v36  ;;  %v8611_v14 = vpop.f32.mrb[225].mxu0  ;;  %v12913_v36 = vld [vmem:[#allocation32_spill] sm:$0xff] }
 0x36a   : > { %v1763_v55 = vadd.f32 %v1730_v25, %v10881_v39  ;;  %v8375_v35 = vpop.f32.mrb[121].mxu1  ;;  %v11135_v15 = vpop.f32.mrb[226].mxu0  ;;  %v12914_v39 = vld [vmem:[#allocation71_spill] sm:$0xff] }
 0x36b   : > { %v1733_v8 = vpop.f32.mrb[122].mxu1  ;;  %12911 = vst [vmem:[#allocation46_spill] sm:$0xff] %v11135_v15  ;;  %v8612_v57 = vpop.f32.mrb[227].mxu0 }
 0x36c   : > { %v1764_v26 = vadd.f32 %v1733_v8, %v10886_v3  ;;  %v8376_v19 = vpop.f32.mrb[123].mxu1  ;;  %v11139_v23 = vadd.f32 %v12912_v33, %v1763_v55  ;;  %v9392_v55 = vld [vmem:[#allocation2 + $0x30] sm:$0xff]  ;;  %v12916_v33 = vld [vmem:[#allocation72_spill] sm:$0xff] }
 0x36d   : > { %v3089_v35 = vrot.slane %v9392_v55, 2  ;;  %v9393_v55 = vld [vmem:[#allocation2 + $0x38] sm:$0xff] }
 0x36e   : > { %8638 = vmatmul.mubr.msk.bf16.gmra.mrb[228].mxu1 %vm1073_vm1, %v3088_v18  ;;  %8874 = vmatmul.mubr.msk.bf16.gmra.mrb[76].mxu0 %vm1073_vm1, %v12913_v36  ;;  %v11146_v25 = vadd.f32 %v12914_v39, %v1764_v26 }
 0x36f   : > { %8641 = vmatprep.mubr.msk.bf16.mxu1 %vm9420_vm0, %v12791_v49  ;;  %8877 = vmatprep.mubr.msk.bf16.mxu0 %vm9420_vm0, %v12791_v49  ;;  %v3090_v15 = vsel %vm3079_vm15, %v3087_v1, %v3089_v35 }
 0x370   : > { %v11152_v52 = vpop.f32.mrb[228].mxu0 }
 0x371   : > { %v1738_v3 = vpop.f32.mrb[124].mxu1  ;;  %12915 = vst [vmem:[#allocation61_spill] sm:$0xff] %v11152_v52  ;;  %v8615_v14 = vpop.f32.mrb[229].mxu0  ;;  %v12917_v52 = vld [vmem:[#allocation33_spill] sm:$0xff] }
 0x372   : > { %v1765_v31 = vadd.f32 %v1738_v3, %v10903_v48  ;;  %v8379_v18 = vpop.f32.mrb[125].mxu1  ;;  %v11155_v36 = vpop.f32.mrb[230].mxu0 }
 0x373   : > { %v1741_v8 = vpop.f32.mrb[126].mxu1  ;;  %v8616_v57 = vpop.f32.mrb[231].mxu0 }
 0x374   : > { %v1766_v26 = vadd.f32 %v1741_v8, %v10908_v63  ;;  %v8380_v19 = vpop.f32.mrb[127].mxu1  ;;  %v11159_v39 = vadd.f32 %v12916_v33, %v1765_v31  ;;  %v3091_v31 = vrot.slane %v9393_v55, 2  ;;  %v12919_v33 = vld [vmem:[#allocation35_spill] sm:$0xff] }
 0x376   : > { %8642 = vmatmul.mubr.msk.bf16.gmra.mrb[232].mxu1 %vm1073_vm1, %v3090_v15  ;;  %8878 = vmatmul.mubr.msk.bf16.gmra.mrb[80].mxu0 %vm1073_vm1, %v12917_v52  ;;  %v11166_v48 = vadd.f32 %v10678_v7, %v1766_v26  ;;  %v3092_v57 = vsel %vm3079_vm15, %v3089_v35, %v3091_v31 }
 0x377   : > { %8645 = vmatprep.mubr.msk.bf16.mxu1 %vm9420_vm0, %v12791_v49  ;;  %8881 = vmatprep.mubr.msk.bf16.mxu0 %vm9420_vm0, %v12791_v49 }
 0x378   : > { %v11172_v3 = vpop.f32.mrb[232].mxu0 }
 0x379   : > { %v2198_v63 = vpop.f32.mrb[128].mxu1  ;;  %v8619_v18 = vpop.f32.mrb[233].mxu0 }
 0x37a   : > { %v2285_v1 = vadd.f32 %v2198_v63, %v10929_v9  ;;  %v8435_v15 = vpop.f32.mrb[129].mxu1  ;;  %v11175_v52 = vpop.f32.mrb[234].mxu0  ;;  %v12920_v9 = vld [vmem:[#allocation73_spill] sm:$0xff] }
 0x37b   : > { %v2201_v14 = vpop.f32.mrb[130].mxu1  ;;  %12918 = vst [vmem:[#allocation62_spill] sm:$0xff] %v11175_v52  ;;  %v8620_v26 = vpop.f32.mrb[235].mxu0 }
 0x37c   : > { %v2286_v7 = vadd.f32 %v2201_v14, %v10940_v56  ;;  %v8436_v8 = vpop.f32.mrb[131].mxu1  ;;  %v11179_v19 = vadd.f32 %v10691_v53, %v2285_v1  ;;  %v9394_v53 = vld [vmem:[#allocation2 + $0x40] sm:$0xff] }
 0x37d   : > { %v3093_v1 = vrot.slane %v9394_v53, 2  ;;  %v9395_v53 = vld [vmem:[#allocation2 + $0x48] sm:$0xff] }
 0x37e   : > { %8646 = vmatmul.mubr.msk.bf16.gmra.mrb[236].mxu1 %vm1073_vm1, %v3092_v57  ;;  %8882 = vmatmul.mubr.msk.bf16.gmra.mrb[84].mxu0 %vm1073_vm1, %v12919_v33  ;;  %v11186_v63 = vadd.f32 %v12920_v9, %v2286_v7  ;;  %v12922_v33 = vld [vmem:[#allocation74_spill] sm:$0xff] }
 0x37f   : > { %8649 = vmatprep.mubr.msk.bf16.mxu1 %vm9420_vm0, %v12791_v49  ;;  %8885 = vmatprep.mubr.msk.bf16.mxu0 %vm9420_vm0, %v12791_v49  ;;  %v3094_v52 = vsel %vm3079_vm15, %v3091_v31, %v3093_v1 }
 0x380   : > { %v11192_v55 = vpop.f32.mrb[236].mxu0 }
 0x381   : > { %v2206_v56 = vpop.f32.mrb[132].mxu1  ;;  %12921 = vst [vmem:[#allocation25_spill] sm:$0xff] %v11192_v55  ;;  %v8675_v18 = vpop.f32.mrb[237].mxu0  ;;  %v12923_v55 = vld [vmem:[#allocation40_spill] sm:$0xff] }
 0x382   : > { %v2287_v35 = vadd.f32 %v2206_v56, %v10953_v51  ;;  %v8439_v15 = vpop.f32.mrb[133].mxu1  ;;  %v11195_v8 = vpop.f32.mrb[238].mxu0 }
 0x383   : > { %v2209_v14 = vpop.f32.mrb[134].mxu1  ;;  %v8676_v57 = vpop.f32.mrb[239].mxu0 }
 0x384   : > { %v2288_v7 = vadd.f32 %v2209_v14, %v10964_v20  ;;  %v8440_v26 = vpop.f32.mrb[135].mxu1  ;;  %v11199_v9 = vadd.f32 %v12922_v33, %v2287_v35  ;;  %v3095_v35 = vrot.slane %v9395_v53, 2  ;;  %v3097_v53 = vrot.slane %v10750_v41, 2  ;;  %v12930_v41 = vld [vmem:[#allocation77_spill] sm:$0xff] }
 0x385   : > { %v12925_v26 = vld [vmem:[#allocation75_spill] sm:$0xff] }
 0x386   : > { %8650 = vmatmul.mubr.msk.bf16.gmra.mrb[240].mxu1 %vm1073_vm1, %v3094_v52  ;;  %8886 = vmatmul.mubr.msk.bf16.gmra.mrb[88].mxu0 %vm1073_vm1, %v12923_v55  ;;  %v11206_v51 = vadd.f32 %v10716_v62, %v2288_v7  ;;  %v3096_v33 = vsel %vm3079_vm15, %v3093_v1, %v3095_v35 }
 0x387   : > { %8653 = vmatprep.mubr.msk.bf16.mxu1 %vm9420_vm0, %v12791_v49  ;;  %8889 = vmatprep.mubr.msk.bf16.mxu0 %vm9420_vm0, %v12791_v49 }
 0x388   : > { %v11212_v56 = vpop.f32.mrb[240].mxu0 }
 0x389   : > { %v2214_v20 = vpop.f32.mrb[136].mxu1  ;;  %12924 = vst [vmem:[#allocation51_spill] sm:$0xff] %v11212_v56  ;;  %v8679_v15 = vpop.f32.mrb[241].mxu0  ;;  %v12926_v56 = vld [vmem:[#allocation42_spill] sm:$0xff] }
 0x38a   : > { %v2289_v31 = vadd.f32 %v2214_v20, %v10977_v59  ;;  %v8443_v52 = vpop.f32.mrb[137].mxu1  ;;  %v11215_v55 = vpop.f32.mrb[242].mxu0 }
 0x38b   : > { %v2217_v18 = vpop.f32.mrb[138].mxu1  ;;  %v8680_v7 = vpop.f32.mrb[243].mxu0 }
 0x38c   : > { %v2290_v62 = vadd.f32 %v2217_v18, %v10988_v43  ;;  %v8444_v14 = vpop.f32.mrb[139].mxu1  ;;  %v11219_v57 = vadd.f32 %v12925_v26, %v2289_v31  ;;  %v3098_v26 = vsel %vm3079_vm15, %v3095_v35, %v3097_v53 }
 0x38d   : > { %v12928_v14 = vld [vmem:[#allocation76_spill] sm:$0xff] }
 0x38e   : > { %8654 = vmatmul.mubr.msk.bf16.gmra.mrb[244].mxu1 %vm1073_vm1, %v3096_v33  ;;  %8890 = vmatmul.mubr.msk.bf16.gmra.mrb[92].mxu0 %vm1073_vm1, %v12926_v56  ;;  %v11226_v59 = vadd.f32 %v10735_v2, %v2290_v62  ;;  %v12929_v33 = vld [vmem:[#allocation44_spill] sm:$0xff] }
 0x38f   : > { %8657 = vmatprep.mubr.msk.bf16.mxu1 %vm9420_vm0, %v12791_v49  ;;  %8893 = vmatprep.mubr.msk.bf16.mxu0 %vm9420_vm0, %v12791_v49 }
 0x390   : > { %v11232_v20 = vpop.f32.mrb[244].mxu0 }
 0x391   : > { %v2222_v43 = vpop.f32.mrb[140].mxu1  ;;  %v8683_v52 = vpop.f32.mrb[245].mxu0 }
 0x392   : > { %v2291_v1 = vadd.f32 %v2222_v43, %v11001_v4  ;;  %v8447_v31 = vpop.f32.mrb[141].mxu1  ;;  %v11236_v56 = vpop.f32.mrb[246].mxu0 }
 0x393   : > { %v2225_v15 = vpop.f32.mrb[142].mxu1  ;;  %12927 = vst [vmem:[#allocation63_spill] sm:$0xff] %v11236_v56  ;;  %v8684_v62 = vpop.f32.mrb[247].mxu0 }
 0x394   : > { %v2292_v2 = vadd.f32 %v2225_v15, %v11008_v29  ;;  %v8448_v18 = vpop.f32.mrb[143].mxu1  ;;  %v11240_v7 = vadd.f32 %v12928_v14, %v2291_v1  ;;  %v9396_v1 = vld [vmem:[#allocation2 + $0x58] sm:$0x7f] }
 0x395   : > { %v3099_v31 = vrot.slane %v9396_v1, 2  ;;  %v9397_v1 = vld [vmem:[#allocation2 + $0xc0] sm:$0xff] }
 0x396   : > { %8658 = vmatmul.mubr.msk.bf16.gmra.mrb[248].mxu1 %vm1073_vm1, %v3098_v26  ;;  %8894 = vmatmul.mubr.msk.bf16.gmra.mrb[96].mxu0 %vm1073_vm1, %v12929_v33  ;;  %v11247_v4 = vadd.f32 %v12930_v41, %v2292_v2  ;;  %v12932_v33 = vld [vmem:[#allocation78_spill] sm:$0xff] }
 0x397   : > { %8661 = vmatprep.mubr.msk.bf16.mxu1 %vm9420_vm0, %v12791_v49  ;;  %8897 = vmatprep.mubr.msk.bf16.mxu0 %vm9420_vm0, %v12791_v49  ;;  %v3100_v56 = vsel %vm3079_vm15, %v3097_v53, %v3099_v31 }
 0x398   : > { %v11253_v43 = vpop.f32.mrb[248].mxu0 }
 0x399   : > { %v2230_v29 = vpop.f32.mrb[144].mxu1  ;;  %12931 = vst [vmem:[#allocation64_spill] sm:$0xff] %v11253_v43  ;;  %v8687_v15 = vpop.f32.mrb[249].mxu0  ;;  %v12933_v43 = vld [vmem:[#allocation48_spill] sm:$0xff] }
 0x39a   : > { %v2293_v35 = vadd.f32 %v2230_v29, %v11021_v46  ;;  %v8451_v52 = vpop.f32.mrb[145].mxu1  ;;  %v11256_v62 = vpop.f32.mrb[250].mxu0 }
 0x39b   : > { %v2233_v18 = vpop.f32.mrb[146].mxu1  ;;  %v8688_v26 = vpop.f32.mrb[251].mxu0 }
 0x39c   : > { %v2294_v2 = vadd.f32 %v2233_v18, %v11029_v27  ;;  %v8452_v14 = vpop.f32.mrb[147].mxu1  ;;  %v11260_v41 = vadd.f32 %v12932_v33, %v2293_v35  ;;  %v4343_v35 = vrot.slane %v9397_v1, 3  ;;  %v12935_v26 = vld [vmem:[#allocation45_spill] sm:$0xff] }
 0x39d   : > { %v12936_v33 = vrot.slane %v12935_v26, 3 }
 0x39e   : > { %8662 = vmatmul.mubr.msk.bf16.gmra.mrb[252].mxu1 %vm1073_vm1, %v3100_v56  ;;  %8898 = vmatmul.mubr.msk.bf16.gmra.mrb[100].mxu0 %vm1073_vm1, %v12933_v43  ;;  %v11267_v46 = vadd.f32 %v10776_v42, %v2294_v2 }
 0x39f   : > { %8665 = vmatprep.mubr.msk.bf16.mxu1 %vm9420_vm0, %v12791_v49  ;;  %8901 = vmatprep.mubr.msk.bf16.mxu0 %vm9420_vm0, %v12791_v49 }
 0x3a0   : > { %v11273_v29 = vpop.f32.mrb[252].mxu0 }
 0x3a1   : > { %v2238_v27 = vpop.f32.mrb[148].mxu1  ;;  %12934 = vst [vmem:[#allocation53_spill] sm:$0xff] %v11273_v29  ;;  %v8691_v52 = vpop.f32.mrb[253].mxu0  ;;  %v4344_v29 = vsel %vm4323_vm10, %v12936_v33, %v4343_v35 }
 0x3a2   : > { %v2295_v53 = vadd.f32 %v2238_v27, %v11042_v45  ;;  %v8455_v56 = vpop.f32.mrb[149].mxu1  ;;  %v11276_v43 = vpop.f32.mrb[254].mxu0 }
 0x3a3   : > { %v2241_v15 = vpop.f32.mrb[150].mxu1  ;;  %v8692_v2 = vpop.f32.mrb[255].mxu0 }
 0x3a4   : > { %v2296_v42 = vadd.f32 %v2241_v15, %v11049_v10  ;;  %v8456_v18 = vpop.f32.mrb[151].mxu1  ;;  %v11280_v14 = vadd.f32 %v10795_v28, %v2295_v53 }
 0x3a5   : > { %v12937_v18 = vld [vmem:[#allocation4_spill] sm:$0xff] }
 0x3a6   : > { %8666 = vmatmul.mubr.msk.bf16.gmra.mrb[0].mxu1 %vm1073_vm1, %v3099_v31  ;;  %8902 = vmatmul.mubr.msk.bf16.gmra.mrb[104].mxu0 %vm1073_vm1, %v4344_v29  ;;  %v11288_v45 = vadd.f32 %v10801_v6, %v2296_v42  ;;  %v9280_v6 = vld [vmem:[%s12724_s3 + $0xc0] sm:$0xff]  }
 0x3a7   : > { %8721 = vmatprep.mubr.msk.bf16.mxu1 %vm9420_vm0, %v12791_v49  ;;  %8905 = vmatprep.mubr.msk.bf16.mxu0 %vm9420_vm0, %v12791_v49 }
 0x3a8   : > { %v11294_v28 = vpop.f32.mrb[0].mxu0 }
 0x3a9   : > { %v2246_v10 = vpop.f32.mrb[152].mxu1  ;;  %v8695_v53 = vpop.f32.mrb[1].mxu0 }
 0x3aa   : > { %v2297_v27 = vadd.f32 %v2246_v10, %v11065_v12  ;;  %v8459_v1 = vpop.f32.mrb[153].mxu1  ;;  %v11297_v31 = vpop.f32.mrb[2].mxu0 }
 0x3ab   : > { %v2249_v56 = vpop.f32.mrb[154].mxu1  ;;  %v8696_v15 = vpop.f32.mrb[3].mxu0 }
 0x3ac   : > { %v2298_v29 = vadd.f32 %v2249_v56, %v11072_v0  ;;  %v8460_v52 = vpop.f32.mrb[155].mxu1  ;;  %v11304_v42 = vadd.f32 %v10825_v58, %v2297_v27  ;;  %v9283_v0 = vld [vmem:[%s12724_s3 + $0xc8] sm:$0xff]  }
 0x3ae   : > { %8722 = vmatmul.mubr.msk.bf16.vlgmr.msra.gmra.mrb[4].mxu1 %vm1073_vm1, %v12937_v18  ;;  %8906 = vmatmul.mubr.msk.bf16.gmra.mrb[108].mxu0 %vm1073_vm1, %v4343_v35  ;;  %v11310_v12 = vadd.f32 %v10830_v61, %v2298_v29  ;;  %v12939_v29 = vld [vmem:[#allocation34_spill] sm:$0xff] }
 0x3af   : > { %8814 = vmatpush3.bf16.msra.mxu1 %v9280_v6  ;;  %8725 = vmatprep.mubr.msk.bf16.mxu1 %vm9420_vm0, %v12791_v49  ;;  %v12938_v6 = vld [vmem:[#allocation5_spill] sm:$0xff] }
 0x3b0   : > { %8961 = vmatprep.mubr.msk.bf16.mxu0 %vm9420_vm0, %v12791_v49  ;;  %8815 = vmatprep.subr.bf16.mxu1 %v12791_v49  ;;  %v11320_v2 = vpop.f32.mrb[4].mxu0 }
 0x3b1   : > { %v2254_v58 = vpop.f32.mrb[156].mxu1  ;;  %v8699_v26 = vpop.f32.mrb[5].mxu0 }
 0x3b2   : > { %v2299_v35 = vadd.f32 %v2254_v58, %v11093_v44  ;;  %v8463_v61 = vpop.f32.mrb[157].mxu1  ;;  %v11323_v10 = vpop.f32.mrb[6].mxu0 }
 0x3b3   : > { %v2257_v33 = vpop.f32.mrb[158].mxu1  ;;  %8816 = vmatpush3.bf16.msra.mxu1 %v9283_v0  ;;  %v8700_v53 = vpop.f32.mrb[7].mxu0 }
 0x3b4   : > { %v2300_v27 = vadd.f32 %v2257_v33, %v11102_v50  ;;  %v8464_v1 = vpop.f32.mrb[159].mxu1  ;;  %8909 = vmatprep.subr.bf16.mxu1 %v12791_v49  ;;  %v11328_v56 = vadd.f32 %v10854_v40, %v2299_v35  ;;  %v12940_v33 = vld [vmem:[#allocation7_spill] sm:$0xff] }
 0x3b6   : > { %8726 = vmatmul.mubr.msk.bf16.gmra.mrb[8].mxu1 %vm1073_vm1, %v12938_v6  ;;  %8962 = vmatmul.mubr.msk.bf16.vlgmr.msra.gmra.mrb[112].mxu0 %vm1073_vm1, %v12939_v29  ;;  %v11335_v44 = vadd.f32 %v10860_v13, %v2300_v27  ;;  %v12941_v27 = vld [vmem:[#allocation37_spill] sm:$0xff] }
 0x3b7   : > { %8729 = vmatprep.mubr.msk.bf16.mxu1 %vm9420_vm0, %v12791_v49  ;;  %8965 = vmatprep.mubr.msk.bf16.mxu0 %vm9420_vm0, %v12791_v49 }
 0x3b8   : > { %v11341_v52 = vpop.f32.mrb[8].mxu0 }
 0x3b9   : > { %v2262_v50 = vpop.f32.mrb[160].mxu1  ;;  %v8703_v18 = vpop.f32.mrb[9].mxu0 }
 0x3ba   : > { %v2301_v40 = vadd.f32 %v2262_v50, %v11119_v11  ;;  %v8467_v15 = vpop.f32.mrb[161].mxu1  ;;  %v11344_v58 = vpop.f32.mrb[10].mxu0 }
 0x3bb   : > { %v2265_v0 = vpop.f32.mrb[162].mxu1  ;;  %v8704_v61 = vpop.f32.mrb[11].mxu0 }
 0x3bc   : > { %v2302_v35 = vadd.f32 %v2265_v0, %v11126_v47  ;;  %v8468_v13 = vpop.f32.mrb[163].mxu1  ;;  %v11348_v26 = vadd.f32 %v10878_v32, %v2301_v40  ;;  %v12942_v0 = vld [vmem:[#allocation9_spill] sm:$0xff] }
 0x3be   : > { %8730 = vmatmul.mubr.msk.bf16.gmra.mrb[12].mxu1 %vm1073_vm1, %v12940_v33  ;;  %8966 = vmatmul.mubr.msk.bf16.gmra.mrb[116].mxu0 %vm1073_vm1, %v12941_v27  ;;  %v11355_v11 = vadd.f32 %v10883_v22, %v2302_v35  ;;  %v12943_v35 = vld [vmem:[#allocation38_spill] sm:$0xff] }
 0x3bf   : > { %8733 = vmatprep.mubr.msk.bf16.mxu1 %vm9420_vm0, %v12791_v49  ;;  %8969 = vmatprep.mubr.msk.bf16.mxu0 %vm9420_vm0, %v12791_v49 }
 0x3c0   : > { %v11361_v1 = vpop.f32.mrb[12].mxu0 }
 0x3c1   : > { %v2270_v47 = vpop.f32.mrb[164].mxu1  ;;  %v8707_v6 = vpop.f32.mrb[13].mxu0 }
 0x3c2   : > { %v2303_v32 = vadd.f32 %v2270_v47, %v11139_v23  ;;  %v8471_v53 = vpop.f32.mrb[165].mxu1  ;;  %v11364_v50 = vpop.f32.mrb[14].mxu0 }
 0x3c3   : > { %v2273_v29 = vpop.f32.mrb[166].mxu1  ;;  %v8708_v15 = vpop.f32.mrb[15].mxu0 }
 0x3c4   : > { %v2304_v40 = vadd.f32 %v2273_v29, %v11146_v25  ;;  %v8472_v22 = vpop.f32.mrb[167].mxu1  ;;  %v11368_v18 = vadd.f32 %v10900_v5, %v2303_v32  ;;  %v12944_v29 = vld [vmem:[#allocation10_spill] sm:$0xff] }
 0x3c6   : > { %8734 = vmatmul.mubr.msk.bf16.gmra.mrb[16].mxu1 %vm1073_vm1, %v12942_v0  ;;  %8970 = vmatmul.mubr.msk.bf16.gmra.mrb[120].mxu0 %vm1073_vm1, %v12943_v35  ;;  %v11375_v23 = vadd.f32 %v10905_v60, %v2304_v40  ;;  %v12945_v40 = vld [vmem:[#allocation39_spill] sm:$0xff] }
 0x3c7   : > { %8737 = vmatprep.mubr.msk.bf16.mxu1 %vm9420_vm0, %v12791_v49  ;;  %8973 = vmatprep.mubr.msk.bf16.mxu0 %vm9420_vm0, %v12791_v49 }
 0x3c8   : > { %v11381_v13 = vpop.f32.mrb[16].mxu0 }
 0x3c9   : > { %v2278_v25 = vpop.f32.mrb[168].mxu1  ;;  %v8711_v33 = vpop.f32.mrb[17].mxu0 }
 0x3ca   : > { %v2305_v5 = vadd.f32 %v2278_v25, %v11159_v39  ;;  %v8475_v61 = vpop.f32.mrb[169].mxu1  ;;  %v11384_v47 = vpop.f32.mrb[18].mxu0 }
 0x3cb   : > { %v2281_v27 = vpop.f32.mrb[170].mxu1  ;;  %v8712_v53 = vpop.f32.mrb[19].mxu0 }
 0x3cc   : > { %v2306_v32 = vadd.f32 %v2281_v27, %v11166_v48  ;;  %v8476_v60 = vpop.f32.mrb[171].mxu1  ;;  %v11388_v6 = vadd.f32 %v10922_v54, %v2305_v5  ;;  %v12946_v27 = vld [vmem:[#allocation13_spill] sm:$0xff] }
 0x3ce   : > { %8738 = vmatmul.mubr.msk.bf16.gmra.mrb[20].mxu1 %vm1073_vm1, %v12944_v29  ;;  %8974 = vmatmul.mubr.msk.bf16.gmra.mrb[124].mxu0 %vm1073_vm1, %v12945_v40  ;;  %v11395_v39 = vadd.f32 %v10925_v38, %v2306_v32  ;;  %v12947_v32 = vld [vmem:[#allocation47_spill] sm:$0xff] }
 0x3cf   : > { %8741 = vmatprep.mubr.msk.bf16.mxu1 %vm9420_vm0, %v12791_v49  ;;  %8977 = vmatprep.mubr.msk.bf16.mxu0 %vm9420_vm0, %v12791_v49 }
 0x3d0   : > { %v11401_v22 = vpop.f32.mrb[20].mxu0 }
 0x3d1   : > { %v2716_v48 = vpop.f32.mrb[172].mxu1  ;;  %v8715_v0 = vpop.f32.mrb[21].mxu0 }
 0x3d2   : > { %v2803_v54 = vadd.f32 %v2716_v48, %v11179_v19  ;;  %v8531_v15 = vpop.f32.mrb[173].mxu1  ;;  %v11404_v25 = vpop.f32.mrb[22].mxu0 }
 0x3d3   : > { %v2719_v35 = vpop.f32.mrb[174].mxu1  ;;  %v8716_v61 = vpop.f32.mrb[23].mxu0 }
 0x3d4   : > { %v2804_v5 = vadd.f32 %v2719_v35, %v11186_v63  ;;  %v8532_v38 = vpop.f32.mrb[175].mxu1  ;;  %v11408_v33 = vadd.f32 %v10946_v16, %v2803_v54  ;;  %v12948_v35 = vld [vmem:[#allocation16_spill] sm:$0xff] }
 0x3d6   : > { %8742 = vmatmul.mubr.msk.bf16.gmra.mrb[24].mxu1 %vm1073_vm1, %v12946_v27  ;;  %8978 = vmatmul.mubr.msk.bf16.gmra.mrb[128].mxu0 %vm1073_vm1, %v12947_v32  ;;  %v11415_v19 = vadd.f32 %v10949_v24, %v2804_v5  ;;  %v12949_v5 = vld [vmem:[#allocation49_spill] sm:$0xff] }
 0x3d7   : > { %8745 = vmatprep.mubr.msk.bf16.mxu1 %vm9420_vm0, %v12791_v49  ;;  %8981 = vmatprep.mubr.msk.bf16.mxu0 %vm9420_vm0, %v12791_v49 }
 0x3d8   : > { %v11421_v60 = vpop.f32.mrb[24].mxu0 }
 0x3d9   : > { %v2724_v63 = vpop.f32.mrb[176].mxu1  ;;  %v8771_v29 = vpop.f32.mrb[25].mxu0 }
 0x3da   : > { %v2805_v16 = vadd.f32 %v2724_v63, %v11199_v9  ;;  %v8535_v53 = vpop.f32.mrb[177].mxu1  ;;  %v11424_v48 = vpop.f32.mrb[26].mxu0 }
 0x3db   : > { %v2727_v40 = vpop.f32.mrb[178].mxu1  ;;  %v8772_v15 = vpop.f32.mrb[27].mxu0 }
 0x3dc   : > { %v2806_v54 = vadd.f32 %v2727_v40, %v11206_v51  ;;  %v8536_v24 = vpop.f32.mrb[179].mxu1  ;;  %v11428_v0 = vadd.f32 %v10970_v37, %v2805_v16  ;;  %v12950_v40 = vld [vmem:[#allocation18_spill] sm:$0xff] }
 0x3de   : > { %8746 = vmatmul.mubr.msk.bf16.gmra.mrb[28].mxu1 %vm1073_vm1, %v12948_v35  ;;  %8982 = vmatmul.mubr.msk.bf16.gmra.mrb[132].mxu0 %vm1073_vm1, %v12949_v5  ;;  %v11435_v9 = vadd.f32 %v10973_v34, %v2806_v54  ;;  %v12951_v54 = vld [vmem:[#allocation50_spill] sm:$0xff] }
 0x3df   : > { %8749 = vmatprep.mubr.msk.bf16.mxu1 %vm9420_vm0, %v12791_v49  ;;  %8985 = vmatprep.mubr.msk.bf16.mxu0 %vm9420_vm0, %v12791_v49 }
 0x3e0   : > { %v11441_v38 = vpop.f32.mrb[28].mxu0 }
 0x3e1   : > { %v2732_v51 = vpop.f32.mrb[180].mxu1  ;;  %v8775_v27 = vpop.f32.mrb[29].mxu0 }
 0x3e2   : > { %v2807_v37 = vadd.f32 %v2732_v51, %v11219_v57  ;;  %v8539_v61 = vpop.f32.mrb[181].mxu1  ;;  %v11444_v63 = vpop.f32.mrb[30].mxu0 }
 0x3e3   : > { %v2735_v32 = vpop.f32.mrb[182].mxu1  ;;  %v8776_v53 = vpop.f32.mrb[31].mxu0 }
 0x3e4   : > { %v2808_v16 = vadd.f32 %v2735_v32, %v11226_v59  ;;  %v8540_v34 = vpop.f32.mrb[183].mxu1  ;;  %v11448_v29 = vadd.f32 %v10994_v21, %v2807_v37  ;;  %v12953_v32 = vld [vmem:[#allocation20_spill] sm:$0xff] }
 0x3e5   : > { %v12955_v34 = vld [vmem:[#allocation12_spill] sm:$0xff] }
 0x3e6   : > { %8750 = vmatmul.mubr.msk.bf16.gmra.mrb[32].mxu1 %vm1073_vm1, %v12950_v40  ;;  %8986 = vmatmul.mubr.msk.bf16.gmra.mrb[136].mxu0 %vm1073_vm1, %v12951_v54  ;;  %v11455_v57 = vadd.f32 %v10997_v30, %v2808_v16  ;;  %v12954_v16 = vld [vmem:[#allocation52_spill] sm:$0xff] }
 0x3e7   : > { %8753 = vmatprep.mubr.msk.bf16.mxu1 %vm9420_vm0, %v12791_v49  ;;  %8989 = vmatprep.mubr.msk.bf16.mxu0 %vm9420_vm0, %v12791_v49 }
 0x3e8   : > { %v11461_v24 = vpop.f32.mrb[32].mxu0 }
 0x3e9   : > { %v2740_v59 = vpop.f32.mrb[184].mxu1  ;;  %v8779_v35 = vpop.f32.mrb[33].mxu0 }
 0x3ea   : > { %v2809_v21 = vadd.f32 %v2740_v59, %v11240_v7  ;;  %v8543_v15 = vpop.f32.mrb[185].mxu1  ;;  %v11464_v51 = vpop.f32.mrb[34].mxu0 }
 0x3eb   : > { %v2743_v5 = vpop.f32.mrb[186].mxu1  ;;  %12952 = vst [vmem:[#allocation65_spill] sm:$0xff] %v11464_v51  ;;  %v8780_v61 = vpop.f32.mrb[35].mxu0 }
 0x3ec   : > { %v2810_v37 = vadd.f32 %v2743_v5, %v11247_v4  ;;  %v8544_v30 = vpop.f32.mrb[187].mxu1  ;;  %v11468_v27 = vadd.f32 %v11014_v17, %v2809_v21  ;;  %v12959_v61 = vld [vmem:[#allocation26_spill] sm:$0xff] }
 0x3ee   : > { %8754 = vmatmul.mubr.msk.bf16.gmra.mrb[36].mxu1 %vm1073_vm1, %v12953_v32  ;;  %8990 = vmatmul.mubr.msk.bf16.gmra.mrb[140].mxu0 %vm1073_vm1, %v12954_v16  ;;  %v11475_v7 = vadd.f32 %v12955_v34, %v2810_v37  ;;  %v12958_v37 = vld [vmem:[#allocation36_spill] sm:$0xff]  ;;  %v12960_v32 = vld [vmem:[#allocation54_spill] sm:$0xff]  ;;  %v12961_v16 = vld [vmem:[#allocation15_spill] sm:$0xff] }
 0x3ef   : > { %8757 = vmatprep.mubr.msk.bf16.mxu1 %vm9420_vm0, %v12791_v49  ;;  %8993 = vmatprep.mubr.msk.bf16.mxu0 %vm9420_vm0, %v12791_v49 }
 0x3f0   : > { %v11481_v53 = vpop.f32.mrb[36].mxu0 }
 0x3f1   : > { %v2748_v4 = vpop.f32.mrb[188].mxu1  ;;  %12956 = vst [vmem:[#allocation66_spill] sm:$0xff] %v11481_v53  ;;  %v8783_v54 = vpop.f32.mrb[37].mxu0 }
 0x3f2   : > { %v2811_v17 = vadd.f32 %v2748_v4, %v11260_v41  ;;  %v8547_v40 = vpop.f32.mrb[189].mxu1  ;;  %v11484_v21 = vpop.f32.mrb[38].mxu0 }
 0x3f3   : > { %v2751_v59 = vpop.f32.mrb[190].mxu1  ;;  %12957 = vst [vmem:[#allocation30_spill] sm:$0xff] %v11484_v21  ;;  %v8784_v5 = vpop.f32.mrb[39].mxu0  ;;  %v12970_v21 = vld [vmem:[#allocation58_spill] sm:$0xff] }
 0x3f4   : > { %v2812_v15 = vadd.f32 %v2751_v59, %v11267_v46  ;;  %v8548_v35 = vpop.f32.mrb[191].mxu1  ;;  %v11488_v30 = vadd.f32 %v12958_v37, %v2811_v17  ;;  %v12964_v37 = vld [vmem:[#allocation41_spill] sm:$0xff] }
 0x3f6   : > { %8758 = vmatmul.mubr.msk.bf16.gmra.mrb[40].mxu1 %vm1073_vm1, %v12959_v61  ;;  %8994 = vmatmul.mubr.msk.bf16.gmra.mrb[144].mxu0 %vm1073_vm1, %v12960_v32  ;;  %v11495_v41 = vadd.f32 %v12961_v16, %v2812_v15  ;;  %v12965_v32 = vld [vmem:[#allocation23_spill] sm:$0xff]  ;;  %v12966_v16 = vld [vmem:[#allocation56_spill] sm:$0xff] }
 0x3f7   : > { %8761 = vmatprep.mubr.msk.bf16.mxu1 %vm9420_vm0, %v12791_v49  ;;  %8997 = vmatprep.mubr.msk.bf16.mxu0 %vm9420_vm0, %v12791_v49 }
 0x3f8   : > { %v11501_v34 = vpop.f32.mrb[40].mxu0 }
 0x3f9   : > { %v2756_v46 = vpop.f32.mrb[192].mxu1  ;;  %12962 = vst [vmem:[#allocation67_spill] sm:$0xff] %v11501_v34  ;;  %v8787_v40 = vpop.f32.mrb[41].mxu0  ;;  %v12967_v34 = vld [vmem:[#allocation57_spill] sm:$0xff] }
 0x3fa   : > { %v2813_v4 = vadd.f32 %v2756_v46, %v11280_v14  ;;  %v8551_v17 = vpop.f32.mrb[193].mxu1  ;;  %v11504_v59 = vpop.f32.mrb[42].mxu0 }
 0x3fb   : > { %v2759_v54 = vpop.f32.mrb[194].mxu1  ;;  %12963 = vst [vmem:[#allocation68_spill] sm:$0xff] %v11504_v59  ;;  %v8788_v5 = vpop.f32.mrb[43].mxu0 }
 0x3fc   : > { %v2814_v35 = vadd.f32 %v2759_v54, %v11288_v45  ;;  %v8552_v15 = vpop.f32.mrb[195].mxu1  ;;  %v11508_v61 = vadd.f32 %v12964_v37, %v2813_v4  ;;  %v9398_v4 = vld [vmem:[#allocation2 + $0x10] sm:$0xff] }
 0x3fd   : > { %v4105_v17 = vrot.slane %v9398_v4, 7 }
 0x3fe   : > { %8762 = vmatmul.mubr.msk.bf16.gmra.mrb[44].mxu1 %vm1073_vm1, %v12965_v32  ;;  %8998 = vmatmul.mubr.msk.bf16.gmra.mrb[148].mxu0 %vm1073_vm1, %v12966_v16  ;;  %v11515_v14 = vadd.f32 %v12967_v34, %v2814_v35  ;;  %v9399_v34 = vld [vmem:[#allocation2 + $0x8] sm:$0x80]  ;;  %v9284_v32 = vld [vmem:[%s12724_s3 + $0xe0] sm:$0xff]  }
 0x3ff   : > { %8817 = vmatprep.mubr.msk.bf16.mxu1 %vm9420_vm0, %v12791_v49  ;;  %9001 = vmatprep.mubr.msk.bf16.mxu0 %vm9420_vm0, %v12791_v49  ;;  %v4104_v35 = vrot.slane %v9399_v34, 7 }
 0x400   : > { %v11521_v46 = vpop.f32.mrb[44].mxu0 }
 0x401   : > { %v2764_v45 = vpop.f32.mrb[196].mxu1  ;;  %12968 = vst [vmem:[#allocation31_spill] sm:$0xff] %v11521_v46  ;;  %v8791_v15 = vpop.f32.mrb[45].mxu0 }
 0x402   : > { %v2815_v40 = vadd.f32 %v2764_v45, %v11304_v42  ;;  %v8555_v54 = vpop.f32.mrb[197].mxu1  ;;  %v11524_v37 = vpop.f32.mrb[46].mxu0  ;;  %v4106_v42 = vsel %vm4103_vm5, %v4104_v35, %v4105_v17  ;;  %v12971_v45 = vld [vmem:[#allocation55_spill] sm:$0xff] }
 0x403   : > { %v2767_v5 = vpop.f32.mrb[198].mxu1  ;;  %12969 = vst [vmem:[#allocation69_spill] sm:$0xff] %v11524_v37  ;;  %v8792_v46 = vpop.f32.mrb[47].mxu0  ;;  %v12972_v54 = vld [vmem:[#allocation43_spill] sm:$0xff] }
 0x404   : > { %v2816_v16 = vadd.f32 %v2767_v5, %v11310_v12  ;;  %v8556_v59 = vpop.f32.mrb[199].mxu1  ;;  %v11531_v4 = vadd.f32 %v12970_v21, %v2815_v40  ;;  %v9285_v12 = vld [vmem:[%s12724_s3 + $0xe8] sm:$0xff]   ;;  %v9400_v46 = vld [vmem:[#allocation2 + $0x18] sm:$0xff] }
 0x405   : > { %v4107_v40 = vrot.slane %v9400_v46, 7  ;;  %v12974_v37 = vld [vmem:[#allocation59_spill] sm:$0xff]  ;;  %v12975_v46 = vld [vmem:[#allocation60_spill] sm:$0xff] }
 0x406   : > { %8818 = vmatmul.mubr.msk.bf16.vlgmr.msra.gmra.mrb[48].mxu1 %vm1073_vm1, %v4106_v42  ;;  %9002 = vmatmul.mubr.msk.bf16.gmra.mrb[152].mxu0 %vm1073_vm1, %v12971_v45  ;;  %v11538_v15 = vadd.f32 %v12972_v54, %v2816_v16 }
 0x407   : > { %8910 = vmatpush3.bf16.msra.mxu1 %v9284_v32  ;;  %8821 = vmatprep.mubr.msk.bf16.mxu1 %vm9420_vm0, %v12791_v49  ;;  %v4108_v51 = vsel %vm4103_vm5, %v4105_v17, %v4107_v40 }
 0x408   : > { %8911 = vmatprep.subr.bf16.mxu1 %v12791_v49  ;;  %v11546_v59 = vpop.f32.mrb[48].mxu0 }
 0x409   : > { %v2772_v21 = vpop.f32.mrb[200].mxu1  ;;  %12973 = vst [vmem:[#allocation70_spill] sm:$0xff] %v11546_v59  ;;  %v8795_v35 = vpop.f32.mrb[49].mxu0 }
 0x40a   : > { %v2817_v5 = vadd.f32 %v2772_v21, %v11328_v56  ;;  %v8559_v34 = vpop.f32.mrb[201].mxu1  ;;  %v11549_v32 = vpop.f32.mrb[50].mxu0 }
 0x40b   : > { %v2775_v16 = vpop.f32.mrb[202].mxu1  ;;  %8912 = vmatpush3.bf16.msra.mxu1 %v9285_v12  ;;  %v8796_v54 = vpop.f32.mrb[51].mxu0  ;;  %v9401_v12 = vld [vmem:[#allocation2 + $0x20] sm:$0xff] }
 0x40c   : > { %v2818_v42 = vadd.f32 %v2775_v16, %v11335_v44  ;;  %v8560_v45 = vpop.f32.mrb[203].mxu1  ;;  %v11553_v53 = vadd.f32 %v12974_v37, %v2817_v5  ;;  %v4109_v44 = vrot.slane %v9401_v12, 7 }
 0x40d   : > { %v12978_v45 = vld [vmem:[#allocation22_spill] sm:$0xff] }
 0x40e   : > { %8822 = vmatmul.mubr.msk.bf16.gmra.mrb[52].mxu1 %vm1073_vm1, %v4108_v51  ;;  %v11558_v59 = vadd.f32 %v12975_v46, %v2818_v42  ;;  %v4110_v46 = vsel %vm4103_vm5, %v4107_v40, %v4109_v44 }
 0x40f   : > { %8825 = vmatprep.mubr.msk.bf16.mxu1 %vm9420_vm0, %v12791_v49 }
 0x410   : > { %v11562_v21 = vpop.f32.mrb[52].mxu0 }
 0x411   : > { %v2780_v56 = vpop.f32.mrb[204].mxu1  ;;  %12976 = vst [vmem:[#allocation32_spill] sm:$0xff] %v11562_v21  ;;  %v8799_v37 = vpop.f32.mrb[53].mxu0  ;;  %v12979_v21 = vld [vmem:[#allocation46_spill] sm:$0xff] }
 0x412   : > { %v2819_v34 = vadd.f32 %v2780_v56, %v11348_v26  ;;  %v8563_v35 = vpop.f32.mrb[205].mxu1  ;;  %v11565_v16 = vpop.f32.mrb[54].mxu0 }
 0x413   : > { %v2783_v5 = vpop.f32.mrb[206].mxu1  ;;  %12977 = vst [vmem:[#allocation71_spill] sm:$0xff] %v11565_v16  ;;  %v8800_v42 = vpop.f32.mrb[55].mxu0  ;;  %v9402_v35 = vld [vmem:[#allocation2 + $0x28] sm:$0xff] }
 0x414   : > { %v2820_v51 = vadd.f32 %v2783_v5, %v11355_v11  ;;  %v8564_v17 = vpop.f32.mrb[207].mxu1  ;;  %v11569_v54 = vadd.f32 %v12978_v45, %v2819_v34  ;;  %v4111_v11 = vrot.slane %v9402_v35, 7 }
 0x416   : > { %8826 = vmatmul.mubr.msk.bf16.gmra.mrb[56].mxu1 %vm1073_vm1, %v4110_v46  ;;  %v11574_v12 = vadd.f32 %v12979_v21, %v2820_v51  ;;  %v12980_v51 = vld [vmem:[#allocation61_spill] sm:$0xff]  ;;  %v4112_v16 = vsel %vm4103_vm5, %v4109_v44, %v4111_v11 }
 0x417   : > { %8829 = vmatprep.mubr.msk.bf16.mxu1 %vm9420_vm0, %v12791_v49 }
 0x418   : > { %v11578_v56 = vpop.f32.mrb[56].mxu0 }
 0x419   : > { %v2788_v26 = vpop.f32.mrb[208].mxu1  ;;  %v8803_v34 = vpop.f32.mrb[57].mxu0 }
 0x41a   : > { %v2821_v37 = vadd.f32 %v2788_v26, %v11368_v18  ;;  %v8567_v5 = vpop.f32.mrb[209].mxu1  ;;  %v11581_v42 = vpop.f32.mrb[58].mxu0 }
 0x41b   : > { %v2791_v17 = vpop.f32.mrb[210].mxu1  ;;  %v8804_v21 = vpop.f32.mrb[59].mxu0  ;;  %v9403_v5 = vld [vmem:[#allocation2 + $0x30] sm:$0xff] }
 0x41c   : > { %v2822_v40 = vadd.f32 %v2791_v17, %v11375_v23  ;;  %v8568_v45 = vpop.f32.mrb[211].mxu1  ;;  %v11585_v46 = vadd.f32 %v12980_v51, %v2821_v37  ;;  %v4113_v23 = vrot.slane %v9403_v5, 7 }
 0x41e   : > { %8830 = vmatmul.mubr.msk.bf16.gmra.mrb[60].mxu1 %vm1073_vm1, %v4112_v16  ;;  %v11590_v35 = vadd.f32 %v11155_v36, %v2822_v40  ;;  %v4114_v51 = vsel %vm4103_vm5, %v4111_v11, %v4113_v23 }
 0x41f   : > { %8833 = vmatprep.mubr.msk.bf16.mxu1 %vm9420_vm0, %v12791_v49 }
 0x420   : > { %v11594_v26 = vpop.f32.mrb[60].mxu0 }
 0x421   : > { %v2796_v18 = vpop.f32.mrb[212].mxu1  ;;  %12981 = vst [vmem:[#allocation72_spill] sm:$0xff] %v11594_v26  ;;  %v8807_v37 = vpop.f32.mrb[61].mxu0  ;;  %v12983_v26 = vld [vmem:[#allocation62_spill] sm:$0xff] }
 0x422   : > { %v2823_v34 = vadd.f32 %v2796_v18, %v11388_v6  ;;  %v8571_v17 = vpop.f32.mrb[213].mxu1  ;;  %v11597_v21 = vpop.f32.mrb[62].mxu0 }
 0x423   : > { %v2799_v45 = vpop.f32.mrb[214].mxu1  ;;  %12982 = vst [vmem:[#allocation33_spill] sm:$0xff] %v11597_v21  ;;  %v8808_v36 = vpop.f32.mrb[63].mxu0  ;;  %v9404_v17 = vld [vmem:[#allocation2 + $0x38] sm:$0xff] }
 0x424   : > { %v2824_v44 = vadd.f32 %v2799_v45, %v11395_v39  ;;  %v8572_v16 = vpop.f32.mrb[215].mxu1  ;;  %v11601_v40 = vadd.f32 %v11172_v3, %v2823_v34  ;;  %v4115_v39 = vrot.slane %v9404_v17, 7 }
 0x426   : > { %8834 = vmatmul.mubr.msk.bf16.gmra.mrb[64].mxu1 %vm1073_vm1, %v4114_v51  ;;  %v11606_v5 = vadd.f32 %v12983_v26, %v2824_v44  ;;  %v12985_v44 = vld [vmem:[#allocation25_spill] sm:$0xff]  ;;  %v4116_v21 = vsel %vm4103_vm5, %v4113_v23, %v4115_v39 }
 0x427   : > { %8837 = vmatprep.mubr.msk.bf16.mxu1 %vm9420_vm0, %v12791_v49 }
 0x428   : > { %v11610_v18 = vpop.f32.mrb[64].mxu0 }
 0x429   : > { %v3180_v6 = vpop.f32.mrb[216].mxu1  ;;  %v8811_v3 = vpop.f32.mrb[65].mxu0 }
 0x42a   : > { %v3267_v37 = vadd.f32 %v3180_v6, %v11408_v33  ;;  %v8627_v45 = vpop.f32.mrb[217].mxu1  ;;  %v11613_v16 = vpop.f32.mrb[66].mxu0 }
 0x42b   : > { %v3183_v34 = vpop.f32.mrb[218].mxu1  ;;  %12984 = vst [vmem:[#allocation35_spill] sm:$0xff] %v11613_v16  ;;  %v8812_v26 = vpop.f32.mrb[67].mxu0  ;;  %v9405_v45 = vld [vmem:[#allocation2 + $0x40] sm:$0xff] }
 0x42c   : > { %v3268_v11 = vadd.f32 %v3183_v34, %v11415_v19  ;;  %v8628_v36 = vpop.f32.mrb[219].mxu1  ;;  %v11617_v51 = vadd.f32 %v12985_v44, %v3267_v37  ;;  %v4117_v19 = vrot.slane %v9405_v45, 7 }
 0x42e   : > { %8838 = vmatmul.mubr.msk.bf16.gmra.mrb[68].mxu1 %vm1073_vm1, %v4116_v21  ;;  %v11622_v17 = vadd.f32 %v11195_v8, %v3268_v11  ;;  %v12986_v11 = vld [vmem:[#allocation51_spill] sm:$0xff]  ;;  %v4118_v16 = vsel %vm4103_vm5, %v4115_v39, %v4117_v19 }
 0x42f   : > { %8841 = vmatprep.mubr.msk.bf16.mxu1 %vm9420_vm0, %v12791_v49 }
 0x431   : > { %v3188_v33 = vpop.f32.mrb[220].mxu1  ;;  %v11626_v6 = vpop.f32.mrb[68].mxu0 }
 0x432   : > { %v3269_v3 = vadd.f32 %v3188_v33, %v11428_v0  ;;  %v8631_v34 = vpop.f32.mrb[221].mxu1  ;;  %v8867_v37 = vpop.f32.mrb[69].mxu0 }
 0x433   : > { %v3191_v36 = vpop.f32.mrb[222].mxu1  ;;  %v11629_v26 = vpop.f32.mrb[70].mxu0  ;;  %v9406_v34 = vld [vmem:[#allocation2 + $0x48] sm:$0xff] }
 0x434   : > { %v3270_v23 = vadd.f32 %v3191_v36, %v11435_v9  ;;  %v8632_v21 = vpop.f32.mrb[223].mxu1  ;;  %v8868_v8 = vpop.f32.mrb[71].mxu0  ;;  %v11633_v44 = vadd.f32 %v12986_v11, %v3269_v3  ;;  %v4119_v9 = vrot.slane %v9406_v34, 7 }
 0x436   : > { %8842 = vmatmul.mubr.msk.bf16.gmra.mrb[72].mxu1 %vm1073_vm1, %v4118_v16  ;;  %v11638_v45 = vadd.f32 %v11215_v55, %v3270_v23  ;;  %v4120_v11 = vsel %vm4103_vm5, %v4117_v19, %v4119_v9 }
 0x437   : > { %8845 = vmatprep.mubr.msk.bf16.mxu1 %vm9420_vm0, %v12791_v49 }
 0x439   : > { %v3196_v0 = vpop.f32.mrb[224].mxu1  ;;  %v11642_v33 = vpop.f32.mrb[72].mxu0 }
 0x43a   : > { %12987 = vst [vmem:[#allocation73_spill] sm:$0xff] %v11642_v33  ;;  %v3271_v37 = vadd.f32 %v3196_v0, %v11448_v29  ;;  %v8635_v36 = vpop.f32.mrb[225].mxu1  ;;  %v8871_v3 = vpop.f32.mrb[73].mxu0  ;;  %v12989_v33 = vld [vmem:[#allocation63_spill] sm:$0xff] }
 0x43b   : > { %v3199_v21 = vpop.f32.mrb[226].mxu1  ;;  %v11645_v8 = vpop.f32.mrb[74].mxu0  ;;  %v9407_v36 = vld [vmem:[#allocation2 + $0x50] sm:$0xff] }
 0x43c   : > { %12988 = vst [vmem:[#allocation74_spill] sm:$0xff] %v11645_v8  ;;  %v3272_v39 = vadd.f32 %v3199_v21, %v11455_v57  ;;  %v8636_v16 = vpop.f32.mrb[227].mxu1  ;;  %v8872_v55 = vpop.f32.mrb[75].mxu0  ;;  %v11649_v23 = vadd.f32 %v11232_v20, %v3271_v37  ;;  %v4121_v57 = vrot.slane %v9407_v36, 7 }
 0x43e   : > { %8846 = vmatmul.mubr.msk.bf16.gmra.mrb[76].mxu1 %vm1073_vm1, %v4120_v11  ;;  %v11654_v34 = vadd.f32 %v12989_v33, %v3272_v39  ;;  %v12991_v39 = vld [vmem:[#allocation64_spill] sm:$0xff]  ;;  %v4122_v8 = vsel %vm4103_vm5, %v4119_v9, %v4121_v57 }
 0x43f   : > { %8849 = vmatprep.mubr.msk.bf16.mxu1 %vm9420_vm0, %v12791_v49 }
 0x441   : > { %v3204_v29 = vpop.f32.mrb[228].mxu1  ;;  %v11658_v0 = vpop.f32.mrb[76].mxu0 }
 0x442   : > { %v3273_v3 = vadd.f32 %v3204_v29, %v11468_v27  ;;  %v8639_v21 = vpop.f32.mrb[229].mxu1  ;;  %v8875_v20 = vpop.f32.mrb[77].mxu0 }
 0x443   : > { %v3207_v37 = vpop.f32.mrb[230].mxu1  ;;  %v11661_v16 = vpop.f32.mrb[78].mxu0  ;;  %v9408_v21 = vld [vmem:[#allocation2 + $0x58] sm:$0xff] }
 0x444   : > { %12990 = vst [vmem:[#allocation40_spill] sm:$0xff] %v11661_v16  ;;  %v3274_v19 = vadd.f32 %v3207_v37, %v11475_v7  ;;  %v8640_v55 = vpop.f32.mrb[231].mxu1  ;;  %v8876_v33 = vpop.f32.mrb[79].mxu0  ;;  %v11665_v11 = vadd.f32 %v12991_v39, %v3273_v3  ;;  %v4123_v7 = vrot.slane %v9408_v21, 7 }
 0x446   : > { %8850 = vmatmul.mubr.msk.bf16.gmra.mrb[80].mxu1 %vm1073_vm1, %v4122_v8  ;;  %v11670_v36 = vadd.f32 %v11256_v62, %v3274_v19  ;;  %v12992_v19 = vld [vmem:[#allocation53_spill] sm:$0xff]  ;;  %v4124_v16 = vsel %vm4103_vm5, %v4121_v57, %v4123_v7 }
 0x447   : > { %8853 = vmatprep.mubr.msk.bf16.mxu1 %vm9420_vm0, %v12791_v49 }
 0x449   : > { %v3212_v27 = vpop.f32.mrb[232].mxu1  ;;  %v11674_v29 = vpop.f32.mrb[80].mxu0 }
 0x44a   : > { %v3275_v20 = vadd.f32 %v3212_v27, %v11488_v30  ;;  %v8643_v37 = vpop.f32.mrb[233].mxu1  ;;  %v8879_v3 = vpop.f32.mrb[81].mxu0 }
 0x44b   : > { %v3215_v55 = vpop.f32.mrb[234].mxu1  ;;  %v11677_v33 = vpop.f32.mrb[82].mxu0  ;;  %v9409_v37 = vld [vmem:[#allocation2 + $0x60] sm:$0xf] }
 0x44c   : > { %v3276_v9 = vadd.f32 %v3215_v55, %v11495_v41  ;;  %v8644_v8 = vpop.f32.mrb[235].mxu1  ;;  %v8880_v62 = vpop.f32.mrb[83].mxu0  ;;  %v11681_v39 = vadd.f32 %v12992_v19, %v3275_v20  ;;  %v4125_v41 = vrot.slane %v9409_v37, 7 }
 0x44e   : > { %8854 = vmatmul.mubr.msk.bf16.gmra.mrb[84].mxu1 %vm1073_vm1, %v4124_v16  ;;  %v11686_v21 = vadd.f32 %v11276_v43, %v3276_v9  ;;  %v4126_v19 = vsel %vm4103_vm5, %v4123_v7, %v4125_v41  ;;  %vm7262_vm5 = vmand %vm7249_vm14, %vm2529_vm4 }
 0x44f   : > { %8857 = vmatprep.mubr.msk.bf16.mxu1 %vm9420_vm0, %v12791_v49 }
 0x451   : > { %v3220_v30 = vpop.f32.mrb[236].mxu1  ;;  %v11690_v27 = vpop.f32.mrb[84].mxu0 }
 0x452   : > { %v3277_v3 = vadd.f32 %v3220_v30, %v11508_v61  ;;  %v8647_v55 = vpop.f32.mrb[237].mxu1  ;;  %v8883_v20 = vpop.f32.mrb[85].mxu0 }
 0x453   : > { %v3223_v8 = vpop.f32.mrb[238].mxu1  ;;  %v11693_v62 = vpop.f32.mrb[86].mxu0 }
 0x454   : > { %v3278_v57 = vadd.f32 %v3223_v8, %v11515_v14  ;;  %v8648_v16 = vpop.f32.mrb[239].mxu1  ;;  %v8884_v43 = vpop.f32.mrb[87].mxu0  ;;  %v11697_v9 = vadd.f32 %v11294_v28, %v3277_v3 }
 0x456   : > { %8858 = vmatmul.mubr.msk.bf16.gmra.mrb[88].mxu1 %vm1073_vm1, %v4126_v19  ;;  %v11702_v37 = vadd.f32 %v11297_v31, %v3278_v57  ;;  %v12993_v57 = vld [vmem:[#allocation6_spill] sm:$0xff] }
 0x457   : > { %8913 = vmatprep.mubr.msk.bf16.mxu1 %vm9420_vm0, %v12791_v49 }
 0x459   : > { %v3228_v61 = vpop.f32.mrb[240].mxu1  ;;  %v11706_v30 = vpop.f32.mrb[88].mxu0 }
 0x45a   : > { %v3279_v14 = vadd.f32 %v3228_v61, %v11531_v4  ;;  %v8651_v55 = vpop.f32.mrb[241].mxu1  ;;  %v8887_v20 = vpop.f32.mrb[89].mxu0 }
 0x45b   : > { %v3231_v8 = vpop.f32.mrb[242].mxu1  ;;  %v11709_v28 = vpop.f32.mrb[90].mxu0 }
 0x45c   : > { %v3280_v7 = vadd.f32 %v3231_v8, %v11538_v15  ;;  %v8652_v41 = vpop.f32.mrb[243].mxu1  ;;  %v8888_v3 = vpop.f32.mrb[91].mxu0  ;;  %v11713_v31 = vadd.f32 %v11320_v2, %v3279_v14 }
 0x45e   : > { %8914 = vmatmul.mubr.msk.bf16.vlgmr.msra.gmra.mrb[92].mxu1 %vm1073_vm1, %v12993_v57  ;;  %v11718_v16 = vadd.f32 %v11323_v10, %v3280_v7  ;;  %v12994_v7 = vld [vmem:[#allocation8_spill] sm:$0xff] }
 0x45f   : > { %8917 = vmatprep.mubr.msk.bf16.mxu1 %vm9420_vm0, %v12791_v49 }
 0x461   : > { %v3236_v4 = vpop.f32.mrb[244].mxu1  ;;  %v11722_v43 = vpop.f32.mrb[92].mxu0 }
 0x462   : > { %v3281_v19 = vadd.f32 %v3236_v4, %v11553_v53  ;;  %v8655_v15 = vpop.f32.mrb[245].mxu1  ;;  %v8891_v61 = vpop.f32.mrb[93].mxu0 }
 0x463   : > { %v3239_v55 = vpop.f32.mrb[246].mxu1  ;;  %v11725_v20 = vpop.f32.mrb[94].mxu0 }
 0x464   : > { %v3282_v2 = vadd.f32 %v3239_v55, %v11558_v59  ;;  %v8656_v14 = vpop.f32.mrb[247].mxu1  ;;  %v8892_v8 = vpop.f32.mrb[95].mxu0  ;;  %v11729_v10 = vadd.f32 %v11341_v52, %v3281_v19 }
 0x466   : > { %8918 = vmatmul.mubr.msk.bf16.gmra.mrb[96].mxu1 %vm1073_vm1, %v12994_v7  ;;  %v11734_v41 = vadd.f32 %v11344_v58, %v3282_v2  ;;  %v12995_v2 = vld [vmem:[#allocation11_spill] sm:$0xff] }
 0x467   : > { %8921 = vmatprep.mubr.msk.bf16.mxu1 %vm9420_vm0, %v12791_v49 }
 0x469   : > { %v3244_v53 = vpop.f32.mrb[248].mxu1  ;;  %v11738_v3 = vpop.f32.mrb[96].mxu0 }
 0x46a   : > { %v3283_v57 = vadd.f32 %v3244_v53, %v11569_v54  ;;  %v8659_v59 = vpop.f32.mrb[249].mxu1  ;;  %v8895_v4 = vpop.f32.mrb[97].mxu0 }
 0x46b   : > { %v3247_v15 = vpop.f32.mrb[250].mxu1  ;;  %v11741_v61 = vpop.f32.mrb[98].mxu0 }
 0x46c   : > { %v3284_v52 = vadd.f32 %v3247_v15, %v11574_v12  ;;  %v8660_v19 = vpop.f32.mrb[251].mxu1  ;;  %v8896_v55 = vpop.f32.mrb[99].mxu0  ;;  %v11745_v58 = vadd.f32 %v11361_v1, %v3283_v57 }
 0x46e   : > { %8922 = vmatmul.mubr.msk.bf16.gmra.mrb[100].mxu1 %vm1073_vm1, %v12995_v2  ;;  %v11750_v14 = vadd.f32 %v11364_v50, %v3284_v52  ;;  %v12996_v52 = vld [vmem:[#allocation14_spill] sm:$0xff] }
 0x46f   : > { %8925 = vmatprep.mubr.msk.bf16.mxu1 %vm9420_vm0, %v12791_v49 }
 0x471   : > { %v3252_v54 = vpop.f32.mrb[252].mxu1  ;;  %v11754_v8 = vpop.f32.mrb[100].mxu0 }
 0x472   : > { %v3285_v7 = vadd.f32 %v3252_v54, %v11585_v46  ;;  %v8663_v12 = vpop.f32.mrb[253].mxu1  ;;  %v8899_v53 = vpop.f32.mrb[101].mxu0 }
 0x473   : > { %v3255_v59 = vpop.f32.mrb[254].mxu1  ;;  %v11757_v4 = vpop.f32.mrb[102].mxu0 }
 0x474   : > { %v3286_v1 = vadd.f32 %v3255_v59, %v11590_v35  ;;  %v8664_v57 = vpop.f32.mrb[255].mxu1  ;;  %v8900_v15 = vpop.f32.mrb[103].mxu0  ;;  %v11761_v50 = vadd.f32 %v11381_v13, %v3285_v7 }
 0x476   : > { %8926 = vmatmul.mubr.msk.bf16.gmra.mrb[104].mxu1 %vm1073_vm1, %v12996_v52  ;;  %v11766_v19 = vadd.f32 %v11384_v47, %v3286_v1  ;;  %v12997_v1 = vld [vmem:[#allocation17_spill] sm:$0xff] }
 0x477   : > { %8929 = vmatprep.mubr.msk.bf16.mxu1 %vm9420_vm0, %v12791_v49 }
 0x479   : > { %v3260_v46 = vpop.f32.mrb[0].mxu1  ;;  %v11770_v55 = vpop.f32.mrb[104].mxu0 }
 0x47a   : > { %v3287_v2 = vadd.f32 %v3260_v46, %v11601_v40  ;;  %v8667_v35 = vpop.f32.mrb[1].mxu1  ;;  %v8903_v54 = vpop.f32.mrb[105].mxu0 }
 0x47b   : > { %v3263_v12 = vpop.f32.mrb[2].mxu1  ;;  %v11773_v53 = vpop.f32.mrb[106].mxu0 }
 0x47c   : > { %v3288_v13 = vadd.f32 %v3263_v12, %v11606_v5  ;;  %v8668_v7 = vpop.f32.mrb[3].mxu1  ;;  %v8904_v59 = vpop.f32.mrb[107].mxu0  ;;  %v11777_v47 = vadd.f32 %v11401_v22, %v3287_v2 }
 0x47e   : > { %8930 = vmatmul.mubr.msk.bf16.gmra.mrb[108].mxu1 %vm1073_vm1, %v12997_v1  ;;  %v11782_v57 = vadd.f32 %v11404_v25, %v3288_v13  ;;  %v12998_v13 = vld [vmem:[#allocation19_spill] sm:$0xff] }
 0x47f   : > { %8933 = vmatprep.mubr.msk.bf16.mxu1 %vm9420_vm0, %v12791_v49 }
 0x481   : > { %v3666_v40 = vpop.f32.mrb[4].mxu1  ;;  %v11786_v15 = vpop.f32.mrb[108].mxu0 }
 0x482   : > { %v3753_v52 = vadd.f32 %v3666_v40, %v11617_v51  ;;  %v8723_v5 = vpop.f32.mrb[5].mxu1  ;;  %v8907_v46 = vpop.f32.mrb[109].mxu0 }
 0x483   : > { %v3669_v35 = vpop.f32.mrb[6].mxu1  ;;  %v11789_v54 = vpop.f32.mrb[110].mxu0 }
 0x484   : > { %v3754_v22 = vadd.f32 %v3669_v35, %v11622_v17  ;;  %v8724_v2 = vpop.f32.mrb[7].mxu1  ;;  %v8908_v12 = vpop.f32.mrb[111].mxu0  ;;  %v11793_v25 = vadd.f32 %v11421_v60, %v3753_v52 }
 0x486   : > { %8934 = vmatmul.mubr.msk.bf16.gmra.mrb[112].mxu1 %vm1073_vm1, %v12998_v13  ;;  %v11798_v7 = vadd.f32 %v11424_v48, %v3754_v22  ;;  %v12999_v22 = vld [vmem:[#allocation21_spill] sm:$0xff] }
 0x487   : > { %8937 = vmatprep.mubr.msk.bf16.mxu1 %vm9420_vm0, %v12791_v49 }
 0x489   : > { %v3674_v51 = vpop.f32.mrb[8].mxu1  ;;  %v11802_v59 = vpop.f32.mrb[112].mxu0 }
 0x48a   : > { %v3755_v1 = vadd.f32 %v3674_v51, %v11633_v44  ;;  %v8727_v17 = vpop.f32.mrb[9].mxu1  ;;  %v8963_v40 = vpop.f32.mrb[113].mxu0 }
 0x48b   : > { %v3677_v5 = vpop.f32.mrb[10].mxu1  ;;  %v11805_v46 = vpop.f32.mrb[114].mxu0 }
 0x48c   : > { %v3756_v60 = vadd.f32 %v3677_v5, %v11638_v45  ;;  %v8728_v52 = vpop.f32.mrb[11].mxu1  ;;  %v8964_v35 = vpop.f32.mrb[115].mxu0  ;;  %v11809_v48 = vadd.f32 %v11441_v38, %v3755_v1 }
 0x48d   : > { %v13001_v52 = vld [vmem:[#allocation24_spill] sm:$0xff] }
 0x48e   : > { %8938 = vmatmul.mubr.msk.bf16.gmra.mrb[116].mxu1 %vm1073_vm1, %v12999_v22  ;;  %v11814_v2 = vadd.f32 %v11444_v63, %v3756_v60  ;;  %v9286_v60 = vld [vmem:[%s12726_s5 + $0x20] sm:$0xff]  }
 0x48f   : > { %8941 = vmatprep.mubr.msk.bf16.mxu1 %vm9420_vm0, %v12791_v49  ;;  %9005 = vmatprep.subr.bf16.mxu1 %v9286_v60 }
 0x490   : > { %9006 = vmatpush3.bf16.msra.mxu1 %v9286_v60  ;;  %v13007_v60 = vld [vmem:[#allocation30_spill] sm:$0xff] }
 0x491   : > { %v3682_v44 = vpop.f32.mrb[12].mxu1  ;;  %v11818_v12 = vpop.f32.mrb[116].mxu0 }
 0x492   : > { %v3757_v13 = vadd.f32 %v3682_v44, %v11649_v23  ;;  %v8731_v45 = vpop.f32.mrb[13].mxu1  ;;  %v8967_v51 = vpop.f32.mrb[117].mxu0  ;;  %v13002_v23 = vld [vmem:[#allocation65_spill] sm:$0xff] }
 0x493   : > { %v3685_v17 = vpop.f32.mrb[14].mxu1  ;;  %v11821_v40 = vpop.f32.mrb[118].mxu0 }
 0x494   : > { %13000 = vst [vmem:[#allocation75_spill] sm:$0xff] %v11821_v40  ;;  %v3758_v38 = vadd.f32 %v3685_v17, %v11654_v34  ;;  %v8732_v1 = vpop.f32.mrb[15].mxu1  ;;  %v8968_v5 = vpop.f32.mrb[119].mxu0  ;;  %v11825_v63 = vadd.f32 %v11461_v24, %v3757_v13 }
 0x495   : > { %v13005_v5 = vld [vmem:[#allocation66_spill] sm:$0xff] }
 0x496   : > { %8942 = vmatmul.mubr.msk.bf16.gmra.mrb[120].mxu1 %vm1073_vm1, %v13001_v52  ;;  %v11833_v35 = vadd.f32 %v13002_v23, %v3758_v38  ;;  %v13006_v23 = vld [vmem:[#allocation27_spill] sm:$0xff] }
 0x497   : > { %8945 = vmatprep.mubr.msk.bf16.mxu1 %vm9420_vm0, %v12791_v49 }
 0x499   : > { %v3690_v34 = vpop.f32.mrb[16].mxu1  ;;  %v11837_v22 = vpop.f32.mrb[120].mxu0 }
 0x49a   : > { %13003 = vst [vmem:[#allocation42_spill] sm:$0xff] %v11837_v22  ;;  %v3759_v24 = vadd.f32 %v3690_v34, %v11665_v11  ;;  %v8735_v44 = vpop.f32.mrb[17].mxu1  ;;  %v8971_v13 = vpop.f32.mrb[121].mxu0 }
 0x49b   : > { %v3693_v45 = vpop.f32.mrb[18].mxu1  ;;  %v11840_v51 = vpop.f32.mrb[122].mxu0 }
 0x49c   : > { %13004 = vst [vmem:[#allocation76_spill] sm:$0xff] %v11840_v51  ;;  %v3760_v17 = vadd.f32 %v3693_v45, %v11670_v36  ;;  %v8736_v1 = vpop.f32.mrb[19].mxu1  ;;  %v8972_v38 = vpop.f32.mrb[123].mxu0  ;;  %v11844_v52 = vadd.f32 %v13005_v5, %v3759_v24  ;;  %v13011_v51 = vld [vmem:[#allocation68_spill] sm:$0xff] }
 0x49e   : > { %8946 = vmatmul.mubr.msk.bf16.gmra.mrb[124].mxu1 %vm1073_vm1, %v13006_v23  ;;  %v11849_v40 = vadd.f32 %v13007_v60, %v3760_v17  ;;  %v13009_v23 = vld [vmem:[#allocation67_spill] sm:$0xff]  ;;  %v13010_v60 = vld [vmem:[#allocation28_spill] sm:$0xff] }
 0x49f   : > { %8949 = vmatprep.mubr.msk.bf16.mxu1 %vm9420_vm0, %v12791_v49 }
 0x4a1   : > { %v3698_v11 = vpop.f32.mrb[20].mxu1  ;;  %v11853_v34 = vpop.f32.mrb[124].mxu0 }
 0x4a2   : > { %v3761_v44 = vadd.f32 %v3698_v11, %v11681_v39  ;;  %v8739_v36 = vpop.f32.mrb[21].mxu1  ;;  %v8975_v13 = vpop.f32.mrb[125].mxu0 }
 0x4a3   : > { %v3701_v45 = vpop.f32.mrb[22].mxu1  ;;  %v11856_v1 = vpop.f32.mrb[126].mxu0 }
 0x4a4   : > { %13008 = vst [vmem:[#allocation44_spill] sm:$0xff] %v11856_v1  ;;  %v3762_v24 = vadd.f32 %v3701_v45, %v11686_v21  ;;  %v8740_v38 = vpop.f32.mrb[23].mxu1  ;;  %v8976_v5 = vpop.f32.mrb[127].mxu0  ;;  %v11860_v17 = vadd.f32 %v13009_v23, %v3761_v44 }
 0x4a6   : > { %8950 = vmatmul.mubr.msk.bf16.gmra.mrb[128].mxu1 %vm1073_vm1, %v13010_v60  ;;  %v11865_v22 = vadd.f32 %v13011_v51, %v3762_v24  ;;  %v13014_v60 = vld [vmem:[#allocation31_spill] sm:$0xff]  ;;  %v13015_v24 = vld [vmem:[#allocation29_spill] sm:$0xff] }
 0x4a7   : > { %8953 = vmatprep.mubr.msk.bf16.mxu1 %vm9420_vm0, %v12791_v49  ;;  %v9287_v49 = vld [vmem:[%s12726_s5 + $0x28] sm:$0xff]   ;;  %vm5203_vm0 = vcmask 519168  }
 0x4a8   : > { %9007 = vmatprep.subr.bf16.mxu1 %v9287_v49 }
 0x4a9   : > { %v3706_v39 = vpop.f32.mrb[24].mxu1  ;;  %v11869_v11 = vpop.f32.mrb[128].mxu0  ;;  %9008 = vmatpush3.bf16.msra.mxu1 %v9287_v49 }
 0x4aa   : > { %13012 = vst [vmem:[#allocation77_spill] sm:$0xff] %v11869_v11  ;;  %v3763_v36 = vadd.f32 %v3706_v39, %v11697_v9  ;;  %v8743_v21 = vpop.f32.mrb[25].mxu1  ;;  %v8979_v13 = vpop.f32.mrb[129].mxu0  ;;  %v13016_v9 = vld [vmem:[#allocation69_spill] sm:$0xff] }
 0x4ab   : > { %v3709_v45 = vpop.f32.mrb[26].mxu1  ;;  %v11872_v38 = vpop.f32.mrb[130].mxu0 }
 0x4ac   : > { %13013 = vst [vmem:[#allocation78_spill] sm:$0xff] %v11872_v38  ;;  %v3764_v44 = vadd.f32 %v3709_v45, %v11702_v37  ;;  %v8744_v5 = vpop.f32.mrb[27].mxu1  ;;  %v8980_v23 = vpop.f32.mrb[131].mxu0  ;;  %v11876_v51 = vadd.f32 %v13014_v60, %v3763_v36 }
 0x4ae   : > { %8954 = vmatmul.mubr.msk.bf16.gmra.mrb[132].mxu1 %vm1073_vm1, %v13015_v24  ;;  %v11884_v39 = vadd.f32 %v13016_v9, %v3764_v44  ;;  %v13019_v24 = vld [vmem:[#allocation70_spill] sm:$0xff]  ;;  %vm5389_vm1 = vcmask 523264  }
 0x4b1   : > { %v3714_v21 = vpop.f32.mrb[28].mxu1  ;;  %v11886_v13 = vpop.f32.mrb[132].mxu0 }
 0x4b2   : > { %13017 = vst [vmem:[#allocation48_spill] sm:$0xff] %v11886_v13  ;;  %v3765_v37 = vadd.f32 %v3714_v21, %v11713_v31  ;;  %v8747_v45 = vpop.f32.mrb[29].mxu1  ;;  %v8983_v36 = vpop.f32.mrb[133].mxu0 }
 0x4b3   : > { %v3717_v5 = vpop.f32.mrb[30].mxu1  ;;  %v11889_v23 = vpop.f32.mrb[134].mxu0 }
 0x4b4   : > { %13018 = vst [vmem:[#allocation45_spill] sm:$0xff] %v11889_v23  ;;  %v3766_v60 = vadd.f32 %v3717_v5, %v11718_v16  ;;  %v8748_v38 = vpop.f32.mrb[31].mxu1  ;;  %v8984_v11 = vpop.f32.mrb[135].mxu0  ;;  %v11893_v1 = vadd.f32 %v13019_v24, %v3765_v37  ;;  %v13021_v5 = vld [vmem:[#allocation32_spill] sm:$0xff]  ;;  %v13022_v24 = vld [vmem:[#allocation71_spill] sm:$0xff] }
 0x4b6   : > { %v11896_v44 = vadd.f32 %v11549_v32, %v3766_v60 }
 0x4b9   : > { %v3722_v49 = vpop.f32.mrb[32].mxu1  ;;  %v11898_v9 = vpop.f32.mrb[136].mxu0 }
 0x4ba   : > { %13020 = vst [vmem:[#allocation4_spill] sm:$0xff] %v11898_v9  ;;  %v3767_v31 = vadd.f32 %v3722_v49, %v11729_v10  ;;  %v8751_v21 = vpop.f32.mrb[33].mxu1  ;;  %v8987_v45 = vpop.f32.mrb[137].mxu0 }
 0x4bb   : > { %v3725_v36 = vpop.f32.mrb[34].mxu1  ;;  %v11901_v13 = vpop.f32.mrb[138].mxu0 }
 0x4bc   : > { %v3768_v16 = vadd.f32 %v3725_v36, %v11734_v41  ;;  %v8752_v38 = vpop.f32.mrb[35].mxu1  ;;  %v8988_v11 = vpop.f32.mrb[139].mxu0  ;;  %v11905_v37 = vadd.f32 %v13021_v5, %v3767_v31 }
 0x4be   : > { %v11908_v32 = vadd.f32 %v13022_v24, %v3768_v16 }
 0x4c1   : > { %v3730_v60 = vpop.f32.mrb[36].mxu1  ;;  %v11910_v23 = vpop.f32.mrb[140].mxu0 }
 0x4c2   : > { %v3769_v10 = vadd.f32 %v3730_v60, %v11745_v58  ;;  %v8755_v49 = vpop.f32.mrb[37].mxu1  ;;  %v8991_v21 = vpop.f32.mrb[141].mxu0 }
 0x4c3   : > { %v3733_v45 = vpop.f32.mrb[38].mxu1  ;;  %v11913_v9 = vpop.f32.mrb[142].mxu0 }
 0x4c4   : > { %v3770_v41 = vadd.f32 %v3733_v45, %v11750_v14  ;;  %v8756_v36 = vpop.f32.mrb[39].mxu1  ;;  %v8992_v38 = vpop.f32.mrb[143].mxu0  ;;  %v11917_v31 = vadd.f32 %v11578_v56, %v3769_v10  ;;  %v13026_v10 = vld [vmem:[#allocation33_spill] sm:$0xff] }
 0x4c5   : > { %v13025_v38 = vld [vmem:[#allocation72_spill] sm:$0xff] }
 0x4c6   : > { %v11920_v16 = vadd.f32 %v11581_v42, %v3770_v41  ;;  %v9288_v42 = vld [vmem:[%s12726_s5 + $0x30] sm:$0xff]  }
 0x4c7   : > { %9009 = vmatprep.subr.bf16.mxu1 %v9288_v42 }
 0x4c8   : > { %9010 = vmatpush3.bf16.msra.mxu1 %v9288_v42 }
 0x4c9   : > { %v3738_v11 = vpop.f32.mrb[40].mxu1  ;;  %v11922_v5 = vpop.f32.mrb[144].mxu0 }
 0x4ca   : > { %13023 = vst [vmem:[#allocation5_spill] sm:$0xff] %v11922_v5  ;;  %v3771_v58 = vadd.f32 %v3738_v11, %v11761_v50  ;;  %v8759_v24 = vpop.f32.mrb[41].mxu1  ;;  %v8995_v60 = vpop.f32.mrb[145].mxu0 }
 0x4cb   : > { %v3741_v49 = vpop.f32.mrb[42].mxu1  ;;  %v11925_v21 = vpop.f32.mrb[146].mxu0 }
 0x4cc   : > { %13024 = vst [vmem:[#allocation34_spill] sm:$0xff] %v11925_v21  ;;  %v3772_v14 = vadd.f32 %v3741_v49, %v11766_v19  ;;  %v8760_v45 = vpop.f32.mrb[43].mxu1  ;;  %v8996_v36 = vpop.f32.mrb[147].mxu0  ;;  %v11929_v56 = vadd.f32 %v13025_v38, %v3771_v58 }
 0x4ce   : > { %v11935_v41 = vadd.f32 %v13026_v10, %v3772_v14  ;;  %v13028_v14 = vld [vmem:[#allocation35_spill] sm:$0xff] }
 0x4d1   : > { %v3746_v50 = vpop.f32.mrb[44].mxu1  ;;  %v11937_v11 = vpop.f32.mrb[148].mxu0 }
 0x4d2   : > { %13027 = vst [vmem:[#allocation7_spill] sm:$0xff] %v11937_v11  ;;  %v3773_v24 = vadd.f32 %v3746_v50, %v11777_v47  ;;  %v8763_v19 = vpop.f32.mrb[45].mxu1  ;;  %v8999_v60 = vpop.f32.mrb[149].mxu0 }
 0x4d3   : > { %v3749_v49 = vpop.f32.mrb[46].mxu1  ;;  %v11940_v45 = vpop.f32.mrb[150].mxu0 }
 0x4d4   : > { %v3774_v58 = vadd.f32 %v3749_v49, %v11782_v57  ;;  %v8764_v36 = vpop.f32.mrb[47].mxu1  ;;  %v9000_v38 = vpop.f32.mrb[151].mxu0  ;;  %v11944_v21 = vadd.f32 %v11610_v18, %v3773_v24 }
 0x4d6   : > { %v11947_v10 = vadd.f32 %v13028_v14, %v3774_v58  ;;  %v9289_v58 = vld [vmem:[%s12726_s5 + $0x60] sm:$0xff]  }
 0x4d7   : > { %9077 = vmatprep.subr.bf16.mxu0 %v9289_v58 }
 0x4d8   : > { %9078 = vmatpush3.bf16.msra.mxu0 %v9289_v58 }
 0x4d9   : > { %v4206_v42 = vpop.f32.mrb[48].mxu1  ;;  %v11949_v5 = vpop.f32.mrb[152].mxu0 }
 0x4da   : > { %v4293_v47 = vadd.f32 %v4206_v42, %v11793_v25  ;;  %v8819_v50 = vpop.f32.mrb[49].mxu1  ;;  %v9003_v19 = vpop.f32.mrb[153].mxu0  ;;  %v9293_v25 = vld [vmem:[%s12726_s5 + $0x38] sm:$0xff]  }
 0x4db   : > { %v4209_v60 = vpop.f32.mrb[50].mxu1  ;;  %v11952_v11 = vpop.f32.mrb[154].mxu0  ;;  %9011 = vmatprep.subr.bf16.mxu1 %v9293_v25  ;;  %v13029_v50 = vld [vmem:[#allocation73_spill] sm:$0xff] }
 0x4dc   : > { %v4294_v57 = vadd.f32 %v4209_v60, %v11798_v7  ;;  %v8820_v49 = vpop.f32.mrb[51].mxu1  ;;  %v9004_v36 = vpop.f32.mrb[155].mxu0  ;;  %v11956_v18 = vadd.f32 %v11626_v6, %v4293_v47  ;;  %v9294_v7 = vld [vmem:[%s12726_s5 + $0x68] sm:$0xff]   ;;  %9012 = vmatpush3.bf16.msra.mxu1 %v9293_v25  ;;  %v13030_v60 = vld [vmem:[#allocation74_spill] sm:$0xff] }
 0x4dd   : > { %9079 = vmatprep.subr.bf16.mxu0 %v9294_v7  ;;  %v9295_v49 = vld [vmem:[%s12726_s5 + $0x70] sm:$0xff]  }
 0x4de   : > { %v11959_v24 = vadd.f32 %v11629_v26, %v4294_v57  ;;  %9080 = vmatpush3.bf16.msra.mxu0 %v9294_v7 }
 0x4df   : > { %9081 = vmatprep.subr.bf16.mxu0 %v9295_v49 }
 0x4e1   : > { %v4214_v38 = vpop.f32.mrb[52].mxu1 }
 0x4e2   : > { %v4295_v6 = vadd.f32 %v4214_v38, %v11809_v48  ;;  %v8823_v26 = vpop.f32.mrb[53].mxu1  ;;  %v9299_v48 = vld [vmem:[%s12726_s5 + $0x78] sm:$0xff]   ;;  %9082 = vmatpush3.bf16.msra.mxu0 %v9295_v49 }
 0x4e3   : > { %v4217_v14 = vpop.f32.mrb[54].mxu1  ;;  %9083 = vmatprep.subr.bf16.mxu0 %v9299_v48  ;;  %v13031_v26 = vld [vmem:[#allocation40_spill] sm:$0xff] }
 0x4e4   : > { %v4296_v42 = vadd.f32 %v4217_v14, %v11814_v2  ;;  %v8824_v47 = vpop.f32.mrb[55].mxu1  ;;  %v11973_v19 = vadd.f32 %v13029_v50, %v4295_v6 }
 0x4e6   : > { %v11976_v57 = vadd.f32 %v13030_v60, %v4296_v42  ;;  %9084 = vmatpush3.bf16.msra.mxu0 %v9299_v48 }
 0x4e9   : > { %v4222_v36 = vpop.f32.mrb[56].mxu1 }
 0x4ea   : > { %v4297_v2 = vadd.f32 %v4222_v36, %v11825_v63  ;;  %v8827_v58 = vpop.f32.mrb[57].mxu1 }
 0x4eb   : > { %v4225_v25 = vpop.f32.mrb[58].mxu1 }
 0x4ec   : > { %v4298_v7 = vadd.f32 %v4225_v25, %v11833_v35  ;;  %v8828_v38 = vpop.f32.mrb[59].mxu1  ;;  %v11987_v6 = vadd.f32 %v11658_v0, %v4297_v2  ;;  %v12003_v0 = vld [vmem:[%s12726_s5] sm:$0xff]  }
 0x4ed   : > { %9029 = vmatprep.subr.bf16.mxu1 %v12003_v0 }
 0x4ee   : > { %v11990_v14 = vadd.f32 %v13031_v26, %v4298_v7 }
 0x4f1   : > { %v4230_v42 = vpop.f32.mrb[60].mxu1 }
 0x4f2   : > { %v4299_v47 = vadd.f32 %v4230_v42, %v11844_v52  ;;  %v8831_v50 = vpop.f32.mrb[61].mxu1 }
 0x4f3   : > { %v4233_v60 = vpop.f32.mrb[62].mxu1 }
 0x4f4   : > { %v4300_v63 = vadd.f32 %v4233_v60, %v11849_v40  ;;  %v8832_v49 = vpop.f32.mrb[63].mxu1  ;;  %v11995_v36 = vadd.f32 %v11674_v29, %v4299_v47 }
 0x4f6   : > { %v11998_v35 = vadd.f32 %v11677_v33, %v4300_v63 }
 0x4f9   : > { %v4238_v48 = vpop.f32.mrb[64].mxu1 }
 0x4fa   : > { %v4301_v52 = vadd.f32 %v4238_v48, %v11860_v17  ;;  %v8835_v2 = vpop.f32.mrb[65].mxu1 }
 0x4fb   : > { %v4241_v58 = vpop.f32.mrb[66].mxu1 }
 0x4fc   : > { %v4302_v40 = vadd.f32 %v4241_v58, %v11865_v22  ;;  %v8836_v25 = vpop.f32.mrb[67].mxu1  ;;  %v12009_v29 = vadd.f32 %v11690_v27, %v4301_v52 }
 0x4fe   : > { %v12012_v33 = vadd.f32 %v11693_v62, %v4302_v40 }
 0x501   : > { %v4246_v7 = vpop.f32.mrb[68].mxu1 }
 0x502   : > { %v4303_v38 = vadd.f32 %v4246_v7, %v11876_v51  ;;  %v8839_v26 = vpop.f32.mrb[69].mxu1 }
 0x503   : > { %v4249_v42 = vpop.f32.mrb[70].mxu1 }
 0x504   : > { %v4304_v47 = vadd.f32 %v4249_v42, %v11884_v39  ;;  %v8840_v50 = vpop.f32.mrb[71].mxu1  ;;  %v12017_v17 = vadd.f32 %v11706_v30, %v4303_v38  ;;  %v12033_v30 = vld [vmem:[%s12726_s5 + $0xa0] sm:$0xff]  }
 0x505   : > { %9125 = vmatprep.subr.bf16.mxu0 %v12033_v30 }
 0x506   : > { %v12020_v22 = vadd.f32 %v11709_v28, %v4304_v47 }
 0x509   : > { %v4254_v60 = vpop.f32.mrb[72].mxu1 }
 0x50a   : > { %v4305_v27 = vadd.f32 %v4254_v60, %v11893_v1  ;;  %v8843_v63 = vpop.f32.mrb[73].mxu1 }
 0x50b   : > { %v4257_v62 = vpop.f32.mrb[74].mxu1 }
 0x50c   : > { %v4306_v49 = vadd.f32 %v4257_v62, %v11896_v44  ;;  %v8844_v48 = vpop.f32.mrb[75].mxu1  ;;  %v12025_v51 = vadd.f32 %v11722_v43, %v4305_v27 }
 0x50e   : > { %v12028_v39 = vadd.f32 %v11725_v20, %v4306_v49 }
 0x511   : > { %v4262_v28 = vpop.f32.mrb[76].mxu1 }
 0x512   : > { %v4307_v1 = vadd.f32 %v4262_v28, %v11905_v37  ;;  %v8847_v52 = vpop.f32.mrb[77].mxu1 }
 0x513   : > { %v4265_v2 = vpop.f32.mrb[78].mxu1 }
 0x514   : > { %v4308_v44 = vadd.f32 %v4265_v2, %v11908_v32  ;;  %v8848_v58 = vpop.f32.mrb[79].mxu1  ;;  %v12039_v43 = vadd.f32 %v11738_v3, %v4307_v1 }
 0x516   : > { %v12042_v20 = vadd.f32 %v11741_v61, %v4308_v44 }
 0x519   : > { %v4270_v40 = vpop.f32.mrb[80].mxu1 }
 0x51a   : > { %v4309_v25 = vadd.f32 %v4270_v40, %v11917_v31  ;;  %v8851_v7 = vpop.f32.mrb[81].mxu1 }
 0x51b   : > { %v4273_v38 = vpop.f32.mrb[82].mxu1 }
 0x51c   : > { %v4310_v26 = vadd.f32 %v4273_v38, %v11920_v16  ;;  %v8852_v42 = vpop.f32.mrb[83].mxu1  ;;  %v12047_v37 = vadd.f32 %v11754_v8, %v4309_v25 }
 0x51e   : > { %v12050_v32 = vadd.f32 %v11757_v4, %v4310_v26 }
 0x521   : > { %v4278_v47 = vpop.f32.mrb[84].mxu1 }
 0x522   : > { %v4311_v3 = vadd.f32 %v4278_v47, %v11929_v56  ;;  %v8855_v50 = vpop.f32.mrb[85].mxu1 }
 0x523   : > { %v4281_v61 = vpop.f32.mrb[86].mxu1 }
 0x524   : > { %v4312_v60 = vadd.f32 %v4281_v61, %v11935_v41  ;;  %v8856_v27 = vpop.f32.mrb[87].mxu1  ;;  %v12055_v31 = vadd.f32 %v11770_v55, %v4311_v3  ;;  %v13032_v3 = vld [vmem:[#allocation75_spill] sm:$0xff] }
 0x526   : > { %v12058_v16 = vadd.f32 %v11773_v53, %v4312_v60  ;;  %v12072_v53 = vld [vmem:[%s12725_s4] ss:$0 sm:$0xff] }
 0x529   : > { %v4286_v63 = vpop.f32.mrb[88].mxu1 }
 0x52a   : > { %v4313_v8 = vadd.f32 %v4286_v63, %v11944_v21  ;;  %v8859_v62 = vpop.f32.mrb[89].mxu1 }
 0x52b   : > { %v4289_v4 = vpop.f32.mrb[90].mxu1 }
 0x52c   : > { %v4314_v49 = vadd.f32 %v4289_v4, %v11947_v10  ;;  %v8860_v48 = vpop.f32.mrb[91].mxu1  ;;  %v12063_v56 = vadd.f32 %v11786_v15, %v4313_v8 }
 0x52e   : > { %v12066_v41 = vadd.f32 %v11789_v54, %v4314_v49 }
 0x531   : > { %v4709_v28 = vpop.f32.mrb[92].mxu1 }
 0x532   : > { %v4796_v55 = vadd.f32 %v4709_v28, %v11956_v18  ;;  %v8915_v1 = vpop.f32.mrb[93].mxu1 }
 0x533   : > { %v4712_v21 = vpop.f32.mrb[94].mxu1 }
 0x534   : > { %v5042_v52 = vadd.f32 %v11802_v59, %v4796_v55  ;;  %v4797_v10 = vadd.f32 %v4712_v21, %v11959_v24  ;;  %v8916_v2 = vpop.f32.mrb[95].mxu1  ;;  %v13034_v21 = vld [vmem:[#allocation76_spill] sm:$0xff] }
 0x536   : > { %v5071_v15 = vadd.f32 %v12072_v53, %v5042_v52  ;;  %v5043_v54 = vadd.f32 %v11805_v46, %v4797_v10 }
 0x538   : > { %v5093_v44 = vmax.f32 %v5071_v15, 0.0  ;;  %v5072_v58 = vadd.f32 %v12072_v53, %v5043_v54 }
 0x539   : > { %v4717_v18 = vpop.f32.mrb[96].mxu1 }
 0x53a   : > { %v7890_v40 = vpack.c.bf16 %v5093_v44, %v5093_v44  ;;  %v5094_v25 = vmax.f32 %v5072_v58, 0.0  ;;  %v4798_v7 = vadd.f32 %v4717_v18, %v11973_v19  ;;  %v8919_v38 = vpop.f32.mrb[97].mxu1 }
 0x53b   : > { %v4720_v26 = vpop.f32.mrb[98].mxu1 }
 0x53c   : > { %5204 = vst.msk [vmem:[#allocation3] sm:$0xf] %vm5203_vm0, %v7890_v40  ;;  %v7891_v59 = vpack.c.bf16 %v5094_v25, %v5094_v25  ;;  %v5044_v24 = vadd.f32 %v11818_v12, %v4798_v7  ;;  %v4799_v42 = vadd.f32 %v4720_v26, %v11976_v57  ;;  %v8920_v47 = vpop.f32.mrb[99].mxu1  ;;  %v13033_v57 = vld [vmem:[#allocation42_spill] sm:$0xff] }
 0x53e   : > { %5205 = vst.msk [vmem:[#allocation3 + $0x4] sm:$0xf] %vm5203_vm0, %v7891_v59  ;;  %v5073_v46 = vadd.f32 %v12072_v53, %v5044_v24  ;;  %v5045_v50 = vadd.f32 %v13032_v3, %v4799_v42  ;;  %v13035_v42 = vld [vmem:[#allocation44_spill] sm:$0xff] }
 0x540   : > { %v5095_v61 = vmax.f32 %v5073_v46, 0.0  ;;  %v5074_v60 = vadd.f32 %v12072_v53, %v5045_v50 }
 0x541   : > { %v4725_v19 = vpop.f32.mrb[100].mxu1 }
 0x542   : > { %v7892_v27 = vpack.c.bf16 %v5095_v61, %v5095_v61  ;;  %v5096_v63 = vmax.f32 %v5074_v60, 0.0  ;;  %v4800_v8 = vadd.f32 %v4725_v19, %v11987_v6  ;;  %v8923_v62 = vpop.f32.mrb[101].mxu1 }
 0x543   : > { %v4728_v4 = vpop.f32.mrb[102].mxu1 }
 0x544   : > { %5206 = vst.msk [vmem:[#allocation3 + $0x8] sm:$0xf] %vm5203_vm0, %v7892_v27  ;;  %v7893_v12 = vpack.c.bf16 %v5096_v63, %v5096_v63  ;;  %v5046_v49 = vadd.f32 %v13033_v57, %v4800_v8  ;;  %v4801_v48 = vadd.f32 %v4728_v4, %v11990_v14  ;;  %v8924_v28 = vpop.f32.mrb[103].mxu1 }
 0x545   : > { %v12091_v55 = vld [vmem:[#allocation3] sm:$0xff]  }
 0x546   : > { %5207 = vst.msk [vmem:[#allocation3 + $0xc] sm:$0xf] %vm5203_vm0, %v7893_v12  ;;  %v5075_v1 = vadd.f32 %v12072_v53, %v5046_v49  ;;  %v5047_v52 = vadd.f32 %v13034_v21, %v4801_v48  ;;  %v5305_v15 = vshll.u32 %v12091_v55, 16  ;;  %v13036_v48 = vld [vmem:[#allocation77_spill] sm:$0xff] }
 0x548   : > { %v5097_v10 = vmax.f32 %v5075_v1, 0.0  ;;  %v5076_v6 = vadd.f32 %v12072_v53, %v5047_v52  ;;  %v5307_v59 = vrot.slane %v5305_v15, 1 }
 0x549   : > { %v4733_v2 = vpop.f32.mrb[104].mxu1 }
 0x54a   : > { %v7894_v54 = vpack.c.bf16 %v5097_v10, %v5097_v10  ;;  %v5098_v44 = vmax.f32 %v5076_v6, 0.0  ;;  %v4802_v58 = vadd.f32 %v4733_v2, %v11995_v36  ;;  %v8927_v14 = vpop.f32.mrb[105].mxu1  ;;  %v5303_v36 = vshrl.u32 %v12091_v55, 16  ;;  %v13037_v10 = vld [vmem:[#allocation78_spill] sm:$0xff] }
 0x54b   : > { %v4736_v18 = vpop.f32.mrb[106].mxu1  ;;  %v5870_v62 = vld [vmem:[#allocation3 + $0x8] sm:$0xc] }
 0x54c   : > { %5208 = vst.msk [vmem:[#allocation3 + $0x10] sm:$0xf] %vm5203_vm0, %v7894_v54  ;;  %v7895_v40 = vpack.c.bf16 %v5098_v44, %v5098_v44  ;;  %v5048_v25 = vadd.f32 %v11853_v34, %v4802_v58  ;;  %v4803_v7 = vadd.f32 %v4736_v18, %v11998_v35  ;;  %v8928_v38 = vpop.f32.mrb[107].mxu1  ;;  %v5308_v61 = vor.u32 %v5307_v59, %v5303_v36 }
 0x54d   : > { %v12102_v26 = vld [vmem:[#allocation3 + $0x8] sm:$0xff]  }
 0x54e   : > { %5209 = vst.msk [vmem:[#allocation3 + $0x14] sm:$0xf] %vm5203_vm0, %v7895_v40  ;;  %v5077_v24 = vadd.f32 %v12072_v53, %v5048_v25  ;;  %v5049_v47 = vadd.f32 %v13035_v42, %v4803_v7  ;;  %v5310_v46 = vshll.u32 %v12102_v26, 16  ;;  %v12110_v34 = vld [vmem:[#allocation3 + $0xc] sm:$0xf]  ;;  %v5314_v2 = vshrl.u32 %v12102_v26, 16 }
 0x54f   : > { %v7778_v57 = vcombine.low %v5870_v62, %v12110_v34 }
 0x550   : > { %v5099_v3 = vmax.f32 %v5077_v24, 0.0  ;;  %v5078_v50 = vadd.f32 %v12072_v53, %v5049_v47  ;;  %v5312_v60 = vrot.slane %v5310_v46, 1 }
 0x551   : > { %v4741_v35 = vpop.f32.mrb[108].mxu1  ;;  %v5938_v44 = vrot.slane %v7778_v57, 2  ;;  %v6113_v18 = vshrl.u32 %v7778_v57, 16  ;;  %v6116_v38 = vshll.u32 %v7778_v57, 16 }
 0x552   : > { %v7896_v19 = vpack.c.bf16 %v5099_v3, %v5099_v3  ;;  %v5100_v27 = vmax.f32 %v5078_v50, 0.0  ;;  %v4804_v63 = vadd.f32 %v4741_v35, %v12009_v29  ;;  %v8931_v8 = vpop.f32.mrb[109].mxu1  ;;  %v5313_v12 = vsel %vm1502_vm12, %v5308_v61, %v5312_v60  ;;  %v9307_v3 = vld [vmem:[%s12726_s5 + $0x8] sm:$0xff]  }
 0x553   : > { %v4744_v4 = vpop.f32.mrb[110].mxu1  ;;  %9013 = vmatprep.mubr.msk.bf16.mxu1 %vm5389_vm1, %v5313_v12  ;;  %v5316_v40 = vor.u32 %v5314_v2, %v5312_v60  ;;  %v9317_v2 = vld [vmem:[%s12726_s5 + $0xa8] sm:$0xff]  }
 0x554   : > { %5210 = vst.msk [vmem:[#allocation3 + $0x18] sm:$0xf] %vm5203_vm0, %v7896_v19  ;;  %v7897_v49 = vpack.c.bf16 %v5100_v27, %v5100_v27  ;;  %v5050_v28 = vadd.f32 %v13036_v48, %v4804_v63  ;;  %v4805_v1 = vadd.f32 %v4744_v4, %v12012_v33  ;;  %v8932_v21 = vpop.f32.mrb[111].mxu1  ;;  %v13038_v19 = vld [vmem:[#allocation48_spill] sm:$0xff]  ;;  %v13039_v4 = vld [vmem:[#allocation45_spill] sm:$0xff]  ;;  %v6118_v48 = vrot.slane %v6116_v38, 3 }
 0x555   : > { %v12119_v52 = vld [vmem:[#allocation3 + $0x10] sm:$0xff]  }
 0x556   : > { %5211 = vst.msk [vmem:[#allocation3 + $0x1c] sm:$0xf] %vm5203_vm0, %v7897_v49  ;;  %v5079_v29 = vadd.f32 %v12072_v53, %v5050_v28  ;;  %v5051_v6 = vadd.f32 %v13037_v10, %v4805_v1  ;;  %v12125_v15 = vld [vmem:[#allocation3 + $0x10] sm:$0xff]   ;;  %v5318_v54 = vshll.u32 %v12119_v52, 16  ;;  %v6115_v49 = vrot.slane %v6113_v18, 2 }
 0x557   : > { %v5939_v14 = vrot.slane %v12125_v15, 2  ;;  %v6121_v59 = vshrl.u32 %v12125_v15, 16  ;;  %v6124_v61 = vshll.u32 %v12125_v15, 16  ;;  %v5322_v1 = vshrl.u32 %v12119_v52, 16 }
 0x558   : > { %v5101_v58 = vmax.f32 %v5079_v29, 0.0  ;;  %v5080_v33 = vadd.f32 %v12072_v53, %v5051_v6  ;;  %v5320_v25 = vrot.slane %v5318_v54, 1 }
 0x559   : > { %v4749_v7 = vpop.f32.mrb[112].mxu1  ;;  %v5940_v46 = vsel %vm3079_vm15, %v5938_v44, %v5939_v14  ;;  %v6126_v21 = vrot.slane %v6124_v61, 3 }
 0x55a   : > { %v7898_v24 = vpack.c.bf16 %v5101_v58, %v5101_v58  ;;  %v5102_v42 = vmax.f32 %v5080_v33, 0.0  ;;  %v4806_v47 = vadd.f32 %v4749_v7, %v12017_v17  ;;  %v8935_v36 = vpop.f32.mrb[113].mxu1  ;;  %v5321_v50 = vsel %vm1502_vm12, %v5316_v40, %v5320_v25  ;;  %9085 = vmatprep.mubr.msk.bf16.mxu0 %vm5389_vm1, %v5940_v46 }
 0x55b   : > { %v4752_v35 = vpop.f32.mrb[114].mxu1  ;;  %9014 = vmatmul.mubr.msk.bf16.vlgmr.msra.gmra.mrb[136].mxu1 %vm5389_vm1, %v5321_v50  ;;  %v5324_v58 = vor.u32 %v5322_v1, %v5320_v25 }
 0x55c   : > { %5212 = vst.msk [vmem:[#allocation3 + $0x20] sm:$0xf] %vm5203_vm0, %v7898_v24  ;;  %v7899_v60 = vpack.c.bf16 %v5102_v42, %v5102_v42  ;;  %v5052_v27 = vadd.f32 %v13038_v19, %v4806_v47  ;;  %v4807_v17 = vadd.f32 %v4752_v35, %v12020_v22  ;;  %v8936_v63 = vpop.f32.mrb[115].mxu1  ;;  %9030 = vmatpush3.bf16.msra.mxu1 %v12003_v0  ;;  %v9310_v22 = vld [vmem:[%s12726_s5 + $0x10] sm:$0xff]   ;;  %v6123_v0 = vrot.slane %v6121_v59, 2  ;;  %v9312_v59 = vld [vmem:[%s12726_s5 + $0x18] sm:$0xff]  }
 0x55d   : > { %v12143_v8 = vld [vmem:[#allocation3 + $0x18] sm:$0xff]   ;;  %9031 = vmatprep.subr.bf16.mxu1 %v9307_v3 }
 0x55e   : > { %5213 = vst.msk [vmem:[#allocation3 + $0x24] sm:$0xf] %vm5203_vm0, %v7899_v60  ;;  %v5081_v62 = vadd.f32 %v12072_v53, %v5052_v27  ;;  %v5053_v12 = vadd.f32 %v13039_v4, %v4807_v17  ;;  %v12149_v57 = vld [vmem:[#allocation3 + $0x18] sm:$0xff]   ;;  %v5941_v28 = vrot.slane %v12143_v8, 2  ;;  %v12170_v42 = vor.u32 %v6126_v21, %v6123_v0 }
 0x55f   : > { %v5326_v6 = vshll.u32 %v12149_v57, 16  ;;  %v6130_v25 = vshrl.u32 %v12143_v8, 16  ;;  %v13040_v47 = vld [vmem:[#allocation4_spill] sm:$0xff]  ;;  %v6133_v60 = vshll.u32 %v12143_v8, 16  ;;  %v5330_v63 = vshrl.u32 %v12149_v57, 16 }
 0x560   : > { %v5103_v29 = vmax.f32 %v5081_v62, 0.0  ;;  %v5082_v10 = vadd.f32 %v12072_v53, %v5053_v12  ;;  %v5942_v54 = vsel %vm3079_vm15, %v5939_v14, %v5941_v28  ;;  %9032 = vmatpush3.bf16.msra.mxu1 %v9307_v3  ;;  %v6119_v14 = vor.u32 %v6118_v48, %v6115_v49  ;;  %v12196_v17 = vld [vmem:[%s12726_s5 + $0x40] sm:$0xff]  }
 0x561   : > { %v4757_v44 = vpop.f32.mrb[116].mxu1  ;;  %9086 = vmatmul.mubr.msk.bf16.vlgmr.msra.gmra.mrb[156].mxu0 %vm5389_vm1, %v5942_v54  ;;  %v5328_v38 = vrot.slane %v5326_v6, 1  ;;  %9033 = vmatprep.subr.bf16.mxu1 %v9310_v22  ;;  %v6132_v0 = vrot.slane %v6130_v25, 2  ;;  %v6135_v21 = vrot.slane %v6133_v60, 3 }
 0x562   : > { %v7900_v33 = vpack.c.bf16 %v5103_v29, %v5103_v29  ;;  %v5104_v18 = vmax.f32 %v5082_v10, 0.0  ;;  %v4808_v40 = vadd.f32 %v4757_v44, %v12025_v51  ;;  %v8939_v7 = vpop.f32.mrb[117].mxu1  ;;  %9126 = vmatpush3.bf16.msra.mxu0 %v12033_v30  ;;  %v9318_v30 = vld [vmem:[%s12726_s5 + $0xb0] sm:$0xff]   ;;  %v12185_v61 = vsel %vm3533_vm2, %v6119_v14, %v12170_v42 }
 0x563   : > { %v4760_v24 = vpop.f32.mrb[118].mxu1  ;;  %v5329_v50 = vsel %vm1502_vm12, %v5324_v58, %v5328_v38  ;;  %9127 = vmatprep.subr.bf16.mxu0 %v9317_v2  ;;  %v5332_v49 = vor.u32 %v5330_v63, %v5328_v38  ;;  %v12223_v38 = vor.u32 %v6135_v21, %v6132_v0 }
 0x564   : > { %5214 = vst.msk [vmem:[#allocation3 + $0x28] sm:$0xf] %vm5203_vm0, %v7900_v33  ;;  %v7901_v51 = vpack.c.bf16 %v5104_v18, %v5104_v18  ;;  %v5054_v36 = vadd.f32 %v13040_v47, %v4808_v40  ;;  %v4809_v46 = vadd.f32 %v4760_v24, %v12028_v39  ;;  %v8940_v3 = vpop.f32.mrb[119].mxu1  ;;  %9017 = vmatprep.mubr.msk.bf16.mxu1 %vm5389_vm1, %v5329_v50 }
 0x565   : > { %v12180_v35 = vld [vmem:[#allocation3 + $0x20] sm:$0xff]   ;;  %9034 = vmatpush3.bf16.msra.mxu1 %v9310_v22  ;;  %v12235_v25 = vsel %vm3533_vm2, %v12170_v42, %v12223_v38 }
 0x566   : > { %5215 = vst.msk [vmem:[#allocation3 + $0x2c] sm:$0xf] %vm5203_vm0, %v7901_v51  ;;  %v5083_v39 = vadd.f32 %v12072_v53, %v5054_v36  ;;  %v5055_v19 = vadd.f32 %v11901_v13, %v4809_v46  ;;  %v12191_v27 = vld [vmem:[#allocation3 + $0x20] sm:$0xff]   ;;  %9035 = vmatprep.subr.bf16.mxu1 %v9312_v59  ;;  %v5334_v62 = vshll.u32 %v12180_v35, 16  ;;  %9128 = vmatpush3.bf16.msra.mxu0 %v9317_v2  ;;  %v9320_v13 = vld [vmem:[%s12726_s5 + $0xb8] sm:$0xff]   ;;  %v5338_v14 = vshrl.u32 %v12180_v35, 16 }
 0x567   : > { %v5943_v22 = vrot.slane %v12191_v27, 2  ;;  %9129 = vmatprep.subr.bf16.mxu0 %v9318_v30 }
 0x568   : > { %v5105_v4 = vmax.f32 %v5083_v39, 0.0  ;;  %v5084_v12 = vadd.f32 %v12072_v53, %v5055_v19  ;;  %v5336_v48 = vrot.slane %v5334_v62, 1  ;;  %v13041_v62 = vld [vmem:[#allocation5_spill] sm:$0xff] }
 0x569   : > { %v4765_v1 = vpop.f32.mrb[120].mxu1  ;;  %9036 = vmatpush3.bf16.msra.mxu1 %v9312_v59  ;;  %v5944_v54 = vsel %vm3079_vm15, %v5941_v28, %v5943_v22  ;;  %v12219_v28 = vld [vmem:[%s12726_s5 + $0xe0] sm:$0xff]  }
 0x56a   : > { %v7902_v29 = vpack.c.bf16 %v5105_v4, %v5105_v4  ;;  %v5106_v10 = vmax.f32 %v5084_v12, 0.0  ;;  %v4810_v6 = vadd.f32 %v4765_v1, %v12039_v43  ;;  %v8943_v2 = vpop.f32.mrb[121].mxu1  ;;  %9053 = vmatprep.subr.bf16.mxu1 %v12196_v17  ;;  %v5337_v44 = vsel %vm1502_vm12, %v5332_v49, %v5336_v48  ;;  %9089 = vmatprep.mubr.msk.bf16.mxu0 %vm5389_vm1, %v5944_v54 }
 0x56b   : > { %v4768_v58 = vpop.f32.mrb[122].mxu1  ;;  %9130 = vmatpush3.bf16.msra.mxu0 %v9318_v30  ;;  %9018 = vmatmul.mubr.msk.bf16.gmra.mrb[140].mxu1 %vm5389_vm1, %v5337_v44  ;;  %v5340_v3 = vor.u32 %v5338_v14, %v5336_v48  ;;  %v13042_v48 = vld [vmem:[#allocation34_spill] sm:$0xff]  ;;  %v6142_v54 = vshll.u32 %v12191_v27, 16 }
 0x56c   : > { %5216 = vst.msk [vmem:[#allocation3 + $0x30] sm:$0xf] %vm5203_vm0, %v7902_v29  ;;  %v7903_v33 = vpack.c.bf16 %v5106_v10, %v5106_v10  ;;  %v5056_v18 = vadd.f32 %v11910_v23, %v4810_v6  ;;  %v4811_v43 = vadd.f32 %v4768_v58, %v12042_v20  ;;  %v8944_v40 = vpop.f32.mrb[123].mxu1  ;;  %9131 = vmatprep.subr.bf16.mxu0 %v9320_v13 }
 0x56d   : > { %v12221_v7 = vld [vmem:[#allocation3 + $0x28] sm:$0xff]  }
 0x56e   : > { %5217 = vst.msk [vmem:[#allocation3 + $0x34] sm:$0xf] %vm5203_vm0, %v7903_v33  ;;  %v5085_v59 = vadd.f32 %v12072_v53, %v5056_v18  ;;  %v5057_v23 = vadd.f32 %v11913_v9, %v4811_v43  ;;  %v12228_v20 = vld [vmem:[#allocation3 + $0x28] sm:$0xff]   ;;  %v5945_v24 = vrot.slane %v12221_v7, 2 }
 0x56f   : > { %9132 = vmatpush3.bf16.msra.mxu0 %v9320_v13  ;;  %v5342_v36 = vshll.u32 %v12228_v20, 16  ;;  %v5346_v21 = vshrl.u32 %v12228_v20, 16 }
 0x570   : > { %v5107_v51 = vmax.f32 %v5085_v59, 0.0  ;;  %v5086_v47 = vadd.f32 %v12072_v53, %v5057_v23  ;;  %9173 = vmatprep.subr.bf16.mxu0 %v12219_v28  ;;  %v5946_v9 = vsel %vm3079_vm15, %v5943_v22, %v5945_v24 }
 0x571   : > { %v4773_v46 = vpop.f32.mrb[124].mxu1  ;;  %9090 = vmatmul.mubr.msk.bf16.gmra.mrb[160].mxu0 %vm5389_vm1, %v5946_v9  ;;  %v5344_v42 = vrot.slane %v5342_v36, 1  ;;  %v13043_v9 = vld [vmem:[#allocation7_spill] sm:$0xff] }
 0x572   : > { %v7904_v50 = vpack.c.bf16 %v5107_v51, %v5107_v51  ;;  %v5108_v30 = vmax.f32 %v5086_v47, 0.0  ;;  %v4812_v60 = vadd.f32 %v4773_v46, %v12047_v37  ;;  %v8947_v39 = vpop.f32.mrb[125].mxu1 }
 0x573   : > { %v4776_v19 = vpop.f32.mrb[126].mxu1  ;;  %v5345_v22 = vsel %vm1502_vm12, %v5340_v3, %v5344_v42  ;;  %v5348_v44 = vor.u32 %v5346_v21, %v5344_v42 }
 0x574   : > { %5218 = vst.msk [vmem:[#allocation3 + $0x38] sm:$0xf] %vm5203_vm0, %v7904_v50  ;;  %v7905_v63 = vpack.c.bf16 %v5108_v30, %v5108_v30  ;;  %v5058_v4 = vadd.f32 %v13041_v62, %v4812_v60  ;;  %v4813_v12 = vadd.f32 %v4776_v19, %v12050_v32  ;;  %v8948_v13 = vpop.f32.mrb[127].mxu1  ;;  %9021 = vmatprep.mubr.msk.bf16.mxu1 %vm5389_vm1, %v5345_v22  ;;  %v6139_v32 = vshrl.u32 %v12191_v27, 16 }
 0x575   : > { %v12247_v49 = vld [vmem:[#allocation3 + $0x30] sm:$0xff]  }
 0x576   : > { %5219 = vst.msk [vmem:[#allocation3 + $0x3c] sm:$0xf] %vm5203_vm0, %v7905_v63  ;;  %v5087_v37 = vadd.f32 %v12072_v53, %v5058_v4  ;;  %v5059_v1 = vadd.f32 %v13042_v48, %v4813_v12  ;;  %v12253_v0 = vld [vmem:[#allocation3 + $0x30] sm:$0xff]   ;;  %v5350_v29 = vshll.u32 %v12247_v49, 16  ;;  %v6141_v47 = vrot.slane %v6139_v32, 2 }
 0x577   : > { %v5947_v2 = vrot.slane %v12253_v0, 2  ;;  %v5354_v19 = vshrl.u32 %v12247_v49, 16 }
 0x578   : > { %v5109_v10 = vmax.f32 %v5087_v37, 0.0  ;;  %v5088_v6 = vadd.f32 %v12072_v53, %v5059_v1  ;;  %v5352_v58 = vrot.slane %v5350_v29, 1  ;;  %v6148_v37 = vshrl.u32 %v12221_v7, 16 }
 0x579   : > { %v4781_v33 = vpop.f32.mrb[128].mxu1  ;;  %v5948_v23 = vsel %vm3079_vm15, %v5945_v24, %v5947_v2 }
 0x57a   : > { %v7906_v18 = vpack.c.bf16 %v5109_v10, %v5109_v10  ;;  %v5110_v43 = vmax.f32 %v5088_v6, 0.0  ;;  %v4814_v40 = vadd.f32 %v4781_v33, %v12055_v31  ;;  %v8951_v59 = vpop.f32.mrb[129].mxu1  ;;  %v5353_v14 = vsel %vm1502_vm12, %v5348_v44, %v5352_v58  ;;  %9093 = vmatprep.mubr.msk.bf16.mxu0 %vm5389_vm1, %v5948_v23 }
 0x57b   : > { %v4784_v51 = vpop.f32.mrb[130].mxu1  ;;  %9022 = vmatmul.mubr.msk.bf16.gmra.mrb[144].mxu1 %vm5389_vm1, %v5353_v14  ;;  %v6144_v31 = vrot.slane %v6142_v54, 3  ;;  %v5356_v22 = vor.u32 %v5354_v19, %v5352_v58  ;;  %v6150_v23 = vrot.slane %v6148_v37, 2 }
 0x57c   : > { %5220 = vst.msk [vmem:[#allocation3 + $0x40] sm:$0xf] %vm5203_vm0, %v7906_v18  ;;  %v7907_v36 = vpack.c.bf16 %v5110_v43, %v5110_v43  ;;  %v5060_v46 = vadd.f32 %v13043_v9, %v4814_v40  ;;  %v4815_v3 = vadd.f32 %v4784_v51, %v12058_v16  ;;  %v8952_v50 = vpop.f32.mrb[131].mxu1  ;;  %v6157_v51 = vshrl.u32 %v12253_v0, 16  ;;  %v6341_v9 = vld [vmem:[#allocation3 + $0x8] sm:$0x8] }
 0x57d   : > { %v12269_v30 = vld [vmem:[#allocation3 + $0x38] sm:$0xff]   ;;  %v6145_v63 = vor.u32 %v6144_v31, %v6141_v47  ;;  %v6358_v31 = vrot.slane %v12125_v15, 3 }
 0x57e   : > { %5221 = vst.msk [vmem:[#allocation3 + $0x44] sm:$0xf] %vm5203_vm0, %v7907_v36  ;;  %v5089_v24 = vadd.f32 %v12072_v53, %v5060_v46  ;;  %v5061_v60 = vadd.f32 %v11940_v45, %v4815_v3  ;;  %v12274_v39 = vld [vmem:[#allocation3 + $0x38] sm:$0xff]   ;;  %v5949_v42 = vrot.slane %v12269_v30, 2  ;;  %v5227_v36 = vld [vmem:[#allocation3 + $0x54] sm:$0x1] }
 0x57f   : > { %v5358_v4 = vshll.u32 %v12274_v39, 16  ;;  %v5362_v10 = vshrl.u32 %v12274_v39, 16  ;;  %v12287_v6 = vsel %vm3533_vm2, %v12223_v38, %v6145_v63 }
 0x580   : > { %v5111_v16 = vmax.f32 %v5089_v24, 0.0  ;;  %v5090_v62 = vadd.f32 %v12072_v53, %v5061_v60  ;;  %v5950_v12 = vsel %vm3079_vm15, %v5947_v2, %v5949_v42  ;;  %v9319_v24 = vld [vmem:[%s12726_s5 + $0x48] sm:$0xff]  }
 0x581   : > { %v4789_v13 = vpop.f32.mrb[132].mxu1  ;;  %9094 = vmatmul.mubr.msk.bf16.gmra.mrb[164].mxu0 %vm5389_vm1, %v5950_v12  ;;  %v5360_v29 = vrot.slane %v5358_v4, 1 }
 0x582   : > { %v7908_v48 = vpack.c.bf16 %v5111_v16, %v5111_v16  ;;  %v5112_v45 = vmax.f32 %v5090_v62, 0.0  ;;  %v4816_v1 = vadd.f32 %v4789_v13, %v12063_v56  ;;  %v8955_v21 = vpop.f32.mrb[133].mxu1  ;;  %v6159_v16 = vrot.slane %v6157_v51, 2  ;;  %v9324_v51 = vld [vmem:[#allocation3 + $0x8] sm:$0xff]  }
 0x583   : > { %v4792_v32 = vpop.f32.mrb[134].mxu1  ;;  %v5361_v56 = vsel %vm1502_vm12, %v5356_v22, %v5360_v29  ;;  %v5364_v33 = vor.u32 %v5362_v10, %v5360_v29  ;;  %v6166_v13 = vshrl.u32 %v12269_v30, 16  ;;  %v6169_v22 = vshll.u32 %v12269_v30, 16 }
 0x584   : > { %5222 = vst.msk [vmem:[#allocation3 + $0x48] sm:$0xf] %vm5203_vm0, %v7908_v48  ;;  %v7909_v2 = vpack.c.bf16 %v5112_v45, %v5112_v45  ;;  %v5062_v54 = vadd.f32 %v11949_v5, %v4816_v1  ;;  %v4817_v44 = vadd.f32 %v4792_v32, %v12066_v41  ;;  %v8956_v58 = vpop.f32.mrb[135].mxu1  ;;  %9025 = vmatprep.mubr.msk.bf16.mxu1 %vm5389_vm1, %v5361_v56  ;;  %v6151_v41 = vshll.u32 %v12221_v7, 16 }
 0x585   : > { %v12294_v18 = vld [vmem:[#allocation3 + $0x40] sm:$0xff]   ;;  %9026 = vmatmul.mubr.msk.bf16.gmra.mrb[148].mxu1 %vm5389_vm1, %v5364_v33  ;;  %v6362_v56 = vrot.slane %v12191_v27, 3  ;;  %v9322_v33 = vld [vmem:[%s12726_s5 + $0x58] sm:$0xff]  }
 0x586   : > { %5223 = vst.msk [vmem:[#allocation3 + $0x4c] sm:$0xf] %vm5203_vm0, %v7909_v2  ;;  %v5091_v38 = vadd.f32 %v12072_v53, %v5062_v54  ;;  %v5063_v43 = vadd.f32 %v11952_v11, %v4817_v44  ;;  %v5951_v5 = vrot.slane %v12294_v18, 2  ;;  %9037 = vmatprep.mubr.msk.bf16.mxu1 %vm5389_vm1, %v12091_v55  ;;  %v6153_v46 = vrot.slane %v6151_v41, 3 }
 0x587   : > { %v7811_v55 = vcombine.low %v6341_v9, %v12110_v34  ;;  %v6178_v37 = vshll.u32 %v12294_v18, 16  ;;  %v6360_v2 = vrot.slane %v12143_v8, 3  ;;  %v9329_v8 = vld [vmem:[%s12726_s5 + $0xe8] sm:$0xff]  }
 0x588   : > { %v5113_v40 = vmax.f32 %v5091_v38, 0.0  ;;  %v5092_v59 = vadd.f32 %v12072_v53, %v5063_v43  ;;  %v5952_v14 = vsel %vm3079_vm15, %v5949_v42, %v5951_v5  ;;  %v6154_v60 = vor.u32 %v6153_v46, %v6150_v23 }
 0x589   : > { %9097 = vmatprep.mubr.msk.bf16.mxu0 %vm5389_vm1, %v5952_v14  ;;  %v6160_v42 = vshll.u32 %v12253_v0, 16  ;;  %v6357_v15 = vrot.slane %v7811_v55, 3  ;;  %v6180_v21 = vrot.slane %v6178_v37, 3  ;;  %v6361_v41 = vsel %vm4323_vm10, %v6358_v31, %v6360_v2 }
 0x58a   : > { %v7910_v47 = vpack.c.bf16 %v5113_v40, %v5113_v40  ;;  %v5114_v11 = vmax.f32 %v5092_v59, 0.0  ;;  %v12324_v4 = vsel %vm3533_vm2, %v6145_v63, %v6154_v60  ;;  %v6175_v63 = vshrl.u32 %v12294_v18, 16 }
 0x58b   : > { %v9315_v3 = vld [vmem:[#allocation3 + $0x48] ss:$0 sps:$4 sm:$0x33]   ;;  %v6162_v12 = vrot.slane %v6160_v42, 3  ;;  %v6359_v48 = vsel %vm4323_vm10, %v6357_v15, %v6358_v31  ;;  %v6363_v40 = vsel %vm4323_vm10, %v6360_v2, %v6362_v56  ;;  %v6364_v23 = vrot.slane %v12221_v7, 3 }
 0x58c   : > { %5224 = vst.msk [vmem:[#allocation3 + $0x50] sm:$0xf] %vm5203_vm0, %v7910_v47  ;;  %v7911_v50 = vpack.c.bf16 %v5114_v11, %v5114_v11  ;;  %v5953_v19 = vrot.slane %v9315_v3, 2  ;;  %v6177_v1 = vrot.slane %v6175_v63, 2  ;;  %v6184_v29 = vshrl.u32 %v9315_v3, 16  ;;  %v12390_v11 = vld [vmem:[#allocation3 + $0x14] sm:$0xff]  }
 0x58d   : > { %9038 = vmatmul.mubr.msk.bf16.vlgmr.msra.gmra.mrb[152].mxu1 %vm5389_vm1, %v12102_v26  ;;  %v9321_v26 = vld [vmem:[%s12726_s5 + $0x50] sm:$0xff]   ;;  %v6163_v45 = vor.u32 %v6162_v12, %v6159_v16  ;;  %v6187_v10 = vshll.u32 %v9315_v3, 16  ;;  %v6366_v14 = vrot.slane %v12253_v0, 3  ;;  %v6365_v47 = vsel %vm4323_vm10, %v6362_v56, %v6364_v23  ;;  %v9323_v0 = vld [vmem:[#allocation3] sm:$0xfe]  }
 0x58e   : > { %v5228_v62 = vsel %vm12310_vm11, %v7911_v50, %v5227_v36  ;;  %v5954_v34 = vsel %vm3079_vm15, %v5951_v5, %v5953_v19  ;;  %9054 = vmatpush3.bf16.msra.mxu1 %v12196_v17  ;;  %9041 = vmatprep.mubr.msk.bf16.mxu1 %vm5389_vm1, %v12119_v52  ;;  %v6168_v17 = vrot.slane %v6166_v13, 2  ;;  %v6171_v52 = vrot.slane %v6169_v22, 3  ;;  %v12394_v3 = vld [vmem:[#allocation3 + $0x1c] sm:$0xff]   ;;  %v12406_v19 = vld [vmem:[#allocation3 + $0x24] sm:$0xff]   ;;  %v12412_v13 = vld [vmem:[#allocation3 + $0x2c] sm:$0xff]  }
 0x58f   : > { %5229 = vst [vmem:[#allocation3 + $0x54] sm:$0x1] %v5228_v62  ;;  %9098 = vmatmul.mubr.msk.bf16.gmra.mrb[168].mxu0 %vm5389_vm1, %v5954_v34  ;;  %9055 = vmatprep.subr.bf16.mxu1 %v9319_v24  ;;  %v12343_v32 = vsel %vm3533_vm2, %v6154_v60, %v6163_v45  ;;  %v6181_v44 = vor.u32 %v6180_v21, %v6177_v1  ;;  %v6186_v58 = vrot.slane %v6184_v29, 2  ;;  %v6189_v38 = vrot.slane %v6187_v10, 3  ;;  %v9330_v50 = vld [vmem:[#allocation3 + $0x18] sm:$0xff]   ;;  %v9336_v12 = vld [vmem:[%s12726_s5 + $0x88] sm:$0xff]  }
 0x590   : > { %9133 = vmatprep.mubr.msk.bf16.mxu0 %vm5389_vm1, %v6359_v48  ;;  %v6172_v54 = vor.u32 %v6171_v52, %v6168_v17  ;;  %v6367_v7 = vsel %vm4323_vm10, %v6364_v23, %v6366_v14  ;;  %v6368_v36 = vrot.slane %v12269_v30, 3  ;;  %v5704_v9 = vrot.slane %v9323_v0, 1  ;;  %v9327_v30 = vld [vmem:[#allocation3 + $0x48] ss:$0 sps:$4 sm:$0x77]   ;;  %v9331_v63 = vld [vmem:[#allocation3 + $0x20] sm:$0xff]  }
 0x591   : > { %v6190_v27 = vor.u32 %v6189_v38, %v6186_v58  ;;  %v6370_v46 = vrot.slane %v12294_v18, 3  ;;  %v6746_v31 = vshll.u32 %v12390_v11, 16  ;;  %v6750_v60 = vshll.u32 %v12394_v3, 16  ;;  %v9342_v21 = vld [vmem:[%s12726_s5 + $0x90] sm:$0xff]   ;;  %v9347_v38 = vld [vmem:[%s12726_s5 + $0x98] sm:$0xff]   ;;  %v9343_v23 = vld [vmem:[#allocation3 + $0x38] sm:$0xff]  }
 0x592   : > { %9056 = vmatpush3.bf16.msra.mxu1 %v9319_v24  ;;  %v12351_v43 = vsel %vm3533_vm2, %v6163_v45, %v6172_v54  ;;  %v12354_v5 = vsel %vm3533_vm2, %v6172_v54, %v6181_v44  ;;  %v6369_v24 = vsel %vm4323_vm10, %v6366_v14, %v6368_v36  ;;  %v6372_v62 = vrot.slane %v9327_v30, 3  ;;  %v9338_v45 = vld [vmem:[#allocation3 + $0x28] sm:$0xff]   ;;  %v12427_v54 = vld [vmem:[#allocation3 + $0x34] sm:$0xff]  }
 0x593   : > { %9057 = vmatprep.subr.bf16.mxu1 %v9321_v26  ;;  %v12370_v59 = vsel %vm3533_vm2, %v6181_v44, %v6190_v27  ;;  %v6371_v18 = vsel %vm4323_vm10, %v6368_v36, %v6370_v46  ;;  %v6748_v16 = vrot.slane %v6746_v31, 1  ;;  %v6744_v34 = vshrl.u32 %v12390_v11, 16  ;;  %v12449_v36 = vld [vmem:[#allocation3 + $0x44] sm:$0xff]   ;;  %vm7211_vm2 = vmand %vm5203_vm0, %vm1771_vm6 }
 0x594   : > { %v6752_v15 = vrot.slane %v6750_v60, 1  ;;  %v6373_v17 = vsel %vm4323_vm10, %v6370_v46, %v6372_v62  ;;  %v6764_v1 = vshll.u32 %v12412_v13, 16  ;;  %v5711_v29 = vrot.slane %v9331_v63, 1 }
 0x595   : > { %9042 = vmatmul.mubr.msk.bf16.gmra.mrb[156].mxu1 %vm5389_vm1, %v12149_v57  ;;  %v9328_v57 = vld [vmem:[%s12726_s5 + $0x80] sm:$0xff]   ;;  %v6749_v48 = vor.u32 %v6748_v16, %v6744_v34  ;;  %v5713_v2 = vrot.slane %v9338_v45, 1  ;;  %v6754_v44 = vshrl.u32 %v12394_v3, 16  ;;  %v6761_v58 = vshrl.u32 %v12406_v19, 16 }
 0x596   : > { %9045 = vmatprep.mubr.msk.bf16.mxu1 %vm5389_vm1, %v12180_v35  ;;  %9058 = vmatpush3.bf16.msra.mxu1 %v9321_v26  ;;  %v9332_v35 = vld [vmem:[%s12726_s5 + $0xf0] sm:$0xff]   ;;  %v6757_v26 = vshll.u32 %v12406_v19, 16  ;;  %v6766_v56 = vrot.slane %v6764_v1, 1  ;;  %v6775_v46 = vshrl.u32 %v12427_v54, 16  ;;  %v6785_v60 = vshll.u32 %v12449_v36, 16 }
 0x597   : > { %9134 = vmatmul.mubr.msk.bf16.vlgmr.msra.gmra.mrb[172].mxu0 %vm5389_vm1, %v6361_v41  ;;  %9059 = vmatprep.subr.bf16.mxu1 %v9322_v33  ;;  %v6753_v52 = vsel %vm1502_vm12, %v6749_v48, %v6752_v15  ;;  %v6756_v27 = vor.u32 %v6754_v44, %v6752_v15  ;;  %v9339_v41 = vld [vmem:[#allocation3 + $0x30] sm:$0xff]   ;;  %vm7243_vm10 = vcmask 519171   ;;  %vm7298_vm0 = vcmask 517120  }
 0x598   : > { %9137 = vmatprep.mubr.msk.bf16.mxu0 %vm5389_vm1, %v6363_v40  ;;  %9174 = vmatpush3.bf16.msra.mxu0 %v12219_v28  ;;  %v9337_v28 = vld [vmem:[%s12726_s5 + $0xf8] sm:$0xff]   ;;  %v6759_v10 = vrot.slane %v6757_v26, 1  ;;  %v5714_v40 = vsel %vm2315_vm9, %v5711_v29, %v5713_v2  ;;  %v6787_v34 = vrot.slane %v6785_v60, 1  ;;  %vm12684_vm4 = vmand %vm7298_vm0, %vm3779_vm8 }
 0x599   : > { %9175 = vmatprep.subr.bf16.mxu0 %v9329_v8 }
 0x59a   : > { %9060 = vmatpush3.bf16.msra.mxu1 %v9322_v33  ;;  %v12431_v33 = vld [vmem:[#allocation3 + $0x3c] sm:$0xff]   ;;  %v6760_v14 = vsel %vm1502_vm12, %v6756_v27, %v6759_v10 }
 0x59b   : > { %9101 = vmatprep.subr.bf16.mxu1 %v9328_v57  ;;  %v6782_v15 = vshrl.u32 %v12431_v33, 16 }
 0x59c   : > { %9176 = vmatpush3.bf16.msra.mxu0 %v9329_v8 }
 0x59d   : > { %9046 = vmatmul.mubr.msk.bf16.gmra.mrb[160].mxu1 %vm5389_vm1, %v12228_v20  ;;  %9177 = vmatprep.subr.bf16.mxu0 %v9332_v35  ;;  %v5705_v20 = vrot.slane %v9324_v51, 1 }
 0x59e   : > { %9049 = vmatprep.mubr.msk.bf16.mxu1 %vm5389_vm1, %v12247_v49  ;;  %v9325_v49 = vld [vmem:[#allocation3 + $0x10] sm:$0xff]  }
 0x59f   : > { %9138 = vmatmul.mubr.msk.bf16.gmra.mrb[176].mxu0 %vm5389_vm1, %v6365_v47  ;;  %v5706_v55 = vsel %vm2315_vm9, %v5704_v9, %v5705_v20  ;;  %v5707_v42 = vrot.slane %v9325_v49, 1  ;;  %v9349_v47 = vld [vmem:[%s12726_s5 + $0xc0] sm:$0xff]   ;;  %v6768_v9 = vshrl.u32 %v12412_v13, 16 }
 0x5a0   : > { %9141 = vmatprep.mubr.msk.bf16.mxu0 %vm5389_vm1, %v6367_v7  ;;  %9178 = vmatpush3.bf16.msra.mxu0 %v9332_v35  ;;  %v6771_v35 = vshll.u32 %v12427_v54, 16  ;;  %v5715_v7 = vrot.slane %v9339_v41, 1  ;;  %v9364_v41 = vld [vmem:[#allocation3 + $0x4c] sm:$0xff]  }
 0x5a1   : > { %9179 = vmatprep.subr.bf16.mxu0 %v9337_v28  ;;  %v5708_v22 = vsel %vm2315_vm9, %v5705_v20, %v5707_v42  ;;  %v5717_v20 = vrot.slane %v9343_v23, 1  ;;  %v6770_v31 = vor.u32 %v6768_v9, %v6766_v56  ;;  %v9365_v23 = vld [vmem:[#allocation3 + $0x54] ss:$0 sps:$4 sm:$0x11]  }
 0x5a2   : > { %v6773_v0 = vrot.slane %v6771_v35, 1 }
 0x5a3   : > { %v5718_v30 = vsel %vm2315_vm9, %v5715_v7, %v5717_v20 }
 0x5a4   : > { %9180 = vmatpush3.bf16.msra.mxu0 %v9337_v28  ;;  %v6778_v28 = vshll.u32 %v12431_v33, 16 }
 0x5a5   : > { %9050 = vmatmul.mubr.msk.bf16.gmra.mrb[164].mxu1 %vm5389_vm1, %v12274_v39  ;;  %v5709_v39 = vrot.slane %v9330_v50, 1  ;;  %v5716_v50 = vsel %vm2315_vm9, %v5713_v2, %v5715_v7 }
 0x5a6   : > { %9061 = vmatprep.mubr.msk.bf16.mxu1 %vm5389_vm1, %v5706_v55  ;;  %v6780_v49 = vrot.slane %v6778_v28, 1  ;;  %v12453_v55 = vld [vmem:[#allocation3 + $0x4c] sm:$0xff]  }
 0x5a7   : > { %9142 = vmatmul.mubr.msk.bf16.gmra.mrb[180].mxu0 %vm5389_vm1, %v6369_v24  ;;  %v5710_v37 = vsel %vm2315_vm9, %v5707_v42, %v5709_v39  ;;  %v5712_v8 = vsel %vm2315_vm9, %v5709_v39, %v5711_v29  ;;  %v9344_v24 = vld [vmem:[#allocation3 + $0x40] ss:$0 sps:$4 sm:$0x11]   ;;  %v6774_v42 = vsel %vm1502_vm12, %v6770_v31, %v6773_v0  ;;  %v6792_v16 = vshll.u32 %v12453_v55, 16 }
 0x5a8   : > { %9145 = vmatprep.mubr.msk.bf16.mxu0 %vm5389_vm1, %v6371_v18  ;;  %v6777_v18 = vor.u32 %v6775_v46, %v6773_v0  ;;  %v5719_v62 = vrot.slane %v9344_v24, 1 }
 0x5aa   : > { %v6781_v39 = vsel %vm1502_vm12, %v6777_v18, %v6780_v49  ;;  %v5720_v63 = vsel %vm2315_vm9, %v5717_v20, %v5719_v62 }
 0x5ad   : > { %9062 = vmatmul.mubr.msk.bf16.vlgmr.msra.gmra.mrb[168].mxu1 %vm5389_vm1, %v5708_v22  ;;  %v6794_v22 = vrot.slane %v6792_v16, 1 }
 0x5ae   : > { %9102 = vmatpush3.bf16.msra.mxu1 %v9328_v57  ;;  %9065 = vmatprep.mubr.msk.bf16.mxu1 %vm5389_vm1, %v5710_v37  ;;  %v6763_v57 = vor.u32 %v6761_v58, %v6759_v10  ;;  %v6784_v37 = vor.u32 %v6782_v15, %v6780_v49  ;;  %v9362_v58 = vld [vmem:[#allocation3 + $0x3c] sm:$0xff]  }
 0x5af   : > { %9146 = vmatmul.mubr.msk.bf16.gmra.mrb[184].mxu0 %vm5389_vm1, %v6373_v17  ;;  %9103 = vmatprep.subr.bf16.mxu1 %v9336_v12  ;;  %v6796_v17 = vshrl.u32 %v12453_v55, 16 }
 0x5b0   : > { %9181 = vmatprep.mubr.msk.bf16.mxu0 %vm5389_vm1, %v6753_v52  ;;  %v6767_v51 = vsel %vm1502_vm12, %v6763_v57, %v6766_v56  ;;  %v6788_v26 = vsel %vm1502_vm12, %v6784_v37, %v6787_v34  ;;  %v9350_v52 = vld [vmem:[%s12726_s5 + $0xc8] sm:$0xff]   ;;  %v7029_v57 = vrot.slane %v9364_v41, 1 }
 0x5b1   : > { %v6798_v1 = vor.u32 %v6796_v17, %v6794_v22 }
 0x5b2   : > { %9104 = vmatpush3.bf16.msra.mxu1 %v9336_v12  ;;  %v6789_v12 = vshrl.u32 %v12449_v36, 16 }
 0x5b3   : > { %9105 = vmatprep.subr.bf16.mxu1 %v9342_v21 }
 0x5b4   : > { %v6791_v48 = vor.u32 %v6789_v12, %v6787_v34 }
 0x5b5   : > { %9066 = vmatmul.mubr.msk.bf16.gmra.mrb[172].mxu1 %vm5389_vm1, %v5712_v8  ;;  %v9363_v8 = vld [vmem:[#allocation3 + $0x44] sm:$0xff]  }
 0x5b6   : > { %9069 = vmatprep.mubr.msk.bf16.mxu1 %vm5389_vm1, %v5714_v40  ;;  %9106 = vmatpush3.bf16.msra.mxu1 %v9342_v21  ;;  %v6795_v45 = vsel %vm1502_vm12, %v6791_v48, %v6794_v22  ;;  %v9352_v21 = vld [vmem:[%s12726_s5 + $0xd8] sm:$0xff]   ;;  %v7027_v40 = vrot.slane %v9363_v8, 1  ;;  %vm7244_vm12 = vsmask.f32 7950 }
 0x5b7   : > { %9182 = vmatmul.mubr.msk.bf16.vlgmr.msra.gmra.mrb[188].mxu0 %vm5389_vm1, %v6760_v14  ;;  %9107 = vmatprep.subr.bf16.mxu1 %v9347_v38  ;;  %vm7245_vm15 = vmand %vm7243_vm10, %vm7244_vm12  ;;  %vm7321_vm12 = vsmask.f32 7440 }
 0x5b8   : > { %9185 = vmatprep.mubr.msk.bf16.mxu0 %vm5389_vm1, %v6767_v51  ;;  %v7030_v14 = vsel %vm2315_vm9, %v7027_v40, %v7029_v57  ;;  %v7031_v51 = vrot.slane %v9365_v23, 1 }
 0x5ba   : > { %9108 = vmatpush3.bf16.msra.mxu1 %v9347_v38  ;;  %v7032_v28 = vsel %vm2315_vm9, %v7029_v57, %v7031_v51 }
 0x5bb   : > { %9149 = vmatprep.subr.bf16.mxu1 %v9349_v47 }
 0x5bd   : > { %9070 = vmatmul.mubr.msk.bf16.gmra.mrb[176].mxu1 %vm5389_vm1, %v5716_v50 }
 0x5be   : > { %9073 = vmatprep.mubr.msk.bf16.mxu1 %vm5389_vm1, %v5718_v30 }
 0x5bf   : > { %9186 = vmatmul.mubr.msk.bf16.gmra.mrb[192].mxu0 %vm5389_vm1, %v6774_v42 }
 0x5c0   : > { %9189 = vmatprep.mubr.msk.bf16.mxu0 %vm5389_vm1, %v6781_v39 }
 0x5c5   : > { %9074 = vmatmul.mubr.msk.bf16.gmra.mrb[180].mxu1 %vm5389_vm1, %v5720_v63 }
 0x5c6   : > { %9109 = vmatprep.mubr.msk.bf16.mxu1 %vm5389_vm1, %v12185_v61  ;;  %v9351_v61 = vld [vmem:[%s12726_s5 + $0xd0] sm:$0xff]  }
 0x5c7   : > { %9190 = vmatmul.mubr.msk.bf16.gmra.mrb[196].mxu0 %vm5389_vm1, %v6788_v26 }
 0x5c8   : > { %9193 = vmatprep.mubr.msk.bf16.mxu0 %vm5389_vm1, %v6795_v45 }
 0x5cd   : > { %9110 = vmatmul.mubr.msk.bf16.vlgmr.msra.gmra.mrb[184].mxu1 %vm5389_vm1, %v12235_v25  ;;  %v9353_v25 = vld [vmem:[%s12726_s5 + $0x100] sm:$0xff]  }
 0x5ce   : > { %9150 = vmatpush3.bf16.msra.mxu1 %v9349_v47  ;;  %9113 = vmatprep.mubr.msk.bf16.mxu1 %vm5389_vm1, %v12287_v6  ;;  %v9354_v6 = vld [vmem:[%s12726_s5 + $0x108] sm:$0xff]  }
 0x5cf   : > { %9194 = vmatmul.mubr.msk.bf16.gmra.mrb[200].mxu0 %vm5389_vm1, %v6798_v1  ;;  %9151 = vmatprep.subr.bf16.mxu1 %v9350_v52 }
 0x5d2   : > { %9152 = vmatpush3.bf16.msra.mxu1 %v9350_v52 }
 0x5d3   : > { %9153 = vmatprep.subr.bf16.mxu1 %v9351_v61 }
 0x5d5   : > { %9114 = vmatmul.mubr.msk.bf16.gmra.mrb[188].mxu1 %vm5389_vm1, %v12324_v4  ;;  %v9355_v4 = vld [vmem:[%s12726_s5 + $0x110] sm:$0xff]  }
 0x5d6   : > { %9117 = vmatprep.mubr.msk.bf16.mxu1 %vm5389_vm1, %v12343_v32  ;;  %9154 = vmatpush3.bf16.msra.mxu1 %v9351_v61  ;;  %v9356_v32 = vld [vmem:[%s12726_s5 + $0x118] sm:$0xff]  }
 0x5d7   : > { %9155 = vmatprep.subr.bf16.mxu1 %v9352_v21 }
 0x5da   : > { %9156 = vmatpush3.bf16.msra.mxu1 %v9352_v21 }
 0x5db   : > { %9197 = vmatprep.subr.bf16.mxu1 %v9353_v25 }
 0x5dd   : > { %9118 = vmatmul.mubr.msk.bf16.gmra.mrb[192].mxu1 %vm5389_vm1, %v12351_v43  ;;  %v9358_v43 = vld [vmem:[#allocation3 + $0x1c] sm:$0xff]  }
 0x5de   : > { %9121 = vmatprep.mubr.msk.bf16.mxu1 %vm5389_vm1, %v12354_v5  ;;  %v9357_v5 = vld [vmem:[#allocation3 + $0x14] sm:$0xfe]  }
 0x5e5   : > { %9122 = vmatmul.mubr.msk.bf16.gmra.mrb[196].mxu1 %vm5389_vm1, %v12370_v59  ;;  %v7017_v59 = vrot.slane %v9358_v43, 1 }
 0x5e6   : > { %9157 = vmatprep.mubr.msk.bf16.mxu1 %vm5389_vm1, %v12390_v11  ;;  %v7016_v11 = vrot.slane %v9357_v5, 1 }
 0x5ed   : > { %9158 = vmatmul.mubr.msk.bf16.vlgmr.msra.gmra.mrb[200].mxu1 %vm5389_vm1, %v12394_v3  ;;  %v9359_v3 = vld [vmem:[#allocation3 + $0x24] sm:$0xff]  }
 0x5ee   : > { %9198 = vmatpush3.bf16.msra.mxu1 %v9353_v25  ;;  %9161 = vmatprep.mubr.msk.bf16.mxu1 %vm5389_vm1, %v12406_v19  ;;  %v7018_v19 = vsel %vm2315_vm9, %v7016_v11, %v7017_v59  ;;  %v7019_v29 = vrot.slane %v9359_v3, 1 }
 0x5ef   : > { %9199 = vmatprep.subr.bf16.mxu1 %v9354_v6 }
 0x5f0   : > { %v7020_v2 = vsel %vm2315_vm9, %v7017_v59, %v7019_v29 }
 0x5f2   : > { %9200 = vmatpush3.bf16.msra.mxu1 %v9354_v6 }
 0x5f3   : > { %9201 = vmatprep.subr.bf16.mxu1 %v9355_v4 }
 0x5f5   : > { %9162 = vmatmul.mubr.msk.bf16.gmra.mrb[204].mxu1 %vm5389_vm1, %v12412_v13  ;;  %v9360_v13 = vld [vmem:[#allocation3 + $0x2c] sm:$0xff]  }
 0x5f6   : > { %9165 = vmatprep.mubr.msk.bf16.mxu1 %vm5389_vm1, %v12427_v54  ;;  %9202 = vmatpush3.bf16.msra.mxu1 %v9355_v4  ;;  %v7021_v10 = vrot.slane %v9360_v13, 1  ;;  %v9361_v54 = vld [vmem:[#allocation3 + $0x34] sm:$0xff]  }
 0x5f7   : > { %9203 = vmatprep.subr.bf16.mxu1 %v9356_v32  ;;  %v7023_v56 = vrot.slane %v9361_v54, 1 }
 0x5f8   : > { %v7022_v44 = vsel %vm2315_vm9, %v7019_v29, %v7021_v10 }
 0x5f9   : > { %v7024_v38 = vsel %vm2315_vm9, %v7021_v10, %v7023_v56 }
 0x5fa   : > { %9204 = vmatpush3.bf16.msra.mxu1 %v9356_v32 }
 0x5fd   : > { %9166 = vmatmul.mubr.msk.bf16.gmra.mrb[208].mxu1 %vm5389_vm1, %v12431_v33  ;;  %v7025_v33 = vrot.slane %v9362_v58, 1 }
 0x5fe   : > { %9169 = vmatprep.mubr.msk.bf16.mxu1 %vm5389_vm1, %v12449_v36 }
 0x5ff   : > { %v7026_v27 = vsel %vm2315_vm9, %v7023_v56, %v7025_v33  ;;  %v7028_v35 = vsel %vm2315_vm9, %v7025_v33, %v7027_v40  ;;  %vm7221_vm9 = vsmask.f32 5392 }
 0x600   : > { %vm7222_vm13 = vmor %vm3779_vm8, %vm7221_vm9  ;;  %vm7293_vm9 = vsmask.f32 7946 }
 0x605   : > { %9170 = vmatmul.mubr.msk.bf16.gmra.mrb[212].mxu1 %vm5389_vm1, %v12453_v55 }
 0x606   : > { %9205 = vmatprep.mubr.msk.bf16.mxu1 %vm5389_vm1, %v7018_v19 }
 0x60d   : > { %9206 = vmatmul.mubr.msk.bf16.vlgmr.msra.gmra.mrb[216].mxu1 %vm5389_vm1, %v7020_v2 }
 0x60e   : > { %9209 = vmatprep.mubr.msk.bf16.mxu1 %vm5389_vm1, %v7022_v44 }
 0x615   : > { %9210 = vmatmul.mubr.msk.bf16.gmra.mrb[220].mxu1 %vm5389_vm1, %v7024_v38 }
 0x616   : > { %9213 = vmatprep.mubr.msk.bf16.mxu1 %vm5389_vm1, %v7026_v27 }
 0x61d   : > { %9214 = vmatmul.mubr.msk.bf16.gmra.mrb[224].mxu1 %vm5389_vm1, %v7028_v35 }
 0x61e   : > { %9217 = vmatprep.mubr.msk.bf16.mxu1 %vm5389_vm1, %v7030_v14 }
 0x625   : > { %9218 = vmatmul.mubr.msk.bf16.gmra.mrb[228].mxu1 %vm5389_vm1, %v7032_v28  ;;  %vm7292_vm1 = vcmask 519170  }
 0x62e   : > { %v9015_v47 = vpop.f32.mrb[136].mxu1 }
 0x62f   : > { %v5448_v7 = vpop.f32.mrb[137].mxu1 }
 0x630   : > { %v9016_v0 = vpop.f32.mrb[138].mxu1 }
 0x631   : > { %v5451_v20 = vpop.f32.mrb[139].mxu1 }
 0x634   : > { %v12544_v36 = vpop.f32.mrb[156].mxu0 }
 0x635   : > { %v12546_v9 = vpop.f32.mrb[157].mxu0 }
 0x636   : > { %v12548_v46 = vpop.f32.mrb[158].mxu0 }
 0x637   : > { %v6040_v49 = vpop.f32.mrb[159].mxu0 }
 0x63e   : > { %v9019_v55 = vpop.f32.mrb[140].mxu1 }
 0x63f   : > { %v5463_v50 = vpop.f32.mrb[141].mxu1 }
 0x640   : > { %v9020_v31 = vpop.f32.mrb[142].mxu1 }
 0x641   : > { %v5465_v24 = vpop.f32.mrb[143].mxu1 }
 0x644   : > { %v9091_v30 = vpop.f32.mrb[160].mxu0 }
 0x645   : > { %v6052_v18 = vpop.f32.mrb[161].mxu0 }
 0x646   : > { %v12550_v60 = vpop.f32.mrb[162].mxu0 }
 0x647   : > { %v12552_v42 = vpop.f32.mrb[163].mxu0 }
 0x64e   : > { %v9023_v39 = vpop.f32.mrb[144].mxu1 }
 0x64f   : > { %v5477_v16 = vpop.f32.mrb[145].mxu1 }
 0x650   : > { %v9024_v62 = vpop.f32.mrb[146].mxu1 }
 0x651   : > { %v5480_v34 = vpop.f32.mrb[147].mxu1 }
 0x654   : > { %v12554_v15 = vpop.f32.mrb[164].mxu0 }
 0x655   : > { %v12556_v12 = vpop.f32.mrb[165].mxu0 }
 0x656   : > { %v9096_v22 = vpop.f32.mrb[166].mxu0 }
 0x657   : > { %v6069_v63 = vpop.f32.mrb[167].mxu0 }
 0x658   : > { %v9027_v37 = vpop.f32.mrb[148].mxu1 }
 0x659   : > { %v5491_v48 = vpop.f32.mrb[149].mxu1 }
 0x65a   : > { %v9028_v26 = vpop.f32.mrb[150].mxu1 }
 0x65b   : > { %v5494_v45 = vpop.f32.mrb[151].mxu1 }
 0x660   : > { %v9039_v17 = vpop.f32.mrb[152].mxu1 }
 0x661   : > { %v5587_v52 = vadd.f32 %v9039_v17, %v9015_v47  ;;  %v5579_v1 = vpop.f32.mrb[153].mxu1 }
 0x662   : > { %v5580_v61 = vadd.f32 %v5579_v1, %v5448_v7  ;;  %v9040_v21 = vpop.f32.mrb[154].mxu1  ;;  %v9099_v25 = vpop.f32.mrb[168].mxu0 }
 0x663   : > { %v5590_v6 = vadd.f32 %v9040_v21, %v9016_v0  ;;  %v5582_v4 = vpop.f32.mrb[155].mxu1  ;;  %v12558_v32 = vpop.f32.mrb[169].mxu0 }
 0x664   : > { %v12560_v43 = vpop.f32.mrb[170].mxu0 }
 0x665   : > { %v12562_v5 = vpop.f32.mrb[171].mxu0 }
 0x668   : > { %v9043_v59 = vpop.f32.mrb[156].mxu1 }
 0x669   : > { %v5594_v11 = vpop.f32.mrb[157].mxu1 }
 0x66a   : > { %v9044_v3 = vpop.f32.mrb[158].mxu1  ;;  %v12564_v19 = vpop.f32.mrb[172].mxu0 }
 0x66b   : > { %v5604_v13 = vadd.f32 %v9044_v3, %v9020_v31  ;;  %v5596_v29 = vpop.f32.mrb[159].mxu1  ;;  %v12566_v10 = vpop.f32.mrb[173].mxu0 }
 0x66c   : > { %v5597_v2 = vadd.f32 %v5596_v29, %v5465_v24  ;;  %v12568_v54 = vpop.f32.mrb[174].mxu0 }
 0x66d   : > { %v6459_v44 = vpop.f32.mrb[175].mxu0 }
 0x670   : > { %v9047_v58 = vpop.f32.mrb[160].mxu1 }
 0x671   : > { %v5616_v56 = vadd.f32 %v9047_v58, %v9023_v39  ;;  %v5608_v33 = vpop.f32.mrb[161].mxu1 }
 0x672   : > { %v5609_v38 = vadd.f32 %v5608_v33, %v5477_v16  ;;  %v9048_v8 = vpop.f32.mrb[162].mxu1  ;;  %v9139_v27 = vpop.f32.mrb[176].mxu0 }
 0x673   : > { %v5611_v41 = vpop.f32.mrb[163].mxu1  ;;  %v6471_v40 = vpop.f32.mrb[177].mxu0 }
 0x674   : > { %v12570_v57 = vpop.f32.mrb[178].mxu0 }
 0x675   : > { %v12572_v35 = vpop.f32.mrb[179].mxu0 }
 0x678   : > { %v9051_v23 = vpop.f32.mrb[164].mxu1 }
 0x679   : > { %v5622_v14 = vpop.f32.mrb[165].mxu1 }
 0x67a   : > { %v5623_v51 = vadd.f32 %v5622_v14, %v5491_v48  ;;  %v9052_v28 = vpop.f32.mrb[166].mxu1  ;;  %v12574_v47 = vpop.f32.mrb[180].mxu0 }
 0x67b   : > { %v5633_v7 = vadd.f32 %v9052_v28, %v9028_v26  ;;  %v5625_v0 = vpop.f32.mrb[167].mxu1  ;;  %v12576_v20 = vpop.f32.mrb[181].mxu0 }
 0x67c   : > { %v5626_v49 = vadd.f32 %v5625_v0, %v5494_v45  ;;  %v9144_v55 = vpop.f32.mrb[182].mxu0 }
 0x67d   : > { %v6488_v50 = vpop.f32.mrb[183].mxu0 }
 0x680   : > { %v9063_v31 = vpop.f32.mrb[168].mxu1 }
 0x681   : > { %v5861_v24 = vadd.f32 %v9063_v31, %v5587_v52  ;;  %v5803_v30 = vpop.f32.mrb[169].mxu1 }
 0x682   : > { %v5860_v18 = vadd.f32 %v5803_v30, %v5580_v61  ;;  %v9064_v39 = vpop.f32.mrb[170].mxu1  ;;  %v9147_v16 = vpop.f32.mrb[184].mxu0 }
 0x683   : > { %v5862_v62 = vadd.f32 %v9064_v39, %v5590_v6  ;;  %v5806_v34 = vpop.f32.mrb[171].mxu1  ;;  %v12578_v22 = vpop.f32.mrb[185].mxu0  ;;  %v6095_v63 = vadd.f32 %v12544_v36, %v5861_v24 }
 0x684   : > { %v12581_v37 = vpop.f32.mrb[186].mxu0  ;;  %v6094_v48 = vadd.f32 %v12546_v9, %v5860_v18 }
 0x685   : > { %v12584_v26 = vpop.f32.mrb[187].mxu0  ;;  %v6096_v45 = vadd.f32 %v12548_v46, %v5862_v62 }
 0x688   : > { %v9067_v17 = vpop.f32.mrb[172].mxu1 }
 0x689   : > { %v5818_v52 = vpop.f32.mrb[173].mxu1 }
 0x68a   : > { %v9068_v1 = vpop.f32.mrb[174].mxu1  ;;  %v12587_v61 = vpop.f32.mrb[188].mxu0 }
 0x68b   : > { %v5864_v21 = vadd.f32 %v9068_v1, %v5604_v13  ;;  %v5820_v25 = vpop.f32.mrb[175].mxu1  ;;  %v12589_v6 = vpop.f32.mrb[189].mxu0 }
 0x68c   : > { %v5863_v4 = vadd.f32 %v5820_v25, %v5597_v2  ;;  %v12591_v59 = vpop.f32.mrb[190].mxu0 }
 0x68d   : > { %v6884_v36 = vpop.f32.mrb[191].mxu0  ;;  %v6098_v11 = vadd.f32 %v12550_v60, %v5864_v21 }
 0x68e   : > { %v6097_v9 = vadd.f32 %v12552_v42, %v5863_v4 }
 0x690   : > { %v9071_v3 = vpop.f32.mrb[176].mxu1 }
 0x691   : > { %v5866_v29 = vadd.f32 %v9071_v3, %v5616_v56  ;;  %v5832_v46 = vpop.f32.mrb[177].mxu1 }
 0x692   : > { %v5865_v44 = vadd.f32 %v5832_v46, %v5609_v38  ;;  %v9072_v58 = vpop.f32.mrb[178].mxu1  ;;  %v9187_v33 = vpop.f32.mrb[192].mxu0 }
 0x693   : > { %v5835_v8 = vpop.f32.mrb[179].mxu1  ;;  %v6896_v27 = vpop.f32.mrb[193].mxu0  ;;  %v6100_v13 = vadd.f32 %v12554_v15, %v5866_v29 }
 0x694   : > { %v12596_v41 = vpop.f32.mrb[194].mxu0  ;;  %v6099_v2 = vadd.f32 %v12556_v12, %v5865_v44 }
 0x695   : > { %v12599_v40 = vpop.f32.mrb[195].mxu0 }
 0x698   : > { %v9075_v23 = vpop.f32.mrb[180].mxu1 }
 0x699   : > { %v5846_v60 = vpop.f32.mrb[181].mxu1 }
 0x69a   : > { %v5867_v14 = vadd.f32 %v5846_v60, %v5623_v51  ;;  %v9076_v42 = vpop.f32.mrb[182].mxu1  ;;  %v12601_v28 = vpop.f32.mrb[196].mxu0 }
 0x69b   : > { %v5869_v56 = vadd.f32 %v9076_v42, %v5633_v7  ;;  %v5849_v38 = vpop.f32.mrb[183].mxu1  ;;  %v12603_v0 = vpop.f32.mrb[197].mxu0 }
 0x69c   : > { %v5868_v55 = vadd.f32 %v5849_v38, %v5626_v49  ;;  %v9192_v50 = vpop.f32.mrb[198].mxu0  ;;  %v6101_v15 = vadd.f32 %v12558_v32, %v5867_v14 }
 0x69d   : > { %v6913_v31 = vpop.f32.mrb[199].mxu0  ;;  %v6103_v24 = vadd.f32 %v12560_v43, %v5869_v56 }
 0x69e   : > { %v6102_v12 = vadd.f32 %v12562_v5, %v5868_v55 }
 0x6a0   : > { %v9111_v30 = vpop.f32.mrb[184].mxu1 }
 0x6a1   : > { %v6332_v18 = vadd.f32 %v9111_v30, %v6095_v63  ;;  %v6274_v39 = vpop.f32.mrb[185].mxu1 }
 0x6a2   : > { %v6331_v51 = vadd.f32 %v6274_v39, %v6094_v48  ;;  %v9112_v16 = vpop.f32.mrb[186].mxu1  ;;  %v9195_v62 = vpop.f32.mrb[200].mxu0 }
 0x6a3   : > { %v6333_v34 = vadd.f32 %v9112_v16, %v6096_v45  ;;  %v6277_v7 = vpop.f32.mrb[187].mxu1  ;;  %v12608_v17 = vpop.f32.mrb[201].mxu0  ;;  %v6514_v49 = vadd.f32 %v12564_v19, %v6332_v18 }
 0x6a4   : > { %v12611_v52 = vpop.f32.mrb[202].mxu0  ;;  %v6513_v32 = vadd.f32 %v12566_v10, %v6331_v51 }
 0x6a5   : > { %v12614_v1 = vpop.f32.mrb[203].mxu0  ;;  %v6515_v43 = vadd.f32 %v12568_v54, %v6333_v34 }
 0x6a8   : > { %v9115_v5 = vpop.f32.mrb[188].mxu1 }
 0x6a9   : > { %v6289_v63 = vpop.f32.mrb[189].mxu1 }
 0x6aa   : > { %v9116_v21 = vpop.f32.mrb[190].mxu1 }
 0x6ab   : > { %v6335_v48 = vadd.f32 %v9116_v21, %v6098_v11  ;;  %v6291_v25 = vpop.f32.mrb[191].mxu1 }
 0x6ac   : > { %v6334_v4 = vadd.f32 %v6291_v25, %v6097_v9 }
 0x6ad   : > { %v6517_v45 = vadd.f32 %v12570_v57, %v6335_v48 }
 0x6ae   : > { %v6516_v36 = vadd.f32 %v12572_v35, %v6334_v4 }
 0x6b0   : > { %v9119_v3 = vpop.f32.mrb[192].mxu1 }
 0x6b1   : > { %v6337_v19 = vadd.f32 %v9119_v3, %v6100_v13  ;;  %v6303_v29 = vpop.f32.mrb[193].mxu1 }
 0x6b2   : > { %v6336_v46 = vadd.f32 %v6303_v29, %v6099_v2  ;;  %v9120_v44 = vpop.f32.mrb[194].mxu1 }
 0x6b3   : > { %v6306_v10 = vpop.f32.mrb[195].mxu1  ;;  %v6519_v58 = vadd.f32 %v12574_v47, %v6337_v19 }
 0x6b4   : > { %v6518_v54 = vadd.f32 %v12576_v20, %v6336_v46  ;;  %v7212_v10 = vld [vmem:[%s12654_s19] sm:$0xf] }
 0x6b8   : > { %v9123_v33 = vpop.f32.mrb[196].mxu1 }
 0x6b9   : > { %v6317_v8 = vpop.f32.mrb[197].mxu1 }
 0x6ba   : > { %v6338_v27 = vadd.f32 %v6317_v8, %v6101_v15  ;;  %v9124_v11 = vpop.f32.mrb[198].mxu1 }
 0x6bb   : > { %v6340_v23 = vadd.f32 %v9124_v11, %v6103_v24  ;;  %v6320_v9 = vpop.f32.mrb[199].mxu1 }
 0x6bc   : > { %v6339_v60 = vadd.f32 %v6320_v9, %v6102_v12  ;;  %v6520_v57 = vadd.f32 %v12578_v22, %v6338_v27 }
 0x6bd   : > { %v6522_v35 = vadd.f32 %v12581_v37, %v6340_v23 }
 0x6be   : > { %v6521_v13 = vadd.f32 %v12584_v26, %v6339_v60 }
 0x6c0   : > { %v9159_v2 = vpop.f32.mrb[200].mxu1 }
 0x6c1   : > { %v6727_v14 = vadd.f32 %v9159_v2, %v6514_v49  ;;  %v6669_v42 = vpop.f32.mrb[201].mxu1 }
 0x6c2   : > { %v6726_v56 = vadd.f32 %v6669_v42, %v6513_v32  ;;  %v9160_v47 = vpop.f32.mrb[202].mxu1 }
 0x6c3   : > { %v6728_v38 = vadd.f32 %v9160_v47, %v6515_v43  ;;  %v6672_v20 = vpop.f32.mrb[203].mxu1  ;;  %v6939_v55 = vadd.f32 %v12587_v61, %v6727_v14 }
 0x6c4   : > { %v6938_v50 = vadd.f32 %v12589_v6, %v6726_v56 }
 0x6c5   : > { %v6940_v15 = vadd.f32 %v12591_v59, %v6728_v38 }
 0x6c8   : > { %v9163_v31 = vpop.f32.mrb[204].mxu1 }
 0x6c9   : > { %v6684_v24 = vpop.f32.mrb[205].mxu1 }
 0x6ca   : > { %v9164_v22 = vpop.f32.mrb[206].mxu1 }
 0x6cb   : > { %v6730_v12 = vadd.f32 %v9164_v22, %v6517_v45  ;;  %v6686_v37 = vpop.f32.mrb[207].mxu1 }
 0x6cc   : > { %v6729_v30 = vadd.f32 %v6686_v37, %v6516_v36 }
 0x6cd   : > { %v6942_v26 = vadd.f32 %v12596_v41, %v6730_v12 }
 0x6ce   : > { %v6941_v18 = vadd.f32 %v12599_v40, %v6729_v30 }
 0x6d0   : > { %v9167_v39 = vpop.f32.mrb[208].mxu1 }
 0x6d1   : > { %v6732_v51 = vadd.f32 %v9167_v39, %v6519_v58  ;;  %v6698_v16 = vpop.f32.mrb[209].mxu1 }
 0x6d2   : > { %v6731_v62 = vadd.f32 %v6698_v16, %v6518_v54  ;;  %v9168_v34 = vpop.f32.mrb[210].mxu1 }
 0x6d3   : > { %v6701_v61 = vpop.f32.mrb[211].mxu1  ;;  %v12630_v6 = vadd.f32 %v12601_v28, %v6732_v51 }
 0x6d4   : > { %v12633_v59 = vadd.f32 %v12603_v0, %v6731_v62  ;;  %v12647_v0 = vld [vmem:[%s12727_s6] ss:$0 sm:$0xff] }
 0x6d8   : > { %v9171_v7 = vpop.f32.mrb[212].mxu1 }
 0x6d9   : > { %v6712_v49 = vpop.f32.mrb[213].mxu1 }
 0x6da   : > { %v6733_v32 = vadd.f32 %v6712_v49, %v6520_v57  ;;  %v9172_v43 = vpop.f32.mrb[214].mxu1 }
 0x6db   : > { %v6735_v41 = vadd.f32 %v9172_v43, %v6522_v35  ;;  %v6715_v5 = vpop.f32.mrb[215].mxu1 }
 0x6dc   : > { %v6734_v40 = vadd.f32 %v6715_v5, %v6521_v13  ;;  %v12636_v63 = vadd.f32 %v12608_v17, %v6733_v32 }
 0x6dd   : > { %v12639_v21 = vadd.f32 %v12611_v52, %v6735_v41 }
 0x6de   : > { %v12642_v48 = vadd.f32 %v12614_v1, %v6734_v40 }
 0x6e0   : > { %v9207_v28 = vpop.f32.mrb[216].mxu1 }
 0x6e1   : > { %v7173_v25 = vadd.f32 %v9207_v28, %v6939_v55  ;;  %v7115_v4 = vpop.f32.mrb[217].mxu1 }
 0x6e2   : > { %v7172_v45 = vadd.f32 %v7115_v4, %v6938_v50  ;;  %v9208_v36 = vpop.f32.mrb[218].mxu1 }
 0x6e3   : > { %v7190_v17 = vadd.f32 %v12647_v0, %v7173_v25  ;;  %v7174_v3 = vadd.f32 %v9208_v36, %v6940_v15  ;;  %v7118_v19 = vpop.f32.mrb[219].mxu1  ;;  %v7312_v36 = vld [vmem:[%s12654_s19 + $0x10] sm:$0x3] }
 0x6e4   : > { %v7189_v52 = vadd.f32 %v12647_v0, %v7172_v45 }
 0x6e5   : > { %v7200_v1 = vmax.f32 %v7190_v17, 0.0  ;;  %v7191_v29 = vadd.f32 %v12647_v0, %v7174_v3 }
 0x6e6   : > { %v7199_v46 = vmax.f32 %v7189_v52, 0.0 }
 0x6e7   : > { %v7912_v44 = vpack.c.bf16 %v7200_v1, %v7200_v1  ;;  %v7201_v58 = vmax.f32 %v7191_v29, 0.0 }
 0x6e8   : > { %v7209_v54 = vpack.c.bf16 %v7199_v46, %v7199_v46  ;;  %v9211_v33 = vpop.f32.mrb[220].mxu1 }
 0x6e9   : > { %v7224_v8 = vshll.u32 %v7912_v44, 16  ;;  %v7227_v27 = vshrl.u32 %v7912_v44, 16  ;;  %v7913_v11 = vpack.c.bf16 %v7201_v58, %v7201_v58  ;;  %v7130_v23 = vpop.f32.mrb[221].mxu1 }
 0x6ea   : > { %v7213_v9 = vsel %vm7211_vm2, %v7209_v54, %v7212_v10  ;;  %v9212_v60 = vpop.f32.mrb[222].mxu1  ;;  %vm7272_vm2 = vsmask.f32 4368 }
 0x6eb   : > { %v7226_v57 = vrot.slane %v7224_v8, 7  ;;  %v7229_v35 = vrot.slane %v7227_v27, 6  ;;  %7214 = vst [vmem:[%s12654_s19] sm:$0xf] %v7213_v9  ;;  %v7233_v13 = vshrl.u32 %v7913_v11, 16  ;;  %v7236_v2 = vshll.u32 %v7913_v11, 16  ;;  %v7132_v14 = vpop.f32.mrb[223].mxu1  ;;  %vm7273_vm8 = vmor %vm4537_vm3, %vm7272_vm2 }
 0x6ec   : > { %v7176_v42 = vadd.f32 %v9212_v60, %v6942_v26  ;;  %v7175_v56 = vadd.f32 %v7132_v14, %v6941_v18  ;;  %vm7344_vm3 = vcmask 519169  }
 0x6ed   : > { %v7230_v47 = vor.u32 %v7229_v35, %v7226_v57  ;;  %v7235_v38 = vrot.slane %v7233_v13, 6  ;;  %v7238_v20 = vrot.slane %v7236_v2, 7 }
 0x6ee   : > { %v7193_v55 = vadd.f32 %v12647_v0, %v7176_v42  ;;  %v7192_v50 = vadd.f32 %v12647_v0, %v7175_v56 }
 0x6ef   : > { %v7231_v15 = vrot.slane %v7230_v47, 4  ;;  %v7239_v31 = vor.u32 %v7238_v20, %v7235_v38 }
 0x6f0   : > { %v7203_v24 = vmax.f32 %v7193_v55, 0.0  ;;  %v7202_v22 = vmax.f32 %v7192_v50, 0.0  ;;  %v9215_v12 = vpop.f32.mrb[224].mxu1 }
 0x6f1   : > { %v7240_v37 = vsel %vm7222_vm13, %v7231_v15, %v7239_v31  ;;  %v7178_v30 = vadd.f32 %v9215_v12, %v12630_v6  ;;  %v7144_v26 = vpop.f32.mrb[225].mxu1  ;;  %v7263_v6 = vld [vmem:[%s12654_s19 + $0x8] sm:$0x7]  ;;  %v7362_v15 = vld [vmem:[%s12654_s19 + $0x18] sm:$0x1] }
 0x6f2   : > { %v7915_v18 = vpack.c.bf16 %v7203_v24, %v7203_v24  ;;  %v7246_v39 = vld [vmem:[%s12654_s19] sm:$0x8]  ;;  %7250 = vst.msk [vmem:[%s12654_s19 + $0x4] sm:$0x7] %vm7249_vm14, %v7240_v37  ;;  %v7914_v51 = vpack.c.bf16 %v7202_v22, %v7202_v22  ;;  %v7177_v16 = vadd.f32 %v7144_v26, %v12633_v59  ;;  %v9216_v62 = vpop.f32.mrb[226].mxu1  ;;  %vm7322_vm14 = vmor %vm1771_vm6, %vm7321_vm12 }
 0x6f3   : > { %v7247_v34 = vsel %vm7245_vm15, %v7226_v57, %v7246_v39  ;;  %v7195_v61 = vadd.f32 %v12647_v0, %v7178_v30  ;;  %v7147_v7 = vpop.f32.mrb[227].mxu1  ;;  %vm7345_vm13 = vsmask.f32 7942 }
 0x6f4   : > { %7248 = vst [vmem:[%s12654_s19] sm:$0x8] %v7247_v34  ;;  %v7255_v49 = vrot.slane %v7914_v51, 5  ;;  %v7194_v32 = vadd.f32 %v12647_v0, %v7177_v16  ;;  %v7275_v41 = vshrl.u32 %v7915_v18, 16  ;;  %v7278_v27 = vshll.u32 %v7915_v18, 16  ;;  %vm7346_vm15 = vmand %vm7344_vm3, %vm7345_vm13 }
 0x6f5   : > { %v7205_v43 = vmax.f32 %v7195_v61, 0.0 }
 0x6f6   : > { %v7256_v5 = vrot.slane %v7255_v49, 4  ;;  %7260 = vst.msk [vmem:[%s12654_s19 + $0x4] sm:$0x8] %vm7243_vm10, %v7255_v49  ;;  %v7204_v59 = vmax.f32 %v7194_v32, 0.0  ;;  %v7277_v3 = vrot.slane %v7275_v41, 7  ;;  %vm7294_vm10 = vmand %vm7292_vm1, %vm7293_vm9 }
 0x6f7   : > { %v7917_v40 = vpack.c.bf16 %v7205_v43, %v7205_v43 }
 0x6f8   : > { %v7264_v28 = vsel %vm7262_vm5, %v7256_v5, %v7263_v6  ;;  %v7916_v25 = vpack.c.bf16 %v7204_v59, %v7204_v59  ;;  %v9219_v4 = vpop.f32.mrb[228].mxu1 }
 0x6f9   : > { %7265 = vst [vmem:[%s12654_s19 + $0x8] sm:$0x7] %v7264_v28  ;;  %v7304_v45 = vrot.slane %v7917_v40, 6  ;;  %v7158_v17 = vpop.f32.mrb[229].mxu1 }
 0x6fa   : > { %v7283_v52 = vshrl.u32 %v7916_v25, 16  ;;  %v7179_v1 = vadd.f32 %v7158_v17, %v12636_v63  ;;  %v9220_v29 = vpop.f32.mrb[230].mxu1  ;;  %v7286_v54 = vshll.u32 %v7916_v25, 16 }
 0x6fb   : > { %v7305_v46 = vrot.slane %v7304_v45, 4  ;;  %7309 = vst.msk [vmem:[%s12654_s19 + $0xc] sm:$0xc] %vm7292_vm1, %v7304_v45  ;;  %v7181_v44 = vadd.f32 %v9220_v29, %v12639_v21  ;;  %v7161_v10 = vpop.f32.mrb[231].mxu1  ;;  %v7281_v21 = vrot.slane %v7277_v3, 4 }
 0x6fc   : > { %v7285_v58 = vrot.slane %v7283_v52, 7  ;;  %v7196_v33 = vadd.f32 %v12647_v0, %v7179_v1  ;;  %v7180_v8 = vadd.f32 %v7161_v10, %v12642_v48  ;;  %v7280_v48 = vor.u32 %v7278_v27, %v7277_v3 }
 0x6fd   : > { %v7313_v63 = vsel %vm12684_vm4, %v7305_v46, %v7312_v36  ;;  %v7198_v11 = vadd.f32 %v12647_v0, %v7181_v44 }
 0x6fe   : > { %7314 = vst [vmem:[%s12654_s19 + $0x10] sm:$0x3] %v7313_v63  ;;  %v7288_v23 = vor.u32 %v7286_v54, %v7285_v58  ;;  %v7206_v9 = vmax.f32 %v7196_v33, 0.0  ;;  %v7197_v60 = vadd.f32 %v12647_v0, %v7180_v8 }
 0x6ff   : > { %v7208_v57 = vmax.f32 %v7198_v11, 0.0 }
 0x700   : > { %v7295_v35 = vld [vmem:[%s12654_s19 + $0x8] sm:$0xc]  ;;  %v7289_v13 = vsel %vm7273_vm8, %v7281_v21, %v7288_v23  ;;  %v7918_v2 = vpack.c.bf16 %v7206_v9, %v7206_v9  ;;  %v7207_v14 = vmax.f32 %v7197_v60, 0.0 }
 0x701   : > { %v7296_v42 = vsel %vm7294_vm10, %v7280_v48, %v7295_v35  ;;  %7299 = vst.msk [vmem:[%s12654_s19 + $0xc] sm:$0x3] %vm7298_vm0, %v7289_v13  ;;  %v7920_v56 = vpack.c.bf16 %v7208_v57, %v7208_v57 }
 0x702   : > { %7297 = vst [vmem:[%s12654_s19 + $0x8] sm:$0xc] %v7296_v42  ;;  %v7324_v47 = vshrl.u32 %v7918_v2, 16  ;;  %v7327_v38 = vshll.u32 %v7918_v2, 16  ;;  %v7919_v20 = vpack.c.bf16 %v7207_v14, %v7207_v14 }
 0x703   : > { %v7356_v55 = vrot.slane %v7920_v56, 7 }
 0x704   : > { %v7326_v0 = vrot.slane %v7324_v47, 4  ;;  %v7329_v50 = vrot.slane %v7327_v38, 5  ;;  %v7333_v31 = vshll.u32 %v7919_v20, 16  ;;  %v7337_v24 = vshrl.u32 %v7919_v20, 16 }
 0x705   : > { %v7357_v22 = vrot.slane %v7356_v55, 4  ;;  %7361 = vst.msk [vmem:[%s12654_s19 + $0x14] sm:$0xe] %vm7344_vm3, %v7356_v55  ;;  %v7347_v62 = vld [vmem:[%s12654_s19 + $0x10] sm:$0xe] }
 0x706   : > { %v7330_v12 = vor.u32 %v7329_v50, %v7326_v0  ;;  %v7335_v37 = vrot.slane %v7333_v31, 5  ;;  %v7339_v30 = vrot.slane %v7337_v24, 4 }
 0x707   : > { %v7363_v26 = vsel %vm12310_vm11, %v7357_v22, %v7362_v15 }
 0x708   : > { %v7331_v18 = vrot.slane %v7330_v12, 4  ;;  %7364 = vst [vmem:[%s12654_s19 + $0x18] sm:$0x1] %v7363_v26  ;;  %v7340_v39 = vor.u32 %v7339_v30, %v7335_v37 }
 0x70a   : > { %v7336_v51 = vsel %vm7322_vm14, %v7331_v18, %v7335_v37  ;;  %v7341_v16 = vrot.slane %v7340_v39, 4 }
 0x70b   : > { %v7348_v34 = vsel %vm7346_vm15, %v7336_v51, %v7347_v62 }
 0x70c   : > { %7349 = vst [vmem:[%s12654_s19 + $0x10] sm:$0xe] %v7348_v34  ;;  %7351 = vst.msk [vmem:[%s12654_s19 + $0x14] sm:$0x1] %vm5225_vm7, %v7341_v16 }
 0x70d PF: > { %s17_s24 = sadd.s32 1, %s9416_s24  }
 0x70e   : > { %p14_p4 = scmp.ge.s32.totalorder %s17_s24, 4  }
 0x710   :  { %16 = sbr.rel (!%p14_p4) target bundleno = 1 (0x1), region = 78 }

// kernel: dqn_forward.3
= control target key start
LH: loop header
LB: loop body
LE: loop exit
PB: predicated region body
PF: predicated region fallthrough
CT: control target
= control target key end

     0   :  { %v812_v36 = vlaneseq  ;;  %v8581_v37 = vmov 1966171168   ;;  %s11223_s0 = inlined_call_operand.vmem [shape: bf16[2,3136], index: 0, kind: input, shape index: {}]   ;;  %s11224_s1 = inlined_call_operand.vmem [shape: bf16[3136,512], index: 1, kind: input, shape index: {}]   ;;  %s11225_s2 = inlined_call_operand.vmem [shape: f32[1,512], index: 2, kind: input, shape index: {}]   ;;  %s11226_s3 = inlined_call_operand.vmem [shape: bf16[512,128], index: 3, kind: input, shape index: {}]   ;;  %s11227_s4 = inlined_call_operand.vmem [shape: f32[1,128], index: 4, kind: input, shape index: {}]   ;;  %s11228_s5 = inlined_call_operand.hbm [shape: f32[2,128], index: 5, kind: output, shape index: {}]  }
   0x1   :  { %v7344_v0 = vld [vmem:[%s11224_s1 + $0x4] ss:$16 sps:$4 sm:$0xff]   ;;  %v7346_v1 = vld [vmem:[%s11224_s1 + $0xc] ss:$16 sps:$4 sm:$0xff]   ;;  %v7348_v2 = vld [vmem:[%s11224_s1] ss:$16 sps:$4 sm:$0xff]   ;;  %v838_v38 = vunpack.c.l.s4 %v8581_v37 }
   0x2   :  { %4945 = vmatprep.subr.bf16.mxu0 %v7344_v0  ;;  %v7349_v3 = vld [vmem:[%s11224_s1 + $0x8] ss:$16 sps:$4 sm:$0xff]   ;;  %5478 = vmatprep.subr.bf16.mxu1 %v7346_v1  ;;  %v7350_v4 = vld [vmem:[%s11224_s1 + $0x24] ss:$16 sps:$4 sm:$0xff]   ;;  %v7352_v5 = vld [vmem:[%s11224_s1 + $0x2c] ss:$16 sps:$4 sm:$0xff]  }
   0x3   :  { %4946 = vmatpush1.bf16.msra.mxu0 %v7348_v2  ;;  %5479 = vmatpush1.bf16.msra.mxu1 %v7349_v3  ;;  %v7354_v6 = vld [vmem:[%s11224_s1 + $0x20] ss:$16 sps:$4 sm:$0xff]   ;;  %v7355_v7 = vld [vmem:[%s11224_s1 + $0x28] ss:$16 sps:$4 sm:$0xff]   ;;  %v7356_v8 = vld [vmem:[%s11224_s1 + $0x44] ss:$16 sps:$4 sm:$0xff]   ;;  %v839_v43 = vunpack.c.0.s8 %v838_v38 }
   0x4   :  { %4947 = vmatprep.subr.bf16.mxu0 %v7350_v4  ;;  %5480 = vmatprep.subr.bf16.mxu1 %v7352_v5  ;;  %v7358_v9 = vld [vmem:[%s11224_s1 + $0x4c] ss:$16 sps:$4 sm:$0xff]   ;;  %v7360_v10 = vld [vmem:[%s11224_s1 + $0x40] ss:$16 sps:$4 sm:$0xff]   ;;  %v7361_v11 = vld [vmem:[%s11224_s1 + $0x48] ss:$16 sps:$4 sm:$0xff]  }
   0x5   :  { %v7362_v12 = vld [vmem:[%s11224_s1 + $0x64] ss:$16 sps:$4 sm:$0xff]   ;;  %v7364_v13 = vld [vmem:[%s11224_s1 + $0x6c] ss:$16 sps:$4 sm:$0xff]   ;;  %v7366_v14 = vld [vmem:[%s11224_s1 + $0x60] ss:$16 sps:$4 sm:$0xff]  }
   0x6   :  { %v7367_v15 = vld [vmem:[%s11224_s1 + $0x68] ss:$16 sps:$4 sm:$0xff]   ;;  %v7368_v16 = vld [vmem:[%s11224_s1 + $0x84] ss:$16 sps:$4 sm:$0xff]   ;;  %v7370_v17 = vld [vmem:[%s11224_s1 + $0x8c] ss:$16 sps:$4 sm:$0xff]  }
   0x7   :  { %4948 = vmatpush1.bf16.msra.mxu0 %v7354_v6  ;;  %5481 = vmatpush1.bf16.msra.mxu1 %v7355_v7  ;;  %v7372_v18 = vld [vmem:[%s11224_s1 + $0x80] ss:$16 sps:$4 sm:$0xff]   ;;  %v7373_v19 = vld [vmem:[%s11224_s1 + $0x88] ss:$16 sps:$4 sm:$0xff]   ;;  %v7374_v20 = vld [vmem:[%s11224_s1 + $0xa4] ss:$16 sps:$4 sm:$0xff]  }
   0x8   :  { %4949 = vmatprep.subr.bf16.mxu0 %v7356_v8  ;;  %5482 = vmatprep.subr.bf16.mxu1 %v7358_v9  ;;  %v7376_v21 = vld [vmem:[%s11224_s1 + $0xac] ss:$16 sps:$4 sm:$0xff]   ;;  %v7378_v22 = vld [vmem:[%s11224_s1 + $0xa0] ss:$16 sps:$4 sm:$0xff]   ;;  %v7379_v23 = vld [vmem:[%s11224_s1 + $0xa8] ss:$16 sps:$4 sm:$0xff]  }
   0x9   :  { %v7380_v24 = vld [vmem:[%s11224_s1 + $0xc4] ss:$16 sps:$4 sm:$0xff]   ;;  %v7382_v25 = vld [vmem:[%s11224_s1 + $0xcc] ss:$16 sps:$4 sm:$0xff]   ;;  %v7384_v26 = vld [vmem:[%s11224_s1 + $0xc0] ss:$16 sps:$4 sm:$0xff]  }
   0xa   :  { %v7385_v27 = vld [vmem:[%s11224_s1 + $0xc8] ss:$16 sps:$4 sm:$0xff]   ;;  %v7386_v28 = vld [vmem:[%s11224_s1 + $0xe4] ss:$16 sps:$4 sm:$0xff]   ;;  %v7388_v29 = vld [vmem:[%s11224_s1 + $0xec] ss:$16 sps:$4 sm:$0xff]  }
   0xb   :  { %4950 = vmatpush1.bf16.msra.mxu0 %v7360_v10  ;;  %5483 = vmatpush1.bf16.msra.mxu1 %v7361_v11  ;;  %v7390_v30 = vld [vmem:[%s11224_s1 + $0xe0] ss:$16 sps:$4 sm:$0xff]   ;;  %v7391_v31 = vld [vmem:[%s11224_s1 + $0xe8] ss:$16 sps:$4 sm:$0xff]   ;;  %v7392_v32 = vld [vmem:[%s11224_s1 + $0x104] ss:$16 sps:$4 sm:$0xff]  }
   0xc   :  { %4951 = vmatprep.subr.bf16.mxu0 %v7362_v12  ;;  %5484 = vmatprep.subr.bf16.mxu1 %v7364_v13  ;;  %v7394_v33 = vld [vmem:[%s11224_s1 + $0x10c] ss:$16 sps:$4 sm:$0xff]   ;;  %v7396_v34 = vld [vmem:[%s11224_s1 + $0x100] ss:$16 sps:$4 sm:$0xff]   ;;  %v7397_v35 = vld [vmem:[%s11224_s1 + $0x108] ss:$16 sps:$4 sm:$0xff]  }
   0xd   :  { %v7398_v39 = vld [vmem:[%s11224_s1 + $0x124] ss:$16 sps:$4 sm:$0xff]   ;;  %v7400_v40 = vld [vmem:[%s11224_s1 + $0x12c] ss:$16 sps:$4 sm:$0xff]   ;;  %v7402_v41 = vld [vmem:[%s11224_s1 + $0x120] ss:$16 sps:$4 sm:$0xff]  }
   0xe   :  { %v8731_v42 = vshrl.u32 %v812_v36, 7  ;;  %v7403_v44 = vld [vmem:[%s11224_s1 + $0x128] ss:$16 sps:$4 sm:$0xff]   ;;  %v7404_v45 = vld [vmem:[%s11224_s1 + $0x144] ss:$16 sps:$4 sm:$0xff]  }
   0xf   :  { %4952 = vmatpush1.bf16.msra.mxu0 %v7366_v14  ;;  %5485 = vmatpush1.bf16.msra.mxu1 %v7367_v15  ;;  %v7406_v46 = vld [vmem:[%s11224_s1 + $0x14c] ss:$16 sps:$4 sm:$0xff]   ;;  %v7408_v47 = vld [vmem:[%s11224_s1 + $0x140] ss:$16 sps:$4 sm:$0xff]   ;;  %v7409_v48 = vld [vmem:[%s11224_s1 + $0x148] ss:$16 sps:$4 sm:$0xff]  }
  0x10   :  { %4953 = vmatprep.subr.bf16.mxu0 %v7368_v16  ;;  %5486 = vmatprep.subr.bf16.mxu1 %v7370_v17  ;;  %v8749_v49 = vsub.s32 %v839_v43, %v8731_v42  ;;  %v7410_v50 = vld [vmem:[%s11224_s1 + $0x164] ss:$16 sps:$4 sm:$0xff]   ;;  %v7412_v51 = vld [vmem:[%s11224_s1 + $0x16c] ss:$16 sps:$4 sm:$0xff]   ;;  %v7414_v53 = vld [vmem:[%s11224_s1 + $0x160] ss:$16 sps:$4 sm:$0xff]  }
  0x11   :  { %v8760_v52 = vld [vmem:[%s11223_s0] sm:$0xff]  ;;  %v7415_v55 = vld [vmem:[%s11224_s1 + $0x168] ss:$16 sps:$4 sm:$0xff]   ;;  %v7418_v57 = vld [vmem:[%s11224_s1 + $0x18c] ss:$16 sps:$4 sm:$0xff]  }
  0x12   :  { %v843_v54 = vrot.slane %v8760_v52, %v8749_v49  ;;  %v7416_v56 = vld [vmem:[%s11224_s1 + $0x184] ss:$16 sps:$4 sm:$0xff]   ;;  %v7420_v59 = vld [vmem:[%s11224_s1 + $0x180] ss:$16 sps:$4 sm:$0xff]   ;;  %v7421_v61 = vld [vmem:[%s11224_s1 + $0x188] ss:$16 sps:$4 sm:$0xff]  }
  0x13   :  { %4954 = vmatpush1.bf16.msra.mxu0 %v7372_v18  ;;  %5487 = vmatpush1.bf16.msra.mxu1 %v7373_v19  ;;  %v7422_v62 = vld [vmem:[%s11224_s1 + $0x1a4] ss:$16 sps:$4 sm:$0xff]   ;;  %v7424_v63 = vld [vmem:[%s11224_s1 + $0x1ac] ss:$16 sps:$4 sm:$0xff]   ;;  %v7426_v0 = vld [vmem:[%s11224_s1 + $0x1a0] ss:$16 sps:$4 sm:$0xff]  }
  0x14   :  { %4955 = vmatprep.subr.bf16.mxu0 %v7374_v20  ;;  %5488 = vmatprep.subr.bf16.mxu1 %v7376_v21  ;;  %v851_v58 = vcombine.high %v843_v54, %v843_v54  ;;  %v7427_v1 = vld [vmem:[%s11224_s1 + $0x1a8] ss:$16 sps:$4 sm:$0xff]   ;;  %v7428_v2 = vld [vmem:[%s11224_s1 + $0x1c4] ss:$16 sps:$4 sm:$0xff]   ;;  %v7430_v3 = vld [vmem:[%s11224_s1 + $0x1cc] ss:$16 sps:$4 sm:$0xff]   ;;  %v8829_v13 = vrot.slane %v843_v54, %v8749_v49 }
  0x15   :  { %v7432_v4 = vld [vmem:[%s11224_s1 + $0x1c0] ss:$16 sps:$4 sm:$0xff]   ;;  %v7433_v5 = vld [vmem:[%s11224_s1 + $0x1c8] ss:$16 sps:$4 sm:$0xff]   ;;  %v7434_v6 = vld [vmem:[%s11224_s1 + $0x1e4] ss:$16 sps:$4 sm:$0xff]  }
  0x16   :  { %v873_v60 = vrot.slane %v851_v58, %v8749_v49  ;;  %v7436_v7 = vld [vmem:[%s11224_s1 + $0x1ec] ss:$16 sps:$4 sm:$0xff]   ;;  %v7438_v8 = vld [vmem:[%s11224_s1 + $0x1e0] ss:$16 sps:$4 sm:$0xff]   ;;  %v7439_v9 = vld [vmem:[%s11224_s1 + $0x1e8] ss:$16 sps:$4 sm:$0xff]  }
  0x17   :  { %4956 = vmatpush1.bf16.msra.mxu0 %v7378_v22  ;;  %5489 = vmatpush1.bf16.msra.mxu1 %v7379_v23  ;;  %v7442_v10 = vld [vmem:[%s11224_s1 + $0x204] ss:$16 sps:$4 sm:$0xff]   ;;  %v7445_v11 = vld [vmem:[%s11224_s1 + $0x20c] ss:$16 sps:$4 sm:$0xff]   ;;  %v7440_v12 = vld [vmem:[%s11224_s1 + $0x200] ss:$16 sps:$4 sm:$0xff]  }
  0x18   :  { %4957 = vmatprep.subr.bf16.mxu0 %v7380_v24  ;;  %5490 = vmatprep.subr.bf16.mxu1 %v7382_v25  ;;  %v7443_v14 = vld [vmem:[%s11224_s1 + $0x208] ss:$16 sps:$4 sm:$0xff]   ;;  %v7448_v15 = vld [vmem:[%s11224_s1 + $0x224] ss:$16 sps:$4 sm:$0xff]   ;;  %v7451_v16 = vld [vmem:[%s11224_s1 + $0x22c] ss:$16 sps:$4 sm:$0xff]   ;;  %v883_v17 = vcombine.high %v873_v60, %v873_v60 }
  0x19   :  { %4977 = vmatprep.mubr.bf16.mxu0 %v873_v60  ;;  %5510 = vmatprep.mubr.bf16.mxu1 %v873_v60  ;;  %v7446_v18 = vld [vmem:[%s11224_s1 + $0x220] ss:$16 sps:$4 sm:$0xff]   ;;  %v7449_v19 = vld [vmem:[%s11224_s1 + $0x228] ss:$16 sps:$4 sm:$0xff]   ;;  %v7454_v20 = vld [vmem:[%s11224_s1 + $0x244] ss:$16 sps:$4 sm:$0xff]  }
  0x1a   :  { %v7457_v21 = vld [vmem:[%s11224_s1 + $0x24c] ss:$16 sps:$4 sm:$0xff]   ;;  %v7452_v22 = vld [vmem:[%s11224_s1 + $0x240] ss:$16 sps:$4 sm:$0xff]   ;;  %v7455_v23 = vld [vmem:[%s11224_s1 + $0x248] ss:$16 sps:$4 sm:$0xff]  }
  0x1b   :  { %4958 = vmatpush1.bf16.msra.mxu0 %v7384_v26  ;;  %5491 = vmatpush1.bf16.msra.mxu1 %v7385_v27  ;;  %v7460_v24 = vld [vmem:[%s11224_s1 + $0x264] ss:$16 sps:$4 sm:$0xff]   ;;  %v7463_v25 = vld [vmem:[%s11224_s1 + $0x26c] ss:$16 sps:$4 sm:$0xff]   ;;  %v7458_v26 = vld [vmem:[%s11224_s1 + $0x260] ss:$16 sps:$4 sm:$0xff]  }
  0x1c   :  { %4959 = vmatprep.subr.bf16.mxu0 %v7386_v28  ;;  %5492 = vmatprep.subr.bf16.mxu1 %v7388_v29  ;;  %v7461_v27 = vld [vmem:[%s11224_s1 + $0x268] ss:$16 sps:$4 sm:$0xff]   ;;  %v7466_v28 = vld [vmem:[%s11224_s1 + $0x284] ss:$16 sps:$4 sm:$0xff]   ;;  %v7469_v29 = vld [vmem:[%s11224_s1 + $0x28c] ss:$16 sps:$4 sm:$0xff]  }
  0x1d   :  { %v7478_v36 = vld [vmem:[%s11224_s1 + $0x2c4] ss:$16 sps:$4 sm:$0xff]   ;;  %v7481_v37 = vld [vmem:[%s11224_s1 + $0x2cc] ss:$16 sps:$4 sm:$0xff]   ;;  %v7476_v38 = vld [vmem:[%s11224_s1 + $0x2c0] ss:$16 sps:$4 sm:$0xff]  }
  0x1e   :  { %v7482_v43 = vld [vmem:[%s11224_s1 + $0x2e0] ss:$16 sps:$4 sm:$0xff]   ;;  %v7497_v54 = vld [vmem:[%s11224_s1 + $0x328] ss:$16 sps:$4 sm:$0xff]   ;;  %v7511_v60 = vld [vmem:[%s11224_s1 + $0x36c] ss:$16 sps:$4 sm:$0xff]  }
  0x1f   :  { %4960 = vmatpush1.bf16.msra.mxu0 %v7390_v30  ;;  %5493 = vmatpush1.bf16.msra.mxu1 %v7391_v31  ;;  %v7464_v30 = vld [vmem:[%s11224_s1 + $0x280] ss:$16 sps:$4 sm:$0xff]   ;;  %v7467_v31 = vld [vmem:[%s11224_s1 + $0x288] ss:$16 sps:$4 sm:$0xff]  }
  0x20   :  { %4961 = vmatprep.subr.bf16.mxu0 %v7392_v32  ;;  %5494 = vmatprep.subr.bf16.mxu1 %v7394_v33  ;;  %v7472_v32 = vld [vmem:[%s11224_s1 + $0x2a4] ss:$16 sps:$4 sm:$0xff]   ;;  %v7475_v33 = vld [vmem:[%s11224_s1 + $0x2ac] ss:$16 sps:$4 sm:$0xff]   ;;  %v7503_v58 = vld [vmem:[%s11224_s1 + $0x348] ss:$16 sps:$4 sm:$0xff]  }
  0x23   :  { %4962 = vmatpush1.bf16.msra.mxu0 %v7396_v34  ;;  %5495 = vmatpush1.bf16.msra.mxu1 %v7397_v35  ;;  %v7470_v34 = vld [vmem:[%s11224_s1 + $0x2a0] ss:$16 sps:$4 sm:$0xff]   ;;  %v7473_v35 = vld [vmem:[%s11224_s1 + $0x2a8] ss:$16 sps:$4 sm:$0xff]  }
  0x24   :  { %4963 = vmatprep.subr.bf16.mxu0 %v7398_v39  ;;  %5496 = vmatprep.subr.bf16.mxu1 %v7400_v40  ;;  %v7479_v39 = vld [vmem:[%s11224_s1 + $0x2c8] ss:$16 sps:$4 sm:$0xff]   ;;  %v7484_v40 = vld [vmem:[%s11224_s1 + $0x2e4] ss:$16 sps:$4 sm:$0xff]  }
  0x27   :  { %4964 = vmatpush1.bf16.msra.mxu0 %v7402_v41  ;;  %5497 = vmatpush1.bf16.msra.mxu1 %v7403_v44  ;;  %v7487_v41 = vld [vmem:[%s11224_s1 + $0x2ec] ss:$16 sps:$4 sm:$0xff]   ;;  %v7485_v44 = vld [vmem:[%s11224_s1 + $0x2e8] ss:$16 sps:$4 sm:$0xff]  }
  0x28   :  { %4965 = vmatprep.subr.bf16.mxu0 %v7404_v45  ;;  %5498 = vmatprep.subr.bf16.mxu1 %v7406_v46  ;;  %v7490_v45 = vld [vmem:[%s11224_s1 + $0x304] ss:$16 sps:$4 sm:$0xff]   ;;  %v7493_v46 = vld [vmem:[%s11224_s1 + $0x30c] ss:$16 sps:$4 sm:$0xff]  }
  0x2b   :  { %4966 = vmatpush1.bf16.msra.mxu0 %v7408_v47  ;;  %5499 = vmatpush1.bf16.msra.mxu1 %v7409_v48  ;;  %v7488_v47 = vld [vmem:[%s11224_s1 + $0x300] ss:$16 sps:$4 sm:$0xff]   ;;  %v7491_v48 = vld [vmem:[%s11224_s1 + $0x308] ss:$16 sps:$4 sm:$0xff]  }
  0x2c   :  { %4967 = vmatprep.subr.bf16.mxu0 %v7410_v50  ;;  %5500 = vmatprep.subr.bf16.mxu1 %v7412_v51  ;;  %v7496_v50 = vld [vmem:[%s11224_s1 + $0x324] ss:$16 sps:$4 sm:$0xff]   ;;  %v7499_v51 = vld [vmem:[%s11224_s1 + $0x32c] ss:$16 sps:$4 sm:$0xff]  }
  0x2f   :  { %4968 = vmatpush1.bf16.msra.mxu0 %v7414_v53  ;;  %5501 = vmatpush1.bf16.msra.mxu1 %v7415_v55  ;;  %v7494_v53 = vld [vmem:[%s11224_s1 + $0x320] ss:$16 sps:$4 sm:$0xff]   ;;  %v7502_v55 = vld [vmem:[%s11224_s1 + $0x344] ss:$16 sps:$4 sm:$0xff]  }
  0x30   :  { %4969 = vmatprep.subr.bf16.mxu0 %v7416_v56  ;;  %5502 = vmatprep.subr.bf16.mxu1 %v7418_v57  ;;  %v7505_v56 = vld [vmem:[%s11224_s1 + $0x34c] ss:$16 sps:$4 sm:$0xff]   ;;  %v7500_v57 = vld [vmem:[%s11224_s1 + $0x340] ss:$16 sps:$4 sm:$0xff]  }
  0x33   :  { %4970 = vmatpush1.bf16.msra.mxu0 %v7420_v59  ;;  %5503 = vmatpush1.bf16.msra.mxu1 %v7421_v61  ;;  %v7508_v59 = vld [vmem:[%s11224_s1 + $0x364] ss:$16 sps:$4 sm:$0xff]   ;;  %v7506_v61 = vld [vmem:[%s11224_s1 + $0x360] ss:$16 sps:$4 sm:$0xff]  }
  0x34   :  { %4971 = vmatprep.subr.bf16.mxu0 %v7422_v62  ;;  %5504 = vmatprep.subr.bf16.mxu1 %v7424_v63  ;;  %v7509_v62 = vld [vmem:[%s11224_s1 + $0x368] ss:$16 sps:$4 sm:$0xff]   ;;  %v7514_v63 = vld [vmem:[%s11224_s1 + $0x384] ss:$16 sps:$4 sm:$0xff]  }
  0x37   :  { %4972 = vmatpush1.bf16.msra.mxu0 %v7426_v0  ;;  %5505 = vmatpush1.bf16.msra.mxu1 %v7427_v1  ;;  %v7517_v0 = vld [vmem:[%s11224_s1 + $0x38c] ss:$16 sps:$4 sm:$0xff]   ;;  %v7512_v1 = vld [vmem:[%s11224_s1 + $0x380] ss:$16 sps:$4 sm:$0xff]  }
  0x38   :  { %4973 = vmatprep.subr.bf16.mxu0 %v7428_v2  ;;  %5506 = vmatprep.subr.bf16.mxu1 %v7430_v3  ;;  %v7515_v2 = vld [vmem:[%s11224_s1 + $0x388] ss:$16 sps:$4 sm:$0xff]   ;;  %v7520_v3 = vld [vmem:[%s11224_s1 + $0x3a4] ss:$16 sps:$4 sm:$0xff]  }
  0x3b   :  { %4974 = vmatpush1.bf16.msra.mxu0 %v7432_v4  ;;  %5507 = vmatpush1.bf16.msra.mxu1 %v7433_v5  ;;  %v7523_v4 = vld [vmem:[%s11224_s1 + $0x3ac] ss:$16 sps:$4 sm:$0xff]   ;;  %v7518_v5 = vld [vmem:[%s11224_s1 + $0x3a0] ss:$16 sps:$4 sm:$0xff]  }
  0x3c   :  { %4975 = vmatprep.subr.bf16.mxu0 %v7434_v6  ;;  %5508 = vmatprep.subr.bf16.mxu1 %v7436_v7  ;;  %v7521_v6 = vld [vmem:[%s11224_s1 + $0x3a8] ss:$16 sps:$4 sm:$0xff]   ;;  %v7526_v7 = vld [vmem:[%s11224_s1 + $0x3c4] ss:$16 sps:$4 sm:$0xff]  }
  0x3f   :  { %4976 = vmatpush1.bf16.msra.mxu0 %v7438_v8  ;;  %5509 = vmatpush1.bf16.msra.mxu1 %v7439_v9  ;;  %v7529_v8 = vld [vmem:[%s11224_s1 + $0x3cc] ss:$16 sps:$4 sm:$0xff]   ;;  %v836_v9 = vcombine.high %v8760_v52, %v8760_v52 }
  0x40   :  { %4986 = vmatprep.subr.bf16.mxu0 %v7442_v10  ;;  %5519 = vmatprep.subr.bf16.mxu1 %v7445_v11  ;;  %v7524_v10 = vld [vmem:[%s11224_s1 + $0x3c0] ss:$16 sps:$4 sm:$0xff]   ;;  %v7527_v11 = vld [vmem:[%s11224_s1 + $0x3c8] ss:$16 sps:$4 sm:$0xff]   ;;  %v7535_v52 = vld [vmem:[%s11224_s1 + $0x3ec] ss:$16 sps:$4 sm:$0xff]  }
  0x42   :  { %4978 = vmatmul.mubr.bf16.vlgmr.msra.gmra.mrb[0].mxu0 %v8829_v13  ;;  %5511 = vmatmul.mubr.bf16.vlgmr.msra.gmra.mrb[0].mxu1 %v8829_v13 }
  0x43   :  { %4987 = vmatpush1.bf16.msra.mxu0 %v7440_v12  ;;  %5520 = vmatpush1.bf16.msra.mxu1 %v7443_v14  ;;  %v7532_v12 = vld [vmem:[%s11224_s1 + $0x3e4] ss:$16 sps:$4 sm:$0xff]   ;;  %v9013_v14 = vrot.slane %v836_v9, %v8749_v49  ;;  %v7611_v9 = vld [vmem:[%s11224_s1 + $0x588] ss:$16 sps:$4 sm:$0xff]  }
  0x44   :  { %4988 = vmatprep.subr.bf16.mxu0 %v7448_v15  ;;  %5521 = vmatprep.subr.bf16.mxu1 %v7451_v16  ;;  %v7530_v15 = vld [vmem:[%s11224_s1 + $0x3e0] ss:$16 sps:$4 sm:$0xff]   ;;  %v7533_v16 = vld [vmem:[%s11224_s1 + $0x3e8] ss:$16 sps:$4 sm:$0xff]  }
  0x45   :  { %5018 = vmatprep.mubr.bf16.mxu0 %v883_v17  ;;  %5551 = vmatprep.mubr.bf16.mxu1 %v883_v17  ;;  %v7538_v17 = vld [vmem:[%s11224_s1 + $0x404] ss:$16 sps:$4 sm:$0xff]  }
  0x47   :  { %4989 = vmatpush1.bf16.msra.mxu0 %v7446_v18  ;;  %5522 = vmatpush1.bf16.msra.mxu1 %v7449_v19  ;;  %v7541_v18 = vld [vmem:[%s11224_s1 + $0x40c] ss:$16 sps:$4 sm:$0xff]   ;;  %v852_v19 = vcombine.high %v9013_v14, %v9013_v14 }
  0x48   :  { %4990 = vmatprep.subr.bf16.mxu0 %v7454_v20  ;;  %5523 = vmatprep.subr.bf16.mxu1 %v7457_v21  ;;  %v7536_v20 = vld [vmem:[%s11224_s1 + $0x400] ss:$16 sps:$4 sm:$0xff]   ;;  %v881_v21 = vcombine.high %v8829_v13, %v8829_v13 }
  0x49   :  { %v7542_v13 = vld [vmem:[%s11224_s1 + $0x420] ss:$16 sps:$4 sm:$0xff]  }
  0x4b   :  { %4991 = vmatpush1.bf16.msra.mxu0 %v7452_v22  ;;  %5524 = vmatpush1.bf16.msra.mxu1 %v7455_v23  ;;  %v7539_v22 = vld [vmem:[%s11224_s1 + $0x408] ss:$16 sps:$4 sm:$0xff]   ;;  %v7544_v23 = vld [vmem:[%s11224_s1 + $0x424] ss:$16 sps:$4 sm:$0xff]  }
  0x4c   :  { %4992 = vmatprep.subr.bf16.mxu0 %v7460_v24  ;;  %5525 = vmatprep.subr.bf16.mxu1 %v7463_v25  ;;  %v7547_v24 = vld [vmem:[%s11224_s1 + $0x42c] ss:$16 sps:$4 sm:$0xff]   ;;  %v9044_v25 = vrot.slane %v852_v19, %v8749_v49  ;;  %v7628_v19 = vld [vmem:[%s11224_s1 + $0x5e4] ss:$16 sps:$4 sm:$0xff]  }
  0x4f   :  { %4993 = vmatpush1.bf16.msra.mxu0 %v7458_v26  ;;  %5526 = vmatpush1.bf16.msra.mxu1 %v7461_v27  ;;  %v7545_v26 = vld [vmem:[%s11224_s1 + $0x428] ss:$16 sps:$4 sm:$0xff]   ;;  %v7550_v27 = vld [vmem:[%s11224_s1 + $0x444] ss:$16 sps:$4 sm:$0xff]  }
  0x50   :  { %4994 = vmatprep.subr.bf16.mxu0 %v7466_v28  ;;  %5527 = vmatprep.subr.bf16.mxu1 %v7469_v29  ;;  %v7553_v28 = vld [vmem:[%s11224_s1 + $0x44c] ss:$16 sps:$4 sm:$0xff]   ;;  %v7548_v29 = vld [vmem:[%s11224_s1 + $0x440] ss:$16 sps:$4 sm:$0xff]  }
  0x53   :  { %4995 = vmatpush1.bf16.msra.mxu0 %v7464_v30  ;;  %5528 = vmatpush1.bf16.msra.mxu1 %v7467_v31  ;;  %v7551_v30 = vld [vmem:[%s11224_s1 + $0x448] ss:$16 sps:$4 sm:$0xff]   ;;  %v7556_v31 = vld [vmem:[%s11224_s1 + $0x464] ss:$16 sps:$4 sm:$0xff]  }
  0x54   :  { %4996 = vmatprep.subr.bf16.mxu0 %v7472_v32  ;;  %5529 = vmatprep.subr.bf16.mxu1 %v7475_v33  ;;  %v7559_v32 = vld [vmem:[%s11224_s1 + $0x46c] ss:$16 sps:$4 sm:$0xff]   ;;  %v7554_v33 = vld [vmem:[%s11224_s1 + $0x460] ss:$16 sps:$4 sm:$0xff]  }
  0x57   :  { %4997 = vmatpush1.bf16.msra.mxu0 %v7470_v34  ;;  %5530 = vmatpush1.bf16.msra.mxu1 %v7473_v35  ;;  %v7557_v34 = vld [vmem:[%s11224_s1 + $0x468] ss:$16 sps:$4 sm:$0xff]   ;;  %v7562_v35 = vld [vmem:[%s11224_s1 + $0x484] ss:$16 sps:$4 sm:$0xff]  }
  0x58   :  { %4998 = vmatprep.subr.bf16.mxu0 %v7478_v36  ;;  %5531 = vmatprep.subr.bf16.mxu1 %v7481_v37  ;;  %v7565_v36 = vld [vmem:[%s11224_s1 + $0x48c] ss:$16 sps:$4 sm:$0xff]   ;;  %v7560_v37 = vld [vmem:[%s11224_s1 + $0x480] ss:$16 sps:$4 sm:$0xff]  }
  0x5b   :  { %4999 = vmatpush1.bf16.msra.mxu0 %v7476_v38  ;;  %5532 = vmatpush1.bf16.msra.mxu1 %v7479_v39  ;;  %v7563_v38 = vld [vmem:[%s11224_s1 + $0x488] ss:$16 sps:$4 sm:$0xff]   ;;  %v7568_v39 = vld [vmem:[%s11224_s1 + $0x4a4] ss:$16 sps:$4 sm:$0xff]  }
  0x5c   :  { %5000 = vmatprep.subr.bf16.mxu0 %v7484_v40  ;;  %5533 = vmatprep.subr.bf16.mxu1 %v7487_v41  ;;  %v7571_v40 = vld [vmem:[%s11224_s1 + $0x4ac] ss:$16 sps:$4 sm:$0xff]   ;;  %v7566_v41 = vld [vmem:[%s11224_s1 + $0x4a0] ss:$16 sps:$4 sm:$0xff]  }
  0x5f   :  { %5001 = vmatpush1.bf16.msra.mxu0 %v7482_v43  ;;  %5534 = vmatpush1.bf16.msra.mxu1 %v7485_v44  ;;  %v7569_v43 = vld [vmem:[%s11224_s1 + $0x4a8] ss:$16 sps:$4 sm:$0xff]   ;;  %v7574_v44 = vld [vmem:[%s11224_s1 + $0x4c4] ss:$16 sps:$4 sm:$0xff]  }
  0x60   :  { %5002 = vmatprep.subr.bf16.mxu0 %v7490_v45  ;;  %5535 = vmatprep.subr.bf16.mxu1 %v7493_v46  ;;  %v7577_v45 = vld [vmem:[%s11224_s1 + $0x4cc] ss:$16 sps:$4 sm:$0xff]   ;;  %v7572_v46 = vld [vmem:[%s11224_s1 + $0x4c0] ss:$16 sps:$4 sm:$0xff]  }
  0x63   :  { %5003 = vmatpush1.bf16.msra.mxu0 %v7488_v47  ;;  %5536 = vmatpush1.bf16.msra.mxu1 %v7491_v48  ;;  %v7575_v47 = vld [vmem:[%s11224_s1 + $0x4c8] ss:$16 sps:$4 sm:$0xff]   ;;  %v7580_v48 = vld [vmem:[%s11224_s1 + $0x4e4] ss:$16 sps:$4 sm:$0xff]  }
  0x64   :  { %5004 = vmatprep.subr.bf16.mxu0 %v7496_v50  ;;  %5537 = vmatprep.subr.bf16.mxu1 %v7499_v51  ;;  %v7583_v50 = vld [vmem:[%s11224_s1 + $0x4ec] ss:$16 sps:$4 sm:$0xff]   ;;  %v7578_v51 = vld [vmem:[%s11224_s1 + $0x4e0] ss:$16 sps:$4 sm:$0xff]  }
  0x67   :  { %5005 = vmatpush1.bf16.msra.mxu0 %v7494_v53  ;;  %5538 = vmatpush1.bf16.msra.mxu1 %v7497_v54  ;;  %v7581_v53 = vld [vmem:[%s11224_s1 + $0x4e8] ss:$16 sps:$4 sm:$0xff]   ;;  %v7586_v54 = vld [vmem:[%s11224_s1 + $0x504] ss:$16 sps:$4 sm:$0xff]  }
  0x68   :  { %5006 = vmatprep.subr.bf16.mxu0 %v7502_v55  ;;  %5539 = vmatprep.subr.bf16.mxu1 %v7505_v56  ;;  %v7589_v55 = vld [vmem:[%s11224_s1 + $0x50c] ss:$16 sps:$4 sm:$0xff]   ;;  %v7584_v56 = vld [vmem:[%s11224_s1 + $0x500] ss:$16 sps:$4 sm:$0xff]  }
  0x6b   :  { %5007 = vmatpush1.bf16.msra.mxu0 %v7500_v57  ;;  %5540 = vmatpush1.bf16.msra.mxu1 %v7503_v58  ;;  %v7587_v57 = vld [vmem:[%s11224_s1 + $0x508] ss:$16 sps:$4 sm:$0xff]   ;;  %v7592_v58 = vld [vmem:[%s11224_s1 + $0x524] ss:$16 sps:$4 sm:$0xff]  }
  0x6c   :  { %5008 = vmatprep.subr.bf16.mxu0 %v7508_v59  ;;  %5541 = vmatprep.subr.bf16.mxu1 %v7511_v60  ;;  %v7595_v59 = vld [vmem:[%s11224_s1 + $0x52c] ss:$16 sps:$4 sm:$0xff]   ;;  %v7590_v60 = vld [vmem:[%s11224_s1 + $0x520] ss:$16 sps:$4 sm:$0xff]  }
  0x6f   :  { %5009 = vmatpush1.bf16.msra.mxu0 %v7506_v61  ;;  %5542 = vmatpush1.bf16.msra.mxu1 %v7509_v62  ;;  %v7593_v61 = vld [vmem:[%s11224_s1 + $0x528] ss:$16 sps:$4 sm:$0xff]   ;;  %v7598_v62 = vld [vmem:[%s11224_s1 + $0x544] ss:$16 sps:$4 sm:$0xff]  }
  0x70   :  { %5010 = vmatprep.subr.bf16.mxu0 %v7514_v63  ;;  %5543 = vmatprep.subr.bf16.mxu1 %v7517_v0  ;;  %v7601_v63 = vld [vmem:[%s11224_s1 + $0x54c] ss:$16 sps:$4 sm:$0xff]   ;;  %v7596_v0 = vld [vmem:[%s11224_s1 + $0x540] ss:$16 sps:$4 sm:$0xff]  }
  0x73   :  { %5011 = vmatpush1.bf16.msra.mxu0 %v7512_v1  ;;  %5544 = vmatpush1.bf16.msra.mxu1 %v7515_v2  ;;  %v7599_v1 = vld [vmem:[%s11224_s1 + $0x548] ss:$16 sps:$4 sm:$0xff]   ;;  %v7604_v2 = vld [vmem:[%s11224_s1 + $0x564] ss:$16 sps:$4 sm:$0xff]  }
  0x74   :  { %5012 = vmatprep.subr.bf16.mxu0 %v7520_v3  ;;  %5545 = vmatprep.subr.bf16.mxu1 %v7523_v4  ;;  %v7607_v3 = vld [vmem:[%s11224_s1 + $0x56c] ss:$16 sps:$4 sm:$0xff]   ;;  %v7602_v4 = vld [vmem:[%s11224_s1 + $0x560] ss:$16 sps:$4 sm:$0xff]  }
  0x77   :  { %5013 = vmatpush1.bf16.msra.mxu0 %v7518_v5  ;;  %5546 = vmatpush1.bf16.msra.mxu1 %v7521_v6  ;;  %v7605_v5 = vld [vmem:[%s11224_s1 + $0x568] ss:$16 sps:$4 sm:$0xff]   ;;  %v7610_v6 = vld [vmem:[%s11224_s1 + $0x584] ss:$16 sps:$4 sm:$0xff]  }
  0x78   :  { %5014 = vmatprep.subr.bf16.mxu0 %v7526_v7  ;;  %5547 = vmatprep.subr.bf16.mxu1 %v7529_v8  ;;  %v7613_v7 = vld [vmem:[%s11224_s1 + $0x58c] ss:$16 sps:$4 sm:$0xff]   ;;  %v7608_v8 = vld [vmem:[%s11224_s1 + $0x580] ss:$16 sps:$4 sm:$0xff]  }
  0x7b   :  { %5015 = vmatpush1.bf16.msra.mxu0 %v7524_v10  ;;  %5548 = vmatpush1.bf16.msra.mxu1 %v7527_v11  ;;  %v7616_v10 = vld [vmem:[%s11224_s1 + $0x5a4] ss:$16 sps:$4 sm:$0xff]   ;;  %v7619_v11 = vld [vmem:[%s11224_s1 + $0x5ac] ss:$16 sps:$4 sm:$0xff]  }
  0x7c   :  { %5016 = vmatprep.subr.bf16.mxu0 %v7532_v12  ;;  %5549 = vmatprep.subr.bf16.mxu1 %v7535_v52  ;;  %v7614_v12 = vld [vmem:[%s11224_s1 + $0x5a0] ss:$16 sps:$4 sm:$0xff]   ;;  %v7617_v52 = vld [vmem:[%s11224_s1 + $0x5a8] ss:$16 sps:$4 sm:$0xff]  }
  0x7f   :  { %5017 = vmatpush1.bf16.msra.mxu0 %v7530_v15  ;;  %5550 = vmatpush1.bf16.msra.mxu1 %v7533_v16  ;;  %v7622_v15 = vld [vmem:[%s11224_s1 + $0x5c4] ss:$16 sps:$4 sm:$0xff]   ;;  %v7625_v16 = vld [vmem:[%s11224_s1 + $0x5cc] ss:$16 sps:$4 sm:$0xff]  }
  0x80   :  { %5027 = vmatprep.subr.bf16.mxu0 %v7538_v17  ;;  %5560 = vmatprep.subr.bf16.mxu1 %v7541_v18  ;;  %v7620_v17 = vld [vmem:[%s11224_s1 + $0x5c0] ss:$16 sps:$4 sm:$0xff]   ;;  %v7623_v18 = vld [vmem:[%s11224_s1 + $0x5c8] ss:$16 sps:$4 sm:$0xff]  }
  0x82   :  { %5019 = vmatmul.mubr.bf16.vlgmr.msra.gmra.mrb[0].mxu0 %v881_v21  ;;  %5552 = vmatmul.mubr.bf16.vlgmr.msra.gmra.mrb[0].mxu1 %v881_v21  ;;  %v7626_v21 = vld [vmem:[%s11224_s1 + $0x5e0] ss:$16 sps:$4 sm:$0xff]  }
  0x83   :  { %5028 = vmatpush1.bf16.msra.mxu0 %v7536_v20  ;;  %5561 = vmatpush1.bf16.msra.mxu1 %v7539_v22  ;;  %v7631_v20 = vld [vmem:[%s11224_s1 + $0x5ec] ss:$16 sps:$4 sm:$0xff]   ;;  %v7629_v22 = vld [vmem:[%s11224_s1 + $0x5e8] ss:$16 sps:$4 sm:$0xff]  }
  0x84   :  { %5029 = vmatprep.subr.bf16.mxu0 %v7544_v23  ;;  %5562 = vmatprep.subr.bf16.mxu1 %v7547_v24  ;;  %v7635_v23 = vld [vmem:[%s11224_s1 + $0x604] ss:$16 sps:$4 sm:$0xff]   ;;  %v7638_v24 = vld [vmem:[%s11224_s1 + $0x60c] ss:$16 sps:$4 sm:$0xff]  }
  0x85   :  { %5059 = vmatprep.mubr.bf16.mxu0 %v9044_v25  ;;  %5592 = vmatprep.mubr.bf16.mxu1 %v9044_v25 }
  0x87   :  { %5030 = vmatpush1.bf16.msra.mxu0 %v7542_v13  ;;  %5563 = vmatpush1.bf16.msra.mxu1 %v7545_v26  ;;  %v7633_v13 = vld [vmem:[%s11224_s1 + $0x600] ss:$16 sps:$4 sm:$0xff]   ;;  %v9233_v26 = vrot.slane %v9013_v14, %v8749_v49  ;;  %v884_v14 = vcombine.high %v9044_v25, %v9044_v25  ;;  %v7647_v25 = vld [vmem:[%s11224_s1 + $0x644] ss:$16 sps:$4 sm:$0xff]  }
  0x88   :  { %5031 = vmatprep.subr.bf16.mxu0 %v7550_v27  ;;  %5564 = vmatprep.subr.bf16.mxu1 %v7553_v28  ;;  %v7636_v27 = vld [vmem:[%s11224_s1 + $0x608] ss:$16 sps:$4 sm:$0xff]   ;;  %v7641_v28 = vld [vmem:[%s11224_s1 + $0x624] ss:$16 sps:$4 sm:$0xff]  }
  0x8b   :  { %5032 = vmatpush1.bf16.msra.mxu0 %v7548_v29  ;;  %5565 = vmatpush1.bf16.msra.mxu1 %v7551_v30  ;;  %v7644_v29 = vld [vmem:[%s11224_s1 + $0x62c] ss:$16 sps:$4 sm:$0xff]   ;;  %v7639_v30 = vld [vmem:[%s11224_s1 + $0x620] ss:$16 sps:$4 sm:$0xff]  }
  0x8c   :  { %5033 = vmatprep.subr.bf16.mxu0 %v7556_v31  ;;  %5566 = vmatprep.subr.bf16.mxu1 %v7559_v32  ;;  %v7642_v31 = vld [vmem:[%s11224_s1 + $0x628] ss:$16 sps:$4 sm:$0xff]   ;;  %v7650_v32 = vld [vmem:[%s11224_s1 + $0x64c] ss:$16 sps:$4 sm:$0xff]  }
  0x8f   :  { %5034 = vmatpush1.bf16.msra.mxu0 %v7554_v33  ;;  %5567 = vmatpush1.bf16.msra.mxu1 %v7557_v34  ;;  %v7645_v33 = vld [vmem:[%s11224_s1 + $0x640] ss:$16 sps:$4 sm:$0xff]   ;;  %v7648_v34 = vld [vmem:[%s11224_s1 + $0x648] ss:$16 sps:$4 sm:$0xff]  }
  0x90   :  { %5035 = vmatprep.subr.bf16.mxu0 %v7562_v35  ;;  %5568 = vmatprep.subr.bf16.mxu1 %v7565_v36  ;;  %v7653_v35 = vld [vmem:[%s11224_s1 + $0x664] ss:$16 sps:$4 sm:$0xff]   ;;  %v7656_v36 = vld [vmem:[%s11224_s1 + $0x66c] ss:$16 sps:$4 sm:$0xff]  }
  0x93   :  { %5036 = vmatpush1.bf16.msra.mxu0 %v7560_v37  ;;  %5569 = vmatpush1.bf16.msra.mxu1 %v7563_v38  ;;  %v7651_v37 = vld [vmem:[%s11224_s1 + $0x660] ss:$16 sps:$4 sm:$0xff]   ;;  %v7654_v38 = vld [vmem:[%s11224_s1 + $0x668] ss:$16 sps:$4 sm:$0xff]  }
  0x94   :  { %5037 = vmatprep.subr.bf16.mxu0 %v7568_v39  ;;  %5570 = vmatprep.subr.bf16.mxu1 %v7571_v40  ;;  %v7659_v39 = vld [vmem:[%s11224_s1 + $0x684] ss:$16 sps:$4 sm:$0xff]   ;;  %v7662_v40 = vld [vmem:[%s11224_s1 + $0x68c] ss:$16 sps:$4 sm:$0xff]  }
  0x97   :  { %5038 = vmatpush1.bf16.msra.mxu0 %v7566_v41  ;;  %5571 = vmatpush1.bf16.msra.mxu1 %v7569_v43  ;;  %v7657_v41 = vld [vmem:[%s11224_s1 + $0x680] ss:$16 sps:$4 sm:$0xff]   ;;  %v7660_v43 = vld [vmem:[%s11224_s1 + $0x688] ss:$16 sps:$4 sm:$0xff]  }
  0x98   :  { %5039 = vmatprep.subr.bf16.mxu0 %v7574_v44  ;;  %5572 = vmatprep.subr.bf16.mxu1 %v7577_v45  ;;  %v7665_v44 = vld [vmem:[%s11224_s1 + $0x6a4] ss:$16 sps:$4 sm:$0xff]   ;;  %v7668_v45 = vld [vmem:[%s11224_s1 + $0x6ac] ss:$16 sps:$4 sm:$0xff]  }
  0x9b   :  { %5040 = vmatpush1.bf16.msra.mxu0 %v7572_v46  ;;  %5573 = vmatpush1.bf16.msra.mxu1 %v7575_v47  ;;  %v7663_v46 = vld [vmem:[%s11224_s1 + $0x6a0] ss:$16 sps:$4 sm:$0xff]   ;;  %v7666_v47 = vld [vmem:[%s11224_s1 + $0x6a8] ss:$16 sps:$4 sm:$0xff]  }
  0x9c   :  { %5041 = vmatprep.subr.bf16.mxu0 %v7580_v48  ;;  %5574 = vmatprep.subr.bf16.mxu1 %v7583_v50  ;;  %v7671_v48 = vld [vmem:[%s11224_s1 + $0x6c4] ss:$16 sps:$4 sm:$0xff]   ;;  %v7674_v50 = vld [vmem:[%s11224_s1 + $0x6cc] ss:$16 sps:$4 sm:$0xff]  }
  0x9f   :  { %5042 = vmatpush1.bf16.msra.mxu0 %v7578_v51  ;;  %5575 = vmatpush1.bf16.msra.mxu1 %v7581_v53  ;;  %v7669_v51 = vld [vmem:[%s11224_s1 + $0x6c0] ss:$16 sps:$4 sm:$0xff]   ;;  %v7672_v53 = vld [vmem:[%s11224_s1 + $0x6c8] ss:$16 sps:$4 sm:$0xff]  }
  0xa0   :  { %5043 = vmatprep.subr.bf16.mxu0 %v7586_v54  ;;  %5576 = vmatprep.subr.bf16.mxu1 %v7589_v55  ;;  %v7677_v54 = vld [vmem:[%s11224_s1 + $0x6e4] ss:$16 sps:$4 sm:$0xff]   ;;  %v7680_v55 = vld [vmem:[%s11224_s1 + $0x6ec] ss:$16 sps:$4 sm:$0xff]  }
  0xa3   :  { %5044 = vmatpush1.bf16.msra.mxu0 %v7584_v56  ;;  %5577 = vmatpush1.bf16.msra.mxu1 %v7587_v57  ;;  %v7675_v56 = vld [vmem:[%s11224_s1 + $0x6e0] ss:$16 sps:$4 sm:$0xff]   ;;  %v7678_v57 = vld [vmem:[%s11224_s1 + $0x6e8] ss:$16 sps:$4 sm:$0xff]  }
  0xa4   :  { %5045 = vmatprep.subr.bf16.mxu0 %v7592_v58  ;;  %5578 = vmatprep.subr.bf16.mxu1 %v7595_v59  ;;  %v7683_v58 = vld [vmem:[%s11224_s1 + $0x704] ss:$16 sps:$4 sm:$0xff]   ;;  %v7686_v59 = vld [vmem:[%s11224_s1 + $0x70c] ss:$16 sps:$4 sm:$0xff]  }
  0xa7   :  { %5046 = vmatpush1.bf16.msra.mxu0 %v7590_v60  ;;  %5579 = vmatpush1.bf16.msra.mxu1 %v7593_v61  ;;  %v7681_v60 = vld [vmem:[%s11224_s1 + $0x700] ss:$16 sps:$4 sm:$0xff]   ;;  %v7684_v61 = vld [vmem:[%s11224_s1 + $0x708] ss:$16 sps:$4 sm:$0xff]  }
  0xa8   :  { %5047 = vmatprep.subr.bf16.mxu0 %v7598_v62  ;;  %5580 = vmatprep.subr.bf16.mxu1 %v7601_v63  ;;  %v7689_v62 = vld [vmem:[%s11224_s1 + $0x724] ss:$16 sps:$4 sm:$0xff]   ;;  %v7692_v63 = vld [vmem:[%s11224_s1 + $0x72c] ss:$16 sps:$4 sm:$0xff]  }
  0xab   :  { %5048 = vmatpush1.bf16.msra.mxu0 %v7596_v0  ;;  %5581 = vmatpush1.bf16.msra.mxu1 %v7599_v1  ;;  %v7687_v0 = vld [vmem:[%s11224_s1 + $0x720] ss:$16 sps:$4 sm:$0xff]   ;;  %v7690_v1 = vld [vmem:[%s11224_s1 + $0x728] ss:$16 sps:$4 sm:$0xff]  }
  0xac   :  { %5049 = vmatprep.subr.bf16.mxu0 %v7604_v2  ;;  %5582 = vmatprep.subr.bf16.mxu1 %v7607_v3  ;;  %v7695_v2 = vld [vmem:[%s11224_s1 + $0x744] ss:$16 sps:$4 sm:$0xff]   ;;  %v7698_v3 = vld [vmem:[%s11224_s1 + $0x74c] ss:$16 sps:$4 sm:$0xff]  }
  0xaf   :  { %5050 = vmatpush1.bf16.msra.mxu0 %v7602_v4  ;;  %5583 = vmatpush1.bf16.msra.mxu1 %v7605_v5  ;;  %v7693_v4 = vld [vmem:[%s11224_s1 + $0x740] ss:$16 sps:$4 sm:$0xff]   ;;  %v7696_v5 = vld [vmem:[%s11224_s1 + $0x748] ss:$16 sps:$4 sm:$0xff]  }
  0xb0   :  { %5051 = vmatprep.subr.bf16.mxu0 %v7610_v6  ;;  %5584 = vmatprep.subr.bf16.mxu1 %v7613_v7  ;;  %v7701_v6 = vld [vmem:[%s11224_s1 + $0x764] ss:$16 sps:$4 sm:$0xff]   ;;  %v7704_v7 = vld [vmem:[%s11224_s1 + $0x76c] ss:$16 sps:$4 sm:$0xff]  }
  0xb3   :  { %5052 = vmatpush1.bf16.msra.mxu0 %v7608_v8  ;;  %5585 = vmatpush1.bf16.msra.mxu1 %v7611_v9  ;;  %v7699_v8 = vld [vmem:[%s11224_s1 + $0x760] ss:$16 sps:$4 sm:$0xff]   ;;  %v7702_v9 = vld [vmem:[%s11224_s1 + $0x768] ss:$16 sps:$4 sm:$0xff]  }
  0xb4   :  { %5053 = vmatprep.subr.bf16.mxu0 %v7616_v10  ;;  %5586 = vmatprep.subr.bf16.mxu1 %v7619_v11  ;;  %v7707_v10 = vld [vmem:[%s11224_s1 + $0x784] ss:$16 sps:$4 sm:$0xff]   ;;  %v7710_v11 = vld [vmem:[%s11224_s1 + $0x78c] ss:$16 sps:$4 sm:$0xff]  }
  0xb7   :  { %5054 = vmatpush1.bf16.msra.mxu0 %v7614_v12  ;;  %5587 = vmatpush1.bf16.msra.mxu1 %v7617_v52  ;;  %v7705_v12 = vld [vmem:[%s11224_s1 + $0x780] ss:$16 sps:$4 sm:$0xff]   ;;  %v7708_v52 = vld [vmem:[%s11224_s1 + $0x788] ss:$16 sps:$4 sm:$0xff]  }
  0xb8   :  { %5055 = vmatprep.subr.bf16.mxu0 %v7622_v15  ;;  %5588 = vmatprep.subr.bf16.mxu1 %v7625_v16  ;;  %v7713_v15 = vld [vmem:[%s11224_s1 + $0x7a4] ss:$16 sps:$4 sm:$0xff]   ;;  %v7716_v16 = vld [vmem:[%s11224_s1 + $0x7ac] ss:$16 sps:$4 sm:$0xff]  }
  0xbb   :  { %5056 = vmatpush1.bf16.msra.mxu0 %v7620_v17  ;;  %5589 = vmatpush1.bf16.msra.mxu1 %v7623_v18  ;;  %v7711_v17 = vld [vmem:[%s11224_s1 + $0x7a0] ss:$16 sps:$4 sm:$0xff]   ;;  %v7714_v18 = vld [vmem:[%s11224_s1 + $0x7a8] ss:$16 sps:$4 sm:$0xff]  }
  0xbc   :  { %5057 = vmatprep.subr.bf16.mxu0 %v7628_v19  ;;  %5590 = vmatprep.subr.bf16.mxu1 %v7631_v20  ;;  %v7719_v19 = vld [vmem:[%s11224_s1 + $0x7c4] ss:$16 sps:$4 sm:$0xff]   ;;  %v7722_v20 = vld [vmem:[%s11224_s1 + $0x7cc] ss:$16 sps:$4 sm:$0xff]  }
  0xbf   :  { %5058 = vmatpush1.bf16.msra.mxu0 %v7626_v21  ;;  %5591 = vmatpush1.bf16.msra.mxu1 %v7629_v22  ;;  %v9407_v21 = vld.sshfl [vmem:[%s11223_s0 + $0x8] sm:$0xff pattern:$0x75316420]  ;;  %v7717_v22 = vld [vmem:[%s11224_s1 + $0x7c0] ss:$16 sps:$4 sm:$0xff]  }
  0xc0   :  { %5068 = vmatprep.subr.bf16.mxu0 %v7635_v23  ;;  %5601 = vmatprep.subr.bf16.mxu1 %v7638_v24  ;;  %v7720_v23 = vld [vmem:[%s11224_s1 + $0x7c8] ss:$16 sps:$4 sm:$0xff]   ;;  %v7725_v24 = vld [vmem:[%s11224_s1 + $0x7e4] ss:$16 sps:$4 sm:$0xff]  }
  0xc2   :  { %5060 = vmatmul.mubr.bf16.vlgmr.msra.gmra.mrb[0].mxu0 %v9233_v26  ;;  %5593 = vmatmul.mubr.bf16.vlgmr.msra.gmra.mrb[0].mxu1 %v9233_v26 }
  0xc3   :  { %5069 = vmatpush1.bf16.msra.mxu0 %v7633_v13  ;;  %5602 = vmatpush1.bf16.msra.mxu1 %v7636_v27  ;;  %v7728_v13 = vld [vmem:[%s11224_s1 + $0x7ec] ss:$16 sps:$4 sm:$0xff]   ;;  %v7723_v27 = vld [vmem:[%s11224_s1 + $0x7e0] ss:$16 sps:$4 sm:$0xff]  }
  0xc4   :  { %5070 = vmatprep.subr.bf16.mxu0 %v7641_v28  ;;  %5603 = vmatprep.subr.bf16.mxu1 %v7644_v29  ;;  %v7726_v28 = vld [vmem:[%s11224_s1 + $0x7e8] ss:$16 sps:$4 sm:$0xff]   ;;  %v7731_v29 = vld [vmem:[%s11224_s1 + $0x804] ss:$16 sps:$4 sm:$0xff]  }
  0xc5   :  { %5100 = vmatprep.mubr.bf16.mxu0 %v884_v14  ;;  %5633 = vmatprep.mubr.bf16.mxu1 %v884_v14  ;;  %v7734_v14 = vld [vmem:[%s11224_s1 + $0x80c] ss:$16 sps:$4 sm:$0xff]  }
  0xc7   :  { %5071 = vmatpush1.bf16.msra.mxu0 %v7639_v30  ;;  %5604 = vmatpush1.bf16.msra.mxu1 %v7642_v31  ;;  %v900_v30 = vcombine.high %v9407_v21, %v9407_v21  ;;  %v882_v31 = vcombine.high %v9233_v26, %v9233_v26  ;;  %v7740_v26 = vld [vmem:[%s11224_s1 + $0x82c] ss:$16 sps:$4 sm:$0xff]  }
  0xc8   :  { %5072 = vmatprep.subr.bf16.mxu0 %v7647_v25  ;;  %5605 = vmatprep.subr.bf16.mxu1 %v7650_v32  ;;  %v7729_v25 = vld [vmem:[%s11224_s1 + $0x800] ss:$16 sps:$4 sm:$0xff]   ;;  %v7732_v32 = vld [vmem:[%s11224_s1 + $0x808] ss:$16 sps:$4 sm:$0xff]  }
  0xcb   :  { %5073 = vmatpush1.bf16.msra.mxu0 %v7645_v33  ;;  %5606 = vmatpush1.bf16.msra.mxu1 %v7648_v34  ;;  %v7737_v33 = vld [vmem:[%s11224_s1 + $0x824] ss:$16 sps:$4 sm:$0xff]   ;;  %v9450_v34 = vrot.slane %v900_v30, %v8749_v49 }
  0xcc   :  { %5074 = vmatprep.subr.bf16.mxu0 %v7653_v35  ;;  %5607 = vmatprep.subr.bf16.mxu1 %v7656_v36  ;;  %v7735_v35 = vld [vmem:[%s11224_s1 + $0x820] ss:$16 sps:$4 sm:$0xff]   ;;  %v7738_v36 = vld [vmem:[%s11224_s1 + $0x828] ss:$16 sps:$4 sm:$0xff]   ;;  %v7821_v30 = vld [vmem:[%s11224_s1 + $0x9e4] ss:$16 sps:$4 sm:$0xff]  }
  0xcf   :  { %5075 = vmatpush1.bf16.msra.mxu0 %v7651_v37  ;;  %5608 = vmatpush1.bf16.msra.mxu1 %v7654_v38  ;;  %v7743_v37 = vld [vmem:[%s11224_s1 + $0x844] ss:$16 sps:$4 sm:$0xff]   ;;  %v7746_v38 = vld [vmem:[%s11224_s1 + $0x84c] ss:$16 sps:$4 sm:$0xff]  }
  0xd0   :  { %5076 = vmatprep.subr.bf16.mxu0 %v7659_v39  ;;  %5609 = vmatprep.subr.bf16.mxu1 %v7662_v40  ;;  %v7741_v39 = vld [vmem:[%s11224_s1 + $0x840] ss:$16 sps:$4 sm:$0xff]   ;;  %v7744_v40 = vld [vmem:[%s11224_s1 + $0x848] ss:$16 sps:$4 sm:$0xff]  }
  0xd3   :  { %5077 = vmatpush1.bf16.msra.mxu0 %v7657_v41  ;;  %5610 = vmatpush1.bf16.msra.mxu1 %v7660_v43  ;;  %v7749_v41 = vld [vmem:[%s11224_s1 + $0x864] ss:$16 sps:$4 sm:$0xff]   ;;  %v7752_v43 = vld [vmem:[%s11224_s1 + $0x86c] ss:$16 sps:$4 sm:$0xff]  }
  0xd4   :  { %5078 = vmatprep.subr.bf16.mxu0 %v7665_v44  ;;  %5611 = vmatprep.subr.bf16.mxu1 %v7668_v45  ;;  %v7747_v44 = vld [vmem:[%s11224_s1 + $0x860] ss:$16 sps:$4 sm:$0xff]   ;;  %v7750_v45 = vld [vmem:[%s11224_s1 + $0x868] ss:$16 sps:$4 sm:$0xff]  }
  0xd7   :  { %5079 = vmatpush1.bf16.msra.mxu0 %v7663_v46  ;;  %5612 = vmatpush1.bf16.msra.mxu1 %v7666_v47  ;;  %v7755_v46 = vld [vmem:[%s11224_s1 + $0x884] ss:$16 sps:$4 sm:$0xff]   ;;  %v7758_v47 = vld [vmem:[%s11224_s1 + $0x88c] ss:$16 sps:$4 sm:$0xff]  }
  0xd8   :  { %5080 = vmatprep.subr.bf16.mxu0 %v7671_v48  ;;  %5613 = vmatprep.subr.bf16.mxu1 %v7674_v50  ;;  %v7753_v48 = vld [vmem:[%s11224_s1 + $0x880] ss:$16 sps:$4 sm:$0xff]   ;;  %v7756_v50 = vld [vmem:[%s11224_s1 + $0x888] ss:$16 sps:$4 sm:$0xff]  }
  0xdb   :  { %5081 = vmatpush1.bf16.msra.mxu0 %v7669_v51  ;;  %5614 = vmatpush1.bf16.msra.mxu1 %v7672_v53  ;;  %v7761_v51 = vld [vmem:[%s11224_s1 + $0x8a4] ss:$16 sps:$4 sm:$0xff]   ;;  %v7764_v53 = vld [vmem:[%s11224_s1 + $0x8ac] ss:$16 sps:$4 sm:$0xff]  }
  0xdc   :  { %5082 = vmatprep.subr.bf16.mxu0 %v7677_v54  ;;  %5615 = vmatprep.subr.bf16.mxu1 %v7680_v55  ;;  %v7759_v54 = vld [vmem:[%s11224_s1 + $0x8a0] ss:$16 sps:$4 sm:$0xff]   ;;  %v7762_v55 = vld [vmem:[%s11224_s1 + $0x8a8] ss:$16 sps:$4 sm:$0xff]  }
  0xdf   :  { %5083 = vmatpush1.bf16.msra.mxu0 %v7675_v56  ;;  %5616 = vmatpush1.bf16.msra.mxu1 %v7678_v57  ;;  %v7767_v56 = vld [vmem:[%s11224_s1 + $0x8c4] ss:$16 sps:$4 sm:$0xff]   ;;  %v7770_v57 = vld [vmem:[%s11224_s1 + $0x8cc] ss:$16 sps:$4 sm:$0xff]  }
  0xe0   :  { %5084 = vmatprep.subr.bf16.mxu0 %v7683_v58  ;;  %5617 = vmatprep.subr.bf16.mxu1 %v7686_v59  ;;  %v7765_v58 = vld [vmem:[%s11224_s1 + $0x8c0] ss:$16 sps:$4 sm:$0xff]   ;;  %v7768_v59 = vld [vmem:[%s11224_s1 + $0x8c8] ss:$16 sps:$4 sm:$0xff]  }
  0xe3   :  { %5085 = vmatpush1.bf16.msra.mxu0 %v7681_v60  ;;  %5618 = vmatpush1.bf16.msra.mxu1 %v7684_v61  ;;  %v7773_v60 = vld [vmem:[%s11224_s1 + $0x8e4] ss:$16 sps:$4 sm:$0xff]   ;;  %v7776_v61 = vld [vmem:[%s11224_s1 + $0x8ec] ss:$16 sps:$4 sm:$0xff]  }
  0xe4   :  { %5086 = vmatprep.subr.bf16.mxu0 %v7689_v62  ;;  %5619 = vmatprep.subr.bf16.mxu1 %v7692_v63  ;;  %v7771_v62 = vld [vmem:[%s11224_s1 + $0x8e0] ss:$16 sps:$4 sm:$0xff]   ;;  %v7774_v63 = vld [vmem:[%s11224_s1 + $0x8e8] ss:$16 sps:$4 sm:$0xff]  }
  0xe7   :  { %5087 = vmatpush1.bf16.msra.mxu0 %v7687_v0  ;;  %5620 = vmatpush1.bf16.msra.mxu1 %v7690_v1  ;;  %v7779_v0 = vld [vmem:[%s11224_s1 + $0x904] ss:$16 sps:$4 sm:$0xff]   ;;  %v7782_v1 = vld [vmem:[%s11224_s1 + $0x90c] ss:$16 sps:$4 sm:$0xff]  }
  0xe8   :  { %5088 = vmatprep.subr.bf16.mxu0 %v7695_v2  ;;  %5621 = vmatprep.subr.bf16.mxu1 %v7698_v3  ;;  %v7777_v2 = vld [vmem:[%s11224_s1 + $0x900] ss:$16 sps:$4 sm:$0xff]   ;;  %v7780_v3 = vld [vmem:[%s11224_s1 + $0x908] ss:$16 sps:$4 sm:$0xff]  }
  0xeb   :  { %5089 = vmatpush1.bf16.msra.mxu0 %v7693_v4  ;;  %5622 = vmatpush1.bf16.msra.mxu1 %v7696_v5  ;;  %v7785_v4 = vld [vmem:[%s11224_s1 + $0x924] ss:$16 sps:$4 sm:$0xff]   ;;  %v7788_v5 = vld [vmem:[%s11224_s1 + $0x92c] ss:$16 sps:$4 sm:$0xff]  }
  0xec   :  { %5090 = vmatprep.subr.bf16.mxu0 %v7701_v6  ;;  %5623 = vmatprep.subr.bf16.mxu1 %v7704_v7  ;;  %v7783_v6 = vld [vmem:[%s11224_s1 + $0x920] ss:$16 sps:$4 sm:$0xff]   ;;  %v7786_v7 = vld [vmem:[%s11224_s1 + $0x928] ss:$16 sps:$4 sm:$0xff]  }
  0xef   :  { %5091 = vmatpush1.bf16.msra.mxu0 %v7699_v8  ;;  %5624 = vmatpush1.bf16.msra.mxu1 %v7702_v9  ;;  %v7791_v8 = vld [vmem:[%s11224_s1 + $0x944] ss:$16 sps:$4 sm:$0xff]   ;;  %v7794_v9 = vld [vmem:[%s11224_s1 + $0x94c] ss:$16 sps:$4 sm:$0xff]  }
  0xf0   :  { %5092 = vmatprep.subr.bf16.mxu0 %v7707_v10  ;;  %5625 = vmatprep.subr.bf16.mxu1 %v7710_v11  ;;  %v7789_v10 = vld [vmem:[%s11224_s1 + $0x940] ss:$16 sps:$4 sm:$0xff]   ;;  %v7792_v11 = vld [vmem:[%s11224_s1 + $0x948] ss:$16 sps:$4 sm:$0xff]  }
  0xf3   :  { %5093 = vmatpush1.bf16.msra.mxu0 %v7705_v12  ;;  %5626 = vmatpush1.bf16.msra.mxu1 %v7708_v52  ;;  %v7797_v12 = vld [vmem:[%s11224_s1 + $0x964] ss:$16 sps:$4 sm:$0xff]   ;;  %v7800_v52 = vld [vmem:[%s11224_s1 + $0x96c] ss:$16 sps:$4 sm:$0xff]  }
  0xf4   :  { %5094 = vmatprep.subr.bf16.mxu0 %v7713_v15  ;;  %5627 = vmatprep.subr.bf16.mxu1 %v7716_v16  ;;  %v7795_v15 = vld [vmem:[%s11224_s1 + $0x960] ss:$16 sps:$4 sm:$0xff]   ;;  %v7798_v16 = vld [vmem:[%s11224_s1 + $0x968] ss:$16 sps:$4 sm:$0xff]  }
  0xf7   :  { %5095 = vmatpush1.bf16.msra.mxu0 %v7711_v17  ;;  %5628 = vmatpush1.bf16.msra.mxu1 %v7714_v18  ;;  %v7803_v17 = vld [vmem:[%s11224_s1 + $0x984] ss:$16 sps:$4 sm:$0xff]   ;;  %v7806_v18 = vld [vmem:[%s11224_s1 + $0x98c] ss:$16 sps:$4 sm:$0xff]  }
  0xf8   :  { %5096 = vmatprep.subr.bf16.mxu0 %v7719_v19  ;;  %5629 = vmatprep.subr.bf16.mxu1 %v7722_v20  ;;  %v7801_v19 = vld [vmem:[%s11224_s1 + $0x980] ss:$16 sps:$4 sm:$0xff]   ;;  %v7804_v20 = vld [vmem:[%s11224_s1 + $0x988] ss:$16 sps:$4 sm:$0xff]  }
  0xfb   :  { %5097 = vmatpush1.bf16.msra.mxu0 %v7717_v22  ;;  %5630 = vmatpush1.bf16.msra.mxu1 %v7720_v23  ;;  %v7809_v22 = vld [vmem:[%s11224_s1 + $0x9a4] ss:$16 sps:$4 sm:$0xff]   ;;  %v7812_v23 = vld [vmem:[%s11224_s1 + $0x9ac] ss:$16 sps:$4 sm:$0xff]  }
  0xfc   :  { %5098 = vmatprep.subr.bf16.mxu0 %v7725_v24  ;;  %5631 = vmatprep.subr.bf16.mxu1 %v7728_v13  ;;  %v7807_v24 = vld [vmem:[%s11224_s1 + $0x9a0] ss:$16 sps:$4 sm:$0xff]   ;;  %v7810_v13 = vld [vmem:[%s11224_s1 + $0x9a8] ss:$16 sps:$4 sm:$0xff]  }
  0xff   :  { %5099 = vmatpush1.bf16.msra.mxu0 %v7723_v27  ;;  %5632 = vmatpush1.bf16.msra.mxu1 %v7726_v28  ;;  %v7815_v27 = vld [vmem:[%s11224_s1 + $0x9c4] ss:$16 sps:$4 sm:$0xff]   ;;  %v7818_v28 = vld [vmem:[%s11224_s1 + $0x9cc] ss:$16 sps:$4 sm:$0xff]  }
 0x100   :  { %5109 = vmatprep.subr.bf16.mxu0 %v7731_v29  ;;  %5642 = vmatprep.subr.bf16.mxu1 %v7734_v14  ;;  %v7813_v29 = vld [vmem:[%s11224_s1 + $0x9c0] ss:$16 sps:$4 sm:$0xff]   ;;  %v7816_v14 = vld [vmem:[%s11224_s1 + $0x9c8] ss:$16 sps:$4 sm:$0xff]  }
 0x102   :  { %5101 = vmatmul.mubr.bf16.vlgmr.msra.gmra.mrb[0].mxu0 %v882_v31  ;;  %5634 = vmatmul.mubr.bf16.vlgmr.msra.gmra.mrb[0].mxu1 %v882_v31  ;;  %v7824_v31 = vld [vmem:[%s11224_s1 + $0x9ec] ss:$16 sps:$4 sm:$0xff]  }
 0x103   :  { %5110 = vmatpush1.bf16.msra.mxu0 %v7729_v25  ;;  %5643 = vmatpush1.bf16.msra.mxu1 %v7732_v32  ;;  %v7819_v25 = vld [vmem:[%s11224_s1 + $0x9e0] ss:$16 sps:$4 sm:$0xff]   ;;  %v7822_v32 = vld [vmem:[%s11224_s1 + $0x9e8] ss:$16 sps:$4 sm:$0xff]  }
 0x104   :  { %5111 = vmatprep.subr.bf16.mxu0 %v7737_v33  ;;  %5644 = vmatprep.subr.bf16.mxu1 %v7740_v26  ;;  %v7827_v33 = vld [vmem:[%s11224_s1 + $0xa04] ss:$16 sps:$4 sm:$0xff]   ;;  %v7830_v26 = vld [vmem:[%s11224_s1 + $0xa0c] ss:$16 sps:$4 sm:$0xff]  }
 0x105   :  { %5141 = vmatprep.mubr.bf16.mxu0 %v9450_v34  ;;  %5674 = vmatprep.mubr.bf16.mxu1 %v9450_v34 }
 0x107   :  { %5112 = vmatpush1.bf16.msra.mxu0 %v7735_v35  ;;  %5645 = vmatpush1.bf16.msra.mxu1 %v7738_v36  ;;  %v9636_v35 = vrot.slane %v9407_v21, %v8749_v49  ;;  %v7825_v36 = vld [vmem:[%s11224_s1 + $0xa00] ss:$16 sps:$4 sm:$0xff]   ;;  %v7836_v21 = vld [vmem:[%s11224_s1 + $0xa2c] ss:$16 sps:$4 sm:$0xff]  }
 0x108   :  { %5113 = vmatprep.subr.bf16.mxu0 %v7743_v37  ;;  %5646 = vmatprep.subr.bf16.mxu1 %v7746_v38  ;;  %v7828_v37 = vld [vmem:[%s11224_s1 + $0xa08] ss:$16 sps:$4 sm:$0xff]   ;;  %v7833_v38 = vld [vmem:[%s11224_s1 + $0xa24] ss:$16 sps:$4 sm:$0xff]  }
 0x10b   :  { %5114 = vmatpush1.bf16.msra.mxu0 %v7741_v39  ;;  %5647 = vmatpush1.bf16.msra.mxu1 %v7744_v40  ;;  %v932_v39 = vcombine.high %v9450_v34, %v9450_v34  ;;  %v7831_v40 = vld [vmem:[%s11224_s1 + $0xa20] ss:$16 sps:$4 sm:$0xff]   ;;  %v7839_v34 = vld [vmem:[%s11224_s1 + $0xa44] ss:$16 sps:$4 sm:$0xff]  }
 0x10c   :  { %5115 = vmatprep.subr.bf16.mxu0 %v7749_v41  ;;  %5648 = vmatprep.subr.bf16.mxu1 %v7752_v43  ;;  %v7834_v41 = vld [vmem:[%s11224_s1 + $0xa28] ss:$16 sps:$4 sm:$0xff]   ;;  %v7842_v43 = vld [vmem:[%s11224_s1 + $0xa4c] ss:$16 sps:$4 sm:$0xff]  }
 0x10f   :  { %5116 = vmatpush1.bf16.msra.mxu0 %v7747_v44  ;;  %5649 = vmatpush1.bf16.msra.mxu1 %v7750_v45  ;;  %v7837_v44 = vld [vmem:[%s11224_s1 + $0xa40] ss:$16 sps:$4 sm:$0xff]   ;;  %v7840_v45 = vld [vmem:[%s11224_s1 + $0xa48] ss:$16 sps:$4 sm:$0xff]  }
 0x110   :  { %5117 = vmatprep.subr.bf16.mxu0 %v7755_v46  ;;  %5650 = vmatprep.subr.bf16.mxu1 %v7758_v47  ;;  %v7845_v46 = vld [vmem:[%s11224_s1 + $0xa64] ss:$16 sps:$4 sm:$0xff]   ;;  %v7848_v47 = vld [vmem:[%s11224_s1 + $0xa6c] ss:$16 sps:$4 sm:$0xff]  }
 0x113   :  { %5118 = vmatpush1.bf16.msra.mxu0 %v7753_v48  ;;  %5651 = vmatpush1.bf16.msra.mxu1 %v7756_v50  ;;  %v7843_v48 = vld [vmem:[%s11224_s1 + $0xa60] ss:$16 sps:$4 sm:$0xff]   ;;  %v7846_v50 = vld [vmem:[%s11224_s1 + $0xa68] ss:$16 sps:$4 sm:$0xff]  }
 0x114   :  { %5119 = vmatprep.subr.bf16.mxu0 %v7761_v51  ;;  %5652 = vmatprep.subr.bf16.mxu1 %v7764_v53  ;;  %v7851_v51 = vld [vmem:[%s11224_s1 + $0xa84] ss:$16 sps:$4 sm:$0xff]   ;;  %v7854_v53 = vld [vmem:[%s11224_s1 + $0xa8c] ss:$16 sps:$4 sm:$0xff]  }
 0x117   :  { %5120 = vmatpush1.bf16.msra.mxu0 %v7759_v54  ;;  %5653 = vmatpush1.bf16.msra.mxu1 %v7762_v55  ;;  %v7849_v54 = vld [vmem:[%s11224_s1 + $0xa80] ss:$16 sps:$4 sm:$0xff]   ;;  %v7852_v55 = vld [vmem:[%s11224_s1 + $0xa88] ss:$16 sps:$4 sm:$0xff]  }
 0x118   :  { %5121 = vmatprep.subr.bf16.mxu0 %v7767_v56  ;;  %5654 = vmatprep.subr.bf16.mxu1 %v7770_v57  ;;  %v7857_v56 = vld [vmem:[%s11224_s1 + $0xaa4] ss:$16 sps:$4 sm:$0xff]   ;;  %v7860_v57 = vld [vmem:[%s11224_s1 + $0xaac] ss:$16 sps:$4 sm:$0xff]  }
 0x11b   :  { %5122 = vmatpush1.bf16.msra.mxu0 %v7765_v58  ;;  %5655 = vmatpush1.bf16.msra.mxu1 %v7768_v59  ;;  %v7855_v58 = vld [vmem:[%s11224_s1 + $0xaa0] ss:$16 sps:$4 sm:$0xff]   ;;  %v7858_v59 = vld [vmem:[%s11224_s1 + $0xaa8] ss:$16 sps:$4 sm:$0xff]  }
 0x11c   :  { %5123 = vmatprep.subr.bf16.mxu0 %v7773_v60  ;;  %5656 = vmatprep.subr.bf16.mxu1 %v7776_v61  ;;  %v7863_v60 = vld [vmem:[%s11224_s1 + $0xac4] ss:$16 sps:$4 sm:$0xff]   ;;  %v7866_v61 = vld [vmem:[%s11224_s1 + $0xacc] ss:$16 sps:$4 sm:$0xff]  }
 0x11f   :  { %5124 = vmatpush1.bf16.msra.mxu0 %v7771_v62  ;;  %5657 = vmatpush1.bf16.msra.mxu1 %v7774_v63  ;;  %v7861_v62 = vld [vmem:[%s11224_s1 + $0xac0] ss:$16 sps:$4 sm:$0xff]   ;;  %v7864_v63 = vld [vmem:[%s11224_s1 + $0xac8] ss:$16 sps:$4 sm:$0xff]  }
 0x120   :  { %5125 = vmatprep.subr.bf16.mxu0 %v7779_v0  ;;  %5658 = vmatprep.subr.bf16.mxu1 %v7782_v1  ;;  %v7869_v0 = vld [vmem:[%s11224_s1 + $0xae4] ss:$16 sps:$4 sm:$0xff]   ;;  %v7872_v1 = vld [vmem:[%s11224_s1 + $0xaec] ss:$16 sps:$4 sm:$0xff]  }
 0x123   :  { %5126 = vmatpush1.bf16.msra.mxu0 %v7777_v2  ;;  %5659 = vmatpush1.bf16.msra.mxu1 %v7780_v3  ;;  %v7867_v2 = vld [vmem:[%s11224_s1 + $0xae0] ss:$16 sps:$4 sm:$0xff]   ;;  %v7870_v3 = vld [vmem:[%s11224_s1 + $0xae8] ss:$16 sps:$4 sm:$0xff]  }
 0x124   :  { %5127 = vmatprep.subr.bf16.mxu0 %v7785_v4  ;;  %5660 = vmatprep.subr.bf16.mxu1 %v7788_v5  ;;  %v7875_v4 = vld [vmem:[%s11224_s1 + $0xb04] ss:$16 sps:$4 sm:$0xff]   ;;  %v7878_v5 = vld [vmem:[%s11224_s1 + $0xb0c] ss:$16 sps:$4 sm:$0xff]  }
 0x127   :  { %5128 = vmatpush1.bf16.msra.mxu0 %v7783_v6  ;;  %5661 = vmatpush1.bf16.msra.mxu1 %v7786_v7  ;;  %v7873_v6 = vld [vmem:[%s11224_s1 + $0xb00] ss:$16 sps:$4 sm:$0xff]   ;;  %v7876_v7 = vld [vmem:[%s11224_s1 + $0xb08] ss:$16 sps:$4 sm:$0xff]  }
 0x128   :  { %5129 = vmatprep.subr.bf16.mxu0 %v7791_v8  ;;  %5662 = vmatprep.subr.bf16.mxu1 %v7794_v9  ;;  %v7881_v8 = vld [vmem:[%s11224_s1 + $0xb24] ss:$16 sps:$4 sm:$0xff]   ;;  %v7884_v9 = vld [vmem:[%s11224_s1 + $0xb2c] ss:$16 sps:$4 sm:$0xff]  }
 0x12b   :  { %5130 = vmatpush1.bf16.msra.mxu0 %v7789_v10  ;;  %5663 = vmatpush1.bf16.msra.mxu1 %v7792_v11  ;;  %v7879_v10 = vld [vmem:[%s11224_s1 + $0xb20] ss:$16 sps:$4 sm:$0xff]   ;;  %v7882_v11 = vld [vmem:[%s11224_s1 + $0xb28] ss:$16 sps:$4 sm:$0xff]  }
 0x12c   :  { %5131 = vmatprep.subr.bf16.mxu0 %v7797_v12  ;;  %5664 = vmatprep.subr.bf16.mxu1 %v7800_v52  ;;  %v7887_v12 = vld [vmem:[%s11224_s1 + $0xb44] ss:$16 sps:$4 sm:$0xff]   ;;  %v7890_v52 = vld [vmem:[%s11224_s1 + $0xb4c] ss:$16 sps:$4 sm:$0xff]  }
 0x12f   :  { %5132 = vmatpush1.bf16.msra.mxu0 %v7795_v15  ;;  %5665 = vmatpush1.bf16.msra.mxu1 %v7798_v16  ;;  %v7885_v15 = vld [vmem:[%s11224_s1 + $0xb40] ss:$16 sps:$4 sm:$0xff]   ;;  %v7888_v16 = vld [vmem:[%s11224_s1 + $0xb48] ss:$16 sps:$4 sm:$0xff]  }
 0x130   :  { %5133 = vmatprep.subr.bf16.mxu0 %v7803_v17  ;;  %5666 = vmatprep.subr.bf16.mxu1 %v7806_v18  ;;  %v7893_v17 = vld [vmem:[%s11224_s1 + $0xb64] ss:$16 sps:$4 sm:$0xff]   ;;  %v7896_v18 = vld [vmem:[%s11224_s1 + $0xb6c] ss:$16 sps:$4 sm:$0xff]  }
 0x133   :  { %5134 = vmatpush1.bf16.msra.mxu0 %v7801_v19  ;;  %5667 = vmatpush1.bf16.msra.mxu1 %v7804_v20  ;;  %v7891_v19 = vld [vmem:[%s11224_s1 + $0xb60] ss:$16 sps:$4 sm:$0xff]   ;;  %v7894_v20 = vld [vmem:[%s11224_s1 + $0xb68] ss:$16 sps:$4 sm:$0xff]  }
 0x134   :  { %5135 = vmatprep.subr.bf16.mxu0 %v7809_v22  ;;  %5668 = vmatprep.subr.bf16.mxu1 %v7812_v23  ;;  %v7899_v22 = vld [vmem:[%s11224_s1 + $0xb84] ss:$16 sps:$4 sm:$0xff]   ;;  %v7902_v23 = vld [vmem:[%s11224_s1 + $0xb8c] ss:$16 sps:$4 sm:$0xff]  }
 0x137   :  { %5136 = vmatpush1.bf16.msra.mxu0 %v7807_v24  ;;  %5669 = vmatpush1.bf16.msra.mxu1 %v7810_v13  ;;  %v7897_v24 = vld [vmem:[%s11224_s1 + $0xb80] ss:$16 sps:$4 sm:$0xff]   ;;  %v7900_v13 = vld [vmem:[%s11224_s1 + $0xb88] ss:$16 sps:$4 sm:$0xff]  }
 0x138   :  { %5137 = vmatprep.subr.bf16.mxu0 %v7815_v27  ;;  %5670 = vmatprep.subr.bf16.mxu1 %v7818_v28  ;;  %v7905_v27 = vld [vmem:[%s11224_s1 + $0xba4] ss:$16 sps:$4 sm:$0xff]   ;;  %v7908_v28 = vld [vmem:[%s11224_s1 + $0xbac] ss:$16 sps:$4 sm:$0xff]  }
 0x13b   :  { %5138 = vmatpush1.bf16.msra.mxu0 %v7813_v29  ;;  %5671 = vmatpush1.bf16.msra.mxu1 %v7816_v14  ;;  %v7903_v29 = vld [vmem:[%s11224_s1 + $0xba0] ss:$16 sps:$4 sm:$0xff]   ;;  %v7906_v14 = vld [vmem:[%s11224_s1 + $0xba8] ss:$16 sps:$4 sm:$0xff]  }
 0x13c   :  { %5139 = vmatprep.subr.bf16.mxu0 %v7821_v30  ;;  %5672 = vmatprep.subr.bf16.mxu1 %v7824_v31  ;;  %v7911_v30 = vld [vmem:[%s11224_s1 + $0xbc4] ss:$16 sps:$4 sm:$0xff]   ;;  %v7914_v31 = vld [vmem:[%s11224_s1 + $0xbcc] ss:$16 sps:$4 sm:$0xff]  }
 0x13f   :  { %5140 = vmatpush1.bf16.msra.mxu0 %v7819_v25  ;;  %5673 = vmatpush1.bf16.msra.mxu1 %v7822_v32  ;;  %v8555_v25 = vld [vmem:[%s11223_s0 + $0x8] sm:$0xff] }
 0x140   :  { %5150 = vmatprep.subr.bf16.mxu0 %v7827_v33  ;;  %5683 = vmatprep.subr.bf16.mxu1 %v7830_v26  ;;  %v885_v32 = vcombine.high %v8555_v25, %v8555_v25  ;;  %v7909_v33 = vld [vmem:[%s11224_s1 + $0xbc0] ss:$16 sps:$4 sm:$0xff]   ;;  %v7912_v26 = vld [vmem:[%s11224_s1 + $0xbc8] ss:$16 sps:$4 sm:$0xff]  }
 0x141   :  { %v7993_v25 = vld [vmem:[%s11224_s1 + $0xd80] ss:$16 sps:$4 sm:$0xff]  }
 0x142   :  { %5142 = vmatmul.mubr.bf16.vlgmr.msra.gmra.mrb[0].mxu0 %v9636_v35  ;;  %5675 = vmatmul.mubr.bf16.vlgmr.msra.gmra.mrb[0].mxu1 %v9636_v35 }
 0x143   :  { %5151 = vmatpush1.bf16.msra.mxu0 %v7825_v36  ;;  %5684 = vmatpush1.bf16.msra.mxu1 %v7828_v37  ;;  %v7917_v36 = vld [vmem:[%s11224_s1 + $0xbe4] ss:$16 sps:$4 sm:$0xff]   ;;  %v7920_v37 = vld [vmem:[%s11224_s1 + $0xbec] ss:$16 sps:$4 sm:$0xff]  }
 0x144   :  { %5152 = vmatprep.subr.bf16.mxu0 %v7833_v38  ;;  %5685 = vmatprep.subr.bf16.mxu1 %v7836_v21  ;;  %v9826_v38 = vrot.slane %v885_v32, %v8749_v49  ;;  %v7915_v21 = vld [vmem:[%s11224_s1 + $0xbe0] ss:$16 sps:$4 sm:$0xff]   ;;  %v7996_v32 = vld [vmem:[%s11224_s1 + $0xd88] ss:$16 sps:$4 sm:$0xff]  }
 0x145   :  { %5182 = vmatprep.mubr.bf16.mxu0 %v932_v39  ;;  %5715 = vmatprep.mubr.bf16.mxu1 %v932_v39  ;;  %v7918_v39 = vld [vmem:[%s11224_s1 + $0xbe8] ss:$16 sps:$4 sm:$0xff]  }
 0x147   :  { %5153 = vmatpush1.bf16.msra.mxu0 %v7831_v40  ;;  %5686 = vmatpush1.bf16.msra.mxu1 %v7834_v41  ;;  %v7923_v40 = vld [vmem:[%s11224_s1 + $0xc04] ss:$16 sps:$4 sm:$0xff]   ;;  %v7926_v41 = vld [vmem:[%s11224_s1 + $0xc0c] ss:$16 sps:$4 sm:$0xff]  }
 0x148   :  { %5154 = vmatprep.subr.bf16.mxu0 %v7839_v34  ;;  %5687 = vmatprep.subr.bf16.mxu1 %v7842_v43  ;;  %v901_v34 = vcombine.high %v9826_v38, %v9826_v38  ;;  %v930_v43 = vcombine.high %v9636_v35, %v9636_v35  ;;  %v7932_v35 = vld [vmem:[%s11224_s1 + $0xc2c] ss:$16 sps:$4 sm:$0xff]  }
 0x14b   :  { %5155 = vmatpush1.bf16.msra.mxu0 %v7837_v44  ;;  %5688 = vmatpush1.bf16.msra.mxu1 %v7840_v45  ;;  %v7921_v44 = vld [vmem:[%s11224_s1 + $0xc00] ss:$16 sps:$4 sm:$0xff]   ;;  %v7924_v45 = vld [vmem:[%s11224_s1 + $0xc08] ss:$16 sps:$4 sm:$0xff]  }
 0x14c   :  { %5156 = vmatprep.subr.bf16.mxu0 %v7845_v46  ;;  %5689 = vmatprep.subr.bf16.mxu1 %v7848_v47  ;;  %v7929_v46 = vld [vmem:[%s11224_s1 + $0xc24] ss:$16 sps:$4 sm:$0xff]   ;;  %v9857_v47 = vrot.slane %v901_v34, %v8749_v49 }
 0x14d   :  { %v8013_v34 = vld [vmem:[%s11224_s1 + $0xde4] ss:$16 sps:$4 sm:$0xff]  }
 0x14f   :  { %5157 = vmatpush1.bf16.msra.mxu0 %v7843_v48  ;;  %5690 = vmatpush1.bf16.msra.mxu1 %v7846_v50  ;;  %v7927_v48 = vld [vmem:[%s11224_s1 + $0xc20] ss:$16 sps:$4 sm:$0xff]   ;;  %v7930_v50 = vld [vmem:[%s11224_s1 + $0xc28] ss:$16 sps:$4 sm:$0xff]  }
 0x150   :  { %5158 = vmatprep.subr.bf16.mxu0 %v7851_v51  ;;  %5691 = vmatprep.subr.bf16.mxu1 %v7854_v53  ;;  %v7935_v51 = vld [vmem:[%s11224_s1 + $0xc44] ss:$16 sps:$4 sm:$0xff]   ;;  %v7938_v53 = vld [vmem:[%s11224_s1 + $0xc4c] ss:$16 sps:$4 sm:$0xff]  }
 0x153   :  { %5159 = vmatpush1.bf16.msra.mxu0 %v7849_v54  ;;  %5692 = vmatpush1.bf16.msra.mxu1 %v7852_v55  ;;  %v7933_v54 = vld [vmem:[%s11224_s1 + $0xc40] ss:$16 sps:$4 sm:$0xff]   ;;  %v7936_v55 = vld [vmem:[%s11224_s1 + $0xc48] ss:$16 sps:$4 sm:$0xff]  }
 0x154   :  { %5160 = vmatprep.subr.bf16.mxu0 %v7857_v56  ;;  %5693 = vmatprep.subr.bf16.mxu1 %v7860_v57  ;;  %v7941_v56 = vld [vmem:[%s11224_s1 + $0xc64] ss:$16 sps:$4 sm:$0xff]   ;;  %v7944_v57 = vld [vmem:[%s11224_s1 + $0xc6c] ss:$16 sps:$4 sm:$0xff]  }
 0x157   :  { %5161 = vmatpush1.bf16.msra.mxu0 %v7855_v58  ;;  %5694 = vmatpush1.bf16.msra.mxu1 %v7858_v59  ;;  %v7939_v58 = vld [vmem:[%s11224_s1 + $0xc60] ss:$16 sps:$4 sm:$0xff]   ;;  %v7942_v59 = vld [vmem:[%s11224_s1 + $0xc68] ss:$16 sps:$4 sm:$0xff]  }
 0x158   :  { %5162 = vmatprep.subr.bf16.mxu0 %v7863_v60  ;;  %5695 = vmatprep.subr.bf16.mxu1 %v7866_v61  ;;  %v7947_v60 = vld [vmem:[%s11224_s1 + $0xc84] ss:$16 sps:$4 sm:$0xff]   ;;  %v7950_v61 = vld [vmem:[%s11224_s1 + $0xc8c] ss:$16 sps:$4 sm:$0xff]  }
 0x15b   :  { %5163 = vmatpush1.bf16.msra.mxu0 %v7861_v62  ;;  %5696 = vmatpush1.bf16.msra.mxu1 %v7864_v63  ;;  %v7945_v62 = vld [vmem:[%s11224_s1 + $0xc80] ss:$16 sps:$4 sm:$0xff]   ;;  %v7948_v63 = vld [vmem:[%s11224_s1 + $0xc88] ss:$16 sps:$4 sm:$0xff]  }
 0x15c   :  { %5164 = vmatprep.subr.bf16.mxu0 %v7869_v0  ;;  %5697 = vmatprep.subr.bf16.mxu1 %v7872_v1  ;;  %v7953_v0 = vld [vmem:[%s11224_s1 + $0xca4] ss:$16 sps:$4 sm:$0xff]   ;;  %v7956_v1 = vld [vmem:[%s11224_s1 + $0xcac] ss:$16 sps:$4 sm:$0xff]  }
 0x15f   :  { %5165 = vmatpush1.bf16.msra.mxu0 %v7867_v2  ;;  %5698 = vmatpush1.bf16.msra.mxu1 %v7870_v3  ;;  %v7951_v2 = vld [vmem:[%s11224_s1 + $0xca0] ss:$16 sps:$4 sm:$0xff]   ;;  %v7954_v3 = vld [vmem:[%s11224_s1 + $0xca8] ss:$16 sps:$4 sm:$0xff]  }
 0x160   :  { %5166 = vmatprep.subr.bf16.mxu0 %v7875_v4  ;;  %5699 = vmatprep.subr.bf16.mxu1 %v7878_v5  ;;  %v7959_v4 = vld [vmem:[%s11224_s1 + $0xcc4] ss:$16 sps:$4 sm:$0xff]   ;;  %v7962_v5 = vld [vmem:[%s11224_s1 + $0xccc] ss:$16 sps:$4 sm:$0xff]  }
 0x163   :  { %5167 = vmatpush1.bf16.msra.mxu0 %v7873_v6  ;;  %5700 = vmatpush1.bf16.msra.mxu1 %v7876_v7  ;;  %v7957_v6 = vld [vmem:[%s11224_s1 + $0xcc0] ss:$16 sps:$4 sm:$0xff]   ;;  %v7960_v7 = vld [vmem:[%s11224_s1 + $0xcc8] ss:$16 sps:$4 sm:$0xff]  }
 0x164   :  { %5168 = vmatprep.subr.bf16.mxu0 %v7881_v8  ;;  %5701 = vmatprep.subr.bf16.mxu1 %v7884_v9  ;;  %v7965_v8 = vld [vmem:[%s11224_s1 + $0xce4] ss:$16 sps:$4 sm:$0xff]   ;;  %v7968_v9 = vld [vmem:[%s11224_s1 + $0xcec] ss:$16 sps:$4 sm:$0xff]  }
 0x167   :  { %5169 = vmatpush1.bf16.msra.mxu0 %v7879_v10  ;;  %5702 = vmatpush1.bf16.msra.mxu1 %v7882_v11  ;;  %v7963_v10 = vld [vmem:[%s11224_s1 + $0xce0] ss:$16 sps:$4 sm:$0xff]   ;;  %v7966_v11 = vld [vmem:[%s11224_s1 + $0xce8] ss:$16 sps:$4 sm:$0xff]  }
 0x168   :  { %5170 = vmatprep.subr.bf16.mxu0 %v7887_v12  ;;  %5703 = vmatprep.subr.bf16.mxu1 %v7890_v52  ;;  %v7971_v12 = vld [vmem:[%s11224_s1 + $0xd04] ss:$16 sps:$4 sm:$0xff]   ;;  %v7974_v52 = vld [vmem:[%s11224_s1 + $0xd0c] ss:$16 sps:$4 sm:$0xff]  }
 0x16b   :  { %5171 = vmatpush1.bf16.msra.mxu0 %v7885_v15  ;;  %5704 = vmatpush1.bf16.msra.mxu1 %v7888_v16  ;;  %v7969_v15 = vld [vmem:[%s11224_s1 + $0xd00] ss:$16 sps:$4 sm:$0xff]   ;;  %v7972_v16 = vld [vmem:[%s11224_s1 + $0xd08] ss:$16 sps:$4 sm:$0xff]  }
 0x16c   :  { %5172 = vmatprep.subr.bf16.mxu0 %v7893_v17  ;;  %5705 = vmatprep.subr.bf16.mxu1 %v7896_v18  ;;  %v7977_v17 = vld [vmem:[%s11224_s1 + $0xd24] ss:$16 sps:$4 sm:$0xff]   ;;  %v7980_v18 = vld [vmem:[%s11224_s1 + $0xd2c] ss:$16 sps:$4 sm:$0xff]  }
 0x16f   :  { %5173 = vmatpush1.bf16.msra.mxu0 %v7891_v19  ;;  %5706 = vmatpush1.bf16.msra.mxu1 %v7894_v20  ;;  %v7975_v19 = vld [vmem:[%s11224_s1 + $0xd20] ss:$16 sps:$4 sm:$0xff]   ;;  %v7978_v20 = vld [vmem:[%s11224_s1 + $0xd28] ss:$16 sps:$4 sm:$0xff]  }
 0x170   :  { %5174 = vmatprep.subr.bf16.mxu0 %v7899_v22  ;;  %5707 = vmatprep.subr.bf16.mxu1 %v7902_v23  ;;  %v7983_v22 = vld [vmem:[%s11224_s1 + $0xd44] ss:$16 sps:$4 sm:$0xff]   ;;  %v7986_v23 = vld [vmem:[%s11224_s1 + $0xd4c] ss:$16 sps:$4 sm:$0xff]  }
 0x173   :  { %5175 = vmatpush1.bf16.msra.mxu0 %v7897_v24  ;;  %5708 = vmatpush1.bf16.msra.mxu1 %v7900_v13  ;;  %v7981_v24 = vld [vmem:[%s11224_s1 + $0xd40] ss:$16 sps:$4 sm:$0xff]   ;;  %v7984_v13 = vld [vmem:[%s11224_s1 + $0xd48] ss:$16 sps:$4 sm:$0xff]  }
 0x174   :  { %5176 = vmatprep.subr.bf16.mxu0 %v7905_v27  ;;  %5709 = vmatprep.subr.bf16.mxu1 %v7908_v28  ;;  %v7989_v27 = vld [vmem:[%s11224_s1 + $0xd64] ss:$16 sps:$4 sm:$0xff]   ;;  %v7992_v28 = vld [vmem:[%s11224_s1 + $0xd6c] ss:$16 sps:$4 sm:$0xff]  }
 0x177   :  { %5177 = vmatpush1.bf16.msra.mxu0 %v7903_v29  ;;  %5710 = vmatpush1.bf16.msra.mxu1 %v7906_v14  ;;  %v7987_v29 = vld [vmem:[%s11224_s1 + $0xd60] ss:$16 sps:$4 sm:$0xff]   ;;  %v7990_v14 = vld [vmem:[%s11224_s1 + $0xd68] ss:$16 sps:$4 sm:$0xff]  }
 0x178   :  { %5178 = vmatprep.subr.bf16.mxu0 %v7911_v30  ;;  %5711 = vmatprep.subr.bf16.mxu1 %v7914_v31  ;;  %v7995_v30 = vld [vmem:[%s11224_s1 + $0xd84] ss:$16 sps:$4 sm:$0xff]   ;;  %v7998_v31 = vld [vmem:[%s11224_s1 + $0xd8c] ss:$16 sps:$4 sm:$0xff]  }
 0x17b   :  { %5179 = vmatpush1.bf16.msra.mxu0 %v7909_v33  ;;  %5712 = vmatpush1.bf16.msra.mxu1 %v7912_v26  ;;  %v8001_v33 = vld [vmem:[%s11224_s1 + $0xda4] ss:$16 sps:$4 sm:$0xff]   ;;  %v8004_v26 = vld [vmem:[%s11224_s1 + $0xdac] ss:$16 sps:$4 sm:$0xff]  }
 0x17c   :  { %5180 = vmatprep.subr.bf16.mxu0 %v7917_v36  ;;  %5713 = vmatprep.subr.bf16.mxu1 %v7920_v37  ;;  %v7999_v36 = vld [vmem:[%s11224_s1 + $0xda0] ss:$16 sps:$4 sm:$0xff]   ;;  %v8002_v37 = vld [vmem:[%s11224_s1 + $0xda8] ss:$16 sps:$4 sm:$0xff]  }
 0x17f   :  { %5181 = vmatpush1.bf16.msra.mxu0 %v7915_v21  ;;  %5714 = vmatpush1.bf16.msra.mxu1 %v7918_v39  ;;  %v8007_v21 = vld [vmem:[%s11224_s1 + $0xdc4] ss:$16 sps:$4 sm:$0xff]   ;;  %v8010_v39 = vld [vmem:[%s11224_s1 + $0xdcc] ss:$16 sps:$4 sm:$0xff]  }
 0x180   :  { %5191 = vmatprep.subr.bf16.mxu0 %v7923_v40  ;;  %5724 = vmatprep.subr.bf16.mxu1 %v7926_v41  ;;  %v8005_v40 = vld [vmem:[%s11224_s1 + $0xdc0] ss:$16 sps:$4 sm:$0xff]   ;;  %v8008_v41 = vld [vmem:[%s11224_s1 + $0xdc8] ss:$16 sps:$4 sm:$0xff]  }
 0x182   :  { %5183 = vmatmul.mubr.bf16.vlgmr.msra.gmra.mrb[0].mxu0 %v930_v43  ;;  %5716 = vmatmul.mubr.bf16.vlgmr.msra.gmra.mrb[0].mxu1 %v930_v43  ;;  %v8016_v43 = vld [vmem:[%s11224_s1 + $0xdec] ss:$16 sps:$4 sm:$0xff]  }
 0x183   :  { %5192 = vmatpush1.bf16.msra.mxu0 %v7921_v44  ;;  %5725 = vmatpush1.bf16.msra.mxu1 %v7924_v45  ;;  %v8011_v44 = vld [vmem:[%s11224_s1 + $0xde0] ss:$16 sps:$4 sm:$0xff]   ;;  %v8014_v45 = vld [vmem:[%s11224_s1 + $0xde8] ss:$16 sps:$4 sm:$0xff]  }
 0x184   :  { %5193 = vmatprep.subr.bf16.mxu0 %v7929_v46  ;;  %5726 = vmatprep.subr.bf16.mxu1 %v7932_v35  ;;  %v8020_v46 = vld [vmem:[%s11224_s1 + $0xe04] ss:$16 sps:$4 sm:$0xff]   ;;  %v8023_v35 = vld [vmem:[%s11224_s1 + $0xe0c] ss:$16 sps:$4 sm:$0xff]  }
 0x185   :  { %5223 = vmatprep.mubr.bf16.mxu0 %v9857_v47  ;;  %5756 = vmatprep.mubr.bf16.mxu1 %v9857_v47 }
 0x187   :  { %5194 = vmatpush1.bf16.msra.mxu0 %v7927_v48  ;;  %5727 = vmatpush1.bf16.msra.mxu1 %v7930_v50  ;;  %v10043_v48 = vrot.slane %v9826_v38, %v8749_v49  ;;  %v8018_v50 = vld [vmem:[%s11224_s1 + $0xe00] ss:$16 sps:$4 sm:$0xff]   ;;  %v8029_v38 = vld [vmem:[%s11224_s1 + $0xe2c] ss:$16 sps:$4 sm:$0xff]  }
 0x188   :  { %5195 = vmatprep.subr.bf16.mxu0 %v7935_v51  ;;  %5728 = vmatprep.subr.bf16.mxu1 %v7938_v53  ;;  %v8021_v51 = vld [vmem:[%s11224_s1 + $0xe08] ss:$16 sps:$4 sm:$0xff]   ;;  %v8026_v53 = vld [vmem:[%s11224_s1 + $0xe24] ss:$16 sps:$4 sm:$0xff]  }
 0x18b   :  { %5196 = vmatpush1.bf16.msra.mxu0 %v7933_v54  ;;  %5729 = vmatpush1.bf16.msra.mxu1 %v7936_v55  ;;  %v933_v54 = vcombine.high %v9857_v47, %v9857_v47  ;;  %v8024_v55 = vld [vmem:[%s11224_s1 + $0xe20] ss:$16 sps:$4 sm:$0xff]   ;;  %v8032_v47 = vld [vmem:[%s11224_s1 + $0xe44] ss:$16 sps:$4 sm:$0xff]  }
 0x18c   :  { %5197 = vmatprep.subr.bf16.mxu0 %v7941_v56  ;;  %5730 = vmatprep.subr.bf16.mxu1 %v7944_v57  ;;  %v8027_v56 = vld [vmem:[%s11224_s1 + $0xe28] ss:$16 sps:$4 sm:$0xff]   ;;  %v8035_v57 = vld [vmem:[%s11224_s1 + $0xe4c] ss:$16 sps:$4 sm:$0xff]  }
 0x18f   :  { %5198 = vmatpush1.bf16.msra.mxu0 %v7939_v58  ;;  %5731 = vmatpush1.bf16.msra.mxu1 %v7942_v59  ;;  %v8030_v58 = vld [vmem:[%s11224_s1 + $0xe40] ss:$16 sps:$4 sm:$0xff]   ;;  %v8033_v59 = vld [vmem:[%s11224_s1 + $0xe48] ss:$16 sps:$4 sm:$0xff]  }
 0x190   :  { %5199 = vmatprep.subr.bf16.mxu0 %v7947_v60  ;;  %5732 = vmatprep.subr.bf16.mxu1 %v7950_v61  ;;  %v8038_v60 = vld [vmem:[%s11224_s1 + $0xe64] ss:$16 sps:$4 sm:$0xff]   ;;  %v8041_v61 = vld [vmem:[%s11224_s1 + $0xe6c] ss:$16 sps:$4 sm:$0xff]  }
 0x193   :  { %5200 = vmatpush1.bf16.msra.mxu0 %v7945_v62  ;;  %5733 = vmatpush1.bf16.msra.mxu1 %v7948_v63  ;;  %v8036_v62 = vld [vmem:[%s11224_s1 + $0xe60] ss:$16 sps:$4 sm:$0xff]   ;;  %v8039_v63 = vld [vmem:[%s11224_s1 + $0xe68] ss:$16 sps:$4 sm:$0xff]  }
 0x194   :  { %5201 = vmatprep.subr.bf16.mxu0 %v7953_v0  ;;  %5734 = vmatprep.subr.bf16.mxu1 %v7956_v1  ;;  %v8044_v0 = vld [vmem:[%s11224_s1 + $0xe84] ss:$16 sps:$4 sm:$0xff]   ;;  %v8047_v1 = vld [vmem:[%s11224_s1 + $0xe8c] ss:$16 sps:$4 sm:$0xff]  }
 0x197   :  { %5202 = vmatpush1.bf16.msra.mxu0 %v7951_v2  ;;  %5735 = vmatpush1.bf16.msra.mxu1 %v7954_v3  ;;  %v8042_v2 = vld [vmem:[%s11224_s1 + $0xe80] ss:$16 sps:$4 sm:$0xff]   ;;  %v8045_v3 = vld [vmem:[%s11224_s1 + $0xe88] ss:$16 sps:$4 sm:$0xff]  }
 0x198   :  { %5203 = vmatprep.subr.bf16.mxu0 %v7959_v4  ;;  %5736 = vmatprep.subr.bf16.mxu1 %v7962_v5  ;;  %v8050_v4 = vld [vmem:[%s11224_s1 + $0xea4] ss:$16 sps:$4 sm:$0xff]   ;;  %v8053_v5 = vld [vmem:[%s11224_s1 + $0xeac] ss:$16 sps:$4 sm:$0xff]  }
 0x19b   :  { %5204 = vmatpush1.bf16.msra.mxu0 %v7957_v6  ;;  %5737 = vmatpush1.bf16.msra.mxu1 %v7960_v7  ;;  %v8048_v6 = vld [vmem:[%s11224_s1 + $0xea0] ss:$16 sps:$4 sm:$0xff]   ;;  %v8051_v7 = vld [vmem:[%s11224_s1 + $0xea8] ss:$16 sps:$4 sm:$0xff]  }
 0x19c   :  { %5205 = vmatprep.subr.bf16.mxu0 %v7965_v8  ;;  %5738 = vmatprep.subr.bf16.mxu1 %v7968_v9  ;;  %v8056_v8 = vld [vmem:[%s11224_s1 + $0xec4] ss:$16 sps:$4 sm:$0xff]   ;;  %v8059_v9 = vld [vmem:[%s11224_s1 + $0xecc] ss:$16 sps:$4 sm:$0xff]  }
 0x19f   :  { %5206 = vmatpush1.bf16.msra.mxu0 %v7963_v10  ;;  %5739 = vmatpush1.bf16.msra.mxu1 %v7966_v11  ;;  %v8054_v10 = vld [vmem:[%s11224_s1 + $0xec0] ss:$16 sps:$4 sm:$0xff]   ;;  %v8057_v11 = vld [vmem:[%s11224_s1 + $0xec8] ss:$16 sps:$4 sm:$0xff]  }
 0x1a0   :  { %5207 = vmatprep.subr.bf16.mxu0 %v7971_v12  ;;  %5740 = vmatprep.subr.bf16.mxu1 %v7974_v52  ;;  %v8062_v12 = vld [vmem:[%s11224_s1 + $0xee4] ss:$16 sps:$4 sm:$0xff]   ;;  %v8065_v52 = vld [vmem:[%s11224_s1 + $0xeec] ss:$16 sps:$4 sm:$0xff]  }
 0x1a3   :  { %5208 = vmatpush1.bf16.msra.mxu0 %v7969_v15  ;;  %5741 = vmatpush1.bf16.msra.mxu1 %v7972_v16  ;;  %v8060_v15 = vld [vmem:[%s11224_s1 + $0xee0] ss:$16 sps:$4 sm:$0xff]   ;;  %v8063_v16 = vld [vmem:[%s11224_s1 + $0xee8] ss:$16 sps:$4 sm:$0xff]  }
 0x1a4   :  { %5209 = vmatprep.subr.bf16.mxu0 %v7977_v17  ;;  %5742 = vmatprep.subr.bf16.mxu1 %v7980_v18  ;;  %v8068_v17 = vld [vmem:[%s11224_s1 + $0xf04] ss:$16 sps:$4 sm:$0xff]   ;;  %v8071_v18 = vld [vmem:[%s11224_s1 + $0xf0c] ss:$16 sps:$4 sm:$0xff]  }
 0x1a7   :  { %5210 = vmatpush1.bf16.msra.mxu0 %v7975_v19  ;;  %5743 = vmatpush1.bf16.msra.mxu1 %v7978_v20  ;;  %v8066_v19 = vld [vmem:[%s11224_s1 + $0xf00] ss:$16 sps:$4 sm:$0xff]   ;;  %v8069_v20 = vld [vmem:[%s11224_s1 + $0xf08] ss:$16 sps:$4 sm:$0xff]  }
 0x1a8   :  { %5211 = vmatprep.subr.bf16.mxu0 %v7983_v22  ;;  %5744 = vmatprep.subr.bf16.mxu1 %v7986_v23  ;;  %v8074_v22 = vld [vmem:[%s11224_s1 + $0xf24] ss:$16 sps:$4 sm:$0xff]   ;;  %v8077_v23 = vld [vmem:[%s11224_s1 + $0xf2c] ss:$16 sps:$4 sm:$0xff]  }
 0x1ab   :  { %5212 = vmatpush1.bf16.msra.mxu0 %v7981_v24  ;;  %5745 = vmatpush1.bf16.msra.mxu1 %v7984_v13  ;;  %v8072_v24 = vld [vmem:[%s11224_s1 + $0xf20] ss:$16 sps:$4 sm:$0xff]   ;;  %v8075_v13 = vld [vmem:[%s11224_s1 + $0xf28] ss:$16 sps:$4 sm:$0xff]  }
 0x1ac   :  { %5213 = vmatprep.subr.bf16.mxu0 %v7989_v27  ;;  %5746 = vmatprep.subr.bf16.mxu1 %v7992_v28  ;;  %v8080_v27 = vld [vmem:[%s11224_s1 + $0xf44] ss:$16 sps:$4 sm:$0xff]   ;;  %v8083_v28 = vld [vmem:[%s11224_s1 + $0xf4c] ss:$16 sps:$4 sm:$0xff]  }
 0x1af   :  { %5214 = vmatpush1.bf16.msra.mxu0 %v7987_v29  ;;  %5747 = vmatpush1.bf16.msra.mxu1 %v7990_v14  ;;  %v8078_v29 = vld [vmem:[%s11224_s1 + $0xf40] ss:$16 sps:$4 sm:$0xff]   ;;  %v8081_v14 = vld [vmem:[%s11224_s1 + $0xf48] ss:$16 sps:$4 sm:$0xff]  }
 0x1b0   :  { %5215 = vmatprep.subr.bf16.mxu0 %v7995_v30  ;;  %5748 = vmatprep.subr.bf16.mxu1 %v7998_v31  ;;  %v8086_v30 = vld [vmem:[%s11224_s1 + $0xf64] ss:$16 sps:$4 sm:$0xff]   ;;  %v8089_v31 = vld [vmem:[%s11224_s1 + $0xf6c] ss:$16 sps:$4 sm:$0xff]  }
 0x1b3   :  { %5216 = vmatpush1.bf16.msra.mxu0 %v7993_v25  ;;  %5749 = vmatpush1.bf16.msra.mxu1 %v7996_v32 }
 0x1b4   :  { %5217 = vmatprep.subr.bf16.mxu0 %v8001_v33  ;;  %5750 = vmatprep.subr.bf16.mxu1 %v8004_v26 }
 0x1b7   :  { %5218 = vmatpush1.bf16.msra.mxu0 %v7999_v36  ;;  %5751 = vmatpush1.bf16.msra.mxu1 %v8002_v37 }
 0x1b8   :  { %5219 = vmatprep.subr.bf16.mxu0 %v8007_v21  ;;  %5752 = vmatprep.subr.bf16.mxu1 %v8010_v39 }
 0x1bb   :  { %5220 = vmatpush1.bf16.msra.mxu0 %v8005_v40  ;;  %5753 = vmatpush1.bf16.msra.mxu1 %v8008_v41 }
 0x1bc   :  { %5221 = vmatprep.subr.bf16.mxu0 %v8013_v34  ;;  %5754 = vmatprep.subr.bf16.mxu1 %v8016_v43 }
 0x1bf   :  { %5222 = vmatpush1.bf16.msra.mxu0 %v8011_v44  ;;  %5755 = vmatpush1.bf16.msra.mxu1 %v8014_v45 }
 0x1c0   :  { %5232 = vmatprep.subr.bf16.mxu0 %v8020_v46  ;;  %5765 = vmatprep.subr.bf16.mxu1 %v8023_v35 }
 0x1c2   :  { %5224 = vmatmul.mubr.bf16.vlgmr.msra.gmra.mrb[0].mxu0 %v10043_v48  ;;  %5757 = vmatmul.mubr.bf16.vlgmr.msra.gmra.mrb[0].mxu1 %v10043_v48 }
 0x1c3   :  { %5233 = vmatpush1.bf16.msra.mxu0 %v8018_v50  ;;  %5766 = vmatpush1.bf16.msra.mxu1 %v8021_v51 }
 0x1c4   :  { %5234 = vmatprep.subr.bf16.mxu0 %v8026_v53  ;;  %5767 = vmatprep.subr.bf16.mxu1 %v8029_v38 }
 0x1c5   :  { %5264 = vmatprep.mubr.bf16.mxu0 %v933_v54  ;;  %5797 = vmatprep.mubr.bf16.mxu1 %v933_v54 }
 0x1c7   :  { %5235 = vmatpush1.bf16.msra.mxu0 %v8024_v55  ;;  %5768 = vmatpush1.bf16.msra.mxu1 %v8027_v56 }
 0x1c8   :  { %5236 = vmatprep.subr.bf16.mxu0 %v8032_v47  ;;  %5769 = vmatprep.subr.bf16.mxu1 %v8035_v57 }
 0x1cb   :  { %5237 = vmatpush1.bf16.msra.mxu0 %v8030_v58  ;;  %5770 = vmatpush1.bf16.msra.mxu1 %v8033_v59 }
 0x1cc   :  { %5238 = vmatprep.subr.bf16.mxu0 %v8038_v60  ;;  %5771 = vmatprep.subr.bf16.mxu1 %v8041_v61 }
 0x1cf   :  { %5239 = vmatpush1.bf16.msra.mxu0 %v8036_v62  ;;  %5772 = vmatpush1.bf16.msra.mxu1 %v8039_v63 }
 0x1d0   :  { %5240 = vmatprep.subr.bf16.mxu0 %v8044_v0  ;;  %5773 = vmatprep.subr.bf16.mxu1 %v8047_v1 }
 0x1d3   :  { %5241 = vmatpush1.bf16.msra.mxu0 %v8042_v2  ;;  %5774 = vmatpush1.bf16.msra.mxu1 %v8045_v3 }
 0x1d4   :  { %5242 = vmatprep.subr.bf16.mxu0 %v8050_v4  ;;  %5775 = vmatprep.subr.bf16.mxu1 %v8053_v5 }
 0x1d7   :  { %5243 = vmatpush1.bf16.msra.mxu0 %v8048_v6  ;;  %5776 = vmatpush1.bf16.msra.mxu1 %v8051_v7 }
 0x1d8   :  { %5244 = vmatprep.subr.bf16.mxu0 %v8056_v8  ;;  %5777 = vmatprep.subr.bf16.mxu1 %v8059_v9 }
 0x1db   :  { %5245 = vmatpush1.bf16.msra.mxu0 %v8054_v10  ;;  %5778 = vmatpush1.bf16.msra.mxu1 %v8057_v11 }
 0x1dc   :  { %5246 = vmatprep.subr.bf16.mxu0 %v8062_v12  ;;  %5779 = vmatprep.subr.bf16.mxu1 %v8065_v52 }
 0x1df   :  { %5247 = vmatpush1.bf16.msra.mxu0 %v8060_v15  ;;  %5780 = vmatpush1.bf16.msra.mxu1 %v8063_v16 }
 0x1e0   :  { %5248 = vmatprep.subr.bf16.mxu0 %v8068_v17  ;;  %5781 = vmatprep.subr.bf16.mxu1 %v8071_v18 }
 0x1e3   :  { %5249 = vmatpush1.bf16.msra.mxu0 %v8066_v19  ;;  %5782 = vmatpush1.bf16.msra.mxu1 %v8069_v20 }
 0x1e4   :  { %5250 = vmatprep.subr.bf16.mxu0 %v8074_v22  ;;  %5783 = vmatprep.subr.bf16.mxu1 %v8077_v23 }
 0x1e7   :  { %5251 = vmatpush1.bf16.msra.mxu0 %v8072_v24  ;;  %5784 = vmatpush1.bf16.msra.mxu1 %v8075_v13 }
 0x1e8   :  { %5252 = vmatprep.subr.bf16.mxu0 %v8080_v27  ;;  %5785 = vmatprep.subr.bf16.mxu1 %v8083_v28 }
 0x1e9   :  { %10 = vsyncpa [#allocation3], 0  ;;  %v8084_v25 = vld [vmem:[%s11224_s1 + $0xf60] ss:$16 sps:$4 sm:$0xff]   ;;  %v8087_v32 = vld [vmem:[%s11224_s1 + $0xf68] ss:$16 sps:$4 sm:$0xff]   ;;  %v931_v47 = vcombine.high %v10043_v48, %v10043_v48 }
 0x1ea   :  { %v8092_v33 = vld [vmem:[%s11224_s1 + $0xf84] ss:$16 sps:$4 sm:$0xff]   ;;  %v8095_v26 = vld [vmem:[%s11224_s1 + $0xf8c] ss:$16 sps:$4 sm:$0xff]   ;;  %v8090_v36 = vld [vmem:[%s11224_s1 + $0xf80] ss:$16 sps:$4 sm:$0xff]  }
 0x1eb   :  { %5253 = vmatpush1.bf16.msra.mxu0 %v8078_v29  ;;  %5786 = vmatpush1.bf16.msra.mxu1 %v8081_v14  ;;  %v8093_v37 = vld [vmem:[%s11224_s1 + $0xf88] ss:$16 sps:$4 sm:$0xff]   ;;  %v8098_v21 = vld [vmem:[%s11224_s1 + $0xfa4] ss:$16 sps:$4 sm:$0xff]   ;;  %v8101_v39 = vld [vmem:[%s11224_s1 + $0xfac] ss:$16 sps:$4 sm:$0xff]  }
 0x1ec   :  { %5254 = vmatprep.subr.bf16.mxu0 %v8086_v30  ;;  %5787 = vmatprep.subr.bf16.mxu1 %v8089_v31  ;;  %v8096_v40 = vld [vmem:[%s11224_s1 + $0xfa0] ss:$16 sps:$4 sm:$0xff]   ;;  %v8099_v41 = vld [vmem:[%s11224_s1 + $0xfa8] ss:$16 sps:$4 sm:$0xff]   ;;  %v8104_v34 = vld [vmem:[%s11224_s1 + $0xfc4] ss:$16 sps:$4 sm:$0xff]  }
 0x1ed   :  { %v8107_v43 = vld [vmem:[%s11224_s1 + $0xfcc] ss:$16 sps:$4 sm:$0xff]   ;;  %v10220_v44 = vld [vmem:[%s11223_s0 + $0x10] sm:$0xff]  ;;  %v8105_v46 = vld [vmem:[%s11224_s1 + $0xfc8] ss:$16 sps:$4 sm:$0xff]   ;;  %vm4941_vm0 = vcmask 523264  }
 0x1ee   :  { %v8102_v45 = vld [vmem:[%s11224_s1 + $0xfc0] ss:$16 sps:$4 sm:$0xff]   ;;  %v8110_v35 = vld [vmem:[%s11224_s1 + $0xfe4] ss:$16 sps:$4 sm:$0xff]   ;;  %v8113_v50 = vld [vmem:[%s11224_s1 + $0xfec] ss:$16 sps:$4 sm:$0xff]   ;;  %v10236_v51 = vrot.slane %v10220_v44, %v8749_v49 }
 0x1ef   :  { %5255 = vmatpush1.bf16.msra.mxu0 %v8084_v25  ;;  %5788 = vmatpush1.bf16.msra.mxu1 %v8087_v32  ;;  %v8108_v53 = vld [vmem:[%s11224_s1 + $0xfe0] ss:$16 sps:$4 sm:$0xff]   ;;  %v8111_v38 = vld [vmem:[%s11224_s1 + $0xfe8] ss:$16 sps:$4 sm:$0xff]   ;;  %v8116_v54 = vld [vmem:[%s11224_s1 + $0x1004] ss:$16 sps:$4 sm:$0xff]  }
 0x1f0   :  { %5256 = vmatprep.subr.bf16.mxu0 %v8092_v33  ;;  %5789 = vmatprep.subr.bf16.mxu1 %v8095_v26  ;;  %v8119_v55 = vld [vmem:[%s11224_s1 + $0x100c] ss:$16 sps:$4 sm:$0xff]   ;;  %v949_v56 = vcombine.high %v10236_v51, %v10236_v51  ;;  %v8114_v57 = vld [vmem:[%s11224_s1 + $0x1000] ss:$16 sps:$4 sm:$0xff]   ;;  %v8117_v58 = vld [vmem:[%s11224_s1 + $0x1008] ss:$16 sps:$4 sm:$0xff]  }
 0x1f1   :  { %v8122_v59 = vld [vmem:[%s11224_s1 + $0x1024] ss:$16 sps:$4 sm:$0xff]   ;;  %v8125_v48 = vld [vmem:[%s11224_s1 + $0x102c] ss:$16 sps:$4 sm:$0xff]   ;;  %v8120_v61 = vld [vmem:[%s11224_s1 + $0x1020] ss:$16 sps:$4 sm:$0xff]  }
 0x1f2   :  { %v10267_v60 = vrot.slane %v949_v56, %v8749_v49  ;;  %v8123_v62 = vld [vmem:[%s11224_s1 + $0x1028] ss:$16 sps:$4 sm:$0xff]   ;;  %v8128_v63 = vld [vmem:[%s11224_s1 + $0x1044] ss:$16 sps:$4 sm:$0xff]   ;;  %v8131_v0 = vld [vmem:[%s11224_s1 + $0x104c] ss:$16 sps:$4 sm:$0xff]  }
 0x1f3   :  { %5257 = vmatpush1.bf16.msra.mxu0 %v8090_v36  ;;  %5790 = vmatpush1.bf16.msra.mxu1 %v8093_v37  ;;  %v8126_v1 = vld [vmem:[%s11224_s1 + $0x1040] ss:$16 sps:$4 sm:$0xff]   ;;  %v8129_v2 = vld [vmem:[%s11224_s1 + $0x1048] ss:$16 sps:$4 sm:$0xff]   ;;  %v8134_v3 = vld [vmem:[%s11224_s1 + $0x1064] ss:$16 sps:$4 sm:$0xff]  }
 0x1f4   :  { %5258 = vmatprep.subr.bf16.mxu0 %v8098_v21  ;;  %5791 = vmatprep.subr.bf16.mxu1 %v8101_v39  ;;  %v8137_v4 = vld [vmem:[%s11224_s1 + $0x106c] ss:$16 sps:$4 sm:$0xff]   ;;  %v8132_v5 = vld [vmem:[%s11224_s1 + $0x1060] ss:$16 sps:$4 sm:$0xff]   ;;  %v8135_v6 = vld [vmem:[%s11224_s1 + $0x1068] ss:$16 sps:$4 sm:$0xff]  }
 0x1f5   :  { %v8140_v7 = vld [vmem:[%s11224_s1 + $0x1084] ss:$16 sps:$4 sm:$0xff]   ;;  %v8143_v8 = vld [vmem:[%s11224_s1 + $0x108c] ss:$16 sps:$4 sm:$0xff]   ;;  %v8138_v9 = vld [vmem:[%s11224_s1 + $0x1080] ss:$16 sps:$4 sm:$0xff]  }
 0x1f6   :  { %v8141_v10 = vld [vmem:[%s11224_s1 + $0x1088] ss:$16 sps:$4 sm:$0xff]   ;;  %v8146_v11 = vld [vmem:[%s11224_s1 + $0x10a4] ss:$16 sps:$4 sm:$0xff]   ;;  %v8149_v12 = vld [vmem:[%s11224_s1 + $0x10ac] ss:$16 sps:$4 sm:$0xff]  }
 0x1f7   :  { %5259 = vmatpush1.bf16.msra.mxu0 %v8096_v40  ;;  %5792 = vmatpush1.bf16.msra.mxu1 %v8099_v41  ;;  %v8144_v52 = vld [vmem:[%s11224_s1 + $0x10a0] ss:$16 sps:$4 sm:$0xff]   ;;  %v8147_v15 = vld [vmem:[%s11224_s1 + $0x10a8] ss:$16 sps:$4 sm:$0xff]   ;;  %v8152_v16 = vld [vmem:[%s11224_s1 + $0x10c4] ss:$16 sps:$4 sm:$0xff]  }
 0x1f8   :  { %5260 = vmatprep.subr.bf16.mxu0 %v8104_v34  ;;  %5793 = vmatprep.subr.bf16.mxu1 %v8107_v43  ;;  %v8155_v17 = vld [vmem:[%s11224_s1 + $0x10cc] ss:$16 sps:$4 sm:$0xff]   ;;  %v8150_v18 = vld [vmem:[%s11224_s1 + $0x10c0] ss:$16 sps:$4 sm:$0xff]   ;;  %v8153_v19 = vld [vmem:[%s11224_s1 + $0x10c8] ss:$16 sps:$4 sm:$0xff]  }
 0x1f9   :  { %v8158_v20 = vld [vmem:[%s11224_s1 + $0x10e4] ss:$16 sps:$4 sm:$0xff]   ;;  %v8161_v22 = vld [vmem:[%s11224_s1 + $0x10ec] ss:$16 sps:$4 sm:$0xff]   ;;  %v8156_v23 = vld [vmem:[%s11224_s1 + $0x10e0] ss:$16 sps:$4 sm:$0xff]  }
 0x1fa   :  { %v8159_v24 = vld [vmem:[%s11224_s1 + $0x10e8] ss:$16 sps:$4 sm:$0xff]   ;;  %v8164_v13 = vld [vmem:[%s11224_s1 + $0x1104] ss:$16 sps:$4 sm:$0xff]   ;;  %v8167_v27 = vld [vmem:[%s11224_s1 + $0x110c] ss:$16 sps:$4 sm:$0xff]  }
 0x1fb   :  { %5261 = vmatpush1.bf16.msra.mxu0 %v8102_v45  ;;  %5794 = vmatpush1.bf16.msra.mxu1 %v8105_v46  ;;  %v8162_v28 = vld [vmem:[%s11224_s1 + $0x1100] ss:$16 sps:$4 sm:$0xff]   ;;  %v8165_v29 = vld [vmem:[%s11224_s1 + $0x1108] ss:$16 sps:$4 sm:$0xff]   ;;  %v8170_v14 = vld [vmem:[%s11224_s1 + $0x1124] ss:$16 sps:$4 sm:$0xff]  }
 0x1fc   :  { %5262 = vmatprep.subr.bf16.mxu0 %v8110_v35  ;;  %5795 = vmatprep.subr.bf16.mxu1 %v8113_v50  ;;  %v8173_v30 = vld [vmem:[%s11224_s1 + $0x112c] ss:$16 sps:$4 sm:$0xff]   ;;  %v8168_v31 = vld [vmem:[%s11224_s1 + $0x1120] ss:$16 sps:$4 sm:$0xff]   ;;  %v8171_v25 = vld [vmem:[%s11224_s1 + $0x1128] ss:$16 sps:$4 sm:$0xff]  }
 0x1fd   :  { %v8176_v32 = vld [vmem:[%s11224_s1 + $0x1144] ss:$16 sps:$4 sm:$0xff]   ;;  %v8179_v33 = vld [vmem:[%s11224_s1 + $0x114c] ss:$16 sps:$4 sm:$0xff]   ;;  %v8174_v26 = vld [vmem:[%s11224_s1 + $0x1140] ss:$16 sps:$4 sm:$0xff]  }
 0x1fe   :  { %v8177_v36 = vld [vmem:[%s11224_s1 + $0x1148] ss:$16 sps:$4 sm:$0xff]   ;;  %v8182_v37 = vld [vmem:[%s11224_s1 + $0x1164] ss:$16 sps:$4 sm:$0xff]   ;;  %v8185_v21 = vld [vmem:[%s11224_s1 + $0x116c] ss:$16 sps:$4 sm:$0xff]  }
 0x1ff   :  { %5263 = vmatpush1.bf16.msra.mxu0 %v8108_v53  ;;  %5796 = vmatpush1.bf16.msra.mxu1 %v8111_v38  ;;  %v8180_v39 = vld [vmem:[%s11224_s1 + $0x1160] ss:$16 sps:$4 sm:$0xff]   ;;  %v8183_v40 = vld [vmem:[%s11224_s1 + $0x1168] ss:$16 sps:$4 sm:$0xff]   ;;  %v8188_v41 = vld [vmem:[%s11224_s1 + $0x1184] ss:$16 sps:$4 sm:$0xff]  }
 0x200   :  { %5273 = vmatprep.subr.bf16.mxu0 %v8116_v54  ;;  %5806 = vmatprep.subr.bf16.mxu1 %v8119_v55  ;;  %v8191_v34 = vld [vmem:[%s11224_s1 + $0x118c] ss:$16 sps:$4 sm:$0xff]   ;;  %v8186_v43 = vld [vmem:[%s11224_s1 + $0x1180] ss:$16 sps:$4 sm:$0xff]   ;;  %v8189_v45 = vld [vmem:[%s11224_s1 + $0x1188] ss:$16 sps:$4 sm:$0xff]  }
 0x201   :  { %v8194_v46 = vld [vmem:[%s11224_s1 + $0x11a4] ss:$16 sps:$4 sm:$0xff]   ;;  %v8197_v35 = vld [vmem:[%s11224_s1 + $0x11ac] ss:$16 sps:$4 sm:$0xff]   ;;  %v8192_v50 = vld [vmem:[%s11224_s1 + $0x11a0] ss:$16 sps:$4 sm:$0xff]  }
 0x202   :  { %5265 = vmatmul.mubr.bf16.vlgmr.msra.gmra.mrb[0].mxu0 %v931_v47  ;;  %5798 = vmatmul.mubr.bf16.vlgmr.msra.gmra.mrb[0].mxu1 %v931_v47  ;;  %v8195_v53 = vld [vmem:[%s11224_s1 + $0x11a8] ss:$16 sps:$4 sm:$0xff]   ;;  %v8200_v38 = vld [vmem:[%s11224_s1 + $0x11c4] ss:$16 sps:$4 sm:$0xff]   ;;  %v8203_v54 = vld [vmem:[%s11224_s1 + $0x11cc] ss:$16 sps:$4 sm:$0xff]  }
 0x203   :  { %5274 = vmatpush1.bf16.msra.mxu0 %v8114_v57  ;;  %5807 = vmatpush1.bf16.msra.mxu1 %v8117_v58  ;;  %v8198_v55 = vld [vmem:[%s11224_s1 + $0x11c0] ss:$16 sps:$4 sm:$0xff]   ;;  %v8201_v56 = vld [vmem:[%s11224_s1 + $0x11c8] ss:$16 sps:$4 sm:$0xff]   ;;  %v8206_v47 = vld [vmem:[%s11224_s1 + $0x11e4] ss:$16 sps:$4 sm:$0xff]  }
 0x204   :  { %5275 = vmatprep.subr.bf16.mxu0 %v8122_v59  ;;  %5808 = vmatprep.subr.bf16.mxu1 %v8125_v48  ;;  %v8209_v57 = vld [vmem:[%s11224_s1 + $0x11ec] ss:$16 sps:$4 sm:$0xff]   ;;  %v8204_v58 = vld [vmem:[%s11224_s1 + $0x11e0] ss:$16 sps:$4 sm:$0xff]   ;;  %v8207_v59 = vld [vmem:[%s11224_s1 + $0x11e8] ss:$16 sps:$4 sm:$0xff]  }
 0x205   :  { %5305 = vmatprep.mubr.bf16.mxu0 %v10267_v60  ;;  %5838 = vmatprep.mubr.bf16.mxu1 %v10267_v60  ;;  %v8212_v48 = vld [vmem:[%s11224_s1 + $0x1204] ss:$16 sps:$4 sm:$0xff]   ;;  %s8583_s6 = smov [#allocation2]  }
 0x206   :  { %s6369_s7 = sshll.u32 %s8583_s6, 4  ;;  %s6370_s7 = int_to_ptr.vmem [resolvable:$true] %s6369_s7 }
 0x207   :  { %5276 = vmatpush1.bf16.msra.mxu0 %v8120_v61  ;;  %5809 = vmatpush1.bf16.msra.mxu1 %v8123_v62  ;;  %v8215_v61 = vld [vmem:[%s11224_s1 + $0x120c] ss:$16 sps:$4 sm:$0xff]   ;;  %v10453_v62 = vrot.slane %v10236_v51, %v8749_v49  ;;  %s8557_s8 = scalar_lea.vmem %s6370_s7, 32  ;;  %p8562_p1 = scmp.lt.s32.totalorder %s6370_s7, %s6370_s7 }
 0x208   :  { %5277 = vmatprep.subr.bf16.mxu0 %v8128_v63  ;;  %5810 = vmatprep.subr.bf16.mxu1 %v8131_v0  ;;  %v8210_v63 = vld [vmem:[%s11224_s1 + $0x1200] ss:$16 sps:$4 sm:$0xff]   ;;  %v8213_v0 = vld [vmem:[%s11224_s1 + $0x1208] ss:$16 sps:$4 sm:$0xff]   ;;  %v8221_v51 = vld [vmem:[%s11224_s1 + $0x122c] ss:$16 sps:$4 sm:$0xff]   ;;  %p8558_p0 = scmp.ne.s32.totalorder %s6370_s7, %s8557_s8  ;;  %p8563_p2 = scmp.lt.s32.totalorder %s8557_s8, %s8557_s8 }
 0x20a   :  { %p8564_p3 = por %p8563_p2, %p8562_p1 }
 0x20b   :  { %5278 = vmatpush1.bf16.msra.mxu0 %v8126_v1  ;;  %5811 = vmatpush1.bf16.msra.mxu1 %v8129_v2  ;;  %v8218_v1 = vld [vmem:[%s11224_s1 + $0x1224] ss:$16 sps:$4 sm:$0xff]   ;;  %v981_v2 = vcombine.high %v10267_v60, %v10267_v60 }
 0x20c   :  { %5279 = vmatprep.subr.bf16.mxu0 %v8134_v3  ;;  %5812 = vmatprep.subr.bf16.mxu1 %v8137_v4  ;;  %v8216_v3 = vld [vmem:[%s11224_s1 + $0x1220] ss:$16 sps:$4 sm:$0xff]   ;;  %v8219_v4 = vld [vmem:[%s11224_s1 + $0x1228] ss:$16 sps:$4 sm:$0xff]   ;;  %v8224_v60 = vld [vmem:[%s11224_s1 + $0x1244] ss:$16 sps:$4 sm:$0xff]   ;;  %p8565_p4 = pnand %p8564_p3, %p8558_p0 }
 0x20f   :  { %5280 = vmatpush1.bf16.msra.mxu0 %v8132_v5  ;;  %5813 = vmatpush1.bf16.msra.mxu1 %v8135_v6  ;;  %v8227_v5 = vld [vmem:[%s11224_s1 + $0x124c] ss:$16 sps:$4 sm:$0xff]   ;;  %v8222_v6 = vld [vmem:[%s11224_s1 + $0x1240] ss:$16 sps:$4 sm:$0xff]  }
 0x210   :  { %5281 = vmatprep.subr.bf16.mxu0 %v8140_v7  ;;  %5814 = vmatprep.subr.bf16.mxu1 %v8143_v8  ;;  %v8225_v7 = vld [vmem:[%s11224_s1 + $0x1248] ss:$16 sps:$4 sm:$0xff]   ;;  %v8230_v8 = vld [vmem:[%s11224_s1 + $0x1264] ss:$16 sps:$4 sm:$0xff]  }
 0x213   :  { %5282 = vmatpush1.bf16.msra.mxu0 %v8138_v9  ;;  %5815 = vmatpush1.bf16.msra.mxu1 %v8141_v10  ;;  %v8233_v9 = vld [vmem:[%s11224_s1 + $0x126c] ss:$16 sps:$4 sm:$0xff]   ;;  %v8228_v10 = vld [vmem:[%s11224_s1 + $0x1260] ss:$16 sps:$4 sm:$0xff]  }
 0x214   :  { %5283 = vmatprep.subr.bf16.mxu0 %v8146_v11  ;;  %5816 = vmatprep.subr.bf16.mxu1 %v8149_v12  ;;  %v8231_v11 = vld [vmem:[%s11224_s1 + $0x1268] ss:$16 sps:$4 sm:$0xff]   ;;  %v8236_v12 = vld [vmem:[%s11224_s1 + $0x1284] ss:$16 sps:$4 sm:$0xff]  }
 0x217   :  { %5284 = vmatpush1.bf16.msra.mxu0 %v8144_v52  ;;  %5817 = vmatpush1.bf16.msra.mxu1 %v8147_v15  ;;  %v8239_v52 = vld [vmem:[%s11224_s1 + $0x128c] ss:$16 sps:$4 sm:$0xff]   ;;  %v8234_v15 = vld [vmem:[%s11224_s1 + $0x1280] ss:$16 sps:$4 sm:$0xff]  }
 0x218   :  { %5285 = vmatprep.subr.bf16.mxu0 %v8152_v16  ;;  %5818 = vmatprep.subr.bf16.mxu1 %v8155_v17  ;;  %v8237_v16 = vld [vmem:[%s11224_s1 + $0x1288] ss:$16 sps:$4 sm:$0xff]   ;;  %v8242_v17 = vld [vmem:[%s11224_s1 + $0x12a4] ss:$16 sps:$4 sm:$0xff]  }
 0x21b   :  { %5286 = vmatpush1.bf16.msra.mxu0 %v8150_v18  ;;  %5819 = vmatpush1.bf16.msra.mxu1 %v8153_v19  ;;  %v8245_v18 = vld [vmem:[%s11224_s1 + $0x12ac] ss:$16 sps:$4 sm:$0xff]   ;;  %v8240_v19 = vld [vmem:[%s11224_s1 + $0x12a0] ss:$16 sps:$4 sm:$0xff]  }
 0x21c   :  { %5287 = vmatprep.subr.bf16.mxu0 %v8158_v20  ;;  %5820 = vmatprep.subr.bf16.mxu1 %v8161_v22  ;;  %v8243_v20 = vld [vmem:[%s11224_s1 + $0x12a8] ss:$16 sps:$4 sm:$0xff]   ;;  %v8248_v22 = vld [vmem:[%s11224_s1 + $0x12c4] ss:$16 sps:$4 sm:$0xff]  }
 0x21f   :  { %5288 = vmatpush1.bf16.msra.mxu0 %v8156_v23  ;;  %5821 = vmatpush1.bf16.msra.mxu1 %v8159_v24  ;;  %v8251_v23 = vld [vmem:[%s11224_s1 + $0x12cc] ss:$16 sps:$4 sm:$0xff]   ;;  %v8246_v24 = vld [vmem:[%s11224_s1 + $0x12c0] ss:$16 sps:$4 sm:$0xff]  }
 0x220   :  { %5289 = vmatprep.subr.bf16.mxu0 %v8164_v13  ;;  %5822 = vmatprep.subr.bf16.mxu1 %v8167_v27  ;;  %v8249_v13 = vld [vmem:[%s11224_s1 + $0x12c8] ss:$16 sps:$4 sm:$0xff]   ;;  %v8254_v27 = vld [vmem:[%s11224_s1 + $0x12e4] ss:$16 sps:$4 sm:$0xff]  }
 0x223   :  { %5290 = vmatpush1.bf16.msra.mxu0 %v8162_v28  ;;  %5823 = vmatpush1.bf16.msra.mxu1 %v8165_v29  ;;  %v8257_v28 = vld [vmem:[%s11224_s1 + $0x12ec] ss:$16 sps:$4 sm:$0xff]   ;;  %v8252_v29 = vld [vmem:[%s11224_s1 + $0x12e0] ss:$16 sps:$4 sm:$0xff]  }
 0x224   :  { %5291 = vmatprep.subr.bf16.mxu0 %v8170_v14  ;;  %5824 = vmatprep.subr.bf16.mxu1 %v8173_v30  ;;  %v8255_v14 = vld [vmem:[%s11224_s1 + $0x12e8] ss:$16 sps:$4 sm:$0xff]   ;;  %v8260_v30 = vld [vmem:[%s11224_s1 + $0x1304] ss:$16 sps:$4 sm:$0xff]  }
 0x227   :  { %5292 = vmatpush1.bf16.msra.mxu0 %v8168_v31  ;;  %5825 = vmatpush1.bf16.msra.mxu1 %v8171_v25  ;;  %v8263_v31 = vld [vmem:[%s11224_s1 + $0x130c] ss:$16 sps:$4 sm:$0xff]   ;;  %v8258_v25 = vld [vmem:[%s11224_s1 + $0x1300] ss:$16 sps:$4 sm:$0xff]  }
 0x228   :  { %5293 = vmatprep.subr.bf16.mxu0 %v8176_v32  ;;  %5826 = vmatprep.subr.bf16.mxu1 %v8179_v33  ;;  %v8261_v32 = vld [vmem:[%s11224_s1 + $0x1308] ss:$16 sps:$4 sm:$0xff]   ;;  %v8266_v33 = vld [vmem:[%s11224_s1 + $0x1324] ss:$16 sps:$4 sm:$0xff]  }
 0x22b   :  { %5294 = vmatpush1.bf16.msra.mxu0 %v8174_v26  ;;  %5827 = vmatpush1.bf16.msra.mxu1 %v8177_v36  ;;  %v8269_v26 = vld [vmem:[%s11224_s1 + $0x132c] ss:$16 sps:$4 sm:$0xff]   ;;  %v8264_v36 = vld [vmem:[%s11224_s1 + $0x1320] ss:$16 sps:$4 sm:$0xff]  }
 0x22c   :  { %5295 = vmatprep.subr.bf16.mxu0 %v8182_v37  ;;  %5828 = vmatprep.subr.bf16.mxu1 %v8185_v21  ;;  %v8267_v37 = vld [vmem:[%s11224_s1 + $0x1328] ss:$16 sps:$4 sm:$0xff]   ;;  %v8272_v21 = vld [vmem:[%s11224_s1 + $0x1344] ss:$16 sps:$4 sm:$0xff]  }
 0x22f   :  { %5296 = vmatpush1.bf16.msra.mxu0 %v8180_v39  ;;  %5829 = vmatpush1.bf16.msra.mxu1 %v8183_v40  ;;  %v8275_v39 = vld [vmem:[%s11224_s1 + $0x134c] ss:$16 sps:$4 sm:$0xff]   ;;  %v8270_v40 = vld [vmem:[%s11224_s1 + $0x1340] ss:$16 sps:$4 sm:$0xff]  }
 0x230   :  { %5297 = vmatprep.subr.bf16.mxu0 %v8188_v41  ;;  %5830 = vmatprep.subr.bf16.mxu1 %v8191_v34  ;;  %v8273_v41 = vld [vmem:[%s11224_s1 + $0x1348] ss:$16 sps:$4 sm:$0xff]   ;;  %v8278_v34 = vld [vmem:[%s11224_s1 + $0x1364] ss:$16 sps:$4 sm:$0xff]  }
 0x233   :  { %5298 = vmatpush1.bf16.msra.mxu0 %v8186_v43  ;;  %5831 = vmatpush1.bf16.msra.mxu1 %v8189_v45  ;;  %v8281_v43 = vld [vmem:[%s11224_s1 + $0x136c] ss:$16 sps:$4 sm:$0xff]   ;;  %v8276_v45 = vld [vmem:[%s11224_s1 + $0x1360] ss:$16 sps:$4 sm:$0xff]  }
 0x234   :  { %5299 = vmatprep.subr.bf16.mxu0 %v8194_v46  ;;  %5832 = vmatprep.subr.bf16.mxu1 %v8197_v35  ;;  %v8279_v46 = vld [vmem:[%s11224_s1 + $0x1368] ss:$16 sps:$4 sm:$0xff]   ;;  %v8284_v35 = vld [vmem:[%s11224_s1 + $0x1384] ss:$16 sps:$4 sm:$0xff]  }
 0x237   :  { %5300 = vmatpush1.bf16.msra.mxu0 %v8192_v50  ;;  %5833 = vmatpush1.bf16.msra.mxu1 %v8195_v53  ;;  %v8287_v50 = vld [vmem:[%s11224_s1 + $0x138c] ss:$16 sps:$4 sm:$0xff]   ;;  %v8282_v53 = vld [vmem:[%s11224_s1 + $0x1380] ss:$16 sps:$4 sm:$0xff]  }
 0x238   :  { %5301 = vmatprep.subr.bf16.mxu0 %v8200_v38  ;;  %5834 = vmatprep.subr.bf16.mxu1 %v8203_v54  ;;  %v8285_v38 = vld [vmem:[%s11224_s1 + $0x1388] ss:$16 sps:$4 sm:$0xff]   ;;  %v8290_v54 = vld [vmem:[%s11224_s1 + $0x13a4] ss:$16 sps:$4 sm:$0xff]  }
 0x23b   :  { %5302 = vmatpush1.bf16.msra.mxu0 %v8198_v55  ;;  %5835 = vmatpush1.bf16.msra.mxu1 %v8201_v56  ;;  %v8293_v55 = vld [vmem:[%s11224_s1 + $0x13ac] ss:$16 sps:$4 sm:$0xff]   ;;  %v8288_v56 = vld [vmem:[%s11224_s1 + $0x13a0] ss:$16 sps:$4 sm:$0xff]  }
 0x23c   :  { %5303 = vmatprep.subr.bf16.mxu0 %v8206_v47  ;;  %5836 = vmatprep.subr.bf16.mxu1 %v8209_v57  ;;  %v8291_v47 = vld [vmem:[%s11224_s1 + $0x13a8] ss:$16 sps:$4 sm:$0xff]   ;;  %v8296_v57 = vld [vmem:[%s11224_s1 + $0x13c4] ss:$16 sps:$4 sm:$0xff]  }
 0x23f   :  { %5304 = vmatpush1.bf16.msra.mxu0 %v8204_v58  ;;  %5837 = vmatpush1.bf16.msra.mxu1 %v8207_v59  ;;  %v8299_v58 = vld [vmem:[%s11224_s1 + $0x13cc] ss:$16 sps:$4 sm:$0xff]   ;;  %v934_v59 = vcombine.high %v10220_v44, %v10220_v44 }
 0x240   :  { %5314 = vmatprep.subr.bf16.mxu0 %v8212_v48  ;;  %5847 = vmatprep.subr.bf16.mxu1 %v8215_v61  ;;  %v8294_v48 = vld [vmem:[%s11224_s1 + $0x13c0] ss:$16 sps:$4 sm:$0xff]   ;;  %v8297_v61 = vld [vmem:[%s11224_s1 + $0x13c8] ss:$16 sps:$4 sm:$0xff]   ;;  %v8305_v44 = vld [vmem:[%s11224_s1 + $0x13ec] ss:$16 sps:$4 sm:$0xff]  }
 0x242   :  { %5306 = vmatmul.mubr.bf16.vlgmr.msra.gmra.mrb[0].mxu0 %v10453_v62  ;;  %5839 = vmatmul.mubr.bf16.vlgmr.msra.gmra.mrb[0].mxu1 %v10453_v62 }
 0x243   :  { %5315 = vmatpush1.bf16.msra.mxu0 %v8210_v63  ;;  %5848 = vmatpush1.bf16.msra.mxu1 %v8213_v0  ;;  %v8302_v63 = vld [vmem:[%s11224_s1 + $0x13e4] ss:$16 sps:$4 sm:$0xff]   ;;  %v10642_v0 = vrot.slane %v934_v59, %v8749_v49  ;;  %v8381_v59 = vld [vmem:[%s11224_s1 + $0x1588] ss:$16 sps:$4 sm:$0xff]  }
 0x244   :  { %5316 = vmatprep.subr.bf16.mxu0 %v8218_v1  ;;  %5849 = vmatprep.subr.bf16.mxu1 %v8221_v51  ;;  %v8300_v1 = vld [vmem:[%s11224_s1 + $0x13e0] ss:$16 sps:$4 sm:$0xff]   ;;  %v8303_v51 = vld [vmem:[%s11224_s1 + $0x13e8] ss:$16 sps:$4 sm:$0xff]  }
 0x245   :  { %5346 = vmatprep.mubr.bf16.mxu0 %v981_v2  ;;  %5879 = vmatprep.mubr.bf16.mxu1 %v981_v2  ;;  %v8308_v2 = vld [vmem:[%s11224_s1 + $0x1404] ss:$16 sps:$4 sm:$0xff]  }
 0x247   :  { %5317 = vmatpush1.bf16.msra.mxu0 %v8216_v3  ;;  %5850 = vmatpush1.bf16.msra.mxu1 %v8219_v4  ;;  %v8311_v3 = vld [vmem:[%s11224_s1 + $0x140c] ss:$16 sps:$4 sm:$0xff]   ;;  %v950_v4 = vcombine.high %v10642_v0, %v10642_v0 }
 0x248   :  { %5318 = vmatprep.subr.bf16.mxu0 %v8224_v60  ;;  %5851 = vmatprep.subr.bf16.mxu1 %v8227_v5  ;;  %v979_v60 = vcombine.high %v10453_v62, %v10453_v62  ;;  %v8306_v5 = vld [vmem:[%s11224_s1 + $0x1400] ss:$16 sps:$4 sm:$0xff]   ;;  %v8317_v62 = vld [vmem:[%s11224_s1 + $0x142c] ss:$16 sps:$4 sm:$0xff]  }
 0x24b   :  { %5319 = vmatpush1.bf16.msra.mxu0 %v8222_v6  ;;  %5852 = vmatpush1.bf16.msra.mxu1 %v8225_v7  ;;  %v8309_v6 = vld [vmem:[%s11224_s1 + $0x1408] ss:$16 sps:$4 sm:$0xff]   ;;  %v8314_v7 = vld [vmem:[%s11224_s1 + $0x1424] ss:$16 sps:$4 sm:$0xff]  }
 0x24c   :  { %5320 = vmatprep.subr.bf16.mxu0 %v8230_v8  ;;  %5853 = vmatprep.subr.bf16.mxu1 %v8233_v9  ;;  %v10673_v8 = vrot.slane %v950_v4, %v8749_v49  ;;  %v8312_v9 = vld [vmem:[%s11224_s1 + $0x1420] ss:$16 sps:$4 sm:$0xff]   ;;  %v8398_v4 = vld [vmem:[%s11224_s1 + $0x15e4] ss:$16 sps:$4 sm:$0xff]  }
 0x24f   :  { %5321 = vmatpush1.bf16.msra.mxu0 %v8228_v10  ;;  %5854 = vmatpush1.bf16.msra.mxu1 %v8231_v11  ;;  %v8315_v10 = vld [vmem:[%s11224_s1 + $0x1428] ss:$16 sps:$4 sm:$0xff]   ;;  %v8320_v11 = vld [vmem:[%s11224_s1 + $0x1444] ss:$16 sps:$4 sm:$0xff]  }
 0x250   :  { %5322 = vmatprep.subr.bf16.mxu0 %v8236_v12  ;;  %5855 = vmatprep.subr.bf16.mxu1 %v8239_v52  ;;  %v8323_v12 = vld [vmem:[%s11224_s1 + $0x144c] ss:$16 sps:$4 sm:$0xff]   ;;  %v8318_v52 = vld [vmem:[%s11224_s1 + $0x1440] ss:$16 sps:$4 sm:$0xff]  }
 0x253   :  { %5323 = vmatpush1.bf16.msra.mxu0 %v8234_v15  ;;  %5856 = vmatpush1.bf16.msra.mxu1 %v8237_v16  ;;  %v8321_v15 = vld [vmem:[%s11224_s1 + $0x1448] ss:$16 sps:$4 sm:$0xff]   ;;  %v8326_v16 = vld [vmem:[%s11224_s1 + $0x1464] ss:$16 sps:$4 sm:$0xff]  }
 0x254   :  { %5324 = vmatprep.subr.bf16.mxu0 %v8242_v17  ;;  %5857 = vmatprep.subr.bf16.mxu1 %v8245_v18  ;;  %v8329_v17 = vld [vmem:[%s11224_s1 + $0x146c] ss:$16 sps:$4 sm:$0xff]   ;;  %v8324_v18 = vld [vmem:[%s11224_s1 + $0x1460] ss:$16 sps:$4 sm:$0xff]  }
 0x257   :  { %5325 = vmatpush1.bf16.msra.mxu0 %v8240_v19  ;;  %5858 = vmatpush1.bf16.msra.mxu1 %v8243_v20  ;;  %v8327_v19 = vld [vmem:[%s11224_s1 + $0x1468] ss:$16 sps:$4 sm:$0xff]   ;;  %v8332_v20 = vld [vmem:[%s11224_s1 + $0x1484] ss:$16 sps:$4 sm:$0xff]  }
 0x258   :  { %5326 = vmatprep.subr.bf16.mxu0 %v8248_v22  ;;  %5859 = vmatprep.subr.bf16.mxu1 %v8251_v23  ;;  %v8335_v22 = vld [vmem:[%s11224_s1 + $0x148c] ss:$16 sps:$4 sm:$0xff]   ;;  %v8330_v23 = vld [vmem:[%s11224_s1 + $0x1480] ss:$16 sps:$4 sm:$0xff]  }
 0x25b   :  { %5327 = vmatpush1.bf16.msra.mxu0 %v8246_v24  ;;  %5860 = vmatpush1.bf16.msra.mxu1 %v8249_v13  ;;  %v8333_v24 = vld [vmem:[%s11224_s1 + $0x1488] ss:$16 sps:$4 sm:$0xff]   ;;  %v8338_v13 = vld [vmem:[%s11224_s1 + $0x14a4] ss:$16 sps:$4 sm:$0xff]  }
 0x25c   :  { %5328 = vmatprep.subr.bf16.mxu0 %v8254_v27  ;;  %5861 = vmatprep.subr.bf16.mxu1 %v8257_v28  ;;  %v8341_v27 = vld [vmem:[%s11224_s1 + $0x14ac] ss:$16 sps:$4 sm:$0xff]   ;;  %v8336_v28 = vld [vmem:[%s11224_s1 + $0x14a0] ss:$16 sps:$4 sm:$0xff]  }
 0x25f   :  { %5329 = vmatpush1.bf16.msra.mxu0 %v8252_v29  ;;  %5862 = vmatpush1.bf16.msra.mxu1 %v8255_v14  ;;  %v8339_v29 = vld [vmem:[%s11224_s1 + $0x14a8] ss:$16 sps:$4 sm:$0xff]   ;;  %v8344_v14 = vld [vmem:[%s11224_s1 + $0x14c4] ss:$16 sps:$4 sm:$0xff]  }
 0x260   :  { %5330 = vmatprep.subr.bf16.mxu0 %v8260_v30  ;;  %5863 = vmatprep.subr.bf16.mxu1 %v8263_v31  ;;  %v8347_v30 = vld [vmem:[%s11224_s1 + $0x14cc] ss:$16 sps:$4 sm:$0xff]   ;;  %v8342_v31 = vld [vmem:[%s11224_s1 + $0x14c0] ss:$16 sps:$4 sm:$0xff]  }
 0x263   :  { %5331 = vmatpush1.bf16.msra.mxu0 %v8258_v25  ;;  %5864 = vmatpush1.bf16.msra.mxu1 %v8261_v32  ;;  %v8345_v25 = vld [vmem:[%s11224_s1 + $0x14c8] ss:$16 sps:$4 sm:$0xff]   ;;  %v8350_v32 = vld [vmem:[%s11224_s1 + $0x14e4] ss:$16 sps:$4 sm:$0xff]  }
 0x264   :  { %5332 = vmatprep.subr.bf16.mxu0 %v8266_v33  ;;  %5865 = vmatprep.subr.bf16.mxu1 %v8269_v26  ;;  %v8353_v33 = vld [vmem:[%s11224_s1 + $0x14ec] ss:$16 sps:$4 sm:$0xff]   ;;  %v8348_v26 = vld [vmem:[%s11224_s1 + $0x14e0] ss:$16 sps:$4 sm:$0xff]  }
 0x267   :  { %5333 = vmatpush1.bf16.msra.mxu0 %v8264_v36  ;;  %5866 = vmatpush1.bf16.msra.mxu1 %v8267_v37  ;;  %v8351_v36 = vld [vmem:[%s11224_s1 + $0x14e8] ss:$16 sps:$4 sm:$0xff]   ;;  %v8356_v37 = vld [vmem:[%s11224_s1 + $0x1504] ss:$16 sps:$4 sm:$0xff]  }
 0x268   :  { %5334 = vmatprep.subr.bf16.mxu0 %v8272_v21  ;;  %5867 = vmatprep.subr.bf16.mxu1 %v8275_v39  ;;  %v8359_v21 = vld [vmem:[%s11224_s1 + $0x150c] ss:$16 sps:$4 sm:$0xff]   ;;  %v8354_v39 = vld [vmem:[%s11224_s1 + $0x1500] ss:$16 sps:$4 sm:$0xff]  }
 0x26b   :  { %5335 = vmatpush1.bf16.msra.mxu0 %v8270_v40  ;;  %5868 = vmatpush1.bf16.msra.mxu1 %v8273_v41  ;;  %v8357_v40 = vld [vmem:[%s11224_s1 + $0x1508] ss:$16 sps:$4 sm:$0xff]   ;;  %v8362_v41 = vld [vmem:[%s11224_s1 + $0x1524] ss:$16 sps:$4 sm:$0xff]  }
 0x26c   :  { %5336 = vmatprep.subr.bf16.mxu0 %v8278_v34  ;;  %5869 = vmatprep.subr.bf16.mxu1 %v8281_v43  ;;  %v8365_v34 = vld [vmem:[%s11224_s1 + $0x152c] ss:$16 sps:$4 sm:$0xff]   ;;  %v8360_v43 = vld [vmem:[%s11224_s1 + $0x1520] ss:$16 sps:$4 sm:$0xff]  }
 0x26f   :  { %5337 = vmatpush1.bf16.msra.mxu0 %v8276_v45  ;;  %5870 = vmatpush1.bf16.msra.mxu1 %v8279_v46  ;;  %v8363_v45 = vld [vmem:[%s11224_s1 + $0x1528] ss:$16 sps:$4 sm:$0xff]   ;;  %v8368_v46 = vld [vmem:[%s11224_s1 + $0x1544] ss:$16 sps:$4 sm:$0xff]  }
 0x270   :  { %5338 = vmatprep.subr.bf16.mxu0 %v8284_v35  ;;  %5871 = vmatprep.subr.bf16.mxu1 %v8287_v50  ;;  %v8371_v35 = vld [vmem:[%s11224_s1 + $0x154c] ss:$16 sps:$4 sm:$0xff]   ;;  %v8366_v50 = vld [vmem:[%s11224_s1 + $0x1540] ss:$16 sps:$4 sm:$0xff]  }
 0x273   :  { %5339 = vmatpush1.bf16.msra.mxu0 %v8282_v53  ;;  %5872 = vmatpush1.bf16.msra.mxu1 %v8285_v38  ;;  %v8369_v53 = vld [vmem:[%s11224_s1 + $0x1548] ss:$16 sps:$4 sm:$0xff]   ;;  %v8374_v38 = vld [vmem:[%s11224_s1 + $0x1564] ss:$16 sps:$4 sm:$0xff]  }
 0x274   :  { %5340 = vmatprep.subr.bf16.mxu0 %v8290_v54  ;;  %5873 = vmatprep.subr.bf16.mxu1 %v8293_v55  ;;  %v8377_v54 = vld [vmem:[%s11224_s1 + $0x156c] ss:$16 sps:$4 sm:$0xff]   ;;  %v8372_v55 = vld [vmem:[%s11224_s1 + $0x1560] ss:$16 sps:$4 sm:$0xff]  }
 0x277   :  { %5341 = vmatpush1.bf16.msra.mxu0 %v8288_v56  ;;  %5874 = vmatpush1.bf16.msra.mxu1 %v8291_v47  ;;  %v8375_v56 = vld [vmem:[%s11224_s1 + $0x1568] ss:$16 sps:$4 sm:$0xff]   ;;  %v8380_v47 = vld [vmem:[%s11224_s1 + $0x1584] ss:$16 sps:$4 sm:$0xff]  }
 0x278   :  { %5342 = vmatprep.subr.bf16.mxu0 %v8296_v57  ;;  %5875 = vmatprep.subr.bf16.mxu1 %v8299_v58  ;;  %v8383_v57 = vld [vmem:[%s11224_s1 + $0x158c] ss:$16 sps:$4 sm:$0xff]   ;;  %v8378_v58 = vld [vmem:[%s11224_s1 + $0x1580] ss:$16 sps:$4 sm:$0xff]  }
 0x27b   :  { %5343 = vmatpush1.bf16.msra.mxu0 %v8294_v48  ;;  %5876 = vmatpush1.bf16.msra.mxu1 %v8297_v61  ;;  %v8386_v48 = vld [vmem:[%s11224_s1 + $0x15a4] ss:$16 sps:$4 sm:$0xff]   ;;  %v8389_v61 = vld [vmem:[%s11224_s1 + $0x15ac] ss:$16 sps:$4 sm:$0xff]  }
 0x27c   :  { %5344 = vmatprep.subr.bf16.mxu0 %v8302_v63  ;;  %5877 = vmatprep.subr.bf16.mxu1 %v8305_v44  ;;  %v8384_v63 = vld [vmem:[%s11224_s1 + $0x15a0] ss:$16 sps:$4 sm:$0xff]   ;;  %v8387_v44 = vld [vmem:[%s11224_s1 + $0x15a8] ss:$16 sps:$4 sm:$0xff]  }
 0x27f   :  { %5345 = vmatpush1.bf16.msra.mxu0 %v8300_v1  ;;  %5878 = vmatpush1.bf16.msra.mxu1 %v8303_v51  ;;  %v8392_v1 = vld [vmem:[%s11224_s1 + $0x15c4] ss:$16 sps:$4 sm:$0xff]   ;;  %v8395_v51 = vld [vmem:[%s11224_s1 + $0x15cc] ss:$16 sps:$4 sm:$0xff]  }
 0x280   :  { %5355 = vmatprep.subr.bf16.mxu0 %v8308_v2  ;;  %5888 = vmatprep.subr.bf16.mxu1 %v8311_v3  ;;  %v8390_v2 = vld [vmem:[%s11224_s1 + $0x15c0] ss:$16 sps:$4 sm:$0xff]   ;;  %v8393_v3 = vld [vmem:[%s11224_s1 + $0x15c8] ss:$16 sps:$4 sm:$0xff]  }
 0x282   :  { %5347 = vmatmul.mubr.bf16.vlgmr.msra.gmra.mrb[0].mxu0 %v979_v60  ;;  %5880 = vmatmul.mubr.bf16.vlgmr.msra.gmra.mrb[0].mxu1 %v979_v60  ;;  %v8401_v60 = vld [vmem:[%s11224_s1 + $0x15ec] ss:$16 sps:$4 sm:$0xff]  }
 0x283   :  { %5356 = vmatpush1.bf16.msra.mxu0 %v8306_v5  ;;  %5889 = vmatpush1.bf16.msra.mxu1 %v8309_v6  ;;  %v8396_v5 = vld [vmem:[%s11224_s1 + $0x15e0] ss:$16 sps:$4 sm:$0xff]   ;;  %v8399_v6 = vld [vmem:[%s11224_s1 + $0x15e8] ss:$16 sps:$4 sm:$0xff]  }
 0x284   :  { %5357 = vmatprep.subr.bf16.mxu0 %v8314_v7  ;;  %5890 = vmatprep.subr.bf16.mxu1 %v8317_v62  ;;  %v8405_v7 = vld [vmem:[%s11224_s1 + $0x1604] ss:$16 sps:$4 sm:$0xff]   ;;  %v8408_v62 = vld [vmem:[%s11224_s1 + $0x160c] ss:$16 sps:$4 sm:$0xff]  }
 0x285   :  { %5387 = vmatprep.mubr.bf16.mxu0 %v10673_v8  ;;  %5920 = vmatprep.mubr.bf16.mxu1 %v10673_v8 }
 0x287   :  { %5358 = vmatpush1.bf16.msra.mxu0 %v8312_v9  ;;  %5891 = vmatpush1.bf16.msra.mxu1 %v8315_v10  ;;  %v10859_v9 = vrot.slane %v10642_v0, %v8749_v49  ;;  %v8403_v10 = vld [vmem:[%s11224_s1 + $0x1600] ss:$16 sps:$4 sm:$0xff]   ;;  %v8414_v0 = vld [vmem:[%s11224_s1 + $0x162c] ss:$16 sps:$4 sm:$0xff]  }
 0x288   :  { %5359 = vmatprep.subr.bf16.mxu0 %v8320_v11  ;;  %5892 = vmatprep.subr.bf16.mxu1 %v8323_v12  ;;  %v8406_v11 = vld [vmem:[%s11224_s1 + $0x1608] ss:$16 sps:$4 sm:$0xff]   ;;  %v8411_v12 = vld [vmem:[%s11224_s1 + $0x1624] ss:$16 sps:$4 sm:$0xff]  }
 0x28b   :  { %5360 = vmatpush1.bf16.msra.mxu0 %v8318_v52  ;;  %5893 = vmatpush1.bf16.msra.mxu1 %v8321_v15  ;;  %v982_v52 = vcombine.high %v10673_v8, %v10673_v8  ;;  %v8409_v15 = vld [vmem:[%s11224_s1 + $0x1620] ss:$16 sps:$4 sm:$0xff]   ;;  %v8417_v8 = vld [vmem:[%s11224_s1 + $0x1644] ss:$16 sps:$4 sm:$0xff]  }
 0x28c   :  { %5361 = vmatprep.subr.bf16.mxu0 %v8326_v16  ;;  %5894 = vmatprep.subr.bf16.mxu1 %v8329_v17  ;;  %v8412_v16 = vld [vmem:[%s11224_s1 + $0x1628] ss:$16 sps:$4 sm:$0xff]   ;;  %v8420_v17 = vld [vmem:[%s11224_s1 + $0x164c] ss:$16 sps:$4 sm:$0xff]  }
 0x28f   :  { %5362 = vmatpush1.bf16.msra.mxu0 %v8324_v18  ;;  %5895 = vmatpush1.bf16.msra.mxu1 %v8327_v19  ;;  %v8415_v18 = vld [vmem:[%s11224_s1 + $0x1640] ss:$16 sps:$4 sm:$0xff]   ;;  %v8418_v19 = vld [vmem:[%s11224_s1 + $0x1648] ss:$16 sps:$4 sm:$0xff]  }
 0x290   :  { %5363 = vmatprep.subr.bf16.mxu0 %v8332_v20  ;;  %5896 = vmatprep.subr.bf16.mxu1 %v8335_v22  ;;  %v8423_v20 = vld [vmem:[%s11224_s1 + $0x1664] ss:$16 sps:$4 sm:$0xff]   ;;  %v8426_v22 = vld [vmem:[%s11224_s1 + $0x166c] ss:$16 sps:$4 sm:$0xff]  }
 0x293   :  { %5364 = vmatpush1.bf16.msra.mxu0 %v8330_v23  ;;  %5897 = vmatpush1.bf16.msra.mxu1 %v8333_v24  ;;  %v8421_v23 = vld [vmem:[%s11224_s1 + $0x1660] ss:$16 sps:$4 sm:$0xff]   ;;  %v8424_v24 = vld [vmem:[%s11224_s1 + $0x1668] ss:$16 sps:$4 sm:$0xff]  }
 0x294   :  { %5365 = vmatprep.subr.bf16.mxu0 %v8338_v13  ;;  %5898 = vmatprep.subr.bf16.mxu1 %v8341_v27  ;;  %v8429_v13 = vld [vmem:[%s11224_s1 + $0x1684] ss:$16 sps:$4 sm:$0xff]   ;;  %v8432_v27 = vld [vmem:[%s11224_s1 + $0x168c] ss:$16 sps:$4 sm:$0xff]  }
 0x297   :  { %5366 = vmatpush1.bf16.msra.mxu0 %v8336_v28  ;;  %5899 = vmatpush1.bf16.msra.mxu1 %v8339_v29  ;;  %v8427_v28 = vld [vmem:[%s11224_s1 + $0x1680] ss:$16 sps:$4 sm:$0xff]   ;;  %v8430_v29 = vld [vmem:[%s11224_s1 + $0x1688] ss:$16 sps:$4 sm:$0xff]  }
 0x298   :  { %5367 = vmatprep.subr.bf16.mxu0 %v8344_v14  ;;  %5900 = vmatprep.subr.bf16.mxu1 %v8347_v30  ;;  %v8435_v14 = vld [vmem:[%s11224_s1 + $0x16a4] ss:$16 sps:$4 sm:$0xff]   ;;  %v8438_v30 = vld [vmem:[%s11224_s1 + $0x16ac] ss:$16 sps:$4 sm:$0xff]  }
 0x29b   :  { %5368 = vmatpush1.bf16.msra.mxu0 %v8342_v31  ;;  %5901 = vmatpush1.bf16.msra.mxu1 %v8345_v25  ;;  %v8433_v31 = vld [vmem:[%s11224_s1 + $0x16a0] ss:$16 sps:$4 sm:$0xff]   ;;  %v8436_v25 = vld [vmem:[%s11224_s1 + $0x16a8] ss:$16 sps:$4 sm:$0xff]  }
 0x29c   :  { %5369 = vmatprep.subr.bf16.mxu0 %v8350_v32  ;;  %5902 = vmatprep.subr.bf16.mxu1 %v8353_v33  ;;  %v8441_v32 = vld [vmem:[%s11224_s1 + $0x16c4] ss:$16 sps:$4 sm:$0xff]   ;;  %v8444_v33 = vld [vmem:[%s11224_s1 + $0x16cc] ss:$16 sps:$4 sm:$0xff]  }
 0x29f   :  { %5370 = vmatpush1.bf16.msra.mxu0 %v8348_v26  ;;  %5903 = vmatpush1.bf16.msra.mxu1 %v8351_v36  ;;  %v8439_v26 = vld [vmem:[%s11224_s1 + $0x16c0] ss:$16 sps:$4 sm:$0xff]   ;;  %v8442_v36 = vld [vmem:[%s11224_s1 + $0x16c8] ss:$16 sps:$4 sm:$0xff]  }
 0x2a0   :  { %5371 = vmatprep.subr.bf16.mxu0 %v8356_v37  ;;  %5904 = vmatprep.subr.bf16.mxu1 %v8359_v21  ;;  %v8447_v37 = vld [vmem:[%s11224_s1 + $0x16e4] ss:$16 sps:$4 sm:$0xff]   ;;  %v8450_v21 = vld [vmem:[%s11224_s1 + $0x16ec] ss:$16 sps:$4 sm:$0xff]  }
 0x2a3   :  { %5372 = vmatpush1.bf16.msra.mxu0 %v8354_v39  ;;  %5905 = vmatpush1.bf16.msra.mxu1 %v8357_v40  ;;  %v8445_v39 = vld [vmem:[%s11224_s1 + $0x16e0] ss:$16 sps:$4 sm:$0xff]   ;;  %v8448_v40 = vld [vmem:[%s11224_s1 + $0x16e8] ss:$16 sps:$4 sm:$0xff]  }
 0x2a4   :  { %5373 = vmatprep.subr.bf16.mxu0 %v8362_v41  ;;  %5906 = vmatprep.subr.bf16.mxu1 %v8365_v34  ;;  %v8453_v41 = vld [vmem:[%s11224_s1 + $0x1704] ss:$16 sps:$4 sm:$0xff]   ;;  %v8456_v34 = vld [vmem:[%s11224_s1 + $0x170c] ss:$16 sps:$4 sm:$0xff]  }
 0x2a7   :  { %5374 = vmatpush1.bf16.msra.mxu0 %v8360_v43  ;;  %5907 = vmatpush1.bf16.msra.mxu1 %v8363_v45  ;;  %v8451_v43 = vld [vmem:[%s11224_s1 + $0x1700] ss:$16 sps:$4 sm:$0xff]   ;;  %v8454_v45 = vld [vmem:[%s11224_s1 + $0x1708] ss:$16 sps:$4 sm:$0xff]  }
 0x2a8   :  { %5375 = vmatprep.subr.bf16.mxu0 %v8368_v46  ;;  %5908 = vmatprep.subr.bf16.mxu1 %v8371_v35  ;;  %v8459_v46 = vld [vmem:[%s11224_s1 + $0x1724] ss:$16 sps:$4 sm:$0xff]   ;;  %v8462_v35 = vld [vmem:[%s11224_s1 + $0x172c] ss:$16 sps:$4 sm:$0xff]  }
 0x2ab   :  { %5376 = vmatpush1.bf16.msra.mxu0 %v8366_v50  ;;  %5909 = vmatpush1.bf16.msra.mxu1 %v8369_v53  ;;  %v8457_v50 = vld [vmem:[%s11224_s1 + $0x1720] ss:$16 sps:$4 sm:$0xff]   ;;  %v8460_v53 = vld [vmem:[%s11224_s1 + $0x1728] ss:$16 sps:$4 sm:$0xff]  }
 0x2ac   :  { %5377 = vmatprep.subr.bf16.mxu0 %v8374_v38  ;;  %5910 = vmatprep.subr.bf16.mxu1 %v8377_v54  ;;  %v8465_v38 = vld [vmem:[%s11224_s1 + $0x1744] ss:$16 sps:$4 sm:$0xff]   ;;  %v8468_v54 = vld [vmem:[%s11224_s1 + $0x174c] ss:$16 sps:$4 sm:$0xff]  }
 0x2af   :  { %5378 = vmatpush1.bf16.msra.mxu0 %v8372_v55  ;;  %5911 = vmatpush1.bf16.msra.mxu1 %v8375_v56  ;;  %v8463_v55 = vld [vmem:[%s11224_s1 + $0x1740] ss:$16 sps:$4 sm:$0xff]   ;;  %v8466_v56 = vld [vmem:[%s11224_s1 + $0x1748] ss:$16 sps:$4 sm:$0xff]  }
 0x2b0   :  { %5379 = vmatprep.subr.bf16.mxu0 %v8380_v47  ;;  %5912 = vmatprep.subr.bf16.mxu1 %v8383_v57  ;;  %v8471_v47 = vld [vmem:[%s11224_s1 + $0x1764] ss:$16 sps:$4 sm:$0xff]   ;;  %v8474_v57 = vld [vmem:[%s11224_s1 + $0x176c] ss:$16 sps:$4 sm:$0xff]  }
 0x2b3   :  { %5380 = vmatpush1.bf16.msra.mxu0 %v8378_v58  ;;  %5913 = vmatpush1.bf16.msra.mxu1 %v8381_v59  ;;  %v8469_v58 = vld [vmem:[%s11224_s1 + $0x1760] ss:$16 sps:$4 sm:$0xff]   ;;  %v8472_v59 = vld [vmem:[%s11224_s1 + $0x1768] ss:$16 sps:$4 sm:$0xff]  }
 0x2b4   :  { %5381 = vmatprep.subr.bf16.mxu0 %v8386_v48  ;;  %5914 = vmatprep.subr.bf16.mxu1 %v8389_v61  ;;  %v8477_v48 = vld [vmem:[%s11224_s1 + $0x1784] ss:$16 sps:$4 sm:$0xff]   ;;  %v8480_v61 = vld [vmem:[%s11224_s1 + $0x178c] ss:$16 sps:$4 sm:$0xff]  }
 0x2b7   :  { %5382 = vmatpush1.bf16.msra.mxu0 %v8384_v63  ;;  %5915 = vmatpush1.bf16.msra.mxu1 %v8387_v44  ;;  %v8475_v63 = vld [vmem:[%s11224_s1 + $0x1780] ss:$16 sps:$4 sm:$0xff]   ;;  %v8478_v44 = vld [vmem:[%s11224_s1 + $0x1788] ss:$16 sps:$4 sm:$0xff]  }
 0x2b8   :  { %5383 = vmatprep.subr.bf16.mxu0 %v8392_v1  ;;  %5916 = vmatprep.subr.bf16.mxu1 %v8395_v51  ;;  %v8483_v1 = vld [vmem:[%s11224_s1 + $0x17a4] ss:$16 sps:$4 sm:$0xff]   ;;  %v8486_v51 = vld [vmem:[%s11224_s1 + $0x17ac] ss:$16 sps:$4 sm:$0xff]  }
 0x2bb   :  { %5384 = vmatpush1.bf16.msra.mxu0 %v8390_v2  ;;  %5917 = vmatpush1.bf16.msra.mxu1 %v8393_v3  ;;  %v8481_v2 = vld [vmem:[%s11224_s1 + $0x17a0] ss:$16 sps:$4 sm:$0xff]   ;;  %v8484_v3 = vld [vmem:[%s11224_s1 + $0x17a8] ss:$16 sps:$4 sm:$0xff]  }
 0x2bc   :  { %5385 = vmatprep.subr.bf16.mxu0 %v8398_v4  ;;  %5918 = vmatprep.subr.bf16.mxu1 %v8401_v60  ;;  %v8489_v4 = vld [vmem:[%s11224_s1 + $0x17c4] ss:$16 sps:$4 sm:$0xff]   ;;  %v8492_v60 = vld [vmem:[%s11224_s1 + $0x17cc] ss:$16 sps:$4 sm:$0xff]  }
 0x2bf   :  { %5386 = vmatpush1.bf16.msra.mxu0 %v8396_v5  ;;  %5919 = vmatpush1.bf16.msra.mxu1 %v8399_v6  ;;  %v8487_v5 = vld [vmem:[%s11224_s1 + $0x17c0] ss:$16 sps:$4 sm:$0xff]   ;;  %v8490_v6 = vld [vmem:[%s11224_s1 + $0x17c8] ss:$16 sps:$4 sm:$0xff]  }
 0x2c0   :  { %5396 = vmatprep.subr.bf16.mxu0 %v8405_v7  ;;  %5929 = vmatprep.subr.bf16.mxu1 %v8408_v62  ;;  %v8495_v7 = vld [vmem:[%s11224_s1 + $0x17e4] ss:$16 sps:$4 sm:$0xff]   ;;  %v8498_v62 = vld [vmem:[%s11224_s1 + $0x17ec] ss:$16 sps:$4 sm:$0xff]  }
 0x2c2   :  { %5388 = vmatmul.mubr.bf16.vlgmr.msra.gmra.mrb[0].mxu0 %v10859_v9  ;;  %5921 = vmatmul.mubr.bf16.vlgmr.msra.gmra.mrb[0].mxu1 %v10859_v9 }
 0x2c3   :  { %5397 = vmatpush1.bf16.msra.mxu0 %v8403_v10  ;;  %5930 = vmatpush1.bf16.msra.mxu1 %v8406_v11  ;;  %v8493_v10 = vld [vmem:[%s11224_s1 + $0x17e0] ss:$16 sps:$4 sm:$0xff]   ;;  %v8496_v11 = vld [vmem:[%s11224_s1 + $0x17e8] ss:$16 sps:$4 sm:$0xff]  }
 0x2c4   :  { %5398 = vmatprep.subr.bf16.mxu0 %v8411_v12  ;;  %5931 = vmatprep.subr.bf16.mxu1 %v8414_v0  ;;  %v8501_v12 = vld [vmem:[%s11224_s1 + $0x1804] ss:$16 sps:$4 sm:$0xff]   ;;  %v8504_v0 = vld [vmem:[%s11224_s1 + $0x180c] ss:$16 sps:$4 sm:$0xff]  }
 0x2c5   :  { %5428 = vmatprep.mubr.bf16.mxu0 %v982_v52  ;;  %5961 = vmatprep.mubr.bf16.mxu1 %v982_v52  ;;  %v980_v52 = vcombine.high %v10859_v9, %v10859_v9  ;;  %v8510_v9 = vld [vmem:[%s11224_s1 + $0x182c] ss:$16 sps:$4 sm:$0xff]  }
 0x2c7   :  { %5399 = vmatpush1.bf16.msra.mxu0 %v8409_v15  ;;  %5932 = vmatpush1.bf16.msra.mxu1 %v8412_v16  ;;  %v8499_v15 = vld [vmem:[%s11224_s1 + $0x1800] ss:$16 sps:$4 sm:$0xff]   ;;  %v8502_v16 = vld [vmem:[%s11224_s1 + $0x1808] ss:$16 sps:$4 sm:$0xff]  }
 0x2c8   :  { %5400 = vmatprep.subr.bf16.mxu0 %v8417_v8  ;;  %5933 = vmatprep.subr.bf16.mxu1 %v8420_v17  ;;  %v8507_v8 = vld [vmem:[%s11224_s1 + $0x1824] ss:$16 sps:$4 sm:$0xff]   ;;  %v8505_v17 = vld [vmem:[%s11224_s1 + $0x1820] ss:$16 sps:$4 sm:$0xff]  }
 0x2cb   :  { %5401 = vmatpush1.bf16.msra.mxu0 %v8415_v18  ;;  %5934 = vmatpush1.bf16.msra.mxu1 %v8418_v19  ;;  %v8508_v18 = vld [vmem:[%s11224_s1 + $0x1828] ss:$16 sps:$4 sm:$0xff]   ;;  %v8513_v19 = vld [vmem:[%s11224_s1 + $0x1844] ss:$16 sps:$4 sm:$0xff]  }
 0x2cc   :  { %5402 = vmatprep.subr.bf16.mxu0 %v8423_v20  ;;  %5935 = vmatprep.subr.bf16.mxu1 %v8426_v22  ;;  %v8516_v20 = vld [vmem:[%s11224_s1 + $0x184c] ss:$16 sps:$4 sm:$0xff]   ;;  %v8582_v22 = vmov 0  }
 0x2cf   :  { %5403 = vmatpush1.bf16.msra.mxu0 %v8421_v23  ;;  %5936 = vmatpush1.bf16.msra.mxu1 %v8424_v24  ;;  %v8511_v23 = vld [vmem:[%s11224_s1 + $0x1840] ss:$16 sps:$4 sm:$0xff]   ;;  %v8514_v24 = vld [vmem:[%s11224_s1 + $0x1848] ss:$16 sps:$4 sm:$0xff]  }
 0x2d0   :  { %5404 = vmatprep.subr.bf16.mxu0 %v8429_v13  ;;  %5937 = vmatprep.subr.bf16.mxu1 %v8432_v27  ;;  %v8519_v13 = vld [vmem:[%s11224_s1 + $0x1864] ss:$16 sps:$4 sm:$0xff]   ;;  %v8522_v27 = vld [vmem:[%s11224_s1 + $0x186c] ss:$16 sps:$4 sm:$0xff]  }
 0x2d3   :  { %5405 = vmatpush1.bf16.msra.mxu0 %v8427_v28  ;;  %5938 = vmatpush1.bf16.msra.mxu1 %v8430_v29  ;;  %v8517_v28 = vld [vmem:[%s11224_s1 + $0x1860] ss:$16 sps:$4 sm:$0xff]   ;;  %v8520_v29 = vld [vmem:[%s11224_s1 + $0x1868] ss:$16 sps:$4 sm:$0xff]  }
 0x2d4   :  { %5406 = vmatprep.subr.bf16.mxu0 %v8435_v14  ;;  %5939 = vmatprep.subr.bf16.mxu1 %v8438_v30  ;;  %v6377_v14 = vld.sshfl [vmem:[%s11223_s0 + $0x18] sm:$0x1 pattern:$0x75316420]  ;;  %v8523_v30 = vld [vmem:[%s11226_s3 + $0x40] sm:$0xff]  }
 0x2d7   :  { %5407 = vmatpush1.bf16.msra.mxu0 %v8433_v31  ;;  %5940 = vmatpush1.bf16.msra.mxu1 %v8436_v25  ;;  %v8524_v31 = vld [vmem:[%s11226_s3 + $0xc0] sm:$0xff]   ;;  %v996_v25 = vrot.slane %v6377_v14, %v8749_v49  ;;  %v8528_v49 = vld [vmem:[%s11226_s3 + $0xc8] sm:$0xff]  }
 0x2d8   :  { %5408 = vmatprep.subr.bf16.mxu0 %v8441_v32  ;;  %5941 = vmatprep.subr.bf16.mxu1 %v8444_v33  ;;  %v8525_v32 = vld [vmem:[%s11226_s3] sm:$0xff]  }
 0x2d9   :  { %v8526_v33 = vld [vmem:[%s11226_s3 + $0x80] sm:$0xff]  }
 0x2db   :  { %5409 = vmatpush1.bf16.msra.mxu0 %v8439_v26  ;;  %5942 = vmatpush1.bf16.msra.mxu1 %v8442_v36  ;;  %v8527_v26 = vld [vmem:[%s11226_s3 + $0x48] sm:$0xff]  }
 0x2dc   :  { %5410 = vmatprep.subr.bf16.mxu0 %v8447_v37  ;;  %5943 = vmatprep.subr.bf16.mxu1 %v8450_v21  ;;  %v8529_v36 = vld [vmem:[%s11226_s3 + $0x8] sm:$0xff]   ;;  %v8531_v21 = vld [vmem:[%s11226_s3 + $0x50] sm:$0xff]  }
 0x2dd   :  { %v8530_v37 = vld [vmem:[%s11226_s3 + $0x88] sm:$0xff]  }
 0x2df   :  { %5411 = vmatpush1.bf16.msra.mxu0 %v8445_v39  ;;  %5944 = vmatpush1.bf16.msra.mxu1 %v8448_v40  ;;  %v8532_v39 = vld [vmem:[%s11226_s3 + $0xd0] sm:$0xff]  }
 0x2e0   :  { %5412 = vmatprep.subr.bf16.mxu0 %v8453_v41  ;;  %5945 = vmatprep.subr.bf16.mxu1 %v8456_v34  ;;  %v8533_v40 = vld [vmem:[%s11226_s3 + $0x10] sm:$0xff]   ;;  %v8535_v34 = vld [vmem:[%s11226_s3 + $0x58] sm:$0xff]  }
 0x2e1   :  { %v8534_v41 = vld [vmem:[%s11226_s3 + $0x90] sm:$0xff]  }
 0x2e3   :  { %5413 = vmatpush1.bf16.msra.mxu0 %v8451_v43  ;;  %5946 = vmatpush1.bf16.msra.mxu1 %v8454_v45  ;;  %v8536_v43 = vld [vmem:[%s11226_s3 + $0xd8] sm:$0xff]  }
 0x2e4   :  { %5414 = vmatprep.subr.bf16.mxu0 %v8459_v46  ;;  %5947 = vmatprep.subr.bf16.mxu1 %v8462_v35  ;;  %v8537_v45 = vld [vmem:[%s11226_s3 + $0x18] sm:$0xff]   ;;  %v8539_v35 = vld [vmem:[%s11226_s3 + $0x60] sm:$0xff]  }
 0x2e5   :  { %v8538_v46 = vld [vmem:[%s11226_s3 + $0x98] sm:$0xff]  }
 0x2e7   :  { %5415 = vmatpush1.bf16.msra.mxu0 %v8457_v50  ;;  %5948 = vmatpush1.bf16.msra.mxu1 %v8460_v53  ;;  %v8540_v50 = vld [vmem:[%s11226_s3 + $0xe0] sm:$0xff]  }
 0x2e8   :  { %5416 = vmatprep.subr.bf16.mxu0 %v8465_v38  ;;  %5949 = vmatprep.subr.bf16.mxu1 %v8468_v54  ;;  %v8541_v53 = vld [vmem:[%s11226_s3 + $0x20] sm:$0xff]   ;;  %v8543_v54 = vld [vmem:[%s11226_s3 + $0x68] sm:$0xff]  }
 0x2e9   :  { %v8542_v38 = vld [vmem:[%s11226_s3 + $0xa0] sm:$0xff]  }
 0x2eb   :  { %5417 = vmatpush1.bf16.msra.mxu0 %v8463_v55  ;;  %5950 = vmatpush1.bf16.msra.mxu1 %v8466_v56  ;;  %v8544_v55 = vld [vmem:[%s11226_s3 + $0xe8] sm:$0xff]  }
 0x2ec   :  { %5418 = vmatprep.subr.bf16.mxu0 %v8471_v47  ;;  %5951 = vmatprep.subr.bf16.mxu1 %v8474_v57  ;;  %v8545_v56 = vld [vmem:[%s11226_s3 + $0x28] sm:$0xff]   ;;  %v8547_v57 = vld [vmem:[%s11226_s3 + $0x70] sm:$0xff]  }
 0x2ed   :  { %v8546_v47 = vld [vmem:[%s11226_s3 + $0xa8] sm:$0xff]  }
 0x2ef   :  { %5419 = vmatpush1.bf16.msra.mxu0 %v8469_v58  ;;  %5952 = vmatpush1.bf16.msra.mxu1 %v8472_v59  ;;  %v8548_v58 = vld [vmem:[%s11226_s3 + $0xf0] sm:$0xff]  }
 0x2f0   :  { %5420 = vmatprep.subr.bf16.mxu0 %v8477_v48  ;;  %5953 = vmatprep.subr.bf16.mxu1 %v8480_v61  ;;  %v8549_v59 = vld [vmem:[%s11226_s3 + $0x30] sm:$0xff]   ;;  %v8551_v61 = vld [vmem:[%s11226_s3 + $0x78] sm:$0xff]  }
 0x2f1   :  { %v8550_v48 = vld [vmem:[%s11226_s3 + $0xb0] sm:$0xff]  }
 0x2f3   :  { %5421 = vmatpush1.bf16.msra.mxu0 %v8475_v63  ;;  %5954 = vmatpush1.bf16.msra.mxu1 %v8478_v44  ;;  %v8552_v63 = vld [vmem:[%s11226_s3 + $0xf8] sm:$0xff]  }
 0x2f4   :  { %5422 = vmatprep.subr.bf16.mxu0 %v8483_v1  ;;  %5955 = vmatprep.subr.bf16.mxu1 %v8486_v51  ;;  %v8553_v44 = vld [vmem:[%s11226_s3 + $0x38] sm:$0xff]   ;;  %v814_v51 = vsub.s32 0, %v8731_v42 }
 0x2f5   :  { %v8554_v1 = vld [vmem:[%s11226_s3 + $0xb8] sm:$0xff]  }
 0x2f7   :  { %5423 = vmatpush1.bf16.msra.mxu0 %v8481_v2  ;;  %5956 = vmatpush1.bf16.msra.mxu1 %v8484_v3  ;;  %v822_v2 = vsub.s32 2, %v8731_v42  ;;  %v810_v3 = vld [vmem:[%s11225_s2] sm:$0xf] }
 0x2f8   :  { %5424 = vmatprep.subr.bf16.mxu0 %v8489_v4  ;;  %5957 = vmatprep.subr.bf16.mxu1 %v8492_v60  ;;  %v818_v4 = vsub.s32 1, %v8731_v42  ;;  %v826_v60 = vsub.s32 3, %v8731_v42 }
 0x2fb   :  { %5425 = vmatpush1.bf16.msra.mxu0 %v8487_v5  ;;  %5958 = vmatpush1.bf16.msra.mxu1 %v8490_v6  ;;  %v815_v5 = vrot.slane %v810_v3, %v814_v51  ;;  %v823_v6 = vrot.slane %v810_v3, %v822_v2 }
 0x2fc   :  { %5426 = vmatprep.subr.bf16.mxu0 %v8495_v7  ;;  %5959 = vmatprep.subr.bf16.mxu1 %v8498_v62  ;;  %v819_v7 = vrot.slane %v810_v3, %v818_v4  ;;  %v827_v62 = vrot.slane %v810_v3, %v826_v60 }
 0x2ff   :  { %5427 = vmatpush1.bf16.msra.mxu0 %v8493_v10  ;;  %5960 = vmatpush1.bf16.msra.mxu1 %v8496_v11 }
 0x300   :  { %5437 = vmatprep.subr.bf16.mxu0 %v8501_v12  ;;  %5970 = vmatprep.subr.bf16.mxu1 %v8504_v0 }
 0x302   :  { %5429 = vmatmul.mubr.bf16.vlgmr.msra.gmra.mrb[0].mxu0 %v980_v52  ;;  %5962 = vmatmul.mubr.bf16.vlgmr.msra.gmra.mrb[0].mxu1 %v980_v52 }
 0x303   :  { %5438 = vmatpush1.bf16.msra.mxu0 %v8499_v15  ;;  %5971 = vmatpush1.bf16.msra.mxu1 %v8502_v16 }
 0x304   :  { %5439 = vmatprep.subr.bf16.mxu0 %v8507_v8  ;;  %5972 = vmatprep.subr.bf16.mxu1 %v8510_v9 }
 0x305   :  { %5469 = vmatprep.mubr.bf16.mxu0 %v8582_v22  ;;  %6002 = vmatprep.mubr.bf16.mxu1 %v8582_v22 }
 0x307   :  { %5440 = vmatpush1.bf16.msra.mxu0 %v8505_v17  ;;  %5973 = vmatpush1.bf16.msra.mxu1 %v8508_v18 }
 0x308   :  { %5441 = vmatprep.subr.bf16.mxu0 %v8513_v19  ;;  %5974 = vmatprep.subr.bf16.mxu1 %v8516_v20 }
 0x30b   :  { %5442 = vmatpush1.bf16.msra.mxu0 %v8511_v23  ;;  %5975 = vmatpush1.bf16.msra.mxu1 %v8514_v24 }
 0x30c   :  { %5443 = vmatprep.subr.bf16.mxu0 %v8519_v13  ;;  %5976 = vmatprep.subr.bf16.mxu1 %v8522_v27 }
 0x30f   :  { %5444 = vmatpush1.bf16.msra.mxu0 %v8517_v28  ;;  %5977 = vmatpush1.bf16.msra.mxu1 %v8520_v29 }
 0x310   :  { %7197 = vmatprep.subr.bf16.mxu0 %v8523_v30  ;;  %7219 = vmatprep.subr.bf16.mxu1 %v8524_v31  ;;  %v7164_v30 = vld [vmem:[%s11227_s4] ss:$0 sm:$0xff] }
 0x312   :  { %7162 = vmatmul.mubr.msk.bf16.vlgmr.msra.gmra.mrb[0].mxu0 %vm4941_vm0, %v996_v25  ;;  %7163 = vmatmul.mubr.msk.bf16.vlgmr.msra.gmra.mrb[0].mxu1 %vm4941_vm0, %v996_v25 }
 0x313   :  { %7198 = vmatpush3.bf16.msra.mxu0 %v8525_v32  ;;  %7220 = vmatpush3.bf16.msra.mxu1 %v8526_v33 }
 0x314   :  { %7199 = vmatprep.subr.bf16.mxu0 %v8527_v26  ;;  %7221 = vmatprep.subr.bf16.mxu1 %v8528_v49 }
 0x317   :  { %7200 = vmatpush3.bf16.msra.mxu0 %v8529_v36  ;;  %7222 = vmatpush3.bf16.msra.mxu1 %v8530_v37 }
 0x318   :  { %7201 = vmatprep.subr.bf16.mxu0 %v8531_v21  ;;  %7223 = vmatprep.subr.bf16.mxu1 %v8532_v39 }
 0x31b   :  { %7202 = vmatpush3.bf16.msra.mxu0 %v8533_v40  ;;  %7224 = vmatpush3.bf16.msra.mxu1 %v8534_v41 }
 0x31c   :  { %7203 = vmatprep.subr.bf16.mxu0 %v8535_v34  ;;  %7225 = vmatprep.subr.bf16.mxu1 %v8536_v43 }
 0x31f   :  { %7204 = vmatpush3.bf16.msra.mxu0 %v8537_v45  ;;  %7226 = vmatpush3.bf16.msra.mxu1 %v8538_v46 }
 0x320   :  { %7205 = vmatprep.subr.bf16.mxu0 %v8539_v35  ;;  %7227 = vmatprep.subr.bf16.mxu1 %v8540_v50 }
 0x323   :  { %7206 = vmatpush3.bf16.msra.mxu0 %v8541_v53  ;;  %7228 = vmatpush3.bf16.msra.mxu1 %v8542_v38 }
 0x324   :  { %7207 = vmatprep.subr.bf16.mxu0 %v8543_v54  ;;  %7229 = vmatprep.subr.bf16.mxu1 %v8544_v55 }
 0x327   :  { %7208 = vmatpush3.bf16.msra.mxu0 %v8545_v56  ;;  %7230 = vmatpush3.bf16.msra.mxu1 %v8546_v47 }
 0x328   :  { %7209 = vmatprep.subr.bf16.mxu0 %v8547_v57  ;;  %7231 = vmatprep.subr.bf16.mxu1 %v8548_v58 }
 0x32b   :  { %7210 = vmatpush3.bf16.msra.mxu0 %v8549_v59  ;;  %7232 = vmatpush3.bf16.msra.mxu1 %v8550_v48 }
 0x32c   :  { %7211 = vmatprep.subr.bf16.mxu0 %v8551_v61  ;;  %7233 = vmatprep.subr.bf16.mxu1 %v8552_v63 }
 0x32f   :  { %7212 = vmatpush3.bf16.msra.mxu0 %v8553_v44  ;;  %7234 = vmatpush3.bf16.msra.mxu1 %v8554_v1 }
 0x3e5   :  { %v5471_v10 = vpop.f32.mrb[0].mxu0  ;;  %v6004_v11 = vpop.f32.mrb[0].mxu1 }
 0x3e6   :  { %v7241_v12 = vadd.f32 %v5471_v10, %v815_v5  ;;  %v7243_v0 = vadd.f32 %v6004_v11, %v823_v6  ;;  %v5473_v52 = vpop.f32.mrb[1].mxu0  ;;  %v6006_v15 = vpop.f32.mrb[1].mxu1 }
 0x3e7   :  { %v7242_v16 = vadd.f32 %v5473_v52, %v819_v7  ;;  %v7244_v8 = vadd.f32 %v6006_v15, %v827_v62  ;;  %v5475_v9 = vpop.f32.mrb[2].mxu0  ;;  %v6008_v17 = vpop.f32.mrb[2].mxu1 }
 0x3e8   :  { %v6011_v18 = vmax.f32 %v7241_v12, 0.0  ;;  %v6013_v19 = vmax.f32 %v7243_v0, 0.0  ;;  %v5476_v20 = vpop.f32.mrb[3].mxu0  ;;  %v6009_v22 = vpop.f32.mrb[3].mxu1 }
 0x3e9   :  { %v6012_v23 = vmax.f32 %v7242_v16, 0.0  ;;  %v6014_v42 = vmax.f32 %v7244_v8, 0.0 }
 0x3ea   :  { %v6015_v27 = vpack.c.bf16 %v6011_v18, %v6011_v18  ;;  %v6017_v28 = vpack.c.bf16 %v6013_v19, %v6013_v19 }
 0x3eb   :  { %v6016_v24 = vpack.c.bf16 %v6012_v23, %v6012_v23  ;;  %v6018_v13 = vpack.c.bf16 %v6014_v42, %v6014_v42 }
 0x3ed   :  { %6314 = vmatprep.mubr.bf16.mxu0 %v6016_v24  ;;  %6354 = vmatprep.mubr.bf16.mxu1 %v6018_v13 }
 0x3ee   :  { %6315 = vmatmul.mubr.bf16.vlgmr.msra.gmra.mrb[4].mxu0 %v6015_v27  ;;  %6355 = vmatmul.mubr.bf16.vlgmr.msra.gmra.mrb[4].mxu1 %v6017_v28 }
 0x4c1   :  { %v7213_v29 = vpop.f32.mrb[4].mxu0  ;;  %v7235_v14 = vpop.f32.mrb[4].mxu1 }
 0x4c2   :  { %v7214_v31 = vpop.f32.mrb[5].mxu0  ;;  %v7236_v25 = vpop.f32.mrb[5].mxu1 }
 0x4c3   :  { %v7215_v32 = vadd.f32 %v7214_v31, %v7213_v29  ;;  %v7237_v33 = vadd.f32 %v7236_v25, %v7235_v14  ;;  %v7216_v26 = vpop.f32.mrb[6].mxu0  ;;  %v7238_v49 = vpop.f32.mrb[6].mxu1 }
 0x4c4   :  { %v7217_v36 = vpop.f32.mrb[7].mxu0  ;;  %v7239_v37 = vpop.f32.mrb[7].mxu1 }
 0x4c5   :  { %v6317_v21 = vadd.f32 %v7215_v32, %v7164_v30 }
 0x4c7   :  { %v6357_v39 = vadd.f32 %v7237_v33, %v6317_v21 }
 0x4c9   :  { %6362 = vst [vmem:[#allocation2] sm:$0x3] %v6357_v39 }
 0x4ca   :  { %8568 = shalt.err (!%p8565_p4)
}
 0x4cb   :  { %s8569_s10 = scalar_lea.hbm %s11228_s5, 32 }
 0x4cc   :  { %p8570_p5 = scmp.ne.s32.totalorder %s11228_s5, %s8569_s10  ;;  %p8573_p6 = scmp.lt.u32.totalorder %s8569_s10, %s11228_s5 }
 0x4ce   :  { %p8575_p7 = pnand %p8573_p6, %p8570_p5 }
 0x4d0   :  { %8578 = shalt.err (!%p8575_p7)
}
 0x4d1   :  { %6372 = dma.vmem_to_hbm [thread:$0]  %s6370_s7, 32, %s11228_s5, [#allocation3]  }
 0x4d2   :  { %8579 = dma.done.wait [#allocation3], 32  }
 0x4d3   :  { %8580 = vsyncadd [#allocation3], 4294967264 }
 0x4d4   :  { %6376 = vsyncpa [#allocation3], 1 }

</bundles_post_ra>
